<compile_context>
chip_gen: v6e
topology: v6e:2x2x1
jax: 0.10.0
libtpu: 0.0.40
codegen_flags: <defaults>
</compile_context>

<pallas_src>
import functools

import jax
import jax.numpy as jnp
from jax.experimental import pallas as pl
from jax.experimental.pallas import tpu as pltpu

LRELU_SLOPE = 0.01          # torch default for nn.LeakyReLU / F.leaky_relu
BN_EPS = 1e-5               # torch default for nn.BatchNorm2d
CPAD = 128                  # lane-dense channel padding for conv outputs / trunk
COMPUTE_DTYPE = jnp.bfloat16
TARGET_TILE_PIXELS = 1024   # target matmul rows (th * W) per grid step
VMEM_BUDGET_BYTES = 20 * 1024 * 1024
VMEM_LIMIT_BYTES = 48 * 1024 * 1024   # > 16/32 MiB scoped defaults, < 64 MiB (v7x)


# ---------------------------------------------------------------------------
# Pallas kernel: fused (multi-input) conv + BN-affine + residual + LeakyReLU.
# ---------------------------------------------------------------------------
def _make_conv_kernel(n_inputs, ksize, th, w_cols, use_scale, use_res,
                      use_lrelu):
    """Kernel over one row-tile: accumulates k*k shifted dots per input."""

    def kernel(*refs):
        idx = 0
        x_refs = refs[idx:idx + n_inputs]; idx += n_inputs
        w_refs = refs[idx:idx + n_inputs]; idx += n_inputs
        scale_ref = None
        if use_scale:
            scale_ref = refs[idx]; idx += 1
        shift_ref = refs[idx]; idx += 1
        res_ref = None
        if use_res:
            res_ref = refs[idx]; idx += 1
        o_ref = refs[idx]

        acc = None
        for t in range(n_inputs):
            x = x_refs[t][...]            # (1, th+2p, W+2p, cin)  haloed tile
            w = w_refs[t][...]            # (k*k, cin, CPAD)
            cin = x.shape[-1]
            for kx in range(ksize):
                col = x[:, :, kx:kx + w_cols, :]          # column-shifted view
                for ky in range(ksize):
                    lhs = col[:, ky:ky + th, :, :].reshape(th * w_cols, cin)
                    part = jnp.dot(lhs, w[ky * ksize + kx],
                                   preferred_element_type=jnp.float32)
                    acc = part if acc is None else acc + part

        if use_scale:                                     # folded BN (+ bias)
            y = acc * scale_ref[...] + shift_ref[...]
        else:                                             # bias only
            y = acc + shift_ref[...]
        if use_res:
            y = y + res_ref[...].reshape(th * w_cols, CPAD).astype(jnp.float32)
        if use_lrelu:
            y = jnp.where(y >= 0, y, LRELU_SLOPE * y)
        o_ref[...] = y.reshape(1, th, w_cols, CPAD).astype(o_ref.dtype)

    return kernel


# ---------------------------------------------------------------------------
# Tiling helpers.
# ---------------------------------------------------------------------------
def _round_up(x, m):
    return ((x + m - 1) // m) * m


def _pick_row_tile(H, W, pad, cin_list, w_bytes, out_bytes, use_res):
    """Pick th (output rows per grid step) against a VMEM budget."""
    th = min(H, max(8, -(-TARGET_TILE_PIXELS // W)))

    def vmem_est(t):
        b = 0
        for c in cin_list:                                 # dbl-buffered inputs
            b += 2 * (t + 2 * pad) * (W + 2 * pad) * c * 2
        b += 2 * t * W * CPAD * out_bytes                  # dbl-buffered output
        if use_res:
            b += 2 * t * W * CPAD * 4                      # residual (<= f32)
        b += t * W * CPAD * 4                              # f32 accumulator
        b += 2 * t * W * max(cin_list) * 2                 # tap temporaries
        b += w_bytes                                       # resident weights
        return b

    while th > 1 and vmem_est(th) > VMEM_BUDGET_BYTES:
        th = max(1, th // 2)
    return th


# ---------------------------------------------------------------------------
# Fused Conv2d('same') [+BN(eval)] [+residual] [+LeakyReLU] wrapper.
# ---------------------------------------------------------------------------
def conv2d(inputs, weights, bias, *, ksize, bn=None, residual=None,
           lrelu=False, out_dtype=COMPUTE_DTYPE):
    """inputs: list of NHWC tensors (logical channel-concat); weights: list of
    (k,k,Cin_t,Cout) f32; returns (N,H,W,CPAD) with channels >= Cout zeroed."""
    N, H, W, _ = inputs[0].shape
    pad = (ksize - 1) // 2
    kk = ksize * ksize
    cin_list = [int(x.shape[-1]) for x in inputs]
    cout_true = int(bias.shape[0])
    assert cout_true <= CPAD

    # ---- fold bias (+ eval-mode BatchNorm) into per-channel scale/shift ----
    if bn is not None:
        gamma, beta, mean, var = bn
        scale_t = gamma / jnp.sqrt(var + BN_EPS)
        shift_t = beta - mean * scale_t + scale_t * bias
        scale = jnp.pad(scale_t, (0, CPAD - cout_true)).reshape(1, CPAD)
    else:
        scale = None
        shift_t = bias
    shift = jnp.pad(shift_t, (0, CPAD - cout_true)).reshape(1, CPAD)
    shift = shift.astype(jnp.float32)
    if scale is not None:
        scale = scale.astype(jnp.float32)

    # ---- pack weights: (k,k,Cin,Cout) -> (k*k, Cin_stored, CPAD) bf16 ----
    w_packed = []
    for x, w in zip(inputs, weights):
        cs = int(x.shape[-1])
        cin_t = int(w.shape[2])
        wk = w.reshape(kk, cin_t, cout_true)
        wk = jnp.pad(wk, ((0, 0), (0, cs - cin_t), (0, CPAD - cout_true)))
        w_packed.append(wk.astype(COMPUTE_DTYPE))
    w_bytes = sum(int(wp.size) * 2 for wp in w_packed)

    # ---- row-tile selection (pad H so the tile divides evenly) ----
    out_bytes = jnp.dtype(out_dtype).itemsize
    th = _pick_row_tile(H, W, pad, cin_list, w_bytes, out_bytes,
                        residual is not None)
    Hp = _round_up(H, th)
    nH = Hp // th

    # ---- build per-grid-step input tiles (halo rows/cols for 3x3) ----
    tiles = []
    for x in inputs:
        x = x.astype(COMPUTE_DTYPE)
        c = int(x.shape[-1])
        if pad == 0:
            if Hp != H:
                x = jnp.pad(x, ((0, 0), (0, Hp - H), (0, 0), (0, 0)))
            tiles.append(x.reshape(N * nH, th, W, c))
        else:
            xp = jnp.pad(x, ((0, 0), (pad, pad + Hp - H), (pad, pad), (0, 0)))
            if nH == 1:
                xh = xp.reshape(N, 1, Hp + 2 * pad, W + 2 * pad, c)
            else:
                rows = ((jnp.arange(nH) * th)[:, None]
                        + jnp.arange(th + 2 * pad)[None, :])
                xh = xp[:, rows]                  # (N, nH, th+2p, W+2p, c)
            tiles.append(xh.reshape(N * nH, th + 2 * pad, W + 2 * pad, c))

    res_tiles = None
    if residual is not None:
        r = residual
        if Hp != H:
            r = jnp.pad(r, ((0, 0), (0, Hp - H), (0, 0), (0, 0)))
        res_tiles = r.reshape(N * nH, th, W, CPAD)

    # ---- assemble pallas_call ----
    in_arrays, in_specs = [], []
    for xt in tiles:
        c = int(xt.shape[-1])
        in_arrays.append(xt)
        in_specs.append(pl.BlockSpec((1, th + 2 * pad, W + 2 * pad, c),
                                     lambda i: (i, 0, 0, 0)))
    for wp in w_packed:
        in_arrays.append(wp)
        in_specs.append(pl.BlockSpec(wp.shape, lambda i: (0, 0, 0)))
    if scale is not None:
        in_arrays.append(scale)
        in_specs.append(pl.BlockSpec((1, CPAD), lambda i: (0, 0)))
    in_arrays.append(shift)
    in_specs.append(pl.BlockSpec((1, CPAD), lambda i: (0, 0)))
    if res_tiles is not None:
        in_arrays.append(res_tiles)
        in_specs.append(pl.BlockSpec((1, th, W, CPAD), lambda i: (i, 0, 0, 0)))

    flops = 2 * (N * Hp * W) * CPAD * kk * sum(cin_list)
    bytes_acc = sum(int(a.size) * a.dtype.itemsize for a in in_arrays)
    bytes_acc += N * Hp * W * CPAD * out_bytes

    kernel = _make_conv_kernel(len(tiles), ksize, th, W,
                               scale is not None, res_tiles is not None, lrelu)
    out = pl.pallas_call(
        kernel,
        out_shape=jax.ShapeDtypeStruct((N * nH, th, W, CPAD), out_dtype),
        grid=(N * nH,),
        in_specs=in_specs,
        out_specs=pl.BlockSpec((1, th, W, CPAD), lambda i: (i, 0, 0, 0)),
        compiler_params=pltpu.CompilerParams(
            dimension_semantics=("parallel",),
            vmem_limit_bytes=VMEM_LIMIT_BYTES),
        cost_estimate=pl.CostEstimate(flops=int(flops), transcendentals=0,
                                      bytes_accessed=int(bytes_acc)),
    )(*in_arrays)

    out = out.reshape(N, Hp, W, CPAD)
    if Hp != H:
        out = out[:, :H]
    return out


# ---------------------------------------------------------------------------
# Deterministic synthetic parameters (no checkpoint).
# ---------------------------------------------------------------------------
def _conv_params(key, cin, cout, k):
    kw, kb = jax.random.split(key)
    fan_in = cin * k * k
    w = jax.random.normal(kw, (k, k, cin, cout), jnp.float32) / jnp.sqrt(fan_in)
    b = 0.1 * jax.random.normal(kb, (cout,), jnp.float32)
    return {"w": w, "b": b}


def _bn_params(key, c):
    k1, k2, k3, k4 = jax.random.split(key, 4)
    gamma = 1.0 + 0.1 * jax.random.normal(k1, (c,), jnp.float32)
    beta = 0.1 * jax.random.normal(k2, (c,), jnp.float32)
    mean = 0.1 * jax.random.normal(k3, (c,), jnp.float32)
    var = jnp.abs(jax.random.normal(k4, (c,), jnp.float32)) + 0.5
    return (gamma, beta, mean, var)


def init_residual_coder(key, data_depth, is_encoder, block_depth=64,
                        block_count=3):
    keys = jax.random.split(key, 2 + block_count)
    params = {"head": _conv_params(keys[0], 3, block_depth, 1)}
    depth = (block_depth + data_depth + 3) if is_encoder else (block_depth + 3)
    indepth = depth // 2
    blocks = []
    for i in range(block_count):
        bk = jax.random.split(keys[1 + i], 9)
        # c1 weight split to match the (un-concatenated) [image, inp, data]
        c1_w = [_conv_params(bk[0], 3, indepth, 1)["w"],
                _conv_params(bk[1], block_depth, indepth, 1)["w"]]
        if is_encoder:
            c1_w.append(_conv_params(bk[2], data_depth, indepth, 1)["w"])
        c1_b = 0.1 * jax.random.normal(bk[3], (indepth,), jnp.float32)
        blocks.append(dict(
            c1_w=c1_w, c1_b=c1_b,
            bn1=_bn_params(bk[4], indepth),
            c2=_conv_params(bk[5], indepth, indepth, 3),
            c3=_conv_params(bk[6], indepth, indepth, 3),
            bn2=_bn_params(bk[7], indepth),
            c4=_conv_params(bk[8], indepth, block_depth, 1),
        ))
    params["blocks"] = blocks
    out_channels = 3 if is_encoder else data_depth
    params["tail"] = _conv_params(keys[-1], block_depth, out_channels, 3)
    return params


# ---------------------------------------------------------------------------
# Forward pass (mirrors ResidualCoder.forward / DualBlock.forward).
# ---------------------------------------------------------------------------
def dual_block_forward(p, image_b16, x, data_b16, is_encoder):
    inputs = [image_b16, x, data_b16] if is_encoder else [image_b16, x]
    y = conv2d(inputs, p["c1_w"], p["c1_b"], ksize=1, bn=p["bn1"])     # 1x1+BN
    y = conv2d([y], [p["c2"]["w"]], p["c2"]["b"], ksize=3)             # 3x3
    y = conv2d([y], [p["c3"]["w"]], p["c3"]["b"], ksize=3,
               bn=p["bn2"], lrelu=True)                                # 3x3+BN+LReLU
    y = conv2d([y], [p["c4"]["w"]], p["c4"]["b"], ksize=1,
               residual=x, lrelu=True)                                 # 1x1 + inp + LReLU
    return y


def residual_coder_forward(params, image_nchw, data_nchw, is_encoder):
    image = jnp.transpose(image_nchw, (0, 2, 3, 1))   # NCHW -> NHWC
    data = jnp.transpose(data_nchw, (0, 2, 3, 1))
    image_b16 = image.astype(COMPUTE_DTYPE)
    data_b16 = data.astype(COMPUTE_DTYPE)

    x = conv2d([image_b16], [params["head"]["w"]], params["head"]["b"], ksize=1)
    for blk in params["blocks"]:
        x = dual_block_forward(blk, image_b16, x, data_b16, is_encoder)

    out_channels = 3 if is_encoder else int(data_nchw.shape[1])
    if is_encoder:
        # tail conv3x3 with fused "+ image" residual, f32 output
        image_res = jnp.pad(image, ((0, 0), (0, 0), (0, 0), (0, CPAD - 3)))
        y = conv2d([x], [params["tail"]["w"]], params["tail"]["b"], ksize=3,
                   residual=image_res, out_dtype=jnp.float32)
    else:
        y = conv2d([x], [params["tail"]["w"]], params["tail"]["b"], ksize=3,
                   out_dtype=jnp.float32)
    y = y[..., :out_channels]
    return jnp.transpose(y, (0, 3, 1, 2))             # back to NCHW


if __name__ == "__main__":
    key = jax.random.PRNGKey(0)
    k_img, k_data, k_params = jax.random.split(key, 3)

    N, H, W = 2, 16, 16
    data_depth = 4
    is_encoder = True

    image = jax.random.normal(k_img, (N, 3, H, W), jnp.float32)
    data = jax.random.normal(k_data, (N, data_depth, H, W), jnp.float32)
    params = init_residual_coder(k_params, data_depth, is_encoder)

    fwd = jax.jit(functools.partial(residual_coder_forward,
                                    is_encoder=is_encoder))
    out = fwd(params, image, data)
    jax.block_until_ready(out)

    expected_c = 3 if is_encoder else data_depth
    assert out.shape == (N, expected_c, H, W), out.shape
    assert out.dtype == jnp.float32
    assert bool(jnp.all(jnp.isfinite(out)))
    print("KERNEL_OK")
</pallas_src>

<mosaic_0001>
module attributes {stable_mosaic.version = 11 : i64} {
  func.func @kernel(%arg0: i32, %arg1: memref<1x16x16x3xbf16, #tpu.memory_space<vmem>>, %arg2: memref<1x3x128xbf16, #tpu.memory_space<vmem>>, %arg3: memref<1x128xf32, #tpu.memory_space<vmem>>, %arg4: memref<1x16x16x128xbf16, #tpu.memory_space<vmem>>) attributes {dimension_semantics = [#tpu.dimension_semantics<parallel>], iteration_bounds = array<i64: 2>, scalar_prefetch = 0 : i64, scratch_operands = 0 : i64, tpu.core_type = #tpu.core_type<tc>, window_params = [{transform_indices = @transform_0, window_bounds = array<i64: 1, 16, 16, 3>}, {pipeline_mode = #tpu.pipeline_mode<synchronous>, transform_indices = @transform_1, window_bounds = array<i64: 1, 3, 128>}, {pipeline_mode = #tpu.pipeline_mode<synchronous>, transform_indices = @transform_2, window_bounds = array<i64: 1, 128>}, {transform_indices = @transform_3, window_bounds = array<i64: 1, 16, 16, 128>}]} {
    %c0 = arith.constant 0 : index
    %c0_0 = arith.constant 0 : index
    %c0_1 = arith.constant 0 : index
    %c0_2 = arith.constant 0 : index
    %0 = vector.load %arg1[%c0, %c0_0, %c0_1, %c0_2] : memref<1x16x16x3xbf16, #tpu.memory_space<vmem>>, vector<1x16x16x3xbf16>
    %c0_3 = arith.constant 0 : index
    %c0_4 = arith.constant 0 : index
    %c0_5 = arith.constant 0 : index
    %1 = vector.load %arg2[%c0_3, %c0_4, %c0_5] : memref<1x3x128xbf16, #tpu.memory_space<vmem>>, vector<1x3x128xbf16>
    %2 = vector.shape_cast %0 : vector<1x16x16x3xbf16> to vector<256x3xbf16>
    %3 = vector.shape_cast %1 : vector<1x3x128xbf16> to vector<3x128xbf16>
    %cst = arith.constant dense<0.000000e+00> : vector<256x128xf32>
    %4 = tpu.matmul %2, %3, %cst {dimension_numbers = #tpu.dot_dimension_numbers<[1], [0], [0], [1], [0, 0, 1, 1], [], []>} : vector<256x3xbf16>, vector<3x128xbf16>, vector<256x128xf32> -> vector<256x128xf32>
    %c0_6 = arith.constant 0 : index
    %c0_7 = arith.constant 0 : index
    %5 = vector.load %arg3[%c0_6, %c0_7] : memref<1x128xf32, #tpu.memory_space<vmem>>, vector<1x128xf32>
    %6 = vector.broadcast %5 : vector<1x128xf32> to vector<256x128xf32>
    %7 = arith.addf %4, %6 : vector<256x128xf32>
    %8 = vector.shape_cast %7 : vector<256x128xf32> to vector<1x16x16x128xf32>
    %9 = arith.truncf %8 : vector<1x16x16x128xf32> to vector<1x16x16x128xbf16>
    %c0_8 = arith.constant 0 : index
    %c0_9 = arith.constant 0 : index
    %c0_10 = arith.constant 0 : index
    %c0_11 = arith.constant 0 : index
    %10 = vector.load %arg4[%c0_8, %c0_9, %c0_10, %c0_11] : memref<1x16x16x128xbf16, #tpu.memory_space<vmem>>, vector<1x16x16x128xbf16>
    tpu.vector_store %arg4[%c0_8, %c0_9, %c0_10, %c0_11], %9 {strides = array<i32>} : memref<1x16x16x128xbf16, #tpu.memory_space<vmem>>, vector<1x16x16x128xbf16>,
    return
  }
  func.func @transform_0(%arg0: i32) -> (i32, i32, i32, i32) {
    %c0_i32 = arith.constant 0 : i32
    %c0_i32_0 = arith.constant 0 : i32
    %c0_i32_1 = arith.constant 0 : i32
    %c0_i32_2 = arith.constant 0 : i32
    return %arg0, %c0_i32, %c0_i32_0, %c0_i32_1 : i32, i32, i32, i32
  }
  func.func @transform_1(%arg0: i32) -> (i32, i32, i32) {
    %c0_i32 = arith.constant 0 : i32
    %c0_i32_0 = arith.constant 0 : i32
    %c0_i32_1 = arith.constant 0 : i32
    %c0_i32_2 = arith.constant 0 : i32
    return %c0_i32, %c0_i32_0, %c0_i32_1 : i32, i32, i32
  }
  func.func @transform_2(%arg0: i32) -> (i32, i32) {
    %c0_i32 = arith.constant 0 : i32
    %c0_i32_0 = arith.constant 0 : i32
    %c0_i32_1 = arith.constant 0 : i32
    return %c0_i32, %c0_i32_0 : i32, i32
  }
  func.func @transform_3(%arg0: i32) -> (i32, i32, i32, i32) {
    %c0_i32 = arith.constant 0 : i32
    %c0_i32_0 = arith.constant 0 : i32
    %c0_i32_1 = arith.constant 0 : i32
    %c0_i32_2 = arith.constant 0 : i32
    return %arg0, %c0_i32, %c0_i32_0, %c0_i32_1 : i32, i32, i32, i32
  }
}

module attributes {stable_mosaic.version = 11 : i64} {
  func.func @kernel(%arg0: i32, %arg1: memref<1x16x16x3xbf16, #tpu.memory_space<vmem>>, %arg2: memref<1x16x16x128xbf16, #tpu.memory_space<vmem>>, %arg3: memref<1x16x16x4xbf16, #tpu.memory_space<vmem>>, %arg4: memref<1x3x128xbf16, #tpu.memory_space<vmem>>, %arg5: memref<1x128x128xbf16, #tpu.memory_space<vmem>>, %arg6: memref<1x4x128xbf16, #tpu.memory_space<vmem>>, %arg7: memref<1x128xf32, #tpu.memory_space<vmem>>, %arg8: memref<1x128xf32, #tpu.memory_space<vmem>>, %arg9: memref<1x16x16x128xbf16, #tpu.memory_space<vmem>>) attributes {dimension_semantics = [#tpu.dimension_semantics<parallel>], iteration_bounds = array<i64: 2>, scalar_prefetch = 0 : i64, scratch_operands = 0 : i64, tpu.core_type = #tpu.core_type<tc>, window_params = [{transform_indices = @transform_0, window_bounds = array<i64: 1, 16, 16, 3>}, {transform_indices = @transform_1, window_bounds = array<i64: 1, 16, 16, 128>}, {transform_indices = @transform_2, window_bounds = array<i64: 1, 16, 16, 4>}, {pipeline_mode = #tpu.pipeline_mode<synchronous>, transform_indices = @transform_3, window_bounds = array<i64: 1, 3, 128>}, {pipeline_mode = #tpu.pipeline_mode<synchronous>, transform_indices = @transform_4, window_bounds = array<i64: 1, 128, 128>}, {pipeline_mode = #tpu.pipeline_mode<synchronous>, transform_indices = @transform_5, window_bounds = array<i64: 1, 4, 128>}, {pipeline_mode = #tpu.pipeline_mode<synchronous>, transform_indices = @transform_6, window_bounds = array<i64: 1, 128>}, {pipeline_mode = #tpu.pipeline_mode<synchronous>, transform_indices = @transform_7, window_bounds = array<i64: 1, 128>}, {transform_indices = @transform_8, window_bounds = array<i64: 1, 16, 16, 128>}]} {
    %c0 = arith.constant 0 : index
    %c0_0 = arith.constant 0 : index
    %c0_1 = arith.constant 0 : index
    %c0_2 = arith.constant 0 : index
    %0 = vector.load %arg1[%c0, %c0_0, %c0_1, %c0_2] : memref<1x16x16x3xbf16, #tpu.memory_space<vmem>>, vector<1x16x16x3xbf16>
    %c0_3 = arith.constant 0 : index
    %c0_4 = arith.constant 0 : index
    %c0_5 = arith.constant 0 : index
    %1 = vector.load %arg4[%c0_3, %c0_4, %c0_5] : memref<1x3x128xbf16, #tpu.memory_space<vmem>>, vector<1x3x128xbf16>
    %2 = vector.shape_cast %0 : vector<1x16x16x3xbf16> to vector<256x3xbf16>
    %3 = vector.shape_cast %1 : vector<1x3x128xbf16> to vector<3x128xbf16>
    %cst = arith.constant dense<0.000000e+00> : vector<256x128xf32>
    %4 = tpu.matmul %2, %3, %cst {dimension_numbers = #tpu.dot_dimension_numbers<[1], [0], [0], [1], [0, 0, 1, 1], [], []>} : vector<256x3xbf16>, vector<3x128xbf16>, vector<256x128xf32> -> vector<256x128xf32>
    %c0_6 = arith.constant 0 : index
    %c0_7 = arith.constant 0 : index
    %c0_8 = arith.constant 0 : index
    %c0_9 = arith.constant 0 : index
    %5 = vector.load %arg2[%c0_6, %c0_7, %c0_8, %c0_9] : memref<1x16x16x128xbf16, #tpu.memory_space<vmem>>, vector<1x16x16x128xbf16>
    %c0_10 = arith.constant 0 : index
    %c0_11 = arith.constant 0 : index
    %c0_12 = arith.constant 0 : index
    %6 = vector.load %arg5[%c0_10, %c0_11, %c0_12] : memref<1x128x128xbf16, #tpu.memory_space<vmem>>, vector<1x128x128xbf16>
    %7 = vector.shape_cast %5 : vector<1x16x16x128xbf16> to vector<256x128xbf16>
    %8 = vector.shape_cast %6 : vector<1x128x128xbf16> to vector<128x128xbf16>
    %cst_13 = arith.constant dense<0.000000e+00> : vector<256x128xf32>
    %9 = tpu.matmul %7, %8, %cst_13 {dimension_numbers = #tpu.dot_dimension_numbers<[1], [0], [0], [1], [0, 0, 1, 1], [], []>} : vector<256x128xbf16>, vector<128x128xbf16>, vector<256x128xf32> -> vector<256x128xf32>
    %10 = arith.addf %4, %9 : vector<256x128xf32>
    %c0_14 = arith.constant 0 : index
    %c0_15 = arith.constant 0 : index
    %c0_16 = arith.constant 0 : index
    %c0_17 = arith.constant 0 : index
    %11 = vector.load %arg3[%c0_14, %c0_15, %c0_16, %c0_17] : memref<1x16x16x4xbf16, #tpu.memory_space<vmem>>, vector<1x16x16x4xbf16>
    %c0_18 = arith.constant 0 : index
    %c0_19 = arith.constant 0 : index
    %c0_20 = arith.constant 0 : index
    %12 = vector.load %arg6[%c0_18, %c0_19, %c0_20] : memref<1x4x128xbf16, #tpu.memory_space<vmem>>, vector<1x4x128xbf16>
    %13 = vector.shape_cast %11 : vector<1x16x16x4xbf16> to vector<256x4xbf16>
    %14 = vector.shape_cast %12 : vector<1x4x128xbf16> to vector<4x128xbf16>
    %cst_21 = arith.constant dense<0.000000e+00> : vector<256x128xf32>
    %15 = tpu.matmul %13, %14, %cst_21 {dimension_numbers = #tpu.dot_dimension_numbers<[1], [0], [0], [1], [0, 0, 1, 1], [], []>} : vector<256x4xbf16>, vector<4x128xbf16>, vector<256x128xf32> -> vector<256x128xf32>
    %16 = arith.addf %10, %15 : vector<256x128xf32>
    %c0_22 = arith.constant 0 : index
    %c0_23 = arith.constant 0 : index
    %17 = vector.load %arg7[%c0_22, %c0_23] : memref<1x128xf32, #tpu.memory_space<vmem>>, vector<1x128xf32>
    %18 = vector.broadcast %17 : vector<1x128xf32> to vector<256x128xf32>
    %19 = arith.mulf %16, %18 : vector<256x128xf32>
    %c0_24 = arith.constant 0 : index
    %c0_25 = arith.constant 0 : index
    %20 = vector.load %arg8[%c0_24, %c0_25] : memref<1x128xf32, #tpu.memory_space<vmem>>, vector<1x128xf32>
    %21 = vector.broadcast %20 : vector<1x128xf32> to vector<256x128xf32>
    %22 = arith.addf %19, %21 : vector<256x128xf32>
    %23 = vector.shape_cast %22 : vector<256x128xf32> to vector<1x16x16x128xf32>
    %24 = arith.truncf %23 : vector<1x16x16x128xf32> to vector<1x16x16x128xbf16>
    %c0_26 = arith.constant 0 : index
    %c0_27 = arith.constant 0 : index
    %c0_28 = arith.constant 0 : index
    %c0_29 = arith.constant 0 : index
    %25 = vector.load %arg9[%c0_26, %c0_27, %c0_28, %c0_29] : memref<1x16x16x128xbf16, #tpu.memory_space<vmem>>, vector<1x16x16x128xbf16>
    tpu.vector_store %arg9[%c0_26, %c0_27, %c0_28, %c0_29], %24 {strides = array<i32>} : memref<1x16x16x128xbf16, #tpu.memory_space<vmem>>, vector<1x16x16x128xbf16>,
    return
  }
  func.func @transform_0(%arg0: i32) -> (i32, i32, i32, i32) {
    %c0_i32 = arith.constant 0 : i32
    %c0_i32_0 = arith.constant 0 : i32
    %c0_i32_1 = arith.constant 0 : i32
    %c0_i32_2 = arith.constant 0 : i32
    return %arg0, %c0_i32, %c0_i32_0, %c0_i32_1 : i32, i32, i32, i32
  }
  func.func @transform_1(%arg0: i32) -> (i32, i32, i32, i32) {
    %c0_i32 = arith.constant 0 : i32
    %c0_i32_0 = arith.constant 0 : i32
    %c0_i32_1 = arith.constant 0 : i32
    %c0_i32_2 = arith.constant 0 : i32
    return %arg0, %c0_i32, %c0_i32_0, %c0_i32_1 : i32, i32, i32, i32
  }
  func.func @transform_2(%arg0: i32) -> (i32, i32, i32, i32) {
    %c0_i32 = arith.constant 0 : i32
    %c0_i32_0 = arith.constant 0 : i32
    %c0_i32_1 = arith.constant 0 : i32
    %c0_i32_2 = arith.constant 0 : i32
    return %arg0, %c0_i32, %c0_i32_0, %c0_i32_1 : i32, i32, i32, i32
  }
  func.func @transform_3(%arg0: i32) -> (i32, i32, i32) {
    %c0_i32 = arith.constant 0 : i32
    %c0_i32_0 = arith.constant 0 : i32
    %c0_i32_1 = arith.constant 0 : i32
    %c0_i32_2 = arith.constant 0 : i32
    return %c0_i32, %c0_i32_0, %c0_i32_1 : i32, i32, i32
  }
  func.func @transform_4(%arg0: i32) -> (i32, i32, i32) {
    %c0_i32 = arith.constant 0 : i32
    %c0_i32_0 = arith.constant 0 : i32
    %c0_i32_1 = arith.constant 0 : i32
    %c0_i32_2 = arith.constant 0 : i32
    return %c0_i32, %c0_i32_0, %c0_i32_1 : i32, i32, i32
  }
  func.func @transform_5(%arg0: i32) -> (i32, i32, i32) {
    %c0_i32 = arith.constant 0 : i32
    %c0_i32_0 = arith.constant 0 : i32
    %c0_i32_1 = arith.constant 0 : i32
    %c0_i32_2 = arith.constant 0 : i32
    return %c0_i32, %c0_i32_0, %c0_i32_1 : i32, i32, i32
  }
  func.func @transform_6(%arg0: i32) -> (i32, i32) {
    %c0_i32 = arith.constant 0 : i32
    %c0_i32_0 = arith.constant 0 : i32
    %c0_i32_1 = arith.constant 0 : i32
    return %c0_i32, %c0_i32_0 : i32, i32
  }
  func.func @transform_7(%arg0: i32) -> (i32, i32) {
    %c0_i32 = arith.constant 0 : i32
    %c0_i32_0 = arith.constant 0 : i32
    %c0_i32_1 = arith.constant 0 : i32
    return %c0_i32, %c0_i32_0 : i32, i32
  }
  func.func @transform_8(%arg0: i32) -> (i32, i32, i32, i32) {
    %c0_i32 = arith.constant 0 : i32
    %c0_i32_0 = arith.constant 0 : i32
    %c0_i32_1 = arith.constant 0 : i32
    %c0_i32_2 = arith.constant 0 : i32
    return %arg0, %c0_i32, %c0_i32_0, %c0_i32_1 : i32, i32, i32, i32
  }
}

module attributes {stable_mosaic.version = 11 : i64} {
  func.func @kernel(%arg0: i32, %arg1: memref<1x18x18x128xbf16, #tpu.memory_space<vmem>>, %arg2: memref<9x128x128xbf16, #tpu.memory_space<vmem>>, %arg3: memref<1x128xf32, #tpu.memory_space<vmem>>, %arg4: memref<1x16x16x128xbf16, #tpu.memory_space<vmem>>) attributes {dimension_semantics = [#tpu.dimension_semantics<parallel>], iteration_bounds = array<i64: 2>, scalar_prefetch = 0 : i64, scratch_operands = 0 : i64, tpu.core_type = #tpu.core_type<tc>, window_params = [{transform_indices = @transform_0, window_bounds = array<i64: 1, 18, 18, 128>}, {pipeline_mode = #tpu.pipeline_mode<synchronous>, transform_indices = @transform_1, window_bounds = array<i64: 9, 128, 128>}, {pipeline_mode = #tpu.pipeline_mode<synchronous>, transform_indices = @transform_2, window_bounds = array<i64: 1, 128>}, {transform_indices = @transform_3, window_bounds = array<i64: 1, 16, 16, 128>}]} {
    %c0 = arith.constant 0 : index
    %c0_0 = arith.constant 0 : index
    %c0_1 = arith.constant 0 : index
    %c0_2 = arith.constant 0 : index
    %0 = vector.load %arg1[%c0, %c0_0, %c0_1, %c0_2] : memref<1x18x18x128xbf16, #tpu.memory_space<vmem>>, vector<1x18x18x128xbf16>
    %c0_3 = arith.constant 0 : index
    %c0_4 = arith.constant 0 : index
    %c0_5 = arith.constant 0 : index
    %1 = vector.load %arg2[%c0_3, %c0_4, %c0_5] : memref<9x128x128xbf16, #tpu.memory_space<vmem>>, vector<9x128x128xbf16>
    %2 = vector.extract_strided_slice %0 {offsets = [0, 0, 0, 0], sizes = [1, 18, 16, 128], strides = [1, 1, 1, 1]} : vector<1x18x18x128xbf16> to vector<1x18x16x128xbf16>
    %3 = vector.extract_strided_slice %2 {offsets = [0, 0, 0, 0], sizes = [1, 16, 16, 128], strides = [1, 1, 1, 1]} : vector<1x18x16x128xbf16> to vector<1x16x16x128xbf16>
    %4 = vector.shape_cast %3 : vector<1x16x16x128xbf16> to vector<256x128xbf16>
    %5 = vector.extract_strided_slice %1 {offsets = [0, 0, 0], sizes = [1, 128, 128], strides = [1, 1, 1]} : vector<9x128x128xbf16> to vector<1x128x128xbf16>
    %6 = vector.shape_cast %5 : vector<1x128x128xbf16> to vector<128x128xbf16>
    %cst = arith.constant dense<0.000000e+00> : vector<256x128xf32>
    %7 = tpu.matmul %4, %6, %cst {dimension_numbers = #tpu.dot_dimension_numbers<[1], [0], [0], [1], [0, 0, 1, 1], [], []>} : vector<256x128xbf16>, vector<128x128xbf16>, vector<256x128xf32> -> vector<256x128xf32>
    %8 = vector.extract_strided_slice %2 {offsets = [0, 1, 0, 0], sizes = [1, 16, 16, 128], strides = [1, 1, 1, 1]} : vector<1x18x16x128xbf16> to vector<1x16x16x128xbf16>
    %9 = vector.shape_cast %8 : vector<1x16x16x128xbf16> to vector<256x128xbf16>
    %10 = vector.extract_strided_slice %1 {offsets = [3, 0, 0], sizes = [1, 128, 128], strides = [1, 1, 1]} : vector<9x128x128xbf16> to vector<1x128x128xbf16>
    %11 = vector.shape_cast %10 : vector<1x128x128xbf16> to vector<128x128xbf16>
    %cst_6 = arith.constant dense<0.000000e+00> : vector<256x128xf32>
    %12 = tpu.matmul %9, %11, %cst_6 {dimension_numbers = #tpu.dot_dimension_numbers<[1], [0], [0], [1], [0, 0, 1, 1], [], []>} : vector<256x128xbf16>, vector<128x128xbf16>, vector<256x128xf32> -> vector<256x128xf32>
    %13 = arith.addf %7, %12 : vector<256x128xf32>
    %14 = vector.extract_strided_slice %2 {offsets = [0, 2, 0, 0], sizes = [1, 16, 16, 128], strides = [1, 1, 1, 1]} : vector<1x18x16x128xbf16> to vector<1x16x16x128xbf16>
    %15 = vector.shape_cast %14 : vector<1x16x16x128xbf16> to vector<256x128xbf16>
    %16 = vector.extract_strided_slice %1 {offsets = [6, 0, 0], sizes = [1, 128, 128], strides = [1, 1, 1]} : vector<9x128x128xbf16> to vector<1x128x128xbf16>
    %17 = vector.shape_cast %16 : vector<1x128x128xbf16> to vector<128x128xbf16>
    %cst_7 = arith.constant dense<0.000000e+00> : vector<256x128xf32>
    %18 = tpu.matmul %15, %17, %cst_7 {dimension_numbers = #tpu.dot_dimension_numbers<[1], [0], [0], [1], [0, 0, 1, 1], [], []>} : vector<256x128xbf16>, vector<128x128xbf16>, vector<256x128xf32> -> vector<256x128xf32>
    %19 = arith.addf %13, %18 : vector<256x128xf32>
    %20 = vector.extract_strided_slice %0 {offsets = [0, 0, 1, 0], sizes = [1, 18, 16, 128], strides = [1, 1, 1, 1]} : vector<1x18x18x128xbf16> to vector<1x18x16x128xbf16>
    %21 = vector.extract_strided_slice %20 {offsets = [0, 0, 0, 0], sizes = [1, 16, 16, 128], strides = [1, 1, 1, 1]} : vector<1x18x16x128xbf16> to vector<1x16x16x128xbf16>
    %22 = vector.shape_cast %21 : vector<1x16x16x128xbf16> to vector<256x128xbf16>
    %23 = vector.extract_strided_slice %1 {offsets = [1, 0, 0], sizes = [1, 128, 128], strides = [1, 1, 1]} : vector<9x128x128xbf16> to vector<1x128x128xbf16>
    %24 = vector.shape_cast %23 : vector<1x128x128xbf16> to vector<128x128xbf16>
    %cst_8 = arith.constant dense<0.000000e+00> : vector<256x128xf32>
    %25 = tpu.matmul %22, %24, %cst_8 {dimension_numbers = #tpu.dot_dimension_numbers<[1], [0], [0], [1], [0, 0, 1, 1], [], []>} : vector<256x128xbf16>, vector<128x128xbf16>, vector<256x128xf32> -> vector<256x128xf32>
    %26 = arith.addf %19, %25 : vector<256x128xf32>
    %27 = vector.extract_strided_slice %20 {offsets = [0, 1, 0, 0], sizes = [1, 16, 16, 128], strides = [1, 1, 1, 1]} : vector<1x18x16x128xbf16> to vector<1x16x16x128xbf16>
    %28 = vector.shape_cast %27 : vector<1x16x16x128xbf16> to vector<256x128xbf16>
    %29 = vector.extract_strided_slice %1 {offsets = [4, 0, 0], sizes = [1, 128, 128], strides = [1, 1, 1]} : vector<9x128x128xbf16> to vector<1x128x128xbf16>
    %30 = vector.shape_cast %29 : vector<1x128x128xbf16> to vector<128x128xbf16>
    %cst_9 = arith.constant dense<0.000000e+00> : vector<256x128xf32>
    %31 = tpu.matmul %28, %30, %cst_9 {dimension_numbers = #tpu.dot_dimension_numbers<[1], [0], [0], [1], [0, 0, 1, 1], [], []>} : vector<256x128xbf16>, vector<128x128xbf16>, vector<256x128xf32> -> vector<256x128xf32>
    %32 = arith.addf %26, %31 : vector<256x128xf32>
    %33 = vector.extract_strided_slice %20 {offsets = [0, 2, 0, 0], sizes = [1, 16, 16, 128], strides = [1, 1, 1, 1]} : vector<1x18x16x128xbf16> to vector<1x16x16x128xbf16>
    %34 = vector.shape_cast %33 : vector<1x16x16x128xbf16> to vector<256x128xbf16>
    %35 = vector.extract_strided_slice %1 {offsets = [7, 0, 0], sizes = [1, 128, 128], strides = [1, 1, 1]} : vector<9x128x128xbf16> to vector<1x128x128xbf16>
    %36 = vector.shape_cast %35 : vector<1x128x128xbf16> to vector<128x128xbf16>
    %cst_10 = arith.constant dense<0.000000e+00> : vector<256x128xf32>
    %37 = tpu.matmul %34, %36, %cst_10 {dimension_numbers = #tpu.dot_dimension_numbers<[1], [0], [0], [1], [0, 0, 1, 1], [], []>} : vector<256x128xbf16>, vector<128x128xbf16>, vector<256x128xf32> -> vector<256x128xf32>
    %38 = arith.addf %32, %37 : vector<256x128xf32>
    %39 = vector.extract_strided_slice %0 {offsets = [0, 0, 2, 0], sizes = [1, 18, 16, 128], strides = [1, 1, 1, 1]} : vector<1x18x18x128xbf16> to vector<1x18x16x128xbf16>
    %40 = vector.extract_strided_slice %39 {offsets = [0, 0, 0, 0], sizes = [1, 16, 16, 128], strides = [1, 1, 1, 1]} : vector<1x18x16x128xbf16> to vector<1x16x16x128xbf16>
    %41 = vector.shape_cast %40 : vector<1x16x16x128xbf16> to vector<256x128xbf16>
    %42 = vector.extract_strided_slice %1 {offsets = [2, 0, 0], sizes = [1, 128, 128], strides = [1, 1, 1]} : vector<9x128x128xbf16> to vector<1x128x128xbf16>
    %43 = vector.shape_cast %42 : vector<1x128x128xbf16> to vector<128x128xbf16>
    %cst_11 = arith.constant dense<0.000000e+00> : vector<256x128xf32>
    %44 = tpu.matmul %41, %43, %cst_11 {dimension_numbers = #tpu.dot_dimension_numbers<[1], [0], [0], [1], [0, 0, 1, 1], [], []>} : vector<256x128xbf16>, vector<128x128xbf16>, vector<256x128xf32> -> vector<256x128xf32>
    %45 = arith.addf %38, %44 : vector<256x128xf32>
    %46 = vector.extract_strided_slice %39 {offsets = [0, 1, 0, 0], sizes = [1, 16, 16, 128], strides = [1, 1, 1, 1]} : vector<1x18x16x128xbf16> to vector<1x16x16x128xbf16>
    %47 = vector.shape_cast %46 : vector<1x16x16x128xbf16> to vector<256x128xbf16>
    %48 = vector.extract_strided_slice %1 {offsets = [5, 0, 0], sizes = [1, 128, 128], strides = [1, 1, 1]} : vector<9x128x128xbf16> to vector<1x128x128xbf16>
    %49 = vector.shape_cast %48 : vector<1x128x128xbf16> to vector<128x128xbf16>
    %cst_12 = arith.constant dense<0.000000e+00> : vector<256x128xf32>
    %50 = tpu.matmul %47, %49, %cst_12 {dimension_numbers = #tpu.dot_dimension_numbers<[1], [0], [0], [1], [0, 0, 1, 1], [], []>} : vector<256x128xbf16>, vector<128x128xbf16>, vector<256x128xf32> -> vector<256x128xf32>
    %51 = arith.addf %45, %50 : vector<256x128xf32>
    %52 = vector.extract_strided_slice %39 {offsets = [0, 2, 0, 0], sizes = [1, 16, 16, 128], strides = [1, 1, 1, 1]} : vector<1x18x16x128xbf16> to vector<1x16x16x128xbf16>
    %53 = vector.shape_cast %52 : vector<1x16x16x128xbf16> to vector<256x128xbf16>
    %54 = vector.extract_strided_slice %1 {offsets = [8, 0, 0], sizes = [1, 128, 128], strides = [1, 1, 1]} : vector<9x128x128xbf16> to vector<1x128x128xbf16>
    %55 = vector.shape_cast %54 : vector<1x128x128xbf16> to vector<128x128xbf16>
    %cst_13 = arith.constant dense<0.000000e+00> : vector<256x128xf32>
    %56 = tpu.matmul %53, %55, %cst_13 {dimension_numbers = #tpu.dot_dimension_numbers<[1], [0], [0], [1], [0, 0, 1, 1], [], []>} : vector<256x128xbf16>, vector<128x128xbf16>, vector<256x128xf32> -> vector<256x128xf32>
    %57 = arith.addf %51, %56 : vector<256x128xf32>
    %c0_14 = arith.constant 0 : index
    %c0_15 = arith.constant 0 : index
    %58 = vector.load %arg3[%c0_14, %c0_15] : memref<1x128xf32, #tpu.memory_space<vmem>>, vector<1x128xf32>
    %59 = vector.broadcast %58 : vector<1x128xf32> to vector<256x128xf32>
    %60 = arith.addf %57, %59 : vector<256x128xf32>
    %61 = vector.shape_cast %60 : vector<256x128xf32> to vector<1x16x16x128xf32>
    %62 = arith.truncf %61 : vector<1x16x16x128xf32> to vector<1x16x16x128xbf16>
    %c0_16 = arith.constant 0 : index
    %c0_17 = arith.constant 0 : index
    %c0_18 = arith.constant 0 : index
    %c0_19 = arith.constant 0 : index
    %63 = vector.load %arg4[%c0_16, %c0_17, %c0_18, %c0_19] : memref<1x16x16x128xbf16, #tpu.memory_space<vmem>>, vector<1x16x16x128xbf16>
    tpu.vector_store %arg4[%c0_16, %c0_17, %c0_18, %c0_19], %62 {strides = array<i32>} : memref<1x16x16x128xbf16, #tpu.memory_space<vmem>>, vector<1x16x16x128xbf16>,
    return
  }
  func.func @transform_0(%arg0: i32) -> (i32, i32, i32, i32) {
    %c0_i32 = arith.constant 0 : i32
    %c0_i32_0 = arith.constant 0 : i32
    %c0_i32_1 = arith.constant 0 : i32
    %c0_i32_2 = arith.constant 0 : i32
    return %arg0, %c0_i32, %c0_i32_0, %c0_i32_1 : i32, i32, i32, i32
  }
  func.func @transform_1(%arg0: i32) -> (i32, i32, i32) {
    %c0_i32 = arith.constant 0 : i32
    %c0_i32_0 = arith.constant 0 : i32
    %c0_i32_1 = arith.constant 0 : i32
    %c0_i32_2 = arith.constant 0 : i32
    return %c0_i32, %c0_i32_0, %c0_i32_1 : i32, i32, i32
  }
  func.func @transform_2(%arg0: i32) -> (i32, i32) {
    %c0_i32 = arith.constant 0 : i32
    %c0_i32_0 = arith.constant 0 : i32
    %c0_i32_1 = arith.constant 0 : i32
    return %c0_i32, %c0_i32_0 : i32, i32
  }
  func.func @transform_3(%arg0: i32) -> (i32, i32, i32, i32) {
    %c0_i32 = arith.constant 0 : i32
    %c0_i32_0 = arith.constant 0 : i32
    %c0_i32_1 = arith.constant 0 : i32
    %c0_i32_2 = arith.constant 0 : i32
    return %arg0, %c0_i32, %c0_i32_0, %c0_i32_1 : i32, i32, i32, i32
  }
}

module attributes {stable_mosaic.version = 11 : i64} {
  func.func @kernel(%arg0: i32, %arg1: memref<1x18x18x128xbf16, #tpu.memory_space<vmem>>, %arg2: memref<9x128x128xbf16, #tpu.memory_space<vmem>>, %arg3: memref<1x128xf32, #tpu.memory_space<vmem>>, %arg4: memref<1x128xf32, #tpu.memory_space<vmem>>, %arg5: memref<1x16x16x128xbf16, #tpu.memory_space<vmem>>) attributes {dimension_semantics = [#tpu.dimension_semantics<parallel>], iteration_bounds = array<i64: 2>, scalar_prefetch = 0 : i64, scratch_operands = 0 : i64, tpu.core_type = #tpu.core_type<tc>, window_params = [{transform_indices = @transform_0, window_bounds = array<i64: 1, 18, 18, 128>}, {pipeline_mode = #tpu.pipeline_mode<synchronous>, transform_indices = @transform_1, window_bounds = array<i64: 9, 128, 128>}, {pipeline_mode = #tpu.pipeline_mode<synchronous>, transform_indices = @transform_2, window_bounds = array<i64: 1, 128>}, {pipeline_mode = #tpu.pipeline_mode<synchronous>, transform_indices = @transform_3, window_bounds = array<i64: 1, 128>}, {transform_indices = @transform_4, window_bounds = array<i64: 1, 16, 16, 128>}]} {
    %c0 = arith.constant 0 : index
    %c0_0 = arith.constant 0 : index
    %c0_1 = arith.constant 0 : index
    %c0_2 = arith.constant 0 : index
    %0 = vector.load %arg1[%c0, %c0_0, %c0_1, %c0_2] : memref<1x18x18x128xbf16, #tpu.memory_space<vmem>>, vector<1x18x18x128xbf16>
    %c0_3 = arith.constant 0 : index
    %c0_4 = arith.constant 0 : index
    %c0_5 = arith.constant 0 : index
    %1 = vector.load %arg2[%c0_3, %c0_4, %c0_5] : memref<9x128x128xbf16, #tpu.memory_space<vmem>>, vector<9x128x128xbf16>
    %2 = vector.extract_strided_slice %0 {offsets = [0, 0, 0, 0], sizes = [1, 18, 16, 128], strides = [1, 1, 1, 1]} : vector<1x18x18x128xbf16> to vector<1x18x16x128xbf16>
    %3 = vector.extract_strided_slice %2 {offsets = [0, 0, 0, 0], sizes = [1, 16, 16, 128], strides = [1, 1, 1, 1]} : vector<1x18x16x128xbf16> to vector<1x16x16x128xbf16>
    %4 = vector.shape_cast %3 : vector<1x16x16x128xbf16> to vector<256x128xbf16>
    %5 = vector.extract_strided_slice %1 {offsets = [0, 0, 0], sizes = [1, 128, 128], strides = [1, 1, 1]} : vector<9x128x128xbf16> to vector<1x128x128xbf16>
    %6 = vector.shape_cast %5 : vector<1x128x128xbf16> to vector<128x128xbf16>
    %cst = arith.constant dense<0.000000e+00> : vector<256x128xf32>
    %7 = tpu.matmul %4, %6, %cst {dimension_numbers = #tpu.dot_dimension_numbers<[1], [0], [0], [1], [0, 0, 1, 1], [], []>} : vector<256x128xbf16>, vector<128x128xbf16>, vector<256x128xf32> -> vector<256x128xf32>
    %8 = vector.extract_strided_slice %2 {offsets = [0, 1, 0, 0], sizes = [1, 16, 16, 128], strides = [1, 1, 1, 1]} : vector<1x18x16x128xbf16> to vector<1x16x16x128xbf16>
    %9 = vector.shape_cast %8 : vector<1x16x16x128xbf16> to vector<256x128xbf16>
    %10 = vector.extract_strided_slice %1 {offsets = [3, 0, 0], sizes = [1, 128, 128], strides = [1, 1, 1]} : vector<9x128x128xbf16> to vector<1x128x128xbf16>
    %11 = vector.shape_cast %10 : vector<1x128x128xbf16> to vector<128x128xbf16>
    %cst_6 = arith.constant dense<0.000000e+00> : vector<256x128xf32>
    %12 = tpu.matmul %9, %11, %cst_6 {dimension_numbers = #tpu.dot_dimension_numbers<[1], [0], [0], [1], [0, 0, 1, 1], [], []>} : vector<256x128xbf16>, vector<128x128xbf16>, vector<256x128xf32> -> vector<256x128xf32>
    %13 = arith.addf %7, %12 : vector<256x128xf32>
    %14 = vector.extract_strided_slice %2 {offsets = [0, 2, 0, 0], sizes = [1, 16, 16, 128], strides = [1, 1, 1, 1]} : vector<1x18x16x128xbf16> to vector<1x16x16x128xbf16>
    %15 = vector.shape_cast %14 : vector<1x16x16x128xbf16> to vector<256x128xbf16>
    %16 = vector.extract_strided_slice %1 {offsets = [6, 0, 0], sizes = [1, 128, 128], strides = [1, 1, 1]} : vector<9x128x128xbf16> to vector<1x128x128xbf16>
    %17 = vector.shape_cast %16 : vector<1x128x128xbf16> to vector<128x128xbf16>
    %cst_7 = arith.constant dense<0.000000e+00> : vector<256x128xf32>
    %18 = tpu.matmul %15, %17, %cst_7 {dimension_numbers = #tpu.dot_dimension_numbers<[1], [0], [0], [1], [0, 0, 1, 1], [], []>} : vector<256x128xbf16>, vector<128x128xbf16>, vector<256x128xf32> -> vector<256x128xf32>
    %19 = arith.addf %13, %18 : vector<256x128xf32>
    %20 = vector.extract_strided_slice %0 {offsets = [0, 0, 1, 0], sizes = [1, 18, 16, 128], strides = [1, 1, 1, 1]} : vector<1x18x18x128xbf16> to vector<1x18x16x128xbf16>
    %21 = vector.extract_strided_slice %20 {offsets = [0, 0, 0, 0], sizes = [1, 16, 16, 128], strides = [1, 1, 1, 1]} : vector<1x18x16x128xbf16> to vector<1x16x16x128xbf16>
    %22 = vector.shape_cast %21 : vector<1x16x16x128xbf16> to vector<256x128xbf16>
    %23 = vector.extract_strided_slice %1 {offsets = [1, 0, 0], sizes = [1, 128, 128], strides = [1, 1, 1]} : vector<9x128x128xbf16> to vector<1x128x128xbf16>
    %24 = vector.shape_cast %23 : vector<1x128x128xbf16> to vector<128x128xbf16>
    %cst_8 = arith.constant dense<0.000000e+00> : vector<256x128xf32>
    %25 = tpu.matmul %22, %24, %cst_8 {dimension_numbers = #tpu.dot_dimension_numbers<[1], [0], [0], [1], [0, 0, 1, 1], [], []>} : vector<256x128xbf16>, vector<128x128xbf16>, vector<256x128xf32> -> vector<256x128xf32>
    %26 = arith.addf %19, %25 : vector<256x128xf32>
    %27 = vector.extract_strided_slice %20 {offsets = [0, 1, 0, 0], sizes = [1, 16, 16, 128], strides = [1, 1, 1, 1]} : vector<1x18x16x128xbf16> to vector<1x16x16x128xbf16>
    %28 = vector.shape_cast %27 : vector<1x16x16x128xbf16> to vector<256x128xbf16>
    %29 = vector.extract_strided_slice %1 {offsets = [4, 0, 0], sizes = [1, 128, 128], strides = [1, 1, 1]} : vector<9x128x128xbf16> to vector<1x128x128xbf16>
    %30 = vector.shape_cast %29 : vector<1x128x128xbf16> to vector<128x128xbf16>
    %cst_9 = arith.constant dense<0.000000e+00> : vector<256x128xf32>
    %31 = tpu.matmul %28, %30, %cst_9 {dimension_numbers = #tpu.dot_dimension_numbers<[1], [0], [0], [1], [0, 0, 1, 1], [], []>} : vector<256x128xbf16>, vector<128x128xbf16>, vector<256x128xf32> -> vector<256x128xf32>
    %32 = arith.addf %26, %31 : vector<256x128xf32>
    %33 = vector.extract_strided_slice %20 {offsets = [0, 2, 0, 0], sizes = [1, 16, 16, 128], strides = [1, 1, 1, 1]} : vector<1x18x16x128xbf16> to vector<1x16x16x128xbf16>
    %34 = vector.shape_cast %33 : vector<1x16x16x128xbf16> to vector<256x128xbf16>
    %35 = vector.extract_strided_slice %1 {offsets = [7, 0, 0], sizes = [1, 128, 128], strides = [1, 1, 1]} : vector<9x128x128xbf16> to vector<1x128x128xbf16>
    %36 = vector.shape_cast %35 : vector<1x128x128xbf16> to vector<128x128xbf16>
    %cst_10 = arith.constant dense<0.000000e+00> : vector<256x128xf32>
    %37 = tpu.matmul %34, %36, %cst_10 {dimension_numbers = #tpu.dot_dimension_numbers<[1], [0], [0], [1], [0, 0, 1, 1], [], []>} : vector<256x128xbf16>, vector<128x128xbf16>, vector<256x128xf32> -> vector<256x128xf32>
    %38 = arith.addf %32, %37 : vector<256x128xf32>
    %39 = vector.extract_strided_slice %0 {offsets = [0, 0, 2, 0], sizes = [1, 18, 16, 128], strides = [1, 1, 1, 1]} : vector<1x18x18x128xbf16> to vector<1x18x16x128xbf16>
    %40 = vector.extract_strided_slice %39 {offsets = [0, 0, 0, 0], sizes = [1, 16, 16, 128], strides = [1, 1, 1, 1]} : vector<1x18x16x128xbf16> to vector<1x16x16x128xbf16>
    %41 = vector.shape_cast %40 : vector<1x16x16x128xbf16> to vector<256x128xbf16>
    %42 = vector.extract_strided_slice %1 {offsets = [2, 0, 0], sizes = [1, 128, 128], strides = [1, 1, 1]} : vector<9x128x128xbf16> to vector<1x128x128xbf16>
    %43 = vector.shape_cast %42 : vector<1x128x128xbf16> to vector<128x128xbf16>
    %cst_11 = arith.constant dense<0.000000e+00> : vector<256x128xf32>
    %44 = tpu.matmul %41, %43, %cst_11 {dimension_numbers = #tpu.dot_dimension_numbers<[1], [0], [0], [1], [0, 0, 1, 1], [], []>} : vector<256x128xbf16>, vector<128x128xbf16>, vector<256x128xf32> -> vector<256x128xf32>
    %45 = arith.addf %38, %44 : vector<256x128xf32>
    %46 = vector.extract_strided_slice %39 {offsets = [0, 1, 0, 0], sizes = [1, 16, 16, 128], strides = [1, 1, 1, 1]} : vector<1x18x16x128xbf16> to vector<1x16x16x128xbf16>
    %47 = vector.shape_cast %46 : vector<1x16x16x128xbf16> to vector<256x128xbf16>
    %48 = vector.extract_strided_slice %1 {offsets = [5, 0, 0], sizes = [1, 128, 128], strides = [1, 1, 1]} : vector<9x128x128xbf16> to vector<1x128x128xbf16>
    %49 = vector.shape_cast %48 : vector<1x128x128xbf16> to vector<128x128xbf16>
    %cst_12 = arith.constant dense<0.000000e+00> : vector<256x128xf32>
    %50 = tpu.matmul %47, %49, %cst_12 {dimension_numbers = #tpu.dot_dimension_numbers<[1], [0], [0], [1], [0, 0, 1, 1], [], []>} : vector<256x128xbf16>, vector<128x128xbf16>, vector<256x128xf32> -> vector<256x128xf32>
    %51 = arith.addf %45, %50 : vector<256x128xf32>
    %52 = vector.extract_strided_slice %39 {offsets = [0, 2, 0, 0], sizes = [1, 16, 16, 128], strides = [1, 1, 1, 1]} : vector<1x18x16x128xbf16> to vector<1x16x16x128xbf16>
    %53 = vector.shape_cast %52 : vector<1x16x16x128xbf16> to vector<256x128xbf16>
    %54 = vector.extract_strided_slice %1 {offsets = [8, 0, 0], sizes = [1, 128, 128], strides = [1, 1, 1]} : vector<9x128x128xbf16> to vector<1x128x128xbf16>
    %55 = vector.shape_cast %54 : vector<1x128x128xbf16> to vector<128x128xbf16>
    %cst_13 = arith.constant dense<0.000000e+00> : vector<256x128xf32>
    %56 = tpu.matmul %53, %55, %cst_13 {dimension_numbers = #tpu.dot_dimension_numbers<[1], [0], [0], [1], [0, 0, 1, 1], [], []>} : vector<256x128xbf16>, vector<128x128xbf16>, vector<256x128xf32> -> vector<256x128xf32>
    %57 = arith.addf %51, %56 : vector<256x128xf32>
    %c0_14 = arith.constant 0 : index
    %c0_15 = arith.constant 0 : index
    %58 = vector.load %arg3[%c0_14, %c0_15] : memref<1x128xf32, #tpu.memory_space<vmem>>, vector<1x128xf32>
    %59 = vector.broadcast %58 : vector<1x128xf32> to vector<256x128xf32>
    %60 = arith.mulf %57, %59 : vector<256x128xf32>
    %c0_16 = arith.constant 0 : index
    %c0_17 = arith.constant 0 : index
    %61 = vector.load %arg4[%c0_16, %c0_17] : memref<1x128xf32, #tpu.memory_space<vmem>>, vector<1x128xf32>
    %62 = vector.broadcast %61 : vector<1x128xf32> to vector<256x128xf32>
    %63 = arith.addf %60, %62 : vector<256x128xf32>
    %cst_18 = arith.constant 0.000000e+00 : f32
    %64 = vector.broadcast %cst_18 : f32 to vector<256x128xf32>
    %65 = arith.cmpf oge, %63, %64 : vector<256x128xf32>
    %cst_19 = arith.constant 0.00999999977 : f32
    %66 = vector.broadcast %cst_19 : f32 to vector<256x128xf32>
    %67 = arith.mulf %66, %63 : vector<256x128xf32>
    %68 = arith.select %65, %63, %67 : vector<256x128xi1>, vector<256x128xf32>
    %69 = vector.shape_cast %68 : vector<256x128xf32> to vector<1x16x16x128xf32>
    %70 = arith.truncf %69 : vector<1x16x16x128xf32> to vector<1x16x16x128xbf16>
    %c0_20 = arith.constant 0 : index
    %c0_21 = arith.constant 0 : index
    %c0_22 = arith.constant 0 : index
    %c0_23 = arith.constant 0 : index
    %71 = vector.load %arg5[%c0_20, %c0_21, %c0_22, %c0_23] : memref<1x16x16x128xbf16, #tpu.memory_space<vmem>>, vector<1x16x16x128xbf16>
    tpu.vector_store %arg5[%c0_20, %c0_21, %c0_22, %c0_23], %70 {strides = array<i32>} : memref<1x16x16x128xbf16, #tpu.memory_space<vmem>>, vector<1x16x16x128xbf16>,
    return
  }
  func.func @transform_0(%arg0: i32) -> (i32, i32, i32, i32) {
    %c0_i32 = arith.constant 0 : i32
    %c0_i32_0 = arith.constant 0 : i32
    %c0_i32_1 = arith.constant 0 : i32
    %c0_i32_2 = arith.constant 0 : i32
    return %arg0, %c0_i32, %c0_i32_0, %c0_i32_1 : i32, i32, i32, i32
  }
  func.func @transform_1(%arg0: i32) -> (i32, i32, i32) {
    %c0_i32 = arith.constant 0 : i32
    %c0_i32_0 = arith.constant 0 : i32
    %c0_i32_1 = arith.constant 0 : i32
    %c0_i32_2 = arith.constant 0 : i32
    return %c0_i32, %c0_i32_0, %c0_i32_1 : i32, i32, i32
  }
  func.func @transform_2(%arg0: i32) -> (i32, i32) {
    %c0_i32 = arith.constant 0 : i32
    %c0_i32_0 = arith.constant 0 : i32
    %c0_i32_1 = arith.constant 0 : i32
    return %c0_i32, %c0_i32_0 : i32, i32
  }
  func.func @transform_3(%arg0: i32) -> (i32, i32) {
    %c0_i32 = arith.constant 0 : i32
    %c0_i32_0 = arith.constant 0 : i32
    %c0_i32_1 = arith.constant 0 : i32
    return %c0_i32, %c0_i32_0 : i32, i32
  }
  func.func @transform_4(%arg0: i32) -> (i32, i32, i32, i32) {
    %c0_i32 = arith.constant 0 : i32
    %c0_i32_0 = arith.constant 0 : i32
    %c0_i32_1 = arith.constant 0 : i32
    %c0_i32_2 = arith.constant 0 : i32
    return %arg0, %c0_i32, %c0_i32_0, %c0_i32_1 : i32, i32, i32, i32
  }
}

module attributes {stable_mosaic.version = 11 : i64} {
  func.func @kernel(%arg0: i32, %arg1: memref<1x16x16x128xbf16, #tpu.memory_space<vmem>>, %arg2: memref<1x128x128xbf16, #tpu.memory_space<vmem>>, %arg3: memref<1x128xf32, #tpu.memory_space<vmem>>, %arg4: memref<1x16x16x128xbf16, #tpu.memory_space<vmem>>, %arg5: memref<1x16x16x128xbf16, #tpu.memory_space<vmem>>) attributes {dimension_semantics = [#tpu.dimension_semantics<parallel>], iteration_bounds = array<i64: 2>, scalar_prefetch = 0 : i64, scratch_operands = 0 : i64, tpu.core_type = #tpu.core_type<tc>, window_params = [{transform_indices = @transform_0, window_bounds = array<i64: 1, 16, 16, 128>}, {pipeline_mode = #tpu.pipeline_mode<synchronous>, transform_indices = @transform_1, window_bounds = array<i64: 1, 128, 128>}, {pipeline_mode = #tpu.pipeline_mode<synchronous>, transform_indices = @transform_2, window_bounds = array<i64: 1, 128>}, {transform_indices = @transform_3, window_bounds = array<i64: 1, 16, 16, 128>}, {transform_indices = @transform_4, window_bounds = array<i64: 1, 16, 16, 128>}]} {
    %c0 = arith.constant 0 : index
    %c0_0 = arith.constant 0 : index
    %c0_1 = arith.constant 0 : index
    %c0_2 = arith.constant 0 : index
    %0 = vector.load %arg1[%c0, %c0_0, %c0_1, %c0_2] : memref<1x16x16x128xbf16, #tpu.memory_space<vmem>>, vector<1x16x16x128xbf16>
    %c0_3 = arith.constant 0 : index
    %c0_4 = arith.constant 0 : index
    %c0_5 = arith.constant 0 : index
    %1 = vector.load %arg2[%c0_3, %c0_4, %c0_5] : memref<1x128x128xbf16, #tpu.memory_space<vmem>>, vector<1x128x128xbf16>
    %2 = vector.shape_cast %0 : vector<1x16x16x128xbf16> to vector<256x128xbf16>
    %3 = vector.shape_cast %1 : vector<1x128x128xbf16> to vector<128x128xbf16>
    %cst = arith.constant dense<0.000000e+00> : vector<256x128xf32>
    %4 = tpu.matmul %2, %3, %cst {dimension_numbers = #tpu.dot_dimension_numbers<[1], [0], [0], [1], [0, 0, 1, 1], [], []>} : vector<256x128xbf16>, vector<128x128xbf16>, vector<256x128xf32> -> vector<256x128xf32>
    %c0_6 = arith.constant 0 : index
    %c0_7 = arith.constant 0 : index
    %5 = vector.load %arg3[%c0_6, %c0_7] : memref<1x128xf32, #tpu.memory_space<vmem>>, vector<1x128xf32>
    %6 = vector.broadcast %5 : vector<1x128xf32> to vector<256x128xf32>
    %7 = arith.addf %4, %6 : vector<256x128xf32>
    %c0_8 = arith.constant 0 : index
    %c0_9 = arith.constant 0 : index
    %c0_10 = arith.constant 0 : index
    %c0_11 = arith.constant 0 : index
    %8 = vector.load %arg4[%c0_8, %c0_9, %c0_10, %c0_11] : memref<1x16x16x128xbf16, #tpu.memory_space<vmem>>, vector<1x16x16x128xbf16>
    %9 = vector.shape_cast %8 : vector<1x16x16x128xbf16> to vector<256x128xbf16>
    %10 = arith.extf %9 : vector<256x128xbf16> to vector<256x128xf32>
    %11 = arith.addf %7, %10 : vector<256x128xf32>
    %cst_12 = arith.constant 0.000000e+00 : f32
    %12 = vector.broadcast %cst_12 : f32 to vector<256x128xf32>
    %13 = arith.cmpf oge, %11, %12 : vector<256x128xf32>
    %cst_13 = arith.constant 0.00999999977 : f32
    %14 = vector.broadcast %cst_13 : f32 to vector<256x128xf32>
    %15 = arith.mulf %14, %11 : vector<256x128xf32>
    %16 = arith.select %13, %11, %15 : vector<256x128xi1>, vector<256x128xf32>
    %17 = vector.shape_cast %16 : vector<256x128xf32> to vector<1x16x16x128xf32>
    %18 = arith.truncf %17 : vector<1x16x16x128xf32> to vector<1x16x16x128xbf16>
    %c0_14 = arith.constant 0 : index
    %c0_15 = arith.constant 0 : index
    %c0_16 = arith.constant 0 : index
    %c0_17 = arith.constant 0 : index
    %19 = vector.load %arg5[%c0_14, %c0_15, %c0_16, %c0_17] : memref<1x16x16x128xbf16, #tpu.memory_space<vmem>>, vector<1x16x16x128xbf16>
    tpu.vector_store %arg5[%c0_14, %c0_15, %c0_16, %c0_17], %18 {strides = array<i32>} : memref<1x16x16x128xbf16, #tpu.memory_space<vmem>>, vector<1x16x16x128xbf16>,
    return
  }
  func.func @transform_0(%arg0: i32) -> (i32, i32, i32, i32) {
    %c0_i32 = arith.constant 0 : i32
    %c0_i32_0 = arith.constant 0 : i32
    %c0_i32_1 = arith.constant 0 : i32
    %c0_i32_2 = arith.constant 0 : i32
    return %arg0, %c0_i32, %c0_i32_0, %c0_i32_1 : i32, i32, i32, i32
  }
  func.func @transform_1(%arg0: i32) -> (i32, i32, i32) {
    %c0_i32 = arith.constant 0 : i32
    %c0_i32_0 = arith.constant 0 : i32
    %c0_i32_1 = arith.constant 0 : i32
    %c0_i32_2 = arith.constant 0 : i32
    return %c0_i32, %c0_i32_0, %c0_i32_1 : i32, i32, i32
  }
  func.func @transform_2(%arg0: i32) -> (i32, i32) {
    %c0_i32 = arith.constant 0 : i32
    %c0_i32_0 = arith.constant 0 : i32
    %c0_i32_1 = arith.constant 0 : i32
    return %c0_i32, %c0_i32_0 : i32, i32
  }
  func.func @transform_3(%arg0: i32) -> (i32, i32, i32, i32) {
    %c0_i32 = arith.constant 0 : i32
    %c0_i32_0 = arith.constant 0 : i32
    %c0_i32_1 = arith.constant 0 : i32
    %c0_i32_2 = arith.constant 0 : i32
    return %arg0, %c0_i32, %c0_i32_0, %c0_i32_1 : i32, i32, i32, i32
  }
  func.func @transform_4(%arg0: i32) -> (i32, i32, i32, i32) {
    %c0_i32 = arith.constant 0 : i32
    %c0_i32_0 = arith.constant 0 : i32
    %c0_i32_1 = arith.constant 0 : i32
    %c0_i32_2 = arith.constant 0 : i32
    return %arg0, %c0_i32, %c0_i32_0, %c0_i32_1 : i32, i32, i32, i32
  }
}

module attributes {stable_mosaic.version = 11 : i64} {
  func.func @kernel(%arg0: i32, %arg1: memref<1x18x18x128xbf16, #tpu.memory_space<vmem>>, %arg2: memref<9x128x128xbf16, #tpu.memory_space<vmem>>, %arg3: memref<1x128xf32, #tpu.memory_space<vmem>>, %arg4: memref<1x16x16x128xf32, #tpu.memory_space<vmem>>, %arg5: memref<1x16x16x128xf32, #tpu.memory_space<vmem>>) attributes {dimension_semantics = [#tpu.dimension_semantics<parallel>], iteration_bounds = array<i64: 2>, scalar_prefetch = 0 : i64, scratch_operands = 0 : i64, tpu.core_type = #tpu.core_type<tc>, window_params = [{transform_indices = @transform_0, window_bounds = array<i64: 1, 18, 18, 128>}, {pipeline_mode = #tpu.pipeline_mode<synchronous>, transform_indices = @transform_1, window_bounds = array<i64: 9, 128, 128>}, {pipeline_mode = #tpu.pipeline_mode<synchronous>, transform_indices = @transform_2, window_bounds = array<i64: 1, 128>}, {transform_indices = @transform_3, window_bounds = array<i64: 1, 16, 16, 128>}, {transform_indices = @transform_4, window_bounds = array<i64: 1, 16, 16, 128>}]} {
    %c0 = arith.constant 0 : index
    %c0_0 = arith.constant 0 : index
    %c0_1 = arith.constant 0 : index
    %c0_2 = arith.constant 0 : index
    %0 = vector.load %arg1[%c0, %c0_0, %c0_1, %c0_2] : memref<1x18x18x128xbf16, #tpu.memory_space<vmem>>, vector<1x18x18x128xbf16>
    %c0_3 = arith.constant 0 : index
    %c0_4 = arith.constant 0 : index
    %c0_5 = arith.constant 0 : index
    %1 = vector.load %arg2[%c0_3, %c0_4, %c0_5] : memref<9x128x128xbf16, #tpu.memory_space<vmem>>, vector<9x128x128xbf16>
    %2 = vector.extract_strided_slice %0 {offsets = [0, 0, 0, 0], sizes = [1, 18, 16, 128], strides = [1, 1, 1, 1]} : vector<1x18x18x128xbf16> to vector<1x18x16x128xbf16>
    %3 = vector.extract_strided_slice %2 {offsets = [0, 0, 0, 0], sizes = [1, 16, 16, 128], strides = [1, 1, 1, 1]} : vector<1x18x16x128xbf16> to vector<1x16x16x128xbf16>
    %4 = vector.shape_cast %3 : vector<1x16x16x128xbf16> to vector<256x128xbf16>
    %5 = vector.extract_strided_slice %1 {offsets = [0, 0, 0], sizes = [1, 128, 128], strides = [1, 1, 1]} : vector<9x128x128xbf16> to vector<1x128x128xbf16>
    %6 = vector.shape_cast %5 : vector<1x128x128xbf16> to vector<128x128xbf16>
    %cst = arith.constant dense<0.000000e+00> : vector<256x128xf32>
    %7 = tpu.matmul %4, %6, %cst {dimension_numbers = #tpu.dot_dimension_numbers<[1], [0], [0], [1], [0, 0, 1, 1], [], []>} : vector<256x128xbf16>, vector<128x128xbf16>, vector<256x128xf32> -> vector<256x128xf32>
    %8 = vector.extract_strided_slice %2 {offsets = [0, 1, 0, 0], sizes = [1, 16, 16, 128], strides = [1, 1, 1, 1]} : vector<1x18x16x128xbf16> to vector<1x16x16x128xbf16>
    %9 = vector.shape_cast %8 : vector<1x16x16x128xbf16> to vector<256x128xbf16>
    %10 = vector.extract_strided_slice %1 {offsets = [3, 0, 0], sizes = [1, 128, 128], strides = [1, 1, 1]} : vector<9x128x128xbf16> to vector<1x128x128xbf16>
    %11 = vector.shape_cast %10 : vector<1x128x128xbf16> to vector<128x128xbf16>
    %cst_6 = arith.constant dense<0.000000e+00> : vector<256x128xf32>
    %12 = tpu.matmul %9, %11, %cst_6 {dimension_numbers = #tpu.dot_dimension_numbers<[1], [0], [0], [1], [0, 0, 1, 1], [], []>} : vector<256x128xbf16>, vector<128x128xbf16>, vector<256x128xf32> -> vector<256x128xf32>
    %13 = arith.addf %7, %12 : vector<256x128xf32>
    %14 = vector.extract_strided_slice %2 {offsets = [0, 2, 0, 0], sizes = [1, 16, 16, 128], strides = [1, 1, 1, 1]} : vector<1x18x16x128xbf16> to vector<1x16x16x128xbf16>
    %15 = vector.shape_cast %14 : vector<1x16x16x128xbf16> to vector<256x128xbf16>
    %16 = vector.extract_strided_slice %1 {offsets = [6, 0, 0], sizes = [1, 128, 128], strides = [1, 1, 1]} : vector<9x128x128xbf16> to vector<1x128x128xbf16>
    %17 = vector.shape_cast %16 : vector<1x128x128xbf16> to vector<128x128xbf16>
    %cst_7 = arith.constant dense<0.000000e+00> : vector<256x128xf32>
    %18 = tpu.matmul %15, %17, %cst_7 {dimension_numbers = #tpu.dot_dimension_numbers<[1], [0], [0], [1], [0, 0, 1, 1], [], []>} : vector<256x128xbf16>, vector<128x128xbf16>, vector<256x128xf32> -> vector<256x128xf32>
    %19 = arith.addf %13, %18 : vector<256x128xf32>
    %20 = vector.extract_strided_slice %0 {offsets = [0, 0, 1, 0], sizes = [1, 18, 16, 128], strides = [1, 1, 1, 1]} : vector<1x18x18x128xbf16> to vector<1x18x16x128xbf16>
    %21 = vector.extract_strided_slice %20 {offsets = [0, 0, 0, 0], sizes = [1, 16, 16, 128], strides = [1, 1, 1, 1]} : vector<1x18x16x128xbf16> to vector<1x16x16x128xbf16>
    %22 = vector.shape_cast %21 : vector<1x16x16x128xbf16> to vector<256x128xbf16>
    %23 = vector.extract_strided_slice %1 {offsets = [1, 0, 0], sizes = [1, 128, 128], strides = [1, 1, 1]} : vector<9x128x128xbf16> to vector<1x128x128xbf16>
    %24 = vector.shape_cast %23 : vector<1x128x128xbf16> to vector<128x128xbf16>
    %cst_8 = arith.constant dense<0.000000e+00> : vector<256x128xf32>
    %25 = tpu.matmul %22, %24, %cst_8 {dimension_numbers = #tpu.dot_dimension_numbers<[1], [0], [0], [1], [0, 0, 1, 1], [], []>} : vector<256x128xbf16>, vector<128x128xbf16>, vector<256x128xf32> -> vector<256x128xf32>
    %26 = arith.addf %19, %25 : vector<256x128xf32>
    %27 = vector.extract_strided_slice %20 {offsets = [0, 1, 0, 0], sizes = [1, 16, 16, 128], strides = [1, 1, 1, 1]} : vector<1x18x16x128xbf16> to vector<1x16x16x128xbf16>
    %28 = vector.shape_cast %27 : vector<1x16x16x128xbf16> to vector<256x128xbf16>
    %29 = vector.extract_strided_slice %1 {offsets = [4, 0, 0], sizes = [1, 128, 128], strides = [1, 1, 1]} : vector<9x128x128xbf16> to vector<1x128x128xbf16>
    %30 = vector.shape_cast %29 : vector<1x128x128xbf16> to vector<128x128xbf16>
    %cst_9 = arith.constant dense<0.000000e+00> : vector<256x128xf32>
    %31 = tpu.matmul %28, %30, %cst_9 {dimension_numbers = #tpu.dot_dimension_numbers<[1], [0], [0], [1], [0, 0, 1, 1], [], []>} : vector<256x128xbf16>, vector<128x128xbf16>, vector<256x128xf32> -> vector<256x128xf32>
    %32 = arith.addf %26, %31 : vector<256x128xf32>
    %33 = vector.extract_strided_slice %20 {offsets = [0, 2, 0, 0], sizes = [1, 16, 16, 128], strides = [1, 1, 1, 1]} : vector<1x18x16x128xbf16> to vector<1x16x16x128xbf16>
    %34 = vector.shape_cast %33 : vector<1x16x16x128xbf16> to vector<256x128xbf16>
    %35 = vector.extract_strided_slice %1 {offsets = [7, 0, 0], sizes = [1, 128, 128], strides = [1, 1, 1]} : vector<9x128x128xbf16> to vector<1x128x128xbf16>
    %36 = vector.shape_cast %35 : vector<1x128x128xbf16> to vector<128x128xbf16>
    %cst_10 = arith.constant dense<0.000000e+00> : vector<256x128xf32>
    %37 = tpu.matmul %34, %36, %cst_10 {dimension_numbers = #tpu.dot_dimension_numbers<[1], [0], [0], [1], [0, 0, 1, 1], [], []>} : vector<256x128xbf16>, vector<128x128xbf16>, vector<256x128xf32> -> vector<256x128xf32>
    %38 = arith.addf %32, %37 : vector<256x128xf32>
    %39 = vector.extract_strided_slice %0 {offsets = [0, 0, 2, 0], sizes = [1, 18, 16, 128], strides = [1, 1, 1, 1]} : vector<1x18x18x128xbf16> to vector<1x18x16x128xbf16>
    %40 = vector.extract_strided_slice %39 {offsets = [0, 0, 0, 0], sizes = [1, 16, 16, 128], strides = [1, 1, 1, 1]} : vector<1x18x16x128xbf16> to vector<1x16x16x128xbf16>
    %41 = vector.shape_cast %40 : vector<1x16x16x128xbf16> to vector<256x128xbf16>
    %42 = vector.extract_strided_slice %1 {offsets = [2, 0, 0], sizes = [1, 128, 128], strides = [1, 1, 1]} : vector<9x128x128xbf16> to vector<1x128x128xbf16>
    %43 = vector.shape_cast %42 : vector<1x128x128xbf16> to vector<128x128xbf16>
    %cst_11 = arith.constant dense<0.000000e+00> : vector<256x128xf32>
    %44 = tpu.matmul %41, %43, %cst_11 {dimension_numbers = #tpu.dot_dimension_numbers<[1], [0], [0], [1], [0, 0, 1, 1], [], []>} : vector<256x128xbf16>, vector<128x128xbf16>, vector<256x128xf32> -> vector<256x128xf32>
    %45 = arith.addf %38, %44 : vector<256x128xf32>
    %46 = vector.extract_strided_slice %39 {offsets = [0, 1, 0, 0], sizes = [1, 16, 16, 128], strides = [1, 1, 1, 1]} : vector<1x18x16x128xbf16> to vector<1x16x16x128xbf16>
    %47 = vector.shape_cast %46 : vector<1x16x16x128xbf16> to vector<256x128xbf16>
    %48 = vector.extract_strided_slice %1 {offsets = [5, 0, 0], sizes = [1, 128, 128], strides = [1, 1, 1]} : vector<9x128x128xbf16> to vector<1x128x128xbf16>
    %49 = vector.shape_cast %48 : vector<1x128x128xbf16> to vector<128x128xbf16>
    %cst_12 = arith.constant dense<0.000000e+00> : vector<256x128xf32>
    %50 = tpu.matmul %47, %49, %cst_12 {dimension_numbers = #tpu.dot_dimension_numbers<[1], [0], [0], [1], [0, 0, 1, 1], [], []>} : vector<256x128xbf16>, vector<128x128xbf16>, vector<256x128xf32> -> vector<256x128xf32>
    %51 = arith.addf %45, %50 : vector<256x128xf32>
    %52 = vector.extract_strided_slice %39 {offsets = [0, 2, 0, 0], sizes = [1, 16, 16, 128], strides = [1, 1, 1, 1]} : vector<1x18x16x128xbf16> to vector<1x16x16x128xbf16>
    %53 = vector.shape_cast %52 : vector<1x16x16x128xbf16> to vector<256x128xbf16>
    %54 = vector.extract_strided_slice %1 {offsets = [8, 0, 0], sizes = [1, 128, 128], strides = [1, 1, 1]} : vector<9x128x128xbf16> to vector<1x128x128xbf16>
    %55 = vector.shape_cast %54 : vector<1x128x128xbf16> to vector<128x128xbf16>
    %cst_13 = arith.constant dense<0.000000e+00> : vector<256x128xf32>
    %56 = tpu.matmul %53, %55, %cst_13 {dimension_numbers = #tpu.dot_dimension_numbers<[1], [0], [0], [1], [0, 0, 1, 1], [], []>} : vector<256x128xbf16>, vector<128x128xbf16>, vector<256x128xf32> -> vector<256x128xf32>
    %57 = arith.addf %51, %56 : vector<256x128xf32>
    %c0_14 = arith.constant 0 : index
    %c0_15 = arith.constant 0 : index
    %58 = vector.load %arg3[%c0_14, %c0_15] : memref<1x128xf32, #tpu.memory_space<vmem>>, vector<1x128xf32>
    %59 = vector.broadcast %58 : vector<1x128xf32> to vector<256x128xf32>
    %60 = arith.addf %57, %59 : vector<256x128xf32>
    %c0_16 = arith.constant 0 : index
    %c0_17 = arith.constant 0 : index
    %c0_18 = arith.constant 0 : index
    %c0_19 = arith.constant 0 : index
    %61 = vector.load %arg4[%c0_16, %c0_17, %c0_18, %c0_19] : memref<1x16x16x128xf32, #tpu.memory_space<vmem>>, vector<1x16x16x128xf32>
    %62 = vector.shape_cast %61 : vector<1x16x16x128xf32> to vector<256x128xf32>
    %63 = arith.addf %60, %62 : vector<256x128xf32>
    %64 = vector.shape_cast %63 : vector<256x128xf32> to vector<1x16x16x128xf32>
    %c0_20 = arith.constant 0 : index
    %c0_21 = arith.constant 0 : index
    %c0_22 = arith.constant 0 : index
    %c0_23 = arith.constant 0 : index
    %65 = vector.load %arg5[%c0_20, %c0_21, %c0_22, %c0_23] : memref<1x16x16x128xf32, #tpu.memory_space<vmem>>, vector<1x16x16x128xf32>
    tpu.vector_store %arg5[%c0_20, %c0_21, %c0_22, %c0_23], %64 {strides = array<i32>} : memref<1x16x16x128xf32, #tpu.memory_space<vmem>>, vector<1x16x16x128xf32>,
    return
  }
  func.func @transform_0(%arg0: i32) -> (i32, i32, i32, i32) {
    %c0_i32 = arith.constant 0 : i32
    %c0_i32_0 = arith.constant 0 : i32
    %c0_i32_1 = arith.constant 0 : i32
    %c0_i32_2 = arith.constant 0 : i32
    return %arg0, %c0_i32, %c0_i32_0, %c0_i32_1 : i32, i32, i32, i32
  }
  func.func @transform_1(%arg0: i32) -> (i32, i32, i32) {
    %c0_i32 = arith.constant 0 : i32
    %c0_i32_0 = arith.constant 0 : i32
    %c0_i32_1 = arith.constant 0 : i32
    %c0_i32_2 = arith.constant 0 : i32
    return %c0_i32, %c0_i32_0, %c0_i32_1 : i32, i32, i32
  }
  func.func @transform_2(%arg0: i32) -> (i32, i32) {
    %c0_i32 = arith.constant 0 : i32
    %c0_i32_0 = arith.constant 0 : i32
    %c0_i32_1 = arith.constant 0 : i32
    return %c0_i32, %c0_i32_0 : i32, i32
  }
  func.func @transform_3(%arg0: i32) -> (i32, i32, i32, i32) {
    %c0_i32 = arith.constant 0 : i32
    %c0_i32_0 = arith.constant 0 : i32
    %c0_i32_1 = arith.constant 0 : i32
    %c0_i32_2 = arith.constant 0 : i32
    return %arg0, %c0_i32, %c0_i32_0, %c0_i32_1 : i32, i32, i32, i32
  }
  func.func @transform_4(%arg0: i32) -> (i32, i32, i32, i32) {
    %c0_i32 = arith.constant 0 : i32
    %c0_i32_0 = arith.constant 0 : i32
    %c0_i32_1 = arith.constant 0 : i32
    %c0_i32_2 = arith.constant 0 : i32
    return %arg0, %c0_i32, %c0_i32_0, %c0_i32_1 : i32, i32, i32, i32
  }
}

</mosaic_0001>

<bundles_post_ra>
// kernel: residual_coder_forward.14
= control target key start
LH: loop header
LB: loop body
LE: loop exit
PB: predicated region body
PF: predicated region fallthrough
CT: control target
= control target key end

     0   :  { %s1036_s12 = smov 0   ;;  %s1152_s0 = inlined_call_operand.vmem [shape: bf16[2,16,16,3], index: 0, kind: input, shape index: {}]   ;;  %s1153_s1 = inlined_call_operand.vmem [shape: bf16[1,3,128], index: 1, kind: input, shape index: {}]   ;;  %s1154_s2 = inlined_call_operand.vmem [shape: f32[1,128], index: 2, kind: input, shape index: {}]   ;;  %s1155_s3 = inlined_call_operand.vmem [shape: bf16[2,16,16,128], index: 3, kind: output, shape index: {}]  }
   0x1 LB: > { %s724_s13 = sadd.s32 4294967295, %s1013_s12   ;;  %p728_p0 = scmp.ge.s32.totalorder %s1013_s12, 1  ;;  %s1013_s12 = sphi %s1036_s12, %s13_s12  }
   0x2   : > { %p137_p1 = scmp.lt.s32.totalorder %s1013_s12, 3 }
   0x4   : > { %p138_p2 = pnand %p728_p0, %p137_p1 }
   0x5   : > { %p161_p3 = scmp.lt.s32.totalorder (!%p138_p2), %s724_s13, 1 }
   0x6   : > { %141 = sbr.rel (%p138_p2) target bundleno = 248 (0xf8), region = 32 }
   0xb   : > { %v204_v0 = vld [vmem:[%s1153_s1] sm:$0x3]  ;;  %vm341_vm0 = vcmask 1040384   ;;  %vm342_vm1 = vcmask 1041408   ;;  %v1015_v1 = vmov 65535   ;;  %s1157_s13 = smov (!%p161_p3, %s724_s13), 1 }
   0xc   : > { %v343_v2 = vsel %vm341_vm0, 4294967295, %v1015_v1  ;;  %s800_s16 = sshll.u32 %s1157_s13, 7  ;;  %vm292_vm2 = vcmask 23552   ;;  %v1092_v23 = vld [vmem:[%s1154_s2] ss:$0 sm:$0xff] }
   0xd   : > { %v344_v3 = vsel %vm342_vm1, %v343_v2, 0  ;;  %s1055_s19 = scalar_lea.vmem %s1152_s0, %s800_s16  ;;  %s1102_s24 = scalar_lea.vmem %s1155_s3, %s800_s16 }
   0xe   : > { %v346_v4 = vand.u32 %v344_v3, %v204_v0  ;;  %v991_v5 = vld [vmem:[%s1055_s19] sm:$0xff]   ;;  %v993_v7 = vld [vmem:[%s1055_s19 + $0x8] sm:$0xff]   ;;  %v995_v9 = vld [vmem:[%s1055_s19 + $0x10] sm:$0xff]  }
   0xf   : > { %v992_v6 = vld [vmem:[%s1055_s19 + $0x40] sm:$0xff]   ;;  %948 = vmatprep.mubr.msk.bf16.mxu0 %vm292_vm2, %v991_v5  ;;  %v994_v8 = vld [vmem:[%s1055_s19 + $0x48] sm:$0xff]   ;;  %v996_v10 = vld [vmem:[%s1055_s19 + $0x50] sm:$0xff]  }
  0x10   : > { %946 = vmatprep.subr.bf16.mxu0 %v346_v4  ;;  %980 = vmatprep.subr.bf16.mxu1 %v346_v4  ;;  %v997_v11 = vld [vmem:[%s1055_s19 + $0x18] sm:$0xff]   ;;  %v999_v13 = vld [vmem:[%s1055_s19 + $0x20] sm:$0xff]   ;;  %v1001_v15 = vld [vmem:[%s1055_s19 + $0x28] sm:$0xff]  }
  0x11   : > { %947 = vmatpush3.bf16.msra.mxu0 %v346_v4  ;;  %981 = vmatpush3.bf16.msra.mxu1 %v346_v4  ;;  %v998_v12 = vld [vmem:[%s1055_s19 + $0x58] sm:$0xff]   ;;  %v1000_v14 = vld [vmem:[%s1055_s19 + $0x60] sm:$0xff]   ;;  %v1002_v16 = vld [vmem:[%s1055_s19 + $0x68] sm:$0xff]  }
  0x12   : > { %964 = vmatprep.mubr.msk.bf16.mxu1 %vm292_vm2, %v992_v6  ;;  %v1003_v17 = vld [vmem:[%s1055_s19 + $0x30] sm:$0xff]   ;;  %v1005_v19 = vld [vmem:[%s1055_s19 + $0x38] sm:$0xff]  }
  0x13   : > { %v1004_v18 = vld [vmem:[%s1055_s19 + $0x70] sm:$0xff]   ;;  %v1006_v20 = vld [vmem:[%s1055_s19 + $0x78] sm:$0xff]  }
  0x14   : > { %949 = vmatmul.mubr.msk.bf16.vlgmr.msra.gmra.mxu0 %vm292_vm2, %v993_v7  ;;  %965 = vmatmul.mubr.msk.bf16.vlgmr.msra.gmra.mxu1 %vm292_vm2, %v994_v8 }
  0x15   : > { %952 = vmatprep.mubr.msk.bf16.mxu0 %vm292_vm2, %v995_v9  ;;  %968 = vmatprep.mubr.msk.bf16.mxu1 %vm292_vm2, %v996_v10 }
  0x1c   : > { %953 = vmatmul.mubr.msk.bf16.gmra.mxu0 %vm292_vm2, %v997_v11  ;;  %969 = vmatmul.mubr.msk.bf16.gmra.mxu1 %vm292_vm2, %v998_v12 }
  0x1d   : > { %956 = vmatprep.mubr.msk.bf16.mxu0 %vm292_vm2, %v999_v13  ;;  %972 = vmatprep.mubr.msk.bf16.mxu1 %vm292_vm2, %v1000_v14 }
  0x24   : > { %957 = vmatmul.mubr.msk.bf16.gmra.mxu0 %vm292_vm2, %v1001_v15  ;;  %973 = vmatmul.mubr.msk.bf16.gmra.mxu1 %vm292_vm2, %v1002_v16 }
  0x25   : > { %960 = vmatprep.mubr.msk.bf16.mxu0 %vm292_vm2, %v1003_v17  ;;  %976 = vmatprep.mubr.msk.bf16.mxu1 %vm292_vm2, %v1004_v18 }
  0x2c   : > { %961 = vmatmul.mubr.msk.bf16.gmra.mxu0 %vm292_vm2, %v1005_v19  ;;  %977 = vmatmul.mubr.msk.bf16.gmra.mxu1 %vm292_vm2, %v1006_v20 }
  0xd4   : > { %v950_v21 = vpop.f32.mrf.mxu0  ;;  %v966_v22 = vpop.f32.mrf.mxu1 }
  0xd5   : > { %v391_v27 = vadd.f32 %v950_v21, %v1092_v23  ;;  %v455_v30 = vadd.f32 %v966_v22, %v1092_v23 }
  0xd6   : > { %v382_v24 = vpop.f32.mrf.mxu0  ;;  %v446_v25 = vpop.f32.mrf.mxu1 }
  0xd7   : > { %v383_v33 = vadd.f32 %v1092_v23, %v382_v24  ;;  %v447_v37 = vadd.f32 %v1092_v23, %v446_v25 }
  0xd8   : > { %v951_v26 = vpop.f32.mrf.mxu0  ;;  %v967_v29 = vpop.f32.mrf.mxu1 }
  0xd9   : > { %v394_v28 = vadd.f32 %v951_v26, %v1092_v23  ;;  %v458_v31 = vadd.f32 %v967_v29, %v1092_v23 }
  0xda   : > { %v385_v32 = vpop.f32.mrf.mxu0  ;;  %v449_v36 = vpop.f32.mrf.mxu1 }
  0xdb   : > { %v842_v34 = vpack.c.bf16 %v394_v28, %v391_v27  ;;  %v386_v35 = vadd.f32 %v1092_v23, %v385_v32  ;;  %v882_v38 = vpack.c.bf16 %v458_v31, %v455_v30  ;;  %v450_v39 = vadd.f32 %v1092_v23, %v449_v36 }
  0xdc   : > { %v954_v40 = vpop.f32.mrf.mxu0  ;;  %v970_v42 = vpop.f32.mrf.mxu1 }
  0xdd   : > { %914 = vst [vmem:[%s1102_s24 + $0x8] sm:$0xff] %v842_v34   ;;  %v837_v41 = vpack.c.bf16 %v386_v35, %v383_v33  ;;  %922 = vst [vmem:[%s1102_s24 + $0x48] sm:$0xff] %v882_v38   ;;  %v877_v43 = vpack.c.bf16 %v450_v39, %v447_v37  ;;  %v407_v47 = vadd.f32 %v954_v40, %v1092_v23 }
  0xde   : > { %v398_v44 = vpop.f32.mrf.mxu0  ;;  %v462_v45 = vpop.f32.mrf.mxu1  ;;  %v471_v50 = vadd.f32 %v970_v42, %v1092_v23 }
  0xdf   : > { %838 = vst [vmem:[%s1102_s24] sm:$0xff] %v837_v41   ;;  %921 = vst [vmem:[%s1102_s24 + $0x40] sm:$0xff] %v877_v43   ;;  %v399_v53 = vadd.f32 %v1092_v23, %v398_v44  ;;  %v463_v57 = vadd.f32 %v1092_v23, %v462_v45 }
  0xe0   : > { %v955_v46 = vpop.f32.mrf.mxu0  ;;  %v971_v49 = vpop.f32.mrf.mxu1 }
  0xe1   : > { %v410_v48 = vadd.f32 %v955_v46, %v1092_v23  ;;  %v474_v51 = vadd.f32 %v971_v49, %v1092_v23 }
  0xe2   : > { %v401_v52 = vpop.f32.mrf.mxu0  ;;  %v465_v56 = vpop.f32.mrf.mxu1 }
  0xe3   : > { %v852_v54 = vpack.c.bf16 %v410_v48, %v407_v47  ;;  %v402_v55 = vadd.f32 %v1092_v23, %v401_v52  ;;  %v892_v58 = vpack.c.bf16 %v474_v51, %v471_v50  ;;  %v466_v59 = vadd.f32 %v1092_v23, %v465_v56 }
  0xe4   : > { %v958_v60 = vpop.f32.mrf.mxu0  ;;  %v974_v62 = vpop.f32.mrf.mxu1 }
  0xe5   : > { %916 = vst [vmem:[%s1102_s24 + $0x18] sm:$0xff] %v852_v54   ;;  %v847_v61 = vpack.c.bf16 %v402_v55, %v399_v53  ;;  %924 = vst [vmem:[%s1102_s24 + $0x58] sm:$0xff] %v892_v58   ;;  %v887_v63 = vpack.c.bf16 %v466_v59, %v463_v57  ;;  %v423_v3 = vadd.f32 %v958_v60, %v1092_v23 }
  0xe6   : > { %v414_v0 = vpop.f32.mrf.mxu0  ;;  %v478_v1 = vpop.f32.mrf.mxu1  ;;  %v487_v6 = vadd.f32 %v974_v62, %v1092_v23 }
  0xe7   : > { %915 = vst [vmem:[%s1102_s24 + $0x10] sm:$0xff] %v847_v61   ;;  %923 = vst [vmem:[%s1102_s24 + $0x50] sm:$0xff] %v887_v63   ;;  %v415_v9 = vadd.f32 %v1092_v23, %v414_v0  ;;  %v479_v13 = vadd.f32 %v1092_v23, %v478_v1 }
  0xe8   : > { %v959_v2 = vpop.f32.mrf.mxu0  ;;  %v975_v5 = vpop.f32.mrf.mxu1 }
  0xe9   : > { %v426_v4 = vadd.f32 %v959_v2, %v1092_v23  ;;  %v490_v7 = vadd.f32 %v975_v5, %v1092_v23 }
  0xea   : > { %v417_v8 = vpop.f32.mrf.mxu0  ;;  %v481_v12 = vpop.f32.mrf.mxu1 }
  0xeb   : > { %v862_v10 = vpack.c.bf16 %v426_v4, %v423_v3  ;;  %v418_v11 = vadd.f32 %v1092_v23, %v417_v8  ;;  %v902_v14 = vpack.c.bf16 %v490_v7, %v487_v6  ;;  %v482_v15 = vadd.f32 %v1092_v23, %v481_v12 }
  0xec   : > { %v962_v16 = vpop.f32.mrf.mxu0  ;;  %v978_v18 = vpop.f32.mrf.mxu1 }
  0xed   : > { %918 = vst [vmem:[%s1102_s24 + $0x28] sm:$0xff] %v862_v10   ;;  %v857_v17 = vpack.c.bf16 %v418_v11, %v415_v9  ;;  %926 = vst [vmem:[%s1102_s24 + $0x68] sm:$0xff] %v902_v14   ;;  %v897_v19 = vpack.c.bf16 %v482_v15, %v479_v13  ;;  %v439_v24 = vadd.f32 %v962_v16, %v1092_v23 }
  0xee   : > { %v430_v20 = vpop.f32.mrf.mxu0  ;;  %v494_v21 = vpop.f32.mrf.mxu1  ;;  %v503_v27 = vadd.f32 %v978_v18, %v1092_v23 }
  0xef   : > { %917 = vst [vmem:[%s1102_s24 + $0x20] sm:$0xff] %v857_v17   ;;  %925 = vst [vmem:[%s1102_s24 + $0x60] sm:$0xff] %v897_v19   ;;  %v431_v30 = vadd.f32 %v1092_v23, %v430_v20  ;;  %v495_v34 = vadd.f32 %v1092_v23, %v494_v21 }
  0xf0   : > { %v963_v22 = vpop.f32.mrf.mxu0  ;;  %v979_v26 = vpop.f32.mrf.mxu1 }
  0xf1   : > { %v442_v25 = vadd.f32 %v963_v22, %v1092_v23  ;;  %v506_v28 = vadd.f32 %v979_v26, %v1092_v23 }
  0xf2   : > { %v433_v29 = vpop.f32.mrf.mxu0  ;;  %v497_v33 = vpop.f32.mrf.mxu1 }
  0xf3   : > { %v872_v31 = vpack.c.bf16 %v442_v25, %v439_v24  ;;  %v434_v32 = vadd.f32 %v1092_v23, %v433_v29  ;;  %v912_v35 = vpack.c.bf16 %v506_v28, %v503_v27  ;;  %v498_v36 = vadd.f32 %v1092_v23, %v497_v33 }
  0xf5   : > { %920 = vst [vmem:[%s1102_s24 + $0x38] sm:$0xff] %v872_v31   ;;  %v867_v37 = vpack.c.bf16 %v434_v32, %v431_v30  ;;  %928 = vst [vmem:[%s1102_s24 + $0x78] sm:$0xff] %v912_v35   ;;  %v907_v38 = vpack.c.bf16 %v498_v36, %v495_v34 }
  0xf7   : > { %919 = vst [vmem:[%s1102_s24 + $0x30] sm:$0xff] %v867_v37   ;;  %927 = vst [vmem:[%s1102_s24 + $0x70] sm:$0xff] %v907_v38  }
  0xf8 PF: > { %s13_s12 = sadd.s32 1, %s1013_s12  }
  0xf9   : > { %p10_p4 = scmp.ge.s32.totalorder %s13_s12, 4  }
  0xfb   :  { %12 = sbr.rel (!%p10_p4) target bundleno = 1 (0x1), region = 62 }

// kernel: residual_coder_forward.15
= control target key start
LH: loop header
LB: loop body
LE: loop exit
PB: predicated region body
PF: predicated region fallthrough
CT: control target
= control target key end

     0   :  { %s2269_s27 = smov 0   ;;  %s2659_s0 = inlined_call_operand.vmem [shape: bf16[2,16,16,3], index: 0, kind: input, shape index: {}]   ;;  %s2660_s1 = inlined_call_operand.vmem [shape: bf16[2,16,16,128], index: 1, kind: input, shape index: {}]   ;;  %s2661_s2 = inlined_call_operand.vmem [shape: bf16[2,16,16,4], index: 2, kind: input, shape index: {}]   ;;  %s2662_s3 = inlined_call_operand.vmem [shape: bf16[1,3,128], index: 3, kind: input, shape index: {}]   ;;  %s2663_s4 = inlined_call_operand.vmem [shape: bf16[1,128,128], index: 4, kind: input, shape index: {}]   ;;  %s2664_s5 = inlined_call_operand.vmem [shape: bf16[1,4,128], index: 5, kind: input, shape index: {}]   ;;  %s2665_s6 = inlined_call_operand.vmem [shape: f32[1,128], index: 6, kind: input, shape index: {}]   ;;  %s2666_s7 = inlined_call_operand.vmem [shape: f32[1,128], index: 7, kind: input, shape index: {}]   ;;  %s2667_s8 = inlined_call_operand.vmem [shape: bf16[2,16,16,128], index: 8, kind: output, shape index: {}]  }
   0x1 LB: > { %s1705_s28 = sadd.s32 4294967295, %s2221_s27   ;;  %p1709_p0 = scmp.ge.s32.totalorder %s2221_s27, 1  ;;  %s2221_s27 = sphi %s2269_s27, %s18_s27  }
   0x2   : > { %p282_p1 = scmp.lt.s32.totalorder %s2221_s27, 3 }
   0x4   : > { %p283_p2 = pnand %p1709_p0, %p282_p1 }
   0x6   : > { %286 = sbr.rel (%p283_p2) target bundleno = 332 (0x14c), region = 52 }
   0xb   : > { %v2159_v0 = vld [vmem:[%s2663_s4 + $0x38] sm:$0xff]   ;;  %vm862_vm0 = vcmask 1040384   ;;  %v379_v1 = vld [vmem:[%s2662_s3] sm:$0x3]  ;;  %vm863_vm1 = vcmask 1041408   ;;  %v2223_v2 = vmov 65535  }
   0xc   : > { %2031 = vmatprep.subr.bf16.mxu0 %v2159_v0  ;;  %v864_v3 = vsel %vm862_vm0, 4294967295, %v2223_v2  ;;  %v2160_v4 = vld [vmem:[%s2663_s4 + $0x30] sm:$0xff]   ;;  %p326_p3 = scmp.lt.s32.totalorder %s1705_s28, 1  ;;  %v2163_v7 = vld [vmem:[%s2663_s4 + $0x28] sm:$0xff]   ;;  %v1062_v8 = vld [vmem:[%s2664_s5] sm:$0x3] }
   0xd   : > { %2032 = vmatpush3.bf16.msra.mxu0 %v2159_v0  ;;  %v865_v5 = vsel %vm863_vm1, %v864_v3, 0  ;;  %vm813_vm2 = vcmask 23552   ;;  %v2164_v9 = vld [vmem:[%s2663_s4 + $0x20] sm:$0xff]   ;;  %v1193_v12 = vsel %vm863_vm1, %v1062_v8, 0  ;;  %v2167_v14 = vld [vmem:[%s2663_s4 + $0x18] sm:$0xff]   ;;  %v2168_v15 = vld [vmem:[%s2663_s4 + $0x10] sm:$0xff]  }
   0xe   : > { %v867_v6 = vand.u32 %v865_v5, %v379_v1  ;;  %2033 = vmatprep.subr.bf16.mxu0 %v2160_v4  ;;  %s2675_s28 = smov (!%p326_p3, %s1705_s28), 1  ;;  %v2171_v19 = vld [vmem:[%s2663_s4 + $0x8] sm:$0xff]   ;;  %v2172_v21 = vld [vmem:[%s2663_s4] sm:$0xff]   ;;  %vm1143_vm3 = vcmask 31744  }
   0xf   : > { %s2293_s17 = sshll.u32 %s2675_s28, 7 }
  0x10   : > { %2147 = vmatprep.subr.bf16.mxu1 %v867_v6  ;;  %s2299_s20 = scalar_lea.vmem %s2659_s0, %s2293_s17  ;;  %s2322_s30 = scalar_lea.vmem %s2660_s1, %s2293_s17 }
  0x11   : > { %2148 = vmatpush3.bf16.msra.mxu1 %v867_v6  ;;  %2034 = vmatpush3.bf16.msra.mxu0 %v2160_v4  ;;  %v2161_v10 = vld [vmem:[%s2299_s20 + $0x20] sm:$0xff]   ;;  %v2162_v11 = vld [vmem:[%s2299_s20 + $0x28] sm:$0xff]   ;;  %v2165_v13 = vld [vmem:[%s2299_s20 + $0x30] sm:$0xff]   ;;  %s2341_s15 = scalar_lea.vmem %s2661_s2, %s2293_s17  ;;  %s2521_s23 = scalar_lea.vmem %s2667_s8, %s2293_s17 }
  0x12   : > { %2149 = vmatprep.subr.msk.bf16.mxu1 %vm863_vm1, %v1062_v8  ;;  %2035 = vmatprep.subr.bf16.mxu0 %v2163_v7  ;;  %v2166_v16 = vld [vmem:[%s2299_s20 + $0x38] sm:$0xff]   ;;  %v2169_v17 = vld [vmem:[%s2299_s20 + $0x40] sm:$0xff]   ;;  %v2170_v20 = vld [vmem:[%s2299_s20 + $0x48] sm:$0xff]  }
  0x13   : > { %2089 = vmatprep.mubr.msk.bf16.mxu1 %vm813_vm2, %v2161_v10  ;;  %v2174_v18 = vld [vmem:[%s2322_s30] sm:$0xff]   ;;  %v2173_v22 = vld [vmem:[%s2299_s20 + $0x50] sm:$0xff]   ;;  %v2175_v23 = vld [vmem:[%s2299_s20 + $0x58] sm:$0xff]  }
  0x14   : > { %2090 = vmatmul.mubr.msk.bf16.vlgmr.msra.gmra.mxu1 %vm813_vm2, %v2162_v11  ;;  %2047 = vmatprep.mubr.bf16.mxu0 %v2174_v18  ;;  %v2176_v24 = vld [vmem:[%s2322_s30 + $0x8] sm:$0xff]   ;;  %v2177_v25 = vld [vmem:[%s2299_s20 + $0x60] sm:$0xff]   ;;  %v2178_v26 = vld [vmem:[%s2322_s30 + $0x10] sm:$0xff]  }
  0x15   : > { %2036 = vmatpush3.bf16.msra.mxu0 %v2163_v7  ;;  %2114 = vmatpush3.bf16.msra.mxu1 %v1193_v12  ;;  %v2179_v27 = vld [vmem:[%s2299_s20 + $0x68] sm:$0xff]   ;;  %v2180_v28 = vld [vmem:[%s2322_s30 + $0x18] sm:$0xff]   ;;  %v2182_v29 = vld [vmem:[%s2322_s30 + $0x20] sm:$0xff]  }
  0x16   : > { %2037 = vmatprep.subr.bf16.mxu0 %v2164_v9  ;;  %2093 = vmatprep.mubr.msk.bf16.mxu1 %vm813_vm2, %v2165_v13  ;;  %v2181_v30 = vld [vmem:[%s2299_s20 + $0x70] sm:$0xff]   ;;  %v2183_v31 = vld [vmem:[%s2299_s20 + $0x78] sm:$0xff]   ;;  %v2184_v32 = vld [vmem:[%s2322_s30 + $0x28] sm:$0xff]  }
  0x17   : > { %v2186_v33 = vld [vmem:[%s2322_s30 + $0x30] sm:$0xff]   ;;  %v2185_v34 = vld [vmem:[%s2341_s15] sm:$0xff]   ;;  %v2187_v35 = vld [vmem:[%s2341_s15 + $0x8] sm:$0xff]  }
  0x18   : > { %v2188_v36 = vld [vmem:[%s2322_s30 + $0x38] sm:$0xff]   ;;  %v2190_v37 = vld [vmem:[%s2322_s30 + $0x40] sm:$0xff]   ;;  %v2189_v38 = vld [vmem:[%s2341_s15 + $0x10] sm:$0xff]  }
  0x19   : > { %2038 = vmatpush3.bf16.msra.mxu0 %v2164_v9  ;;  %v2192_v39 = vld [vmem:[%s2322_s30 + $0x48] sm:$0xff]   ;;  %v2191_v40 = vld [vmem:[%s2341_s15 + $0x18] sm:$0xff]   ;;  %v2194_v41 = vld [vmem:[%s2322_s30 + $0x50] sm:$0xff]  }
  0x1a   : > { %2039 = vmatprep.subr.bf16.mxu0 %v2167_v14  ;;  %v2193_v42 = vld [vmem:[%s2341_s15 + $0x20] sm:$0xff]   ;;  %v2196_v43 = vld [vmem:[%s2322_s30 + $0x58] sm:$0xff]   ;;  %v2195_v44 = vld [vmem:[%s2341_s15 + $0x28] sm:$0xff]  }
  0x1b   : > { %v2198_v45 = vld [vmem:[%s2322_s30 + $0x60] sm:$0xff]   ;;  %v2197_v46 = vld [vmem:[%s2341_s15 + $0x30] sm:$0xff]   ;;  %v2200_v47 = vld [vmem:[%s2322_s30 + $0x68] sm:$0xff]  }
  0x1c   : > { %2094 = vmatmul.mubr.msk.bf16.gmra.mxu1 %vm813_vm2, %v2166_v16  ;;  %v2199_v48 = vld [vmem:[%s2341_s15 + $0x38] sm:$0xff]   ;;  %v2202_v49 = vld [vmem:[%s2322_s30 + $0x70] sm:$0xff]   ;;  %v2201_v50 = vld [vmem:[%s2341_s15 + $0x40] sm:$0xff]  }
  0x1d   : > { %2040 = vmatpush3.bf16.msra.mxu0 %v2167_v14  ;;  %2097 = vmatprep.mubr.msk.bf16.mxu1 %vm813_vm2, %v2169_v17  ;;  %v2204_v51 = vld [vmem:[%s2322_s30 + $0x78] sm:$0xff]   ;;  %v2203_v52 = vld [vmem:[%s2341_s15 + $0x48] sm:$0xff]   ;;  %v2206_v53 = vld [vmem:[%s2299_s20] sm:$0xff]  }
  0x1e   : > { %2041 = vmatprep.subr.bf16.mxu0 %v2168_v15  ;;  %v2205_v54 = vld [vmem:[%s2341_s15 + $0x50] sm:$0xff]   ;;  %v2208_v55 = vld [vmem:[%s2299_s20 + $0x8] sm:$0xff]   ;;  %v2207_v56 = vld [vmem:[%s2341_s15 + $0x58] sm:$0xff]  }
  0x1f   : > { %v2210_v57 = vld [vmem:[%s2299_s20 + $0x10] sm:$0xff]   ;;  %v2209_v58 = vld [vmem:[%s2341_s15 + $0x60] sm:$0xff]   ;;  %v2212_v59 = vld [vmem:[%s2299_s20 + $0x18] sm:$0xff]  }
  0x20   : > { %v2211_v60 = vld [vmem:[%s2341_s15 + $0x68] sm:$0xff]   ;;  %v2213_v61 = vld [vmem:[%s2341_s15 + $0x70] sm:$0xff]   ;;  %v2214_v62 = vld [vmem:[%s2341_s15 + $0x78] sm:$0xff]  }
  0x21   : > { %2042 = vmatpush3.bf16.msra.mxu0 %v2168_v15 }
  0x22   : > { %2043 = vmatprep.subr.bf16.mxu0 %v2171_v19 }
  0x24   : > { %2098 = vmatmul.mubr.msk.bf16.gmra.mxu1 %vm813_vm2, %v2170_v20 }
  0x25   : > { %2044 = vmatpush3.bf16.msra.mxu0 %v2171_v19  ;;  %2101 = vmatprep.mubr.msk.bf16.mxu1 %vm813_vm2, %v2173_v22 }
  0x26   : > { %2045 = vmatprep.subr.bf16.mxu0 %v2172_v21 }
  0x29   : > { %2046 = vmatpush3.bf16.msra.mxu0 %v2172_v21 }
  0x2a   : > { %2079 = vmatprep.subr.bf16.mxu0 %v867_v6 }
  0x2c   : > { %2048 = vmatmul.mubr.bf16.vlgmr.msra.gmra.mxu0 %v2176_v24  ;;  %2102 = vmatmul.mubr.msk.bf16.gmra.mxu1 %vm813_vm2, %v2175_v23 }
  0x2d   : > { %2080 = vmatpush3.bf16.msra.mxu0 %v867_v6  ;;  %2105 = vmatprep.mubr.msk.bf16.mxu1 %vm813_vm2, %v2177_v25 }
  0x2e   : > { %2051 = vmatprep.mubr.bf16.mxu0 %v2178_v26 }
  0x34   : > { %2052 = vmatmul.mubr.bf16.gmra.mxu0 %v2180_v28  ;;  %2106 = vmatmul.mubr.msk.bf16.gmra.mxu1 %vm813_vm2, %v2179_v27 }
  0x35   : > { %2055 = vmatprep.mubr.bf16.mxu0 %v2182_v29  ;;  %2109 = vmatprep.mubr.msk.bf16.mxu1 %vm813_vm2, %v2181_v30 }
  0x3c   : > { %2056 = vmatmul.mubr.bf16.gmra.mxu0 %v2184_v32  ;;  %2110 = vmatmul.mubr.msk.bf16.gmra.mxu1 %vm813_vm2, %v2183_v31 }
  0x3d   : > { %2059 = vmatprep.mubr.bf16.mxu0 %v2186_v33  ;;  %2115 = vmatprep.mubr.msk.bf16.mxu1 %vm1143_vm3, %v2185_v34 }
  0x44   : > { %2060 = vmatmul.mubr.bf16.gmra.mxu0 %v2188_v36  ;;  %2116 = vmatmul.mubr.msk.bf16.vlgmr.msra.gmra.mxu1 %vm1143_vm3, %v2187_v35 }
  0x45   : > { %2063 = vmatprep.mubr.bf16.mxu0 %v2190_v37  ;;  %2119 = vmatprep.mubr.msk.bf16.mxu1 %vm1143_vm3, %v2189_v38 }
  0x4c   : > { %2064 = vmatmul.mubr.bf16.gmra.mxu0 %v2192_v39  ;;  %2120 = vmatmul.mubr.msk.bf16.gmra.mxu1 %vm1143_vm3, %v2191_v40 }
  0x4d   : > { %2067 = vmatprep.mubr.bf16.mxu0 %v2194_v41  ;;  %2123 = vmatprep.mubr.msk.bf16.mxu1 %vm1143_vm3, %v2193_v42 }
  0x54   : > { %2068 = vmatmul.mubr.bf16.gmra.mxu0 %v2196_v43  ;;  %2124 = vmatmul.mubr.msk.bf16.gmra.mxu1 %vm1143_vm3, %v2195_v44 }
  0x55   : > { %2071 = vmatprep.mubr.bf16.mxu0 %v2198_v45  ;;  %2127 = vmatprep.mubr.msk.bf16.mxu1 %vm1143_vm3, %v2197_v46 }
  0x5c   : > { %2072 = vmatmul.mubr.bf16.gmra.mxu0 %v2200_v47  ;;  %2128 = vmatmul.mubr.msk.bf16.gmra.mxu1 %vm1143_vm3, %v2199_v48 }
  0x5d   : > { %2075 = vmatprep.mubr.bf16.mxu0 %v2202_v49  ;;  %2131 = vmatprep.mubr.msk.bf16.mxu1 %vm1143_vm3, %v2201_v50 }
  0x64   : > { %2076 = vmatmul.mubr.bf16.gmra.mxu0 %v2204_v51  ;;  %2132 = vmatmul.mubr.msk.bf16.gmra.mxu1 %vm1143_vm3, %v2203_v52 }
  0x65   : > { %2081 = vmatprep.mubr.msk.bf16.mxu0 %vm813_vm2, %v2206_v53  ;;  %2135 = vmatprep.mubr.msk.bf16.mxu1 %vm1143_vm3, %v2205_v54 }
  0x6c   : > { %2082 = vmatmul.mubr.msk.bf16.vlgmr.msra.gmra.mxu0 %vm813_vm2, %v2208_v55  ;;  %2136 = vmatmul.mubr.msk.bf16.gmra.mxu1 %vm1143_vm3, %v2207_v56 }
  0x6d   : > { %2085 = vmatprep.mubr.msk.bf16.mxu0 %vm813_vm2, %v2210_v57  ;;  %2139 = vmatprep.mubr.msk.bf16.mxu1 %vm1143_vm3, %v2209_v58  ;;  %v2493_v57 = vld [vmem:[%s2665_s6] ss:$0 sm:$0xff] }
  0x74   : > { %2086 = vmatmul.mubr.msk.bf16.gmra.mxu0 %vm813_vm2, %v2212_v59  ;;  %2140 = vmatmul.mubr.msk.bf16.gmra.mxu1 %vm1143_vm3, %v2211_v60 }
  0x75   : > { %2143 = vmatprep.mubr.msk.bf16.mxu1 %vm1143_vm3, %v2213_v61 }
  0x7c   : > { %2144 = vmatmul.mubr.msk.bf16.gmra.mxu1 %vm1143_vm3, %v2214_v62 }
  0xd4   : > { %v2091_v63 = vpop.f32.mrf.mxu1 }
  0xd6   : > { %v935_v0 = vpop.f32.mrf.mxu1 }
  0xd8   : > { %v2092_v1 = vpop.f32.mrf.mxu1 }
  0xda   : > { %v938_v2 = vpop.f32.mrf.mxu1 }
  0xdc   : > { %v2410_v3 = vpop.f32.mrf.mxu1 }
  0xde   : > { %v2412_v4 = vpop.f32.mrf.mxu1 }
  0xe0   : > { %v2414_v5 = vpop.f32.mrf.mxu1 }
  0xe2   : > { %v2416_v6 = vpop.f32.mrf.mxu1 }
  0xe4   : > { %v2418_v7 = vpop.f32.mrf.mxu1 }
  0xe6   : > { %v2420_v8 = vpop.f32.mrf.mxu1 }
  0xe8   : > { %v2422_v9 = vpop.f32.mrf.mxu1 }
  0xea   : > { %v2424_v10 = vpop.f32.mrf.mxu1 }
  0xec   : > { %v2426_v11 = vpop.f32.mrf.mxu0  ;;  %v2428_v12 = vpop.f32.mrf.mxu1 }
  0xee   : > { %v2430_v13 = vpop.f32.mrf.mxu0  ;;  %v2432_v14 = vpop.f32.mrf.mxu1 }
  0xf0   : > { %v2434_v15 = vpop.f32.mrf.mxu0  ;;  %v2436_v16 = vpop.f32.mrf.mxu1 }
  0xf2   : > { %v2438_v17 = vpop.f32.mrf.mxu0  ;;  %v2440_v18 = vpop.f32.mrf.mxu1 }
  0xf4   : > { %v2442_v19 = vpop.f32.mrf.mxu0  ;;  %v2444_v20 = vpop.f32.mrf.mxu1 }
  0xf6   : > { %v2446_v21 = vpop.f32.mrf.mxu0  ;;  %v2448_v22 = vpop.f32.mrf.mxu1 }
  0xf8   : > { %v2450_v23 = vpop.f32.mrf.mxu0  ;;  %v2452_v24 = vpop.f32.mrf.mxu1 }
  0xfa   : > { %v2454_v25 = vpop.f32.mrf.mxu0  ;;  %v2456_v26 = vpop.f32.mrf.mxu1 }
  0xfc   : > { %v2057_v27 = vpop.f32.mrf.mxu0  ;;  %v2458_v28 = vpop.f32.mrf.mxu1 }
  0xfd   : > { %v944_v51 = vadd.f32 %v2091_v63, %v2057_v27 }
  0xfe   : > { %v638_v29 = vpop.f32.mrf.mxu0  ;;  %v2460_v30 = vpop.f32.mrf.mxu1 }
  0xff   : > { %2668 = vst [vmem:[#allocation2_spill] sm:$0xff] %v2460_v30  ;;  %v936_v54 = vadd.f32 %v935_v0, %v638_v29  ;;  %v2503_v0 = vld [vmem:[%s2666_s7] ss:$0 sm:$0xff] }
 0x100   : > { %v2058_v31 = vpop.f32.mrf.mxu0  ;;  %v2462_v32 = vpop.f32.mrf.mxu1 }
 0x101   : > { %2669 = vst [vmem:[#allocation3_spill] sm:$0xff] %v2462_v32  ;;  %v947_v59 = vadd.f32 %v2092_v1, %v2058_v31 }
 0x102   : > { %v641_v33 = vpop.f32.mrf.mxu0  ;;  %v2464_v34 = vpop.f32.mrf.mxu1 }
 0x103   : > { %2670 = vst [vmem:[#allocation4_spill] sm:$0xff] %v2464_v34  ;;  %v939_v34 = vadd.f32 %v938_v2, %v641_v33 }
 0x104   : > { %v2061_v35 = vpop.f32.mrf.mxu0  ;;  %v2466_v36 = vpop.f32.mrf.mxu1 }
 0x106   : > { %v654_v37 = vpop.f32.mrf.mxu0  ;;  %v2468_v38 = vpop.f32.mrf.mxu1 }
 0x107   : > { %v952_v33 = vadd.f32 %v2412_v4, %v654_v37 }
 0x108   : > { %v2062_v39 = vpop.f32.mrf.mxu0  ;;  %v2470_v40 = vpop.f32.mrf.mxu1 }
 0x10a   : > { %v657_v41 = vpop.f32.mrf.mxu0  ;;  %v2472_v42 = vpop.f32.mrf.mxu1 }
 0x10c   : > { %v2065_v43 = vpop.f32.mrf.mxu0  ;;  %v2474_v44 = vpop.f32.mrf.mxu1 }
 0x10e   : > { %v670_v45 = vpop.f32.mrf.mxu0  ;;  %v2476_v46 = vpop.f32.mrf.mxu1 }
 0x110   : > { %v2478_v47 = vpop.f32.mrf.mxu0  ;;  %v2480_v48 = vpop.f32.mrf.mxu1 }
 0x112   : > { %v2482_v49 = vpop.f32.mrf.mxu0  ;;  %v2484_v50 = vpop.f32.mrf.mxu1 }
 0x114   : > { %v2486_v52 = vpop.f32.mrf.mxu0  ;;  %v2125_v53 = vpop.f32.mrf.mxu1 }
 0x115   : > { %v1366_v55 = vadd.f32 %v2125_v53, %v944_v51  ;;  %v960_v51 = vadd.f32 %v2410_v3, %v2061_v35  ;;  %v963_v3 = vadd.f32 %v2414_v5, %v2062_v39 }
 0x116   : > { %v2488_v56 = vpop.f32.mrf.mxu0  ;;  %v1261_v58 = vpop.f32.mrf.mxu1 }
 0x117   : > { %v1364_v60 = vadd.f32 %v1261_v58, %v936_v54  ;;  %v1405_v63 = vmul.f32 %v2493_v57, %v1366_v55 }
 0x118   : > { %v2495_v61 = vpop.f32.mrf.mxu0  ;;  %v2126_v62 = vpop.f32.mrf.mxu1 }
 0x119   : > { %v1367_v27 = vadd.f32 %v2126_v62, %v947_v59  ;;  %v1403_v1 = vmul.f32 %v2493_v57, %v1364_v60  ;;  %v1444_v55 = vadd.f32 %v2503_v0, %v1405_v63 }
 0x11a   : > { %v2498_v32 = vpop.f32.mrf.mxu0  ;;  %v1264_v29 = vpop.f32.mrf.mxu1 }
 0x11b   : > { %v1406_v31 = vmul.f32 %v2493_v57, %v1367_v27  ;;  %v1365_v53 = vadd.f32 %v1264_v29, %v939_v34  ;;  %v1442_v34 = vadd.f32 %v2503_v0, %v1403_v1  ;;  %v955_v29 = vadd.f32 %v2416_v6, %v657_v41 }
 0x11c   : > { %v2508_v2 = vpop.f32.mrf.mxu0  ;;  %v2129_v54 = vpop.f32.mrf.mxu1  ;;  %v968_v6 = vadd.f32 %v2420_v8, %v670_v45 }
 0x11d   : > { %v1445_v58 = vadd.f32 %v2503_v0, %v1406_v31  ;;  %v1404_v59 = vmul.f32 %v2493_v57, %v1365_v53  ;;  %v1370_v62 = vadd.f32 %v2129_v54, %v960_v51  ;;  %v976_v54 = vadd.f32 %v2418_v7, %v2065_v43 }
 0x11e   : > { %v2514_v30 = vpop.f32.mrf.mxu0  ;;  %v1277_v4 = vpop.f32.mrf.mxu1  ;;  %v979_v43 = vadd.f32 %v2422_v9, %v2478_v47 }
 0x11f   : > { %v1906_v35 = vpack.c.bf16 %v1445_v58, %v1444_v55  ;;  %v1443_v37 = vadd.f32 %v2503_v0, %v1404_v59  ;;  %v1368_v60 = vadd.f32 %v1277_v4, %v952_v33  ;;  %v1409_v39 = vmul.f32 %v2493_v57, %v1370_v62 }
 0x120   : > { %v2525_v63 = vpop.f32.mrf.mxu0  ;;  %v2130_v27 = vpop.f32.mrf.mxu1 }
 0x121   : > { %1962 = vst [vmem:[%s2521_s23 + $0x28] sm:$0xff] %v1906_v35   ;;  %v1901_v5 = vpack.c.bf16 %v1443_v37, %v1442_v34  ;;  %v1371_v51 = vadd.f32 %v2130_v27, %v963_v3  ;;  %v1407_v1 = vmul.f32 %v2493_v57, %v1368_v60  ;;  %v1448_v59 = vadd.f32 %v2503_v0, %v1409_v39 }
 0x122   : > { %v2530_v31 = vpop.f32.mrf.mxu0  ;;  %v1280_v53 = vpop.f32.mrf.mxu1 }
 0x123   : > { %1961 = vst [vmem:[%s2521_s23 + $0x20] sm:$0xff] %v1901_v5   ;;  %v1410_v33 = vmul.f32 %v2493_v57, %v1371_v51  ;;  %v1369_v55 = vadd.f32 %v1280_v53, %v955_v29  ;;  %v1446_v35 = vadd.f32 %v2503_v0, %v1407_v1  ;;  %v971_v29 = vadd.f32 %v2424_v10, %v2482_v49 }
 0x124   : > { %v2536_v58 = vpop.f32.mrf.mxu0  ;;  %v2133_v41 = vpop.f32.mrf.mxu1  ;;  %v984_v10 = vadd.f32 %v2432_v14, %v2488_v56 }
 0x125   : > { %v1449_v62 = vadd.f32 %v2503_v0, %v1410_v33  ;;  %v1408_v3 = vmul.f32 %v2493_v57, %v1369_v55  ;;  %v1374_v4 = vadd.f32 %v2133_v41, %v976_v54  ;;  %v992_v54 = vadd.f32 %v2428_v12, %v2486_v52 }
 0x126   : > { %v2542_v7 = vpop.f32.mrf.mxu0  ;;  %v1293_v34 = vpop.f32.mrf.mxu1  ;;  %v995_v12 = vadd.f32 %v2436_v16, %v2495_v61 }
 0x127   : > { %v1916_v37 = vpack.c.bf16 %v1449_v62, %v1448_v59  ;;  %v1447_v8 = vadd.f32 %v2503_v0, %v1408_v3  ;;  %v1372_v45 = vadd.f32 %v1293_v34, %v968_v6  ;;  %v1413_v39 = vmul.f32 %v2493_v57, %v1374_v4 }
 0x128   : > { %v2548_v60 = vpop.f32.mrf.mxu0  ;;  %v2134_v27 = vpop.f32.mrf.mxu1 }
 0x129   : > { %1964 = vst [vmem:[%s2521_s23 + $0x38] sm:$0xff] %v1916_v37   ;;  %v1911_v5 = vpack.c.bf16 %v1447_v8, %v1446_v35  ;;  %v1375_v51 = vadd.f32 %v2134_v27, %v979_v43  ;;  %v1411_v47 = vmul.f32 %v2493_v57, %v1372_v45  ;;  %v1452_v41 = vadd.f32 %v2503_v0, %v1413_v39 }
 0x12a   : > { %v2554_v9 = vpop.f32.mrf.mxu0  ;;  %v1296_v53 = vpop.f32.mrf.mxu1  ;;  %v987_v45 = vadd.f32 %v2440_v18, %v2498_v32  ;;  %v1000_v18 = vadd.f32 %v2448_v22, %v2514_v30 }
 0x12b   : > { %1963 = vst [vmem:[%s2521_s23 + $0x30] sm:$0xff] %v1911_v5   ;;  %v1414_v1 = vmul.f32 %v2493_v57, %v1375_v51  ;;  %v1373_v33 = vadd.f32 %v1296_v53, %v971_v29  ;;  %v1450_v52 = vadd.f32 %v2503_v0, %v1411_v47 }
 0x12c   : > { %v2083_v55 = vpop.f32.mrf.mxu0  ;;  %v2137_v49 = vpop.f32.mrf.mxu1 }
 0x12d   : > { %v912_v6 = vadd.f32 %v2083_v55, %v2426_v11  ;;  %v1453_v59 = vadd.f32 %v2503_v0, %v1414_v1  ;;  %v1412_v62 = vmul.f32 %v2493_v57, %v1373_v33  ;;  %v1378_v3 = vadd.f32 %v2137_v49, %v992_v54 }
 0x12e   : > { %v903_v4 = vpop.f32.mrf.mxu0  ;;  %v1309_v14 = vpop.f32.mrf.mxu1 }
 0x12f   : > { %v1358_v43 = vadd.f32 %v2466_v36, %v912_v6  ;;  %v904_v56 = vadd.f32 %v903_v4, %v2430_v13  ;;  %v1926_v11 = vpack.c.bf16 %v1453_v59, %v1452_v41  ;;  %v1451_v34 = vadd.f32 %v2503_v0, %v1412_v62 }
 0x130   : > { %v1417_v35 = vmul.f32 %v2493_v57, %v1378_v3  ;;  %v1376_v37 = vadd.f32 %v1309_v14, %v984_v10  ;;  %v2084_v8 = vpop.f32.mrf.mxu0  ;;  %v2138_v27 = vpop.f32.mrf.mxu1  ;;  %v1008_v13 = vadd.f32 %v2444_v20, %v2508_v2 }
 0x131   : > { %v1397_v16 = vmul.f32 %v2493_v57, %v1358_v43  ;;  %v1356_v61 = vadd.f32 %v2468_v38, %v904_v56  ;;  %v915_v36 = vadd.f32 %v2084_v8, %v2434_v15  ;;  %1966 = vst [vmem:[%s2521_s23 + $0x48] sm:$0xff] %v1926_v11   ;;  %v1921_v29 = vpack.c.bf16 %v1451_v34, %v1450_v52 }
 0x132   : > { %v1415_v5 = vmul.f32 %v2493_v57, %v1376_v37  ;;  %v1379_v39 = vadd.f32 %v2138_v27, %v995_v12  ;;  %v906_v51 = vpop.f32.mrf.mxu0  ;;  %v1312_v38 = vpop.f32.mrf.mxu1  ;;  %v1011_v15 = vadd.f32 %v2452_v24, %v2525_v63  ;;  %v1456_v20 = vadd.f32 %v2503_v0, %v1417_v35 }
 0x133   : > { %v1395_v32 = vmul.f32 %v2493_v57, %v1356_v61  ;;  %v1359_v47 = vadd.f32 %v2470_v40, %v915_v36  ;;  %v907_v53 = vadd.f32 %v906_v51, %v2438_v17  ;;  %1965 = vst [vmem:[%s2521_s23 + $0x40] sm:$0xff] %v1921_v29   ;;  %v1377_v54 = vadd.f32 %v1312_v38, %v987_v45  ;;  %v2673_v38 = vld [vmem:[#allocation4_spill] sm:$0xff] }
 0x134   : > { %v1418_v2 = vmul.f32 %v2493_v57, %v1379_v39  ;;  %v2087_v1 = vpop.f32.mrf.mxu0  ;;  %v1436_v33 = vadd.f32 %v2503_v0, %v1397_v16  ;;  %v2141_v40 = vpop.f32.mrf.mxu1  ;;  %v1454_v17 = vadd.f32 %v2503_v0, %v1415_v5 }
 0x135   : > { %v1398_v22 = vmul.f32 %v2493_v57, %v1359_v47  ;;  %v1357_v30 = vadd.f32 %v2472_v42, %v907_v53  ;;  %v928_v55 = vadd.f32 %v2087_v1, %v2442_v19  ;;  %v1416_v63 = vmul.f32 %v2493_v57, %v1377_v54 }
 0x136   : > { %v1457_v24 = vadd.f32 %v2503_v0, %v1418_v2  ;;  %v1382_v10 = vadd.f32 %v2141_v40, %v1008_v13  ;;  %v919_v49 = vpop.f32.mrf.mxu0  ;;  %v1434_v6 = vadd.f32 %v2503_v0, %v1395_v32  ;;  %v1325_v62 = vpop.f32.mrf.mxu1  ;;  %v2672_v32 = vld [vmem:[#allocation3_spill] sm:$0xff]  ;;  %v1019_v53 = vadd.f32 %v2673_v38, %v2554_v9 }
 0x137   : > { %v1437_v41 = vadd.f32 %v2503_v0, %v1398_v22  ;;  %v1396_v59 = vmul.f32 %v2493_v57, %v1357_v30  ;;  %v920_v42 = vadd.f32 %v919_v49, %v2446_v21  ;;  %v1455_v19 = vadd.f32 %v2503_v0, %v1416_v63 }
 0x138   : > { %v1936_v3 = vpack.c.bf16 %v1457_v24, %v1456_v20  ;;  %v1362_v4 = vadd.f32 %v2474_v44, %v928_v55  ;;  %v1380_v12 = vadd.f32 %v1325_v62, %v1000_v18  ;;  %v2088_v52 = vpop.f32.mrf.mxu0  ;;  %v1421_v56 = vmul.f32 %v2493_v57, %v1382_v10  ;;  %v2142_v34 = vpop.f32.mrf.mxu1 }
 0x139   : > { %v1886_v43 = vpack.c.bf16 %v1437_v41, %v1436_v33  ;;  %v1435_v14 = vadd.f32 %v2503_v0, %v1396_v59  ;;  %v1360_v11 = vadd.f32 %v2476_v46, %v920_v42  ;;  %v1003_v21 = vadd.f32 %v2456_v26, %v2530_v31 }
 0x13a   : > { %1968 = vst [vmem:[%s2521_s23 + $0x58] sm:$0xff] %v1936_v3   ;;  %v1931_v35 = vpack.c.bf16 %v1455_v19, %v1454_v17  ;;  %v1383_v37 = vadd.f32 %v2142_v34, %v1011_v15  ;;  %v922_v8 = vpop.f32.mrf.mxu0  ;;  %v1024_v44 = vadd.f32 %v2458_v28, %v2536_v58  ;;  %v931_v16 = vadd.f32 %v2088_v52, %v2450_v23  ;;  %v1328_v61 = vpop.f32.mrf.mxu1 }
 0x13b   : > { %1958 = vst [vmem:[%s2521_s23 + $0x8] sm:$0xff] %v1886_v43   ;;  %v1881_v45 = vpack.c.bf16 %v1435_v14, %v1434_v6  ;;  %v1419_v46 = vmul.f32 %v2493_v57, %v1380_v12  ;;  %v1381_v36 = vadd.f32 %v1328_v61, %v1003_v21  ;;  %v923_v26 = vadd.f32 %v922_v8, %v2454_v25  ;;  %v2671_v25 = vld [vmem:[#allocation2_spill] sm:$0xff] }
 0x13c   : > { %1967 = vst [vmem:[%s2521_s23 + $0x50] sm:$0xff] %v1931_v35   ;;  %v1422_v27 = vmul.f32 %v2493_v57, %v1383_v37  ;;  %v1460_v31 = vadd.f32 %v2503_v0, %v1421_v56  ;;  %v1401_v13 = vmul.f32 %v2493_v57, %v1362_v4  ;;  %v1399_v28 = vmul.f32 %v2493_v57, %v1360_v11  ;;  %v2145_v29 = vpop.f32.mrf.mxu1 }
 0x13d   : > { %1882 = vst [vmem:[%s2521_s23] sm:$0xff] %v1881_v45   ;;  %v1363_v58 = vadd.f32 %v2480_v48, %v931_v16  ;;  %v1420_v5 = vmul.f32 %v2493_v57, %v1381_v36  ;;  %v1361_v39 = vadd.f32 %v2484_v50, %v923_v26  ;;  %v1386_v51 = vadd.f32 %v2145_v29, %v1024_v44 }
 0x13e   : > { %v1461_v23 = vadd.f32 %v2503_v0, %v1422_v27  ;;  %v1016_v18 = vadd.f32 %v2671_v25, %v2542_v7  ;;  %v1027_v47 = vadd.f32 %v2672_v32, %v2548_v60  ;;  %v1341_v15 = vpop.f32.mrf.mxu1  ;;  %v1458_v20 = vadd.f32 %v2503_v0, %v1419_v46 }
 0x13f   : > { %v1402_v48 = vmul.f32 %v2493_v57, %v1363_v58  ;;  %v1459_v50 = vadd.f32 %v2503_v0, %v1420_v5  ;;  %v1400_v54 = vmul.f32 %v2493_v57, %v1361_v39  ;;  %v1440_v1 = vadd.f32 %v2503_v0, %v1401_v13 }
 0x140   : > { %v1946_v2 = vpack.c.bf16 %v1461_v23, %v1460_v31  ;;  %v1438_v7 = vadd.f32 %v2503_v0, %v1399_v28  ;;  %v1384_v9 = vadd.f32 %v1341_v15, %v1016_v18  ;;  %v2146_v33 = vpop.f32.mrf.mxu1  ;;  %v1425_v40 = vmul.f32 %v2493_v57, %v1386_v51 }
 0x141   : > { %v1441_v60 = vadd.f32 %v2503_v0, %v1402_v48  ;;  %v1941_v22 = vpack.c.bf16 %v1459_v50, %v1458_v20  ;;  %v1439_v30 = vadd.f32 %v2503_v0, %v1400_v54  ;;  %v1387_v55 = vadd.f32 %v2146_v33, %v1027_v47 }
 0x142   : > { %1970 = vst [vmem:[%s2521_s23 + $0x68] sm:$0xff] %v1946_v2   ;;  %v1344_v24 = vpop.f32.mrf.mxu1  ;;  %v1423_v10 = vmul.f32 %v2493_v57, %v1384_v9  ;;  %v1464_v41 = vadd.f32 %v2503_v0, %v1425_v40 }
 0x143   : > { %v1896_v17 = vpack.c.bf16 %v1441_v60, %v1440_v1  ;;  %1969 = vst [vmem:[%s2521_s23 + $0x60] sm:$0xff] %v1941_v22   ;;  %v1891_v63 = vpack.c.bf16 %v1439_v30, %v1438_v7  ;;  %v1426_v49 = vmul.f32 %v2493_v57, %v1387_v55  ;;  %v1385_v6 = vadd.f32 %v1344_v24, %v1019_v53 }
 0x144   : > { %v1462_v42 = vadd.f32 %v2503_v0, %v1423_v10 }
 0x145   : > { %1960 = vst [vmem:[%s2521_s23 + $0x18] sm:$0xff] %v1896_v17   ;;  %1959 = vst [vmem:[%s2521_s23 + $0x10] sm:$0xff] %v1891_v63   ;;  %v1465_v59 = vadd.f32 %v2503_v0, %v1426_v49  ;;  %v1424_v62 = vmul.f32 %v2493_v57, %v1385_v6 }
 0x147   : > { %v1956_v3 = vpack.c.bf16 %v1465_v59, %v1464_v41  ;;  %v1463_v19 = vadd.f32 %v2503_v0, %v1424_v62 }
 0x149   : > { %1972 = vst [vmem:[%s2521_s23 + $0x78] sm:$0xff] %v1956_v3   ;;  %v1951_v4 = vpack.c.bf16 %v1463_v19, %v1462_v42 }
 0x14b   : > { %1971 = vst [vmem:[%s2521_s23 + $0x70] sm:$0xff] %v1951_v4  }
 0x14c PF: > { %s18_s27 = sadd.s32 1, %s2221_s27  }
 0x14d   : > { %p15_p4 = scmp.ge.s32.totalorder %s18_s27, 4  }
 0x14f   :  { %17 = sbr.rel (!%p15_p4) target bundleno = 1 (0x1), region = 88 }

// kernel: residual_coder_forward.18
= control target key start
LH: loop header
LB: loop body
LE: loop exit
PB: predicated region body
PF: predicated region fallthrough
CT: control target
= control target key end

     0   :  { %s1430_s15 = smov 0   ;;  %s1688_s0 = inlined_call_operand.vmem [shape: bf16[2,16,16,128], index: 0, kind: input, shape index: {}]   ;;  %s1689_s1 = inlined_call_operand.vmem [shape: bf16[1,128,128], index: 1, kind: input, shape index: {}]   ;;  %s1690_s2 = inlined_call_operand.vmem [shape: f32[1,128], index: 2, kind: input, shape index: {}]   ;;  %s1691_s3 = inlined_call_operand.vmem [shape: bf16[2,16,16,128], index: 3, kind: input, shape index: {}]   ;;  %s1692_s4 = inlined_call_operand.vmem [shape: bf16[2,16,16,128], index: 4, kind: output, shape index: {}]  }
   0x1 LB: > { %s998_s16 = sadd.s32 4294967295, %s1403_s15   ;;  %p1002_p0 = scmp.ge.s32.totalorder %s1403_s15, 1  ;;  %s1403_s15 = sphi %s1430_s15, %s14_s15  }
   0x2   : > { %p172_p1 = scmp.lt.s32.totalorder %s1403_s15, 3 }
   0x4   : > { %p173_p2 = pnand %p1002_p0, %p172_p1 }
   0x5   : > { %p203_p3 = scmp.lt.s32.totalorder (!%p173_p2), %s998_s16, 1 }
   0x6   : > { %176 = sbr.rel (%p173_p2) target bundleno = 290 (0x122), region = 36 }
   0xb   : > { %v1373_v0 = vld [vmem:[%s1689_s1 + $0x38] sm:$0xff]   ;;  %v1374_v1 = vld [vmem:[%s1689_s1 + $0x30] sm:$0xff]   ;;  %s1697_s16 = smov (!%p203_p3, %s998_s16), 1  ;;  %v1375_v2 = vld [vmem:[%s1689_s1 + $0x28] sm:$0xff]  }
   0xc   : > { %1301 = vmatprep.subr.bf16.mxu0 %v1373_v0  ;;  %1349 = vmatprep.subr.bf16.mxu1 %v1373_v0  ;;  %s1447_s23 = sshll.u32 %s1697_s16, 7  ;;  %v1376_v3 = vld [vmem:[%s1689_s1 + $0x20] sm:$0xff]   ;;  %v1377_v6 = vld [vmem:[%s1689_s1 + $0x18] sm:$0xff]   ;;  %v1378_v7 = vld [vmem:[%s1689_s1 + $0x10] sm:$0xff]  }
   0xd   : > { %1302 = vmatpush3.bf16.msra.mxu0 %v1373_v0  ;;  %1357 = vmatpush3.bf16.msra.mxu1 %v1373_v0  ;;  %s1453_s26 = scalar_lea.vmem %s1688_s0, %s1447_s23  ;;  %v1379_v8 = vld [vmem:[%s1689_s1 + $0x8] sm:$0xff]   ;;  %v1380_v9 = vld [vmem:[%s1689_s1] sm:$0xff]   ;;  %s1490_s13 = scalar_lea.vmem %s1691_s3, %s1447_s23 }
   0xe   : > { %1303 = vmatprep.subr.bf16.mxu0 %v1374_v1  ;;  %1350 = vmatprep.subr.bf16.mxu1 %v1374_v1  ;;  %v1381_v4 = vld [vmem:[%s1453_s26] sm:$0xff]   ;;  %v1383_v10 = vld [vmem:[%s1453_s26 + $0x8] sm:$0xff]   ;;  %v1385_v12 = vld [vmem:[%s1453_s26 + $0x10] sm:$0xff]   ;;  %s1597_s19 = scalar_lea.vmem %s1692_s4, %s1447_s23 }
   0xf   : > { %v1382_v5 = vld [vmem:[%s1453_s26 + $0x40] sm:$0xff]   ;;  %1317 = vmatprep.mubr.bf16.mxu0 %v1381_v4  ;;  %v1384_v11 = vld [vmem:[%s1453_s26 + $0x48] sm:$0xff]   ;;  %v1386_v13 = vld [vmem:[%s1453_s26 + $0x50] sm:$0xff]  }
  0x10   : > { %1333 = vmatprep.mubr.bf16.mxu1 %v1382_v5  ;;  %v1387_v14 = vld [vmem:[%s1453_s26 + $0x18] sm:$0xff]   ;;  %v1389_v16 = vld [vmem:[%s1453_s26 + $0x20] sm:$0xff]   ;;  %v1391_v18 = vld [vmem:[%s1453_s26 + $0x28] sm:$0xff]  }
  0x11   : > { %1304 = vmatpush3.bf16.msra.mxu0 %v1374_v1  ;;  %1358 = vmatpush3.bf16.msra.mxu1 %v1374_v1  ;;  %v1388_v15 = vld [vmem:[%s1453_s26 + $0x58] sm:$0xff]   ;;  %v1390_v17 = vld [vmem:[%s1453_s26 + $0x60] sm:$0xff]   ;;  %v1392_v19 = vld [vmem:[%s1453_s26 + $0x68] sm:$0xff]  }
  0x12   : > { %1305 = vmatprep.subr.bf16.mxu0 %v1375_v2  ;;  %1351 = vmatprep.subr.bf16.mxu1 %v1375_v2  ;;  %v1393_v20 = vld [vmem:[%s1453_s26 + $0x30] sm:$0xff]   ;;  %v1395_v22 = vld [vmem:[%s1453_s26 + $0x38] sm:$0xff]   ;;  %v1493_v24 = vld [vmem:[%s1490_s13 + $0x8] sm:$0xff]  }
  0x13   : > { %v1394_v21 = vld [vmem:[%s1453_s26 + $0x70] sm:$0xff]   ;;  %v1396_v23 = vld [vmem:[%s1453_s26 + $0x78] sm:$0xff]   ;;  %v1496_v25 = vld [vmem:[%s1490_s13 + $0x48] sm:$0xff]   ;;  %v1109_v32 = vunpack.c.l.bf16 %v1493_v24  ;;  %v1110_v37 = vunpack.c.h.bf16 %v1493_v24 }
  0x14   : > { %v1499_v26 = vld [vmem:[%s1490_s13] sm:$0xff]   ;;  %v1505_v28 = vld [vmem:[%s1490_s13 + $0x18] sm:$0xff]   ;;  %v1511_v30 = vld [vmem:[%s1490_s13 + $0x10] sm:$0xff]   ;;  %v1141_v33 = vunpack.c.l.bf16 %v1496_v25  ;;  %v1142_v38 = vunpack.c.h.bf16 %v1496_v25 }
  0x15   : > { %1306 = vmatpush3.bf16.msra.mxu0 %v1375_v2  ;;  %1359 = vmatpush3.bf16.msra.mxu1 %v1375_v2  ;;  %v1502_v27 = vld [vmem:[%s1490_s13 + $0x40] sm:$0xff]   ;;  %v1508_v29 = vld [vmem:[%s1490_s13 + $0x58] sm:$0xff]   ;;  %v1514_v31 = vld [vmem:[%s1490_s13 + $0x50] sm:$0xff]   ;;  %v1105_v34 = vunpack.c.l.bf16 %v1499_v26  ;;  %v1106_v39 = vunpack.c.h.bf16 %v1499_v26  ;;  %v1117_v45 = vunpack.c.l.bf16 %v1505_v28  ;;  %v1113_v47 = vunpack.c.l.bf16 %v1511_v30 }
  0x16   : > { %1307 = vmatprep.subr.bf16.mxu0 %v1376_v3  ;;  %1352 = vmatprep.subr.bf16.mxu1 %v1376_v3  ;;  %v1137_v35 = vunpack.c.l.bf16 %v1502_v27  ;;  %v1521_v36 = vld [vmem:[%s1490_s13 + $0x28] sm:$0xff]   ;;  %v1138_v40 = vunpack.c.h.bf16 %v1502_v27  ;;  %v1531_v42 = vld [vmem:[%s1490_s13 + $0x20] sm:$0xff]   ;;  %v1149_v46 = vunpack.c.l.bf16 %v1508_v29  ;;  %v1145_v48 = vunpack.c.l.bf16 %v1514_v31  ;;  %v1550_v53 = vld [vmem:[%s1490_s13 + $0x38] sm:$0xff]  }
  0x17   : > { %v1528_v41 = vld [vmem:[%s1490_s13 + $0x68] sm:$0xff]   ;;  %v1534_v43 = vld [vmem:[%s1490_s13 + $0x60] sm:$0xff]   ;;  %v1118_v49 = vunpack.c.h.bf16 %v1505_v28  ;;  %v1150_v50 = vunpack.c.h.bf16 %v1508_v29  ;;  %v1114_v51 = vunpack.c.h.bf16 %v1511_v30  ;;  %v1146_v52 = vunpack.c.h.bf16 %v1514_v31  ;;  %v1553_v54 = vld [vmem:[%s1490_s13 + $0x78] sm:$0xff]  }
  0x18   : > { %v1539_v44 = vld [vmem:[%s1690_s2] ss:$0 sm:$0xff]  ;;  %v1125_v57 = vunpack.c.l.bf16 %v1521_v36  ;;  %v1157_v58 = vunpack.c.l.bf16 %v1528_v41  ;;  %v1121_v59 = vunpack.c.l.bf16 %v1531_v42  ;;  %v1153_v60 = vunpack.c.l.bf16 %v1534_v43  ;;  %v1564_v1 = vld [vmem:[%s1490_s13 + $0x30] sm:$0xff]  }
  0x19   : > { %1308 = vmatpush3.bf16.msra.mxu0 %v1376_v3  ;;  %1360 = vmatpush3.bf16.msra.mxu1 %v1376_v3  ;;  %v1126_v63 = vunpack.c.h.bf16 %v1521_v36  ;;  %v1158_v0 = vunpack.c.h.bf16 %v1528_v41  ;;  %v1567_v2 = vld [vmem:[%s1490_s13 + $0x70] sm:$0xff]   ;;  %v1122_v5 = vunpack.c.h.bf16 %v1531_v42 }
  0x1a   : > { %1309 = vmatprep.subr.bf16.mxu0 %v1377_v6  ;;  %1353 = vmatprep.subr.bf16.mxu1 %v1377_v6 }
  0x1d   : > { %1310 = vmatpush3.bf16.msra.mxu0 %v1377_v6  ;;  %1361 = vmatpush3.bf16.msra.mxu1 %v1377_v6  ;;  %v1154_v6 = vunpack.c.h.bf16 %v1534_v43 }
  0x1e   : > { %1311 = vmatprep.subr.bf16.mxu0 %v1378_v7  ;;  %1354 = vmatprep.subr.bf16.mxu1 %v1378_v7 }
  0x21   : > { %1312 = vmatpush3.bf16.msra.mxu0 %v1378_v7  ;;  %1362 = vmatpush3.bf16.msra.mxu1 %v1378_v7  ;;  %v1133_v7 = vunpack.c.l.bf16 %v1550_v53 }
  0x22   : > { %1313 = vmatprep.subr.bf16.mxu0 %v1379_v8  ;;  %1355 = vmatprep.subr.bf16.mxu1 %v1379_v8 }
  0x25   : > { %1314 = vmatpush3.bf16.msra.mxu0 %v1379_v8  ;;  %1363 = vmatpush3.bf16.msra.mxu1 %v1379_v8  ;;  %v1165_v8 = vunpack.c.l.bf16 %v1553_v54 }
  0x26   : > { %1315 = vmatprep.subr.bf16.mxu0 %v1380_v9  ;;  %1356 = vmatprep.subr.bf16.mxu1 %v1380_v9 }
  0x29   : > { %1316 = vmatpush3.bf16.msra.mxu0 %v1380_v9  ;;  %1364 = vmatpush3.bf16.msra.mxu1 %v1380_v9 }
  0x2c   : > { %1318 = vmatmul.mubr.bf16.vlgmr.msra.gmra.mxu0 %v1383_v10  ;;  %1334 = vmatmul.mubr.bf16.vlgmr.msra.gmra.mxu1 %v1384_v11 }
  0x2d   : > { %1321 = vmatprep.mubr.bf16.mxu0 %v1385_v12  ;;  %1337 = vmatprep.mubr.bf16.mxu1 %v1386_v13 }
  0x34   : > { %1322 = vmatmul.mubr.bf16.gmra.mxu0 %v1387_v14  ;;  %1338 = vmatmul.mubr.bf16.gmra.mxu1 %v1388_v15  ;;  %v1129_v15 = vunpack.c.l.bf16 %v1564_v1 }
  0x35   : > { %1325 = vmatprep.mubr.bf16.mxu0 %v1389_v16  ;;  %1341 = vmatprep.mubr.bf16.mxu1 %v1390_v17 }
  0x3c   : > { %1326 = vmatmul.mubr.bf16.gmra.mxu0 %v1391_v18  ;;  %1342 = vmatmul.mubr.bf16.gmra.mxu1 %v1392_v19 }
  0x3d   : > { %1329 = vmatprep.mubr.bf16.mxu0 %v1393_v20  ;;  %1345 = vmatprep.mubr.bf16.mxu1 %v1394_v21 }
  0x44   : > { %1330 = vmatmul.mubr.bf16.gmra.mxu0 %v1395_v22  ;;  %1346 = vmatmul.mubr.bf16.gmra.mxu1 %v1396_v23 }
  0xec   : > { %v1319_v55 = vpop.f32.mrf.mxu0  ;;  %v1335_v56 = vpop.f32.mrf.mxu1 }
  0xed   : > { %v461_v61 = vadd.f32 %v1319_v55, %v1539_v44  ;;  %v525_v62 = vadd.f32 %v1335_v56, %v1539_v44 }
  0xee   : > { %v452_v3 = vpop.f32.mrf.mxu0  ;;  %v516_v4 = vpop.f32.mrf.mxu1 }
  0xef   : > { %v645_v9 = vadd.f32 %v1109_v32, %v461_v61  ;;  %v661_v10 = vadd.f32 %v1141_v33, %v525_v62  ;;  %v453_v11 = vadd.f32 %v1539_v44, %v452_v3  ;;  %v517_v12 = vadd.f32 %v1539_v44, %v516_v4 }
  0xf0   : > { %v1320_v13 = vpop.f32.mrf.mxu0  ;;  %v1336_v14 = vpop.f32.mrf.mxu1 }
  0xf1   : > { %vm677_vm0 = vcmp.ge.f32.partialorder %v645_v9, 0.0  ;;  %v709_v19 = vmul.f32 0.01, %v645_v9  ;;  %vm693_vm1 = vcmp.ge.f32.partialorder %v661_v10, 0.0  ;;  %v725_v20 = vmul.f32 0.01, %v661_v10 }
  0xf2   : > { %v643_v21 = vadd.f32 %v1105_v34, %v453_v11  ;;  %v659_v22 = vadd.f32 %v1137_v35, %v517_v12  ;;  %v464_v23 = vadd.f32 %v1320_v13, %v1539_v44  ;;  %v528_v32 = vadd.f32 %v1336_v14, %v1539_v44  ;;  %v455_v33 = vpop.f32.mrf.mxu0  ;;  %v519_v55 = vpop.f32.mrf.mxu1 }
  0xf3   : > { %v741_v56 = vsel %vm677_vm0, %v645_v9, %v709_v19  ;;  %v757_v61 = vsel %vm693_vm1, %v661_v10, %v725_v20  ;;  %v456_v62 = vadd.f32 %v1539_v44, %v455_v33  ;;  %v520_v3 = vadd.f32 %v1539_v44, %v519_v55 }
  0xf4   : > { %vm675_vm2 = vcmp.ge.f32.partialorder %v643_v21, 0.0  ;;  %v707_v4 = vmul.f32 0.01, %v643_v21  ;;  %vm691_vm3 = vcmp.ge.f32.partialorder %v659_v22, 0.0  ;;  %v723_v18 = vmul.f32 0.01, %v659_v22  ;;  %v1323_v17 = vpop.f32.mrf.mxu0  ;;  %v1339_v16 = vpop.f32.mrf.mxu1 }
  0xf5   : > { %v646_v34 = vadd.f32 %v1110_v37, %v464_v23  ;;  %v662_v35 = vadd.f32 %v1142_v38, %v528_v32  ;;  %v644_v9 = vadd.f32 %v1106_v39, %v456_v62  ;;  %v660_v10 = vadd.f32 %v1138_v40, %v520_v3 }
  0xf6   : > { %v739_v11 = vsel %vm675_vm2, %v643_v21, %v707_v4  ;;  %v755_v12 = vsel %vm691_vm3, %v659_v22, %v723_v18  ;;  %v477_v13 = vadd.f32 %v1323_v17, %v1539_v44  ;;  %v541_v14 = vadd.f32 %v1339_v16, %v1539_v44  ;;  %v468_v19 = vpop.f32.mrf.mxu0  ;;  %v532_v20 = vpop.f32.mrf.mxu1 }
  0xf7   : > { %vm678_vm4 = vcmp.ge.f32.partialorder %v646_v34, 0.0  ;;  %v710_v24 = vmul.f32 0.01, %v646_v34  ;;  %vm694_vm5 = vcmp.ge.f32.partialorder %v662_v35, 0.0  ;;  %v726_v25 = vmul.f32 0.01, %v662_v35 }
  0xf8   : > { %vm676_vm6 = vcmp.ge.f32.partialorder %v644_v9, 0.0  ;;  %v708_v37 = vmul.f32 0.01, %v644_v9  ;;  %vm692_vm7 = vcmp.ge.f32.partialorder %v660_v10, 0.0  ;;  %v724_v26 = vmul.f32 0.01, %v660_v10  ;;  %v1324_v38 = vpop.f32.mrf.mxu0  ;;  %v1340_v27 = vpop.f32.mrf.mxu1 }
  0xf9   : > { %v742_v39 = vsel %vm678_vm4, %v646_v34, %v710_v24  ;;  %v758_v40 = vsel %vm694_vm5, %v662_v35, %v726_v25  ;;  %v649_v16 = vadd.f32 %v1117_v45, %v477_v13  ;;  %v665_v17 = vadd.f32 %v1149_v46, %v541_v14 }
  0xfa   : > { %v1175_v18 = vpack.c.bf16 %v742_v39, %v741_v56  ;;  %v1215_v21 = vpack.c.bf16 %v758_v40, %v757_v61  ;;  %v740_v22 = vsel %vm676_vm6, %v644_v9, %v708_v37  ;;  %v756_v23 = vsel %vm692_vm7, %v660_v10, %v724_v26  ;;  %v471_v32 = vpop.f32.mrf.mxu0  ;;  %v535_v33 = vpop.f32.mrf.mxu1 }
  0xfb   : > { %v1170_v55 = vpack.c.bf16 %v740_v22, %v739_v11  ;;  %v1210_v62 = vpack.c.bf16 %v756_v23, %v755_v12  ;;  %vm681_vm8 = vcmp.ge.f32.partialorder %v649_v16, 0.0  ;;  %v713_v3 = vmul.f32 0.01, %v649_v16 }
  0xfc   : > { %1262 = vst [vmem:[%s1597_s19 + $0x8] sm:$0xff] %v1175_v18   ;;  %1270 = vst [vmem:[%s1597_s19 + $0x48] sm:$0xff] %v1215_v21   ;;  %vm697_vm9 = vcmp.ge.f32.partialorder %v665_v17, 0.0  ;;  %v729_v4 = vmul.f32 0.01, %v665_v17  ;;  %v469_v45 = vadd.f32 %v1539_v44, %v468_v19  ;;  %v533_v46 = vadd.f32 %v1539_v44, %v532_v20  ;;  %v1327_v56 = vpop.f32.mrf.mxu0  ;;  %v1343_v61 = vpop.f32.mrf.mxu1 }
  0xfd   : > { %1171 = vst [vmem:[%s1597_s19] sm:$0xff] %v1170_v55   ;;  %1269 = vst [vmem:[%s1597_s19 + $0x40] sm:$0xff] %v1210_v62   ;;  %v745_v34 = vsel %vm681_vm8, %v649_v16, %v713_v3  ;;  %v480_v35 = vadd.f32 %v1324_v38, %v1539_v44  ;;  %v544_v9 = vadd.f32 %v1340_v27, %v1539_v44 }
  0xfe   : > { %v472_v10 = vadd.f32 %v1539_v44, %v471_v32  ;;  %v761_v11 = vsel %vm697_vm9, %v665_v17, %v729_v4  ;;  %v647_v12 = vadd.f32 %v1113_v47, %v469_v45  ;;  %v663_v13 = vadd.f32 %v1145_v48, %v533_v46  ;;  %v484_v19 = vpop.f32.mrf.mxu0  ;;  %v548_v20 = vpop.f32.mrf.mxu1 }
  0xff   : > { %v536_v14 = vadd.f32 %v1539_v44, %v535_v33  ;;  %v650_v24 = vadd.f32 %v1118_v49, %v480_v35  ;;  %v666_v25 = vadd.f32 %v1150_v50, %v544_v9  ;;  %v493_v26 = vadd.f32 %v1327_v56, %v1539_v44 }
 0x100   : > { %v648_v37 = vadd.f32 %v1114_v51, %v472_v10  ;;  %vm679_vm10 = vcmp.ge.f32.partialorder %v647_v12, 0.0  ;;  %v711_v47 = vmul.f32 0.01, %v647_v12  ;;  %vm695_vm11 = vcmp.ge.f32.partialorder %v663_v13, 0.0  ;;  %v1328_v48 = vpop.f32.mrf.mxu0  ;;  %v1344_v27 = vpop.f32.mrf.mxu1 }
 0x101   : > { %v727_v38 = vmul.f32 0.01, %v663_v13  ;;  %vm682_vm12 = vcmp.ge.f32.partialorder %v650_v24, 0.0  ;;  %v714_v39 = vmul.f32 0.01, %v650_v24  ;;  %vm698_vm13 = vcmp.ge.f32.partialorder %v666_v25, 0.0 }
 0x102   : > { %v730_v40 = vmul.f32 0.01, %v666_v25  ;;  %v743_v28 = vsel %vm679_vm10, %v647_v12, %v711_v47  ;;  %vm680_vm14 = vcmp.ge.f32.partialorder %v648_v37, 0.0  ;;  %v712_v29 = vmul.f32 0.01, %v648_v37  ;;  %v487_v50 = vpop.f32.mrf.mxu0  ;;  %v551_v30 = vpop.f32.mrf.mxu1 }
 0x103   : > { %v759_v49 = vsel %vm695_vm11, %v663_v13, %v727_v38  ;;  %v746_v51 = vsel %vm682_vm12, %v650_v24, %v714_v39  ;;  %v664_v17 = vadd.f32 %v1146_v52, %v536_v14  ;;  %v653_v18 = vadd.f32 %v1125_v57, %v493_v26 }
 0x104   : > { %v762_v16 = vsel %vm698_vm13, %v666_v25, %v730_v40  ;;  %v1185_v21 = vpack.c.bf16 %v746_v51, %v745_v34  ;;  %v744_v23 = vsel %vm680_vm14, %v648_v37, %v712_v29  ;;  %v557_v32 = vadd.f32 %v1343_v61, %v1539_v44  ;;  %v1331_v33 = vpop.f32.mrf.mxu0  ;;  %v1347_v4 = vpop.f32.mrf.mxu1 }
 0x105   : > { %v1225_v22 = vpack.c.bf16 %v762_v16, %v761_v11  ;;  %v1180_v55 = vpack.c.bf16 %v744_v23, %v743_v28  ;;  %vm696_vm15 = vcmp.ge.f32.partialorder %v664_v17, 0.0  ;;  %v728_v62 = vmul.f32 0.01, %v664_v17 }
 0x106   : > { %vm685_vm0 = vcmp.ge.f32.partialorder %v653_v18, 0.0  ;;  %1264 = vst [vmem:[%s1597_s19 + $0x18] sm:$0xff] %v1185_v21   ;;  %v717_v3 = vmul.f32 0.01, %v653_v18  ;;  %v669_v31 = vadd.f32 %v1157_v58, %v557_v32  ;;  %v485_v52 = vadd.f32 %v1539_v44, %v484_v19  ;;  %v500_v34 = vpop.f32.mrf.mxu0 }
 0x107   : > { %1272 = vst [vmem:[%s1597_s19 + $0x58] sm:$0xff] %v1225_v22   ;;  %v549_v57 = vadd.f32 %v1539_v44, %v548_v20  ;;  %1263 = vst [vmem:[%s1597_s19 + $0x10] sm:$0xff] %v1180_v55   ;;  %v760_v45 = vsel %vm696_vm15, %v664_v17, %v728_v62  ;;  %v496_v46 = vadd.f32 %v1328_v48, %v1539_v44  ;;  %v1130_v58 = vunpack.c.h.bf16 %v1564_v1 }
 0x108   : > { %v560_v56 = vadd.f32 %v1344_v27, %v1539_v44  ;;  %v488_v61 = vadd.f32 %v1539_v44, %v487_v50  ;;  %v1220_v35 = vpack.c.bf16 %v760_v45, %v759_v49  ;;  %vm701_vm1 = vcmp.ge.f32.partialorder %v669_v31, 0.0  ;;  %v1332_v36 = vpop.f32.mrf.mxu0 }
 0x109   : > { %v733_v9 = vmul.f32 0.01, %v669_v31  ;;  %v651_v10 = vadd.f32 %v1121_v59, %v485_v52  ;;  %v667_v11 = vadd.f32 %v1153_v60, %v549_v57  ;;  %v654_v12 = vadd.f32 %v1126_v63, %v496_v46  ;;  %v564_v59 = vpop.f32.mrf.mxu1 }
 0x10a   : > { %v670_v13 = vadd.f32 %v1158_v0, %v560_v56  ;;  %1271 = vst [vmem:[%s1597_s19 + $0x50] sm:$0xff] %v1220_v35   ;;  %v749_v14 = vsel %vm685_vm0, %v653_v18, %v717_v3  ;;  %v652_v19 = vadd.f32 %v1122_v5, %v488_v61  ;;  %v552_v20 = vadd.f32 %v1539_v44, %v551_v30  ;;  %v503_v49 = vpop.f32.mrf.mxu0 }
 0x10b   : > { %v509_v24 = vadd.f32 %v1331_v33, %v1539_v44  ;;  %v765_v25 = vsel %vm701_vm1, %v669_v31, %v733_v9  ;;  %vm683_vm2 = vcmp.ge.f32.partialorder %v651_v10, 0.0  ;;  %v715_v60 = vmul.f32 0.01, %v651_v10  ;;  %v1348_v48 = vpop.f32.mrf.mxu1 }
 0x10c   : > { %v731_v37 = vmul.f32 0.01, %v667_v11  ;;  %vm686_vm3 = vcmp.ge.f32.partialorder %v654_v12, 0.0  ;;  %v718_v63 = vmul.f32 0.01, %v654_v12  ;;  %vm702_vm4 = vcmp.ge.f32.partialorder %v670_v13, 0.0 }
 0x10d   : > { %v734_v41 = vmul.f32 0.01, %v670_v13  ;;  %v747_v0 = vsel %vm683_vm2, %v651_v10, %v715_v60  ;;  %vm699_vm5 = vcmp.ge.f32.partialorder %v667_v11, 0.0  ;;  %vm684_vm6 = vcmp.ge.f32.partialorder %v652_v19, 0.0  ;;  %v567_v22 = vpop.f32.mrf.mxu1 }
 0x10e   : > { %v716_v42 = vmul.f32 0.01, %v652_v19  ;;  %v750_v5 = vsel %vm686_vm3, %v654_v12, %v718_v63  ;;  %v668_v47 = vadd.f32 %v1154_v6, %v552_v20  ;;  %v657_v38 = vadd.f32 %v1133_v7, %v509_v24 }
 0x10f   : > { %v766_v26 = vsel %vm702_vm4, %v670_v13, %v734_v41  ;;  %v1195_v27 = vpack.c.bf16 %v750_v5, %v749_v14  ;;  %v573_v28 = vadd.f32 %v1347_v4, %v1539_v44  ;;  %v763_v29 = vsel %vm699_vm5, %v667_v11, %v731_v37 }
 0x110   : > { %v1235_v39 = vpack.c.bf16 %v766_v26, %v765_v25  ;;  %v748_v40 = vsel %vm684_vm6, %v652_v19, %v716_v42  ;;  %vm700_vm7 = vcmp.ge.f32.partialorder %v668_v47, 0.0  ;;  %v732_v30 = vmul.f32 0.01, %v668_v47 }
 0x111   : > { %v1190_v50 = vpack.c.bf16 %v748_v40, %v747_v0  ;;  %1266 = vst [vmem:[%s1597_s19 + $0x28] sm:$0xff] %v1195_v27   ;;  %v721_v51 = vmul.f32 0.01, %v657_v38  ;;  %v673_v43 = vadd.f32 %v1165_v8, %v573_v28  ;;  %v501_v6 = vadd.f32 %v1539_v44, %v500_v34 }
 0x112   : > { %1274 = vst [vmem:[%s1597_s19 + $0x68] sm:$0xff] %v1235_v39   ;;  %v565_v7 = vadd.f32 %v1539_v44, %v564_v59  ;;  %v764_v16 = vsel %vm700_vm7, %v668_v47, %v732_v30  ;;  %v512_v17 = vadd.f32 %v1332_v36, %v1539_v44  ;;  %v576_v18 = vadd.f32 %v1348_v48, %v1539_v44 }
 0x113   : > { %1265 = vst [vmem:[%s1597_s19 + $0x20] sm:$0xff] %v1190_v50   ;;  %v504_v21 = vadd.f32 %v1539_v44, %v503_v49  ;;  %v1230_v23 = vpack.c.bf16 %v764_v16, %v763_v29  ;;  %vm689_vm8 = vcmp.ge.f32.partialorder %v657_v38, 0.0  ;;  %v737_v32 = vmul.f32 0.01, %v673_v43 }
 0x114   : > { %v655_v8 = vadd.f32 %v1129_v15, %v501_v6  ;;  %v1693_v33 = vunpack.c.l.bf16 %v1567_v2  ;;  %v1694_v62 = vunpack.c.h.bf16 %v1550_v53  ;;  %v1695_v31 = vunpack.c.h.bf16 %v1553_v54 }
 0x115   : > { %1273 = vst [vmem:[%s1597_s19 + $0x60] sm:$0xff] %v1230_v23   ;;  %vm705_vm9 = vcmp.ge.f32.partialorder %v673_v43, 0.0  ;;  %v656_v57 = vadd.f32 %v1130_v58, %v504_v21  ;;  %v568_v4 = vadd.f32 %v1539_v44, %v567_v22  ;;  %v1162_v45 = vunpack.c.h.bf16 %v1567_v2 }
 0x116   : > { %v671_v55 = vadd.f32 %v1693_v33, %v565_v7  ;;  %v658_v3 = vadd.f32 %v1694_v62, %v512_v17  ;;  %v674_v52 = vadd.f32 %v1695_v31, %v576_v18  ;;  %v753_v46 = vsel %vm689_vm8, %v657_v38, %v721_v51 }
 0x117   : > { %vm687_vm10 = vcmp.ge.f32.partialorder %v655_v8, 0.0  ;;  %v719_v1 = vmul.f32 0.01, %v655_v8  ;;  %v769_v53 = vsel %vm705_vm9, %v673_v43, %v737_v32  ;;  %vm688_vm14 = vcmp.ge.f32.partialorder %v656_v57, 0.0 }
 0x118   : > { %vm690_vm11 = vcmp.ge.f32.partialorder %v658_v3, 0.0  ;;  %v722_v15 = vmul.f32 0.01, %v658_v3  ;;  %vm706_vm12 = vcmp.ge.f32.partialorder %v674_v52, 0.0  ;;  %v738_v56 = vmul.f32 0.01, %v674_v52 }
 0x119   : > { %vm703_vm13 = vcmp.ge.f32.partialorder %v671_v55, 0.0  ;;  %v720_v54 = vmul.f32 0.01, %v656_v57  ;;  %v735_v61 = vmul.f32 0.01, %v671_v55  ;;  %v672_v35 = vadd.f32 %v1162_v45, %v568_v4 }
 0x11a   : > { %v754_v34 = vsel %vm690_vm11, %v658_v3, %v722_v15  ;;  %v770_v44 = vsel %vm706_vm12, %v674_v52, %v738_v56  ;;  %v751_v2 = vsel %vm687_vm10, %v655_v8, %v719_v1 }
 0x11b   : > { %v1205_v9 = vpack.c.bf16 %v754_v34, %v753_v46  ;;  %v1245_v58 = vpack.c.bf16 %v770_v44, %v769_v53  ;;  %v752_v10 = vsel %vm688_vm14, %v656_v57, %v720_v54  ;;  %vm704_vm15 = vcmp.ge.f32.partialorder %v672_v35, 0.0 }
 0x11c   : > { %v1200_v11 = vpack.c.bf16 %v752_v10, %v751_v2  ;;  %v736_v12 = vmul.f32 0.01, %v672_v35  ;;  %v767_v13 = vsel %vm703_vm13, %v671_v55, %v735_v61 }
 0x11d   : > { %1268 = vst [vmem:[%s1597_s19 + $0x38] sm:$0xff] %v1205_v9   ;;  %1276 = vst [vmem:[%s1597_s19 + $0x78] sm:$0xff] %v1245_v58  }
 0x11e   : > { %1267 = vst [vmem:[%s1597_s19 + $0x30] sm:$0xff] %v1200_v11   ;;  %v768_v14 = vsel %vm704_vm15, %v672_v35, %v736_v12 }
 0x11f   : > { %v1240_v19 = vpack.c.bf16 %v768_v14, %v767_v13 }
 0x121   : > { %1275 = vst [vmem:[%s1597_s19 + $0x70] sm:$0xff] %v1240_v19  }
 0x122 PF: > { %s14_s15 = sadd.s32 1, %s1403_s15  }
 0x123   : > { %p11_p4 = scmp.ge.s32.totalorder %s14_s15, 4  }
 0x125   :  { %13 = sbr.rel (!%p11_p4) target bundleno = 1 (0x1), region = 69 }

// kernel: residual_coder_forward.16
= control target key start
LH: loop header
LB: loop body
LE: loop exit
PB: predicated region body
PF: predicated region fallthrough
CT: control target
= control target key end

     0   :  { %s4701_s12 = smov 0   ;;  %s6279_s0 = inlined_call_operand.vmem [shape: bf16[2,18,18,128], index: 0, kind: input, shape index: {}]   ;;  %s6280_s1 = inlined_call_operand.vmem [shape: bf16[9,128,128], index: 1, kind: input, shape index: {}]   ;;  %s6281_s2 = inlined_call_operand.vmem [shape: f32[1,128], index: 2, kind: input, shape index: {}]   ;;  %s6282_s3 = inlined_call_operand.vmem [shape: bf16[2,16,16,128], index: 3, kind: output, shape index: {}]  }
   0x1 LB: > { %s3563_s13 = sadd.s32 4294967295, %s4679_s12   ;;  %p3567_p0 = scmp.ge.s32.totalorder %s4679_s12, 1  ;;  %s4679_s12 = sphi %s4701_s12, %s13_s12  }
   0x2   : > { %p137_p1 = scmp.lt.s32.totalorder %s4679_s12, 3 }
   0x4   : > { %p138_p2 = pnand %p3567_p0, %p137_p1 }
   0x6   : > { %141 = sbr.rel (%p138_p2) target bundleno = 532 (0x214), region = 32 }
   0xb   : > { %v4551_v0 = vld [vmem:[%s6280_s1 + $0xf8] sm:$0xff]   ;;  %p161_p3 = scmp.lt.s32.totalorder %s3563_s13, 1  ;;  %v4552_v1 = vld [vmem:[%s6280_s1 + $0xf0] sm:$0xff]   ;;  %v4553_v2 = vld [vmem:[%s6280_s1 + $0xe8] sm:$0xff]   ;;  %vm1137_vm0 = vsmask.f32 3328 }
   0xc   : > { %4094 = vmatprep.subr.bf16.mxu0 %v4551_v0  ;;  %4526 = vmatprep.subr.bf16.mxu1 %v4551_v0  ;;  %v4554_v3 = vld [vmem:[%s6280_s1 + $0xe0] sm:$0xff]   ;;  %v4555_v10 = vld [vmem:[%s6280_s1 + $0xd8] sm:$0xff]   ;;  %v4556_v11 = vld [vmem:[%s6280_s1 + $0xd0] sm:$0xff]   ;;  %vm1138_vm1 = vsmask.f32 7440  ;;  %vm2383_vm3 = vcmask 1042432  }
   0xd   : > { %s6350_s13 = smov (!%p161_p3, %s3563_s13), 1  ;;  %4095 = vmatpush3.bf16.msra.mxu0 %v4551_v0  ;;  %4534 = vmatpush3.bf16.msra.mxu1 %v4551_v0  ;;  %v4557_v12 = vld [vmem:[%s6280_s1 + $0xc8] sm:$0xff]   ;;  %v4558_v13 = vld [vmem:[%s6280_s1 + $0xc0] sm:$0xff]   ;;  %v4563_v18 = vld [vmem:[%s6280_s1 + $0x38] sm:$0xff]   ;;  %vm2384_vm4 = vcmask 1046532  }
   0xe   : > { %4096 = vmatprep.subr.bf16.mxu0 %v4552_v1  ;;  %4527 = vmatprep.subr.bf16.mxu1 %v4552_v1  ;;  %s4542_s20 = smul.u32 216, %s6350_s13  ;;  %v4564_v19 = vld [vmem:[%s6280_s1 + $0x1b8] sm:$0xff]   ;;  %v4565_v26 = vld [vmem:[%s6280_s1 + $0x30] sm:$0xff]   ;;  %v4571_v34 = vld [vmem:[%s6280_s1 + $0x28] sm:$0xff]   ;;  %s3750_s18 = sshll.u32 %s6350_s13, 7 }
   0xf   : > { %v4566_v27 = vld [vmem:[%s6280_s1 + $0x1b0] sm:$0xff]   ;;  %v4572_v35 = vld [vmem:[%s6280_s1 + $0x1a8] sm:$0xff]   ;;  %v4573_v45 = vld [vmem:[%s6280_s1 + $0x20] sm:$0xff]   ;;  %s6178_s13 = scalar_lea.vmem %s6282_s3, %s3750_s18 }
  0x10   : > { %s4724_s23 = scalar_lea.vmem %s6279_s0, %s4542_s20  ;;  %v4574_v46 = vld [vmem:[%s6280_s1 + $0x1a0] sm:$0xff]   ;;  %v4579_v52 = vld [vmem:[%s6280_s1 + $0x18] sm:$0xff]   ;;  %v4581_v63 = vld [vmem:[%s6280_s1 + $0x10] sm:$0xff]  }
  0x11   : > { %4097 = vmatpush3.bf16.msra.mxu0 %v4552_v1  ;;  %4535 = vmatpush3.bf16.msra.mxu1 %v4552_v1  ;;  %v4730_v4 = vld [vmem:[%s4724_s23 + $0xc] sm:$0xf]  ;;  %v4733_v5 = vld [vmem:[%s4724_s23 + $0x10] sm:$0xf]  ;;  %v4764_v14 = vld [vmem:[%s4724_s23 + $0x18] sm:$0xf] }
  0x12   : > { %4098 = vmatprep.subr.bf16.mxu0 %v4553_v2  ;;  %4528 = vmatprep.subr.bf16.mxu1 %v4553_v2  ;;  %v4736_v6 = vld [vmem:[%s4724_s23 + $0x6c] sm:$0xf]  ;;  %v4740_v7 = vcombine.low %v4730_v4, %v4733_v5  ;;  %v4743_v8 = vld [vmem:[%s4724_s23 + $0x70] sm:$0xf]  ;;  %v4767_v15 = vld [vmem:[%s4724_s23 + $0x1c] sm:$0xf] }
  0x13   : > { %v4747_v9 = vcombine.low %v4736_v6, %v4743_v8  ;;  %v4770_v16 = vld [vmem:[%s4724_s23 + $0x78] sm:$0xf]  ;;  %v4773_v17 = vld [vmem:[%s4724_s23 + $0x7c] sm:$0xf]  ;;  %v4782_v20 = vld [vmem:[%s4724_s23 + $0x24] sm:$0xf]  ;;  %v4786_v21 = vcombine.low %v4764_v14, %v4767_v15 }
  0x14   : > { %4110 = vmatprep.mubr.bf16.mxu0 %v4740_v7  ;;  %v4790_v22 = vcombine.low %v4770_v16, %v4773_v17  ;;  %v4793_v23 = vld [vmem:[%s4724_s23 + $0x28] sm:$0xf]  ;;  %v4796_v24 = vld [vmem:[%s4724_s23 + $0x84] sm:$0xf]  ;;  %v4818_v30 = vld [vmem:[%s4724_s23 + $0x30] sm:$0xf] }
  0x15   : > { %4099 = vmatpush3.bf16.msra.mxu0 %v4553_v2  ;;  %4536 = vmatpush3.bf16.msra.mxu1 %v4553_v2  ;;  %v4799_v25 = vld [vmem:[%s4724_s23 + $0x88] sm:$0xf]  ;;  %v4809_v28 = vcombine.low %v4782_v20, %v4793_v23  ;;  %v4821_v31 = vld [vmem:[%s4724_s23 + $0x34] sm:$0xf]  ;;  %v4824_v32 = vld [vmem:[%s4724_s23 + $0x90] sm:$0xf] }
  0x16   : > { %4100 = vmatprep.subr.bf16.mxu0 %v4554_v3  ;;  %4529 = vmatprep.subr.bf16.mxu1 %v4554_v3  ;;  %v4813_v29 = vcombine.low %v4796_v24, %v4799_v25  ;;  %v4827_v33 = vld [vmem:[%s4724_s23 + $0x94] sm:$0xf]  ;;  %v1165_v36 = vshrl.u32 %v4730_v4, 16  ;;  %v4839_v37 = vld [vmem:[%s4724_s23 + $0x3c] sm:$0xf]  ;;  %v4843_v38 = vcombine.low %v4818_v30, %v4821_v31  ;;  %v1168_v43 = vshll.u32 %v4730_v4, 16  ;;  %vm4971_vm2 = vmor %vm1137_vm0, %vm1138_vm1 }
  0x17   : > { %4126 = vmatprep.mubr.bf16.mxu1 %v4747_v9  ;;  %v4847_v39 = vcombine.low %v4824_v32, %v4827_v33  ;;  %v4850_v40 = vld [vmem:[%s4724_s23 + $0x40] sm:$0xf]  ;;  %v4853_v41 = vld [vmem:[%s4724_s23 + $0x9c] sm:$0xf]  ;;  %v1174_v44 = vshll.u32 %v4733_v5, 16  ;;  %v1178_v50 = vshrl.u32 %v4733_v5, 16  ;;  %vm5116_vm5 = vmor %vm2383_vm3, %vm2384_vm4 }
  0x18   : > { %v4856_v42 = vld [vmem:[%s4724_s23 + $0xa0] sm:$0xf]  ;;  %v4868_v47 = vcombine.low %v4839_v37, %v4850_v40  ;;  %v4875_v49 = vld [vmem:[%s4724_s23 + $0x48] sm:$0xf]  ;;  %v4881_v51 = vld [vmem:[%s4724_s23 + $0x4c] sm:$0xf] }
  0x19   : > { %4101 = vmatpush3.bf16.msra.mxu0 %v4554_v3  ;;  %4537 = vmatpush3.bf16.msra.mxu1 %v4554_v3  ;;  %v4872_v48 = vcombine.low %v4853_v41, %v4856_v42  ;;  %v4580_v53 = vld [vmem:[%s6280_s1 + $0x198] sm:$0xff]   ;;  %v4890_v54 = vld [vmem:[%s4724_s23 + $0xa8] sm:$0xf]  ;;  %v215_v55 = vld [vmem:[%s4724_s23 + $0xac] sm:$0xf]  ;;  %v4904_v59 = vcombine.low %v4875_v49, %v4881_v51  ;;  %v1167_v62 = vrot.slane %v1165_v36, 4 }
  0x1a   : > { %4102 = vmatprep.subr.bf16.mxu0 %v4555_v10  ;;  %4530 = vmatprep.subr.bf16.mxu1 %v4555_v10  ;;  %v4894_v56 = vld [vmem:[%s4724_s23 + $0x54] sm:$0xf]  ;;  %v4897_v57 = vld [vmem:[%s4724_s23 + $0x58] sm:$0xf]  ;;  %v4907_v60 = vcombine.low %v4890_v54, %v215_v55  ;;  %v1170_v0 = vrot.slane %v1168_v43, 5  ;;  %v4589_v43 = vld [vmem:[%s6280_s1] sm:$0xff]  }
  0x1b   : > { %v217_v58 = vld [vmem:[%s4724_s23 + $0xb4] sm:$0xf]  ;;  %v218_v61 = vld [vmem:[%s4724_s23 + $0xb8] sm:$0xf]  ;;  %v4918_v2 = vcombine.low %v4894_v56, %v4897_v57  ;;  %v4950_v36 = vld [vmem:[%s4724_s23 + $0x4] sm:$0xf] }
  0x1c   : > { %v4582_v1 = vld [vmem:[%s6280_s1 + $0x190] sm:$0xff]   ;;  %v4920_v3 = vcombine.low %v217_v58, %v218_v61  ;;  %v4593_v58 = vld [vmem:[%s6280_s1 + $0x138] sm:$0xff]  }
  0x1d   : > { %4103 = vmatpush3.bf16.msra.mxu0 %v4555_v10  ;;  %4538 = vmatpush3.bf16.msra.mxu1 %v4555_v10  ;;  %v4923_v10 = vld [vmem:[%s4724_s23 + $0x60] sm:$0xf] }
  0x1e   : > { %4104 = vmatprep.subr.bf16.mxu0 %v4556_v11  ;;  %4531 = vmatprep.subr.bf16.mxu1 %v4556_v11 }
  0x21   : > { %4105 = vmatpush3.bf16.msra.mxu0 %v4556_v11  ;;  %4539 = vmatpush3.bf16.msra.mxu1 %v4556_v11  ;;  %v4926_v11 = vld [vmem:[%s4724_s23 + $0x64] sm:$0xf] }
  0x22   : > { %4106 = vmatprep.subr.bf16.mxu0 %v4557_v12  ;;  %4532 = vmatprep.subr.bf16.mxu1 %v4557_v12 }
  0x25   : > { %4107 = vmatpush3.bf16.msra.mxu0 %v4557_v12  ;;  %4540 = vmatpush3.bf16.msra.mxu1 %v4557_v12  ;;  %v220_v12 = vld [vmem:[%s4724_s23 + $0xc0] sm:$0xf] }
  0x26   : > { %4108 = vmatprep.subr.bf16.mxu0 %v4558_v13  ;;  %4533 = vmatprep.subr.bf16.mxu1 %v4558_v13 }
  0x29   : > { %4109 = vmatpush3.bf16.msra.mxu0 %v4558_v13  ;;  %4541 = vmatpush3.bf16.msra.mxu1 %v4558_v13  ;;  %v4587_v13 = vld [vmem:[%s6280_s1 + $0x8] sm:$0xff]  }
  0x2a   : > { %4142 = vmatprep.subr.bf16.mxu1 %v4563_v18  ;;  %4190 = vmatprep.subr.bf16.mxu0 %v4564_v19 }
  0x2c   : > { %4111 = vmatmul.mubr.bf16.vlgmr.msra.gmra.mxu0 %v4786_v21  ;;  %4127 = vmatmul.mubr.bf16.vlgmr.msra.gmra.mxu1 %v4790_v22 }
  0x2d   : > { %4143 = vmatpush3.bf16.msra.mxu1 %v4563_v18  ;;  %4191 = vmatpush3.bf16.msra.mxu0 %v4564_v19  ;;  %v221_v18 = vld [vmem:[%s4724_s23 + $0xc4] sm:$0xf]  ;;  %v1180_v19 = vrot.slane %v1178_v50, 4 }
  0x2e   : > { %4144 = vmatprep.subr.bf16.mxu1 %v4565_v26  ;;  %4192 = vmatprep.subr.bf16.mxu0 %v4566_v27  ;;  %v4590_v50 = vld [vmem:[%s6280_s1 + $0x180] sm:$0xff]  }
  0x2f   : > { %4114 = vmatprep.mubr.bf16.mxu0 %v4809_v28  ;;  %4130 = vmatprep.mubr.bf16.mxu1 %v4813_v29 }
  0x31   : > { %4145 = vmatpush3.bf16.msra.mxu1 %v4565_v26  ;;  %4193 = vmatpush3.bf16.msra.mxu0 %v4566_v27  ;;  %v4588_v26 = vld [vmem:[%s6280_s1 + $0x188] sm:$0xff]   ;;  %v4941_v27 = vld [vmem:[%s4724_s23] sm:$0xf] }
  0x32   : > { %4146 = vmatprep.subr.bf16.mxu1 %v4571_v34  ;;  %4194 = vmatprep.subr.bf16.mxu0 %v4572_v35 }
  0x34   : > { %4115 = vmatmul.mubr.bf16.gmra.mxu0 %v4843_v38  ;;  %4131 = vmatmul.mubr.bf16.gmra.mxu1 %v4847_v39 }
  0x35   : > { %4147 = vmatpush3.bf16.msra.mxu1 %v4571_v34  ;;  %4195 = vmatpush3.bf16.msra.mxu0 %v4572_v35  ;;  %v4945_v34 = vcombine.low %v4923_v10, %v4926_v11  ;;  %v4947_v35 = vcombine.low %v220_v12, %v221_v18  ;;  %v4594_v12 = vld [vmem:[%s6280_s1 + $0x70] sm:$0xff]  }
  0x36   : > { %4148 = vmatprep.subr.bf16.mxu1 %v4573_v45  ;;  %4196 = vmatprep.subr.bf16.mxu0 %v4574_v46 }
  0x37   : > { %4118 = vmatprep.mubr.bf16.mxu0 %v4868_v47  ;;  %4134 = vmatprep.mubr.bf16.mxu1 %v4872_v48 }
  0x39   : > { %4149 = vmatpush3.bf16.msra.mxu1 %v4573_v45  ;;  %4197 = vmatpush3.bf16.msra.mxu0 %v4574_v46  ;;  %v1171_v45 = vor.u32 %v1170_v0, %v1167_v62  ;;  %v1176_v46 = vrot.slane %v1174_v44, 5  ;;  %v4592_v44 = vld [vmem:[%s6280_s1 + $0x78] sm:$0xff]   ;;  %v4976_v62 = vld [vmem:[%s4724_s23 + $0x14] sm:$0x1] }
  0x3a   : > { %4150 = vmatprep.subr.bf16.mxu1 %v4579_v52  ;;  %4198 = vmatprep.subr.bf16.mxu0 %v4580_v53 }
  0x3b   : > { %v1181_v55 = vor.u32 %v1180_v19, %v1176_v46  ;;  %v4596_v19 = vld [vmem:[%s6280_s1 + $0x68] sm:$0xff]  }
  0x3c   : > { %4119 = vmatmul.mubr.bf16.gmra.mxu0 %v4904_v59  ;;  %4135 = vmatmul.mubr.bf16.gmra.mxu1 %v4907_v60 }
  0x3d   : > { %4151 = vmatpush3.bf16.msra.mxu1 %v4579_v52  ;;  %4199 = vmatpush3.bf16.msra.mxu0 %v4580_v53  ;;  %v3595_v52 = vcombine.low %v4941_v27, %v4950_v36  ;;  %v1172_v53 = vrot.slane %v1171_v45, 4  ;;  %v1182_v0 = vrot.slane %v1181_v55, 4  ;;  %v4598_v45 = vld [vmem:[%s6280_s1 + $0x60] sm:$0xff]   ;;  %v1189_v55 = vshrl.u32 %v4764_v14, 16 }
  0x3e   : > { %4152 = vmatprep.subr.bf16.mxu1 %v4581_v63  ;;  %4200 = vmatprep.subr.bf16.mxu0 %v4582_v1 }
  0x3f   : > { %4122 = vmatprep.mubr.bf16.mxu0 %v4918_v2  ;;  %4138 = vmatprep.mubr.bf16.mxu1 %v4920_v3 }
  0x41   : > { %4153 = vmatpush3.bf16.msra.mxu1 %v4581_v63  ;;  %4201 = vmatpush3.bf16.msra.mxu0 %v4582_v1  ;;  %v1177_v63 = vsel %vm4971_vm2, %v1172_v53, %v1176_v46  ;;  %v1184_v1 = vshll.u32 %v4976_v62, 16  ;;  %v4600_v46 = vld [vmem:[%s6280_s1 + $0x58] sm:$0xff]   ;;  %v4605_v53 = vld [vmem:[%s6280_s1 + $0x108] sm:$0xff]  }
  0x42   : > { %4154 = vmatprep.subr.bf16.mxu1 %v4587_v13  ;;  %4202 = vmatprep.subr.bf16.mxu0 %v4588_v26 }
  0x43   : > { %v1186_v18 = vrot.slane %v1184_v1, 5 }
  0x44   : > { %4123 = vmatmul.mubr.bf16.gmra.mxu0 %v4945_v34  ;;  %4139 = vmatmul.mubr.bf16.gmra.mxu1 %v4947_v35 }
  0x45   : > { %4155 = vmatpush3.bf16.msra.mxu1 %v4587_v13  ;;  %4203 = vmatpush3.bf16.msra.mxu0 %v4588_v26  ;;  %v4595_v13 = vld [vmem:[%s6280_s1 + $0x130] sm:$0xff]   ;;  %v1187_v26 = vsel %vm4971_vm2, %v1182_v0, %v1186_v18  ;;  %v5050_v0 = vld [vmem:[%s6280_s1 + $0x1f8] sm:$0xff]   ;;  %v1154_v18 = vshrl.u32 %v4950_v36, 16 }
  0x46   : > { %4156 = vmatprep.subr.bf16.mxu1 %v4589_v43  ;;  %4204 = vmatprep.subr.bf16.mxu0 %v4590_v50 }
  0x47   : > { %4158 = vmatprep.mubr.bf16.mxu1 %v3595_v52  ;;  %4206 = vmatprep.mubr.bf16.mxu0 %v4786_v21  ;;  %v4604_v52 = vld [vmem:[%s6280_s1 + $0x48] sm:$0xff]  }
  0x49   : > { %4157 = vmatpush3.bf16.msra.mxu1 %v4589_v43  ;;  %4205 = vmatpush3.bf16.msra.mxu0 %v4590_v50  ;;  %v4597_v43 = vld [vmem:[%s6280_s1 + $0x128] sm:$0xff]   ;;  %v4601_v50 = vld [vmem:[%s6280_s1 + $0x118] sm:$0xff]  }
  0x4a   : > { %4238 = vmatprep.subr.bf16.mxu1 %v4592_v44  ;;  %4286 = vmatprep.subr.bf16.mxu0 %v4593_v58 }
  0x4c   : > { %4159 = vmatmul.mubr.bf16.vlgmr.msra.gmra.mxu1 %v4740_v7  ;;  %4207 = vmatmul.mubr.bf16.vlgmr.msra.gmra.mxu0 %v4809_v28  ;;  %v4999_v7 = vcombine.low %v1177_v63, %v1187_v26  ;;  %v1202_v63 = vshrl.u32 %v4767_v15, 16  ;;  %v2395_v26 = vrot.slane %v4733_v5, 5  ;;  %v1357_v5 = vshrl.u32 %v4736_v6, 16 }
  0x4d   : > { %4239 = vmatpush3.bf16.msra.mxu1 %v4592_v44  ;;  %4287 = vmatpush3.bf16.msra.mxu0 %v4593_v58  ;;  %v1192_v44 = vshll.u32 %v4764_v14, 16  ;;  %v1198_v58 = vshll.u32 %v4767_v15, 16  ;;  %v5055_v14 = vld [vmem:[%s6280_s1 + $0xb8] sm:$0xff]  }
  0x4e   : > { %4162 = vmatprep.mubr.bf16.mxu1 %v4786_v21  ;;  %4210 = vmatprep.mubr.bf16.mxu0 %v4843_v38  ;;  %v4599_v21 = vld [vmem:[%s6280_s1 + $0x120] sm:$0xff]  }
  0x4f   : > { %4240 = vmatprep.subr.bf16.mxu1 %v4594_v12  ;;  %4288 = vmatprep.subr.bf16.mxu0 %v4595_v13  ;;  %v1194_v15 = vrot.slane %v1192_v44, 5  ;;  %v5057_v1 = vrot.slane %v1198_v58, 5 }
  0x51   : > { %4241 = vmatpush3.bf16.msra.mxu1 %v4594_v12  ;;  %4289 = vmatpush3.bf16.msra.mxu0 %v4595_v13  ;;  %v1141_v12 = vshrl.u32 %v4941_v27, 16  ;;  %v1144_v13 = vshll.u32 %v4941_v27, 16 }
  0x52   : > { %4242 = vmatprep.subr.bf16.mxu1 %v4596_v19  ;;  %4290 = vmatprep.subr.bf16.mxu0 %v4597_v43 }
  0x53   : > { %v1143_v27 = vrot.slane %v1141_v12, 4  ;;  %v1240_v12 = vshll.u32 %v4818_v30, 16 }
  0x54   : > { %4163 = vmatmul.mubr.bf16.gmra.mxu1 %v4809_v28  ;;  %4211 = vmatmul.mubr.bf16.gmra.mxu0 %v4868_v47  ;;  %v4602_v28 = vld [vmem:[%s6280_s1 + $0x50] sm:$0xff]  }
  0x55   : > { %4166 = vmatprep.mubr.bf16.mxu1 %v4843_v38  ;;  %4214 = vmatprep.mubr.bf16.mxu0 %v4904_v59  ;;  %v4603_v38 = vld [vmem:[%s6280_s1 + $0x110] sm:$0xff]  }
  0x56   : > { %4243 = vmatpush3.bf16.msra.mxu1 %v4596_v19  ;;  %4291 = vmatpush3.bf16.msra.mxu0 %v4597_v43  ;;  %v1150_v19 = vshll.u32 %v4950_v36, 16  ;;  %v1146_v36 = vrot.slane %v1144_v13, 5  ;;  %v1222_v13 = vshll.u32 %v4793_v23, 16 }
  0x57   : > { %4244 = vmatprep.subr.bf16.mxu1 %v4598_v45  ;;  %4292 = vmatprep.subr.bf16.mxu0 %v4599_v21 }
  0x58   : > { %v1147_v44 = vor.u32 %v1146_v36, %v1143_v27  ;;  %v5106_v36 = vrot.slane %v1222_v13, 5 }
  0x5a   : > { %4245 = vmatpush3.bf16.msra.mxu1 %v4598_v45  ;;  %4293 = vmatpush3.bf16.msra.mxu0 %v4599_v21  ;;  %v5071_v21 = vrot.slane %v1150_v19, 5  ;;  %v1261_v19 = vshrl.u32 %v4839_v37, 16 }
  0x5b   : > { %4246 = vmatprep.subr.bf16.mxu1 %v4600_v46  ;;  %4294 = vmatprep.subr.bf16.mxu0 %v4601_v50 }
  0x5c   : > { %4167 = vmatmul.mubr.bf16.gmra.mxu1 %v4868_v47  ;;  %4215 = vmatmul.mubr.bf16.gmra.mxu0 %v4918_v2  ;;  %v4607_v47 = vld [vmem:[%s6280_s1 + $0x40] sm:$0xff]  }
  0x5d   : > { %4170 = vmatprep.mubr.bf16.mxu1 %v4904_v59  ;;  %4218 = vmatprep.mubr.bf16.mxu0 %v4945_v34  ;;  %v4608_v59 = vld [vmem:[%s6280_s1 + $0x100] sm:$0xff]  }
  0x5e   : > { %4247 = vmatpush3.bf16.msra.mxu1 %v4600_v46  ;;  %4295 = vmatpush3.bf16.msra.mxu0 %v4601_v50  ;;  %v1156_v46 = vrot.slane %v1154_v18, 4  ;;  %v3656_v50 = vrot.slane %v4730_v4, 9  ;;  %v5086_v4 = vld [vmem:[%s4724_s23 + $0x8] sm:$0x1]  ;;  %v1250_v18 = vshrl.u32 %v4821_v31, 16 }
  0x5f   : > { %4248 = vmatprep.subr.bf16.mxu1 %v4602_v28  ;;  %4296 = vmatprep.subr.bf16.mxu0 %v4603_v38 }
  0x60   : > { %v1157_v58 = vor.u32 %v1156_v46, %v5071_v21  ;;  %v2396_v13 = vsel %vm5116_vm5, %v3656_v50, %v2395_v26  ;;  %v1242_v50 = vrot.slane %v1240_v12, 5 }
  0x62   : > { %4249 = vmatpush3.bf16.msra.mxu1 %v4602_v28  ;;  %4297 = vmatpush3.bf16.msra.mxu0 %v4603_v38  ;;  %v2397_v28 = vrot.slane %v2395_v26, 4  ;;  %v1252_v38 = vrot.slane %v1250_v18, 4 }
  0x63   : > { %4250 = vmatprep.subr.bf16.mxu1 %v4604_v52  ;;  %4298 = vmatprep.subr.bf16.mxu0 %v4605_v53 }
  0x64   : > { %4171 = vmatmul.mubr.bf16.gmra.mxu1 %v4918_v2  ;;  %4219 = vmatmul.mubr.bf16.gmra.mxu0 %v4747_v9  ;;  %v1191_v2 = vrot.slane %v1189_v55, 4  ;;  %v1213_v55 = vshrl.u32 %v4782_v20, 16 }
  0x65   : > { %4174 = vmatprep.mubr.bf16.mxu1 %v4945_v34  ;;  %4222 = vmatprep.mubr.bf16.mxu0 %v4790_v22  ;;  %v1204_v34 = vrot.slane %v1202_v63, 4  ;;  %v1216_v63 = vshll.u32 %v4782_v20, 16  ;;  %v1160_v20 = vshll.u32 %v5086_v4, 16 }
  0x66   : > { %4251 = vmatpush3.bf16.msra.mxu1 %v4604_v52  ;;  %4299 = vmatpush3.bf16.msra.mxu0 %v4605_v53  ;;  %v1195_v43 = vor.u32 %v1194_v15, %v1191_v2  ;;  %v1226_v2 = vshrl.u32 %v4793_v23, 16  ;;  %v1215_v27 = vrot.slane %v1213_v55, 4  ;;  %v1274_v15 = vshrl.u32 %v4850_v40, 16 }
  0x67   : > { %4252 = vmatprep.subr.bf16.mxu1 %v4607_v47  ;;  %4300 = vmatprep.subr.bf16.mxu0 %v4608_v59  ;;  %v1205_v45 = vor.u32 %v1204_v34, %v5057_v1  ;;  %v1237_v34 = vshrl.u32 %v4818_v30, 16  ;;  %v1148_v30 = vrot.slane %v1147_v44, 4  ;;  %v1218_v23 = vrot.slane %v1216_v63, 5  ;;  %v5113_v44 = vld [vmem:[%s4724_s23 + $0x2c] sm:$0x1] }
  0x68   : > { %v5079_v53 = vrot.slane %v1195_v43, 4  ;;  %v1264_v43 = vshll.u32 %v4839_v37, 16  ;;  %v1162_v46 = vrot.slane %v1160_v20, 5  ;;  %v1285_v37 = vshrl.u32 %v4875_v49, 16  ;;  %v5123_v63 = vld [vmem:[%s4724_s23 + $0xcc] sm:$0xf] }
  0x69   : > { %v1246_v55 = vshll.u32 %v4821_v31, 16  ;;  %v1153_v31 = vsel %vm4971_vm2, %v1148_v30, %v5071_v21  ;;  %v1270_v52 = vshll.u32 %v4850_v40, 16  ;;  %v1239_v26 = vrot.slane %v1237_v34, 4  ;;  %v5150_v40 = vld [vmem:[%s4724_s23 + $0x38] sm:$0x1] }
  0x6a   : > { %4253 = vmatpush3.bf16.msra.mxu1 %v4607_v47  ;;  %4301 = vmatpush3.bf16.msra.mxu0 %v4608_v59  ;;  %v5081_v47 = vrot.slane %v1205_v45, 4  ;;  %v1158_v45 = vrot.slane %v1157_v58, 4  ;;  %v2398_v59 = vrot.slane %v4976_v62, 5  ;;  %v5126_v62 = vld [vmem:[%s4724_s23 + $0xd0] sm:$0xf]  ;;  %v1288_v30 = vshll.u32 %v4875_v49, 16 }
  0x6b   : > { %4334 = vmatprep.subr.bf16.mxu1 %v5050_v0  ;;  %4382 = vmatprep.subr.bf16.mxu0 %v5055_v14  ;;  %v1298_v34 = vshrl.u32 %v4881_v51, 16  ;;  %v1201_v12 = vsel %vm4971_vm2, %v5079_v53, %v5057_v1  ;;  %v1294_v53 = vshll.u32 %v4881_v51, 16 }
  0x6c   : > { %4175 = vmatmul.mubr.bf16.gmra.mxu1 %v4747_v9  ;;  %4223 = vmatmul.mubr.bf16.gmra.mxu0 %v4813_v29  ;;  %v1360_v9 = vshll.u32 %v4736_v6, 16 }
  0x6d   : > { %4178 = vmatprep.mubr.bf16.mxu1 %v4790_v22  ;;  %4226 = vmatprep.mubr.bf16.mxu0 %v4847_v39 }
  0x74   : > { %4179 = vmatmul.mubr.bf16.gmra.mxu1 %v4813_v29  ;;  %4227 = vmatmul.mubr.bf16.gmra.mxu0 %v4872_v48  ;;  %v5104_v29 = vld [vmem:[%s4724_s23 + $0x20] sm:$0x1] }
  0x75   : > { %4182 = vmatprep.mubr.bf16.mxu1 %v4847_v39  ;;  %4230 = vmatprep.mubr.bf16.mxu0 %v4907_v60  ;;  %v1228_v39 = vrot.slane %v1226_v2, 4  ;;  %v1208_v22 = vshll.u32 %v5104_v29, 16  ;;  %v1219_v2 = vor.u32 %v1218_v23, %v1215_v27  ;;  %v1232_v23 = vshll.u32 %v5113_v44, 16 }
  0x77   : > { %v1229_v20 = vor.u32 %v1228_v39, %v5106_v36  ;;  %v1210_v27 = vrot.slane %v1208_v22, 5  ;;  %v1263_v22 = vrot.slane %v1261_v19, 4  ;;  %v1266_v39 = vrot.slane %v1264_v43, 5 }
  0x78   : > { %v1220_v18 = vrot.slane %v1219_v2, 4  ;;  %v1243_v43 = vor.u32 %v1242_v50, %v1239_v26  ;;  %v1322_v2 = vshrl.u32 %v4897_v57, 16  ;;  %v1287_v50 = vrot.slane %v1285_v37, 4 }
  0x79   : > { %v1230_v49 = vrot.slane %v1229_v20, 4  ;;  %v1211_v19 = vsel %vm4971_vm2, %v5081_v47, %v1210_v27  ;;  %v1267_v1 = vor.u32 %v1266_v39, %v1263_v22  ;;  %v1333_v20 = vshrl.u32 %v4923_v10, 16 }
  0x7a   : > { %v5176_v27 = vcombine.low %v1201_v12, %v1211_v19  ;;  %v1290_v22 = vrot.slane %v1288_v30, 5  ;;  %v5184_v39 = vrot.slane %v1294_v53, 5  ;;  %v5187_v19 = vld [vmem:[%s4724_s23 + $0x50] sm:$0x1]  ;;  %v1346_v37 = vshrl.u32 %v4926_v11, 16 }
  0x7c   : > { %4183 = vmatmul.mubr.bf16.gmra.mxu1 %v4872_v48  ;;  %4231 = vmatmul.mubr.bf16.gmra.mxu0 %v4920_v3  ;;  %v1163_v48 = vsel %vm4971_vm2, %v1158_v45, %v1162_v46  ;;  %v3604_v45 = vcombine.low %v5123_v63, %v5126_v62 }
  0x7d   : > { %4186 = vmatprep.mubr.bf16.mxu1 %v4907_v60  ;;  %4234 = vmatprep.mubr.bf16.mxu0 %v4947_v35  ;;  %v2399_v60 = vsel %vm5116_vm5, %v2397_v28, %v2398_v59  ;;  %v5142_v35 = vrot.slane %v1246_v55, 5  ;;  %v3613_v46 = vcombine.low %v1153_v31, %v1163_v48  ;;  %v5153_v28 = vrot.slane %v1270_v52, 5 }
  0x7e   : > { %v5144_v21 = vcombine.low %v2396_v13, %v2399_v60  ;;  %v1276_v59 = vrot.slane %v1274_v15, 4  ;;  %v1234_v55 = vrot.slane %v1232_v23, 5  ;;  %v5160_v13 = vld [vmem:[%s4724_s23 + $0x44] sm:$0x1]  ;;  %v1256_v52 = vshll.u32 %v5150_v40, 16 }
  0x7f   : > { %v1253_v31 = vor.u32 %v1252_v38, %v5142_v35  ;;  %v1309_v15 = vshrl.u32 %v4894_v56, 16  ;;  %v1312_v48 = vshll.u32 %v4894_v56, 16  ;;  %v1280_v47 = vshll.u32 %v5160_v13, 16 }
  0x80   : > { %v1277_v38 = vor.u32 %v1276_v59, %v5153_v28  ;;  %v1225_v56 = vsel %vm4971_vm2, %v1220_v18, %v5106_v36  ;;  %v1235_v51 = vsel %vm4971_vm2, %v1230_v49, %v1234_v55  ;;  %v1244_v23 = vrot.slane %v1243_v43, 4 }
  0x81   : > { %v1254_v26 = vrot.slane %v1253_v31, 4  ;;  %v1258_v60 = vrot.slane %v1256_v52, 5  ;;  %v1282_v12 = vrot.slane %v1280_v47, 5  ;;  %v1311_v36 = vrot.slane %v1309_v15, 4  ;;  %v5205_v31 = vld [vmem:[%s4724_s23 + $0x5c] sm:$0x1] }
  0x82   : > { %v1278_v59 = vrot.slane %v1277_v38, 4  ;;  %v1314_v18 = vrot.slane %v1312_v48, 5  ;;  %v1336_v49 = vshll.u32 %v4923_v10, 16  ;;  %v5190_v55 = vcombine.low %v1225_v56, %v1235_v51  ;;  %v4612_v10 = vld [vmem:[%s6280_s1 + $0xb0] sm:$0xff]  }
  0x83   : > { %v1324_v43 = vrot.slane %v1322_v2, 4  ;;  %v1249_v30 = vsel %vm4971_vm2, %v1244_v23, %v5142_v35  ;;  %v1342_v52 = vshll.u32 %v4926_v11, 16  ;;  %v1259_v35 = vsel %vm4971_vm2, %v1254_v26, %v1258_v60  ;;  %v5222_v2 = vld [vmem:[%s4724_s23 + $0x70] sm:$0xf] }
  0x84   : > { %4187 = vmatmul.mubr.bf16.gmra.mxu1 %v4920_v3  ;;  %4235 = vmatmul.mubr.bf16.gmra.mxu0 %v3604_v45  ;;  %v1318_v3 = vshll.u32 %v4897_v57, 16  ;;  %v1268_v45 = vrot.slane %v1267_v1, 4  ;;  %v1291_v15 = vor.u32 %v1290_v22, %v1287_v50  ;;  %v1304_v1 = vshll.u32 %v5187_v19, 16 }
  0x85   : > { %4254 = vmatprep.mubr.bf16.mxu1 %v3613_v46  ;;  %4302 = vmatprep.mubr.bf16.mxu0 %v4999_v7  ;;  %v1300_v46 = vrot.slane %v1298_v34, 4  ;;  %v4611_v34 = vld [vmem:[%s6280_s1 + $0x1f0] sm:$0xff]   ;;  %v1315_v53 = vor.u32 %v1314_v18, %v1311_v36  ;;  %v1366_v38 = vshll.u32 %v5222_v2, 16  ;;  %v1328_v47 = vshll.u32 %v5205_v31, 16 }
  0x86   : > { %v5192_v57 = vrot.slane %v1318_v3, 5  ;;  %v1273_v11 = vsel %vm4971_vm2, %v1268_v45, %v5153_v28  ;;  %v1335_v56 = vrot.slane %v1333_v20, 4  ;;  %v1338_v51 = vrot.slane %v1336_v49, 5 }
  0x87   : > { %v1301_v48 = vor.u32 %v1300_v46, %v5184_v39  ;;  %v1408_v3 = vshll.u32 %v4796_v24, 16  ;;  %v5236_v23 = vcombine.low %v1249_v30, %v1259_v35  ;;  %v5238_v26 = vrot.slane %v1342_v52, 5  ;;  %v5254_v35 = vld [vmem:[%s4724_s23 + $0x74] sm:$0x1] }
  0x88   : > { %v1325_v28 = vor.u32 %v1324_v43, %v5192_v57  ;;  %v1348_v60 = vrot.slane %v1346_v37, 4  ;;  %v1292_v45 = vrot.slane %v1291_v15, 4  ;;  %v1306_v46 = vrot.slane %v1304_v1, 5 }
  0x89   : > { %v1302_v22 = vrot.slane %v1301_v48, 4  ;;  %v1359_v20 = vrot.slane %v1357_v5, 4  ;;  %v5249_v36 = vrot.slane %v1366_v38, 5  ;;  %v6297_v18 = vshrl.u32 %v4743_v8, 16  ;;  %v4615_v8 = vld [vmem:[%s6280_s1 + $0x1e0] sm:$0xff]  }
  0x8a   : > { %v1316_v43 = vrot.slane %v1315_v53, 4  ;;  %v1326_v37 = vrot.slane %v1325_v28, 4  ;;  %v1330_v30 = vrot.slane %v1328_v47, 5  ;;  %v1339_v52 = vor.u32 %v1338_v51, %v1335_v56  ;;  %v5286_v56 = vld [vmem:[%s4724_s23 + $0x88] sm:$0xf] }
  0x8b   : > { %v1372_v49 = vrot.slane %v6297_v18, 4  ;;  %v1429_v5 = vshrl.u32 %v4824_v32, 16  ;;  %v1349_v6 = vor.u32 %v1348_v60, %v5238_v26  ;;  %v1432_v15 = vshll.u32 %v4824_v32, 16 }
  0x8c   : > { %4255 = vmatmul.mubr.bf16.vlgmr.msra.gmra.mxu1 %v4999_v7  ;;  %4303 = vmatmul.mubr.bf16.vlgmr.msra.gmra.mxu0 %v5176_v27  ;;  %v1283_v7 = vsel %vm4971_vm2, %v1278_v59, %v1282_v12  ;;  %v5243_v59 = vld [vmem:[%s4724_s23 + $0x68] sm:$0x1]  ;;  %v1362_v12 = vrot.slane %v1360_v9, 5  ;;  %v1442_v48 = vshrl.u32 %v4827_v33, 16  ;;  %v1390_v1 = vshll.u32 %v4773_v17, 16 }
  0x8d   : > { %4335 = vmatpush3.bf16.msra.mxu1 %v5050_v0  ;;  %4383 = vmatpush3.bf16.msra.mxu0 %v5055_v14  ;;  %v4613_v0 = vld [vmem:[%s6280_s1 + $0x1e8] sm:$0xff]   ;;  %v5240_v50 = vcombine.low %v1273_v11, %v1283_v7  ;;  %v1352_v9 = vshll.u32 %v5243_v59, 16  ;;  %v1307_v11 = vsel %vm4971_vm2, %v1302_v22, %v1306_v46  ;;  %v1373_v53 = vor.u32 %v1372_v49, %v5249_v36  ;;  %v5303_v49 = vld [vmem:[%s4724_s23 + $0x80] sm:$0x1] }
  0x8e   : > { %4258 = vmatprep.mubr.bf16.mxu1 %v5176_v27  ;;  %4306 = vmatprep.mubr.bf16.mxu0 %v5190_v55  ;;  %v4614_v14 = vld [vmem:[%s6280_s1 + $0xa8] sm:$0xff]   ;;  %v1363_v7 = vor.u32 %v1362_v12, %v1359_v20  ;;  %v1376_v38 = vshll.u32 %v5254_v35, 16  ;;  %v1331_v28 = vsel %vm4971_vm2, %v1326_v37, %v1330_v30  ;;  %v1340_v47 = vrot.slane %v1339_v52, 4  ;;  %v4618_v20 = vld [vmem:[%s6280_s1 + $0x98] sm:$0xff]  }
  0x8f   : > { %4336 = vmatprep.subr.bf16.mxu1 %v4611_v34  ;;  %4384 = vmatprep.subr.bf16.mxu0 %v4612_v10  ;;  %v1414_v51 = vshll.u32 %v5286_v56, 16  ;;  %v1350_v60 = vrot.slane %v1349_v6, 4  ;;  %v6299_v22 = vshll.u32 %v4770_v16, 16  ;;  %v1453_v12 = vshrl.u32 %v4853_v41, 16 }
  0x90   : > { %v6300_v37 = vshrl.u32 %v4773_v17, 16  ;;  %v1364_v52 = vrot.slane %v1363_v7, 4  ;;  %v1374_v6 = vrot.slane %v1373_v53, 4  ;;  %v1345_v17 = vsel %vm4971_vm2, %v1340_v47, %v5238_v26 }
  0x91   : > { %4337 = vmatpush3.bf16.msra.mxu1 %v4611_v34  ;;  %4385 = vmatpush3.bf16.msra.mxu0 %v4612_v10  ;;  %v1418_v34 = vshrl.u32 %v4799_v25, 16  ;;  %v4616_v10 = vld [vmem:[%s6280_s1 + $0xa0] sm:$0xff]   ;;  %v1297_v25 = vsel %vm4971_vm2, %v1292_v45, %v5184_v39  ;;  %v1321_v39 = vsel %vm4971_vm2, %v1316_v43, %v5192_v57  ;;  %v1354_v45 = vrot.slane %v1352_v9, 5  ;;  %v4617_v57 = vld [vmem:[%s6280_s1 + $0x1d8] sm:$0xff]  }
  0x92   : > { %4338 = vmatprep.subr.bf16.mxu1 %v4613_v0  ;;  %4386 = vmatprep.subr.bf16.mxu0 %v4614_v14  ;;  %v1386_v46 = vrot.slane %v6299_v22, 5  ;;  %v5300_v18 = vcombine.low %v1297_v25, %v1307_v11  ;;  %v5305_v43 = vrot.slane %v1390_v1, 5  ;;  %v5309_v30 = vcombine.low %v1321_v39, %v1331_v28  ;;  %v5338_v39 = vld [vmem:[%s4724_s23 + $0x94] sm:$0xf] }
  0x93   : > { %v1378_v9 = vrot.slane %v1376_v38, 5  ;;  %v1410_v25 = vrot.slane %v1408_v3, 5  ;;  %v5315_v11 = vrot.slane %v1414_v51, 5  ;;  %v1420_v1 = vrot.slane %v1418_v34, 4  ;;  %v4620_v3 = vld [vmem:[%s6280_s1 + $0x90] sm:$0xff]  }
  0x94   : > { %4259 = vmatmul.mubr.bf16.gmra.mxu1 %v5190_v55  ;;  %4307 = vmatmul.mubr.bf16.gmra.mxu0 %v5236_v23  ;;  %v1355_v7 = vsel %vm4971_vm2, %v1350_v60, %v1354_v45  ;;  %v1456_v26 = vshll.u32 %v4853_v41, 16  ;;  %v1466_v34 = vshrl.u32 %v4856_v42, 16  ;;  %v1438_v28 = vshll.u32 %v5338_v39, 16  ;;  %v5350_v51 = vld [vmem:[%s4724_s23 + $0xa0] sm:$0xf] }
  0x95   : > { %4262 = vmatprep.mubr.bf16.mxu1 %v5236_v23  ;;  %4310 = vmatprep.mubr.bf16.mxu0 %v5240_v50  ;;  %v1369_v41 = vsel %vm4971_vm2, %v1364_v52, %v5249_v36  ;;  %v1379_v42 = vsel %vm4971_vm2, %v1374_v6, %v1378_v9  ;;  %6302 = vst [vmem:[#allocation2_spill] sm:$0xff] %v5350_v51  ;;  %v1462_v60 = vshll.u32 %v5350_v51, 16  ;;  %v1431_v36 = vrot.slane %v1429_v5, 4  ;;  %v5415_v51 = vld [vmem:[%s4724_s23 + $0xb8] sm:$0xf] }
  0x96   : > { %4339 = vmatpush3.bf16.msra.mxu1 %v4613_v0  ;;  %4387 = vmatpush3.bf16.msra.mxu0 %v4614_v14  ;;  %v6298_v0 = vshrl.u32 %v4770_v16, 16  ;;  %v1396_v16 = vrot.slane %v6300_v37, 4  ;;  %v5353_v45 = vcombine.low %v1345_v17, %v1355_v7  ;;  %v1434_v52 = vrot.slane %v1432_v15, 5  ;;  %v5379_v7 = vld [vmem:[%s4724_s23 + $0xa8] sm:$0xf]  ;;  %6308 = vst [vmem:[#allocation8_spill] sm:$0xff] %v5415_v51 }
  0x97   : > { %4340 = vmatprep.subr.bf16.mxu1 %v4615_v8  ;;  %4388 = vmatprep.subr.bf16.mxu0 %v4616_v10  ;;  %v5367_v6 = vcombine.low %v1369_v41, %v1379_v42  ;;  %v5372_v5 = vrot.slane %v1438_v28, 5  ;;  %v1444_v32 = vrot.slane %v1442_v48, 4  ;;  %v1455_v15 = vrot.slane %v1453_v12, 4  ;;  %6304 = vst [vmem:[#allocation4_spill] sm:$0xff] %v5379_v7  ;;  %v5383_v28 = vld [vmem:[%s4724_s23 + $0xa4] sm:$0x1] }
  0x98   : > { %v1383_v14 = vrot.slane %v6298_v0, 4  ;;  %v6301_v0 = vshrl.u32 %v4796_v24, 16  ;;  %v4619_v24 = vld [vmem:[%s6280_s1 + $0x1d0] sm:$0xff]   ;;  %v1397_v38 = vor.u32 %v1396_v16, %v5305_v43  ;;  %v1468_v17 = vrot.slane %v1466_v34, 4  ;;  %6305 = vst [vmem:[#allocation5_spill] sm:$0xff] %v5383_v28 }
  0x99   : > { %v5386_v42 = vld [vmem:[%s4724_s23 + $0xac] sm:$0xf]  ;;  %v5390_v48 = vld [vmem:[%s4724_s23 + $0xb4] sm:$0xf] }
  0x9a   : > { %4341 = vmatpush3.bf16.msra.mxu1 %v4615_v8  ;;  %4389 = vmatpush3.bf16.msra.mxu0 %v4616_v10  ;;  %v1407_v22 = vrot.slane %v6301_v0, 4  ;;  %v1387_v53 = vor.u32 %v1386_v46, %v1383_v14  ;;  %v1400_v8 = vshll.u32 %v5303_v49, 16  ;;  %v5324_v10 = vld [vmem:[%s4724_s23 + $0x8c] sm:$0x1]  ;;  %v1421_v46 = vor.u32 %v1420_v1, %v5315_v11  ;;  %6306 = vst [vmem:[#allocation6_spill] sm:$0xff] %v5386_v42 }
  0x9b   : > { %4342 = vmatprep.subr.bf16.mxu1 %v4617_v57  ;;  %4390 = vmatprep.subr.bf16.mxu0 %v4618_v20  ;;  %v1424_v37 = vshll.u32 %v5324_v10, 16  ;;  %v1398_v9 = vrot.slane %v1397_v38, 4  ;;  %v5376_v1 = vrot.slane %v1462_v60, 5  ;;  %v1490_v33 = vshrl.u32 %v5386_v42, 16  ;;  %6307 = vst [vmem:[#allocation7_spill] sm:$0xff] %v5390_v48 }
  0x9c   : > { %4263 = vmatmul.mubr.bf16.gmra.mxu1 %v5240_v50  ;;  %4311 = vmatmul.mubr.bf16.gmra.mxu0 %v5300_v18  ;;  %v1411_v14 = vor.u32 %v1410_v25, %v1407_v22  ;;  %v1388_v16 = vrot.slane %v1387_v53, 4  ;;  %v1402_v0 = vrot.slane %v1400_v8, 5  ;;  %v5370_v22 = vld [vmem:[%s4724_s23 + $0x98] sm:$0x1]  ;;  %v1458_v25 = vrot.slane %v1456_v26, 5 }
  0x9d   : > { %4266 = vmatprep.mubr.bf16.mxu1 %v5300_v18  ;;  %4314 = vmatprep.mubr.bf16.mxu0 %v5309_v30  ;;  %6303 = vst [vmem:[#allocation3_spill] sm:$0xff] %v5370_v22  ;;  %v1480_v53 = vshll.u32 %v5379_v7, 16  ;;  %v1422_v38 = vrot.slane %v1421_v46, 4  ;;  %v1426_v41 = vrot.slane %v1424_v37, 5  ;;  %v1501_v12 = vshrl.u32 %v5390_v48, 16 }
  0x9e   : > { %4343 = vmatpush3.bf16.msra.mxu1 %v4617_v57  ;;  %4391 = vmatpush3.bf16.msra.mxu0 %v4618_v20  ;;  %v4621_v57 = vld [vmem:[%s6280_s1 + $0x1c8] sm:$0xff]   ;;  %v1412_v8 = vrot.slane %v1411_v14, 4  ;;  %v1435_v26 = vor.u32 %v1434_v52, %v1431_v36  ;;  %v1448_v34 = vshll.u32 %v5370_v22, 16  ;;  %v1393_v60 = vsel %vm4971_vm2, %v1388_v16, %v5305_v43 }
  0x9f   : > { %4344 = vmatprep.subr.bf16.mxu1 %v4619_v24  ;;  %4392 = vmatprep.subr.bf16.mxu0 %v4620_v3  ;;  %v4622_v20 = vld [vmem:[%s6280_s1 + $0x88] sm:$0xff]   ;;  %v1403_v14 = vsel %vm4971_vm2, %v1398_v9, %v1402_v0  ;;  %v1445_v46 = vor.u32 %v1444_v32, %v5372_v5  ;;  %v1486_v37 = vshll.u32 %v5386_v42, 16  ;;  %v1504_v36 = vshll.u32 %v5390_v48, 16 }
  0xa0   : > { %v1459_v52 = vor.u32 %v1458_v25, %v1455_v15  ;;  %v1469_v47 = vor.u32 %v1468_v17, %v5376_v1  ;;  %v1472_v7 = vshll.u32 %v5383_v28, 16  ;;  %v1514_v43 = vshrl.u32 %v5415_v51, 16  ;;  %v5482_v22 = vld [vmem:[%s4724_s23 + $0xc8] sm:$0x1] }
  0xa1   : > { %v1417_v16 = vsel %vm4971_vm2, %v1412_v8, %v5315_v11  ;;  %v1427_v0 = vsel %vm4971_vm2, %v1422_v38, %v1426_v41  ;;  %v1510_v9 = vshll.u32 %v5415_v51, 16  ;;  %v5424_v32 = vcombine.low %v1393_v60, %v1403_v14  ;;  %v5431_v11 = vld [vmem:[%s6280_s1 + $0x178] sm:$0xff]   ;;  %v5443_v14 = vld [vmem:[%s4724_s23 + $0xb0] sm:$0x1] }
  0xa2   : > { %4345 = vmatpush3.bf16.msra.mxu1 %v4619_v24  ;;  %4393 = vmatpush3.bf16.msra.mxu0 %v4620_v3  ;;  %v4623_v24 = vld [vmem:[%s6280_s1 + $0x1c0] sm:$0xff]   ;;  %v1436_v15 = vrot.slane %v1435_v26, 4  ;;  %v1450_v25 = vrot.slane %v1448_v34, 5  ;;  %v6309_v17 = vshrl.u32 %v4890_v54, 16  ;;  %v1482_v8 = vrot.slane %v1480_v53, 5  ;;  %6310 = vst [vmem:[#allocation9_spill] sm:$0xff] %v5443_v14 }
  0xa3   : > { %4346 = vmatprep.subr.bf16.mxu1 %v4621_v57  ;;  %4394 = vmatprep.subr.bf16.mxu0 %v4622_v20  ;;  %v4624_v3 = vld [vmem:[%s6280_s1 + $0x80] sm:$0xff]   ;;  %v5438_v38 = vrot.slane %v1486_v37, 5  ;;  %v1492_v41 = vrot.slane %v1490_v33, 4  ;;  %v5440_v54 = vcombine.low %v1417_v16, %v1427_v0  ;;  %v1460_v26 = vrot.slane %v1459_v52, 4 }
  0xa4   : > { %4267 = vmatmul.mubr.bf16.gmra.mxu1 %v5309_v30  ;;  %4315 = vmatmul.mubr.bf16.gmra.mxu0 %v5353_v45  ;;  %v1479_v48 = vrot.slane %v6309_v17, 4  ;;  %v1470_v34 = vrot.slane %v1469_v47, 4  ;;  %v1474_v60 = vrot.slane %v1472_v7, 5  ;;  %v1503_v17 = vrot.slane %v1501_v12, 4  ;;  %v5454_v7 = vld [vmem:[%s4724_s23 + $0xbc] sm:$0x1] }
  0xa5   : > { %4270 = vmatprep.mubr.bf16.mxu1 %v5353_v45  ;;  %4318 = vmatprep.mubr.bf16.mxu0 %v5367_v6  ;;  %v1506_v51 = vrot.slane %v1504_v36, 5  ;;  %v1512_v28 = vrot.slane %v1510_v9, 5  ;;  %v1516_v42 = vrot.slane %v1514_v43, 4  ;;  %v1441_v47 = vsel %vm4971_vm2, %v1436_v15, %v5372_v5  ;;  %v5465_v36 = vld [vmem:[%s4724_s23 + $0xc4] sm:$0xf] }
  0xa6   : > { %4347 = vmatpush3.bf16.msra.mxu1 %v4621_v57  ;;  %4395 = vmatpush3.bf16.msra.mxu0 %v4622_v20  ;;  %v5436_v57 = vld [vmem:[%s6280_s1 + $0x238] sm:$0xff]   ;;  %v1446_v20 = vrot.slane %v1445_v46, 4  ;;  %v5446_v46 = vld [vmem:[%s4724_s23 + $0xc0] sm:$0xf]  ;;  %v1496_v37 = vshll.u32 %v5443_v14, 16  ;;  %6312 = vst [vmem:[#allocation11_spill] sm:$0xff] %v5465_v36  ;;  %v1465_v52 = vsel %vm4971_vm2, %v1460_v26, %v5376_v1  ;;  %v1475_v43 = vsel %vm4971_vm2, %v1470_v34, %v1474_v60 }
  0xa7   : > { %4348 = vmatprep.subr.bf16.mxu1 %v4623_v24  ;;  %4396 = vmatprep.subr.bf16.mxu0 %v4624_v3  ;;  %6311 = vst [vmem:[#allocation10_spill] sm:$0xff] %v5446_v46  ;;  %v1830_v53 = vshrl.u32 %v5446_v46, 16  ;;  %v1833_v33 = vshll.u32 %v5446_v46, 16  ;;  %v1843_v5 = vshrl.u32 %v5465_v36, 16  ;;  %v1507_v16 = vor.u32 %v1506_v51, %v1503_v17 }
  0xa8   : > { %v1451_v12 = vsel %vm4971_vm2, %v1446_v20, %v1450_v25  ;;  %v1517_v0 = vor.u32 %v1516_v42, %v1512_v28  ;;  %v1520_v9 = vshll.u32 %v5454_v7, 16  ;;  %v5479_v25 = vcombine.low %v1465_v52, %v1475_v43 }
  0xa9   : > { %v5477_v15 = vcombine.low %v1441_v47, %v1451_v12  ;;  %v1832_v46 = vrot.slane %v1830_v53, 4  ;;  %v1835_v14 = vrot.slane %v1833_v33, 5  ;;  %v1845_v26 = vrot.slane %v1843_v5, 4 }
  0xaa   : > { %4349 = vmatpush3.bf16.msra.mxu1 %v4623_v24  ;;  %4397 = vmatpush3.bf16.msra.mxu0 %v4624_v3  ;;  %v1483_v24 = vor.u32 %v1482_v8, %v1479_v48  ;;  %v1493_v3 = vor.u32 %v1492_v41, %v5438_v38  ;;  %v1839_v48 = vshll.u32 %v5465_v36, 16  ;;  %v1498_v41 = vrot.slane %v1496_v37, 5 }
  0xab   : > { %4430 = vmatprep.subr.bf16.mxu1 %v5431_v11  ;;  %4478 = vmatprep.subr.bf16.mxu0 %v5436_v57  ;;  %v1508_v34 = vrot.slane %v1507_v16, 4  ;;  %v1518_v60 = vrot.slane %v1517_v0, 4  ;;  %v1522_v36 = vrot.slane %v1520_v9, 5  ;;  %v1836_v17 = vor.u32 %v1835_v14, %v1832_v46  ;;  %v4652_v14 = vld [vmem:[%s4724_s23] sm:$0xf] }
  0xac   : > { %4271 = vmatmul.mubr.bf16.gmra.mxu1 %v5367_v6  ;;  %4319 = vmatmul.mubr.bf16.gmra.mxu0 %v5424_v32  ;;  %v1484_v20 = vrot.slane %v1483_v24, 4  ;;  %v1494_v8 = vrot.slane %v1493_v3, 4  ;;  %v1841_v1 = vrot.slane %v1839_v48, 5  ;;  %v1849_v33 = vshll.u32 %v5482_v22, 16 }
  0xad   : > { %4274 = vmatprep.mubr.bf16.mxu1 %v5424_v32  ;;  %4322 = vmatprep.mubr.bf16.mxu0 %v5440_v54  ;;  %v1513_v47 = vsel %vm4971_vm2, %v1508_v34, %v1512_v28  ;;  %v1523_v12 = vsel %vm4971_vm2, %v1518_v60, %v1522_v36  ;;  %v1837_v5 = vrot.slane %v1836_v17, 4  ;;  %v3655_v46 = vrot.slane %v4652_v14, 9  ;;  %v5509_v36 = vld [vmem:[%s4724_s23 + $0xd4] sm:$0x1] }
  0xae   : > { %v1489_v51 = vsel %vm4971_vm2, %v1484_v20, %v5438_v38  ;;  %v1499_v42 = vsel %vm4971_vm2, %v1494_v8, %v1498_v41  ;;  %v1846_v53 = vor.u32 %v1845_v26, %v1841_v1  ;;  %v4651_v38 = vld [vmem:[%s4724_s23 + $0x4] sm:$0xf]  ;;  %v5501_v37 = vcombine.low %v1513_v47, %v1523_v12  ;;  %v4653_v26 = vld [vmem:[%s4724_s23 + $0x1c] sm:$0xf] }
  0xaf   : > { %v2388_v24 = vrot.slane %v4651_v38, 5  ;;  %v5499_v3 = vcombine.low %v1489_v51, %v1499_v42  ;;  %v1851_v43 = vrot.slane %v1849_v33, 5  ;;  %v2391_v16 = vrot.slane %v5086_v4, 5  ;;  %v4654_v33 = vld [vmem:[%s4724_s23 + $0x18] sm:$0xf] }
  0xb0   : > { %v1847_v52 = vrot.slane %v1846_v53, 4  ;;  %v3059_v28 = vrot.slane %v5126_v62, 5  ;;  %v3705_v0 = vrot.slane %v5123_v63, 9  ;;  %v1842_v9 = vsel %vm4971_vm2, %v1837_v5, %v1841_v1 }
  0xb1   : > { %v2390_v48 = vrot.slane %v2388_v24, 4  ;;  %v3062_v20 = vrot.slane %v5509_v36, 5  ;;  %v2389_v8 = vsel %vm5116_vm5, %v3655_v46, %v2388_v24  ;;  %v2402_v34 = vrot.slane %v4653_v26, 5  ;;  %v4655_v24 = vld [vmem:[%s4724_s23 + $0x28] sm:$0xf] }
  0xb2   : > { %v1852_v4 = vsel %vm4971_vm2, %v1847_v52, %v1851_v43  ;;  %v3061_v60 = vrot.slane %v3059_v28, 4  ;;  %v5528_v1 = vsel %vm5116_vm5, %v3705_v0, %v3059_v28  ;;  %v3657_v47 = vrot.slane %v4654_v33, 9  ;;  %v4656_v52 = vld [vmem:[%s4724_s23 + $0x34] sm:$0xf]  ;;  %v4659_v26 = vld [vmem:[%s4724_s23 + $0x40] sm:$0xf] }
  0xb3   : > { %v2392_v41 = vsel %vm5116_vm5, %v2390_v48, %v2391_v16  ;;  %v5524_v51 = vcombine.low %v1842_v9, %v1852_v4  ;;  %v2404_v12 = vrot.slane %v2402_v34, 4  ;;  %v2405_v38 = vrot.slane %v5104_v29, 5  ;;  %v4657_v48 = vld [vmem:[%s4724_s23 + $0x24] sm:$0xf] }
  0xb4   : > { %4275 = vmatmul.mubr.bf16.gmra.mxu1 %v5440_v54  ;;  %4323 = vmatmul.mubr.bf16.gmra.mxu0 %v5477_v15  ;;  %v3671_v42 = vcombine.low %v2389_v8, %v2392_v41  ;;  %v5532_v17 = vsel %vm5116_vm5, %v3061_v60, %v3062_v20  ;;  %v2409_v5 = vrot.slane %v4655_v24, 5  ;;  %v2416_v43 = vrot.slane %v4656_v52, 5  ;;  %v4627_v8 = vld [vmem:[%s6280_s1 + $0x170] sm:$0xff]   ;;  %v4630_v60 = vld [vmem:[%s6280_s1 + $0x228] sm:$0xff]  }
  0xb5   : > { %4278 = vmatprep.mubr.bf16.mxu1 %v5477_v15  ;;  %4326 = vmatprep.mubr.bf16.mxu0 %v5479_v25  ;;  %v3706_v53 = vcombine.low %v5528_v1, %v5532_v17  ;;  %v2403_v14 = vsel %vm5116_vm5, %v3657_v47, %v2402_v34  ;;  %v2406_v46 = vsel %vm5116_vm5, %v2404_v12, %v2405_v38  ;;  %v3658_v29 = vrot.slane %v4657_v48, 9  ;;  %v4628_v41 = vld [vmem:[%s6280_s1 + $0x230] sm:$0xff]   ;;  %v4661_v12 = vld [vmem:[%s4724_s23 + $0x3c] sm:$0xf]  ;;  %v4662_v52 = vld [vmem:[%s4724_s23 + $0x48] sm:$0xf] }
  0xb6   : > { %v2411_v16 = vrot.slane %v2409_v5, 4  ;;  %v2412_v28 = vrot.slane %v5113_v44, 5  ;;  %v5549_v0 = vcombine.low %v2403_v14, %v2406_v46  ;;  %v2418_v4 = vrot.slane %v2416_v43, 4  ;;  %v4631_v48 = vld [vmem:[%s6280_s1 + $0x160] sm:$0xff]  }
  0xb7   : > { %v2419_v20 = vrot.slane %v5150_v40, 5  ;;  %v2410_v44 = vsel %vm5116_vm5, %v3658_v29, %v2409_v5  ;;  %v2423_v34 = vrot.slane %v4659_v26, 5  ;;  %v3660_v38 = vrot.slane %v4661_v12, 9  ;;  %v4632_v29 = vld [vmem:[%s6280_s1 + $0x220] sm:$0xff]  }
  0xb8   : > { %v2413_v40 = vsel %vm5116_vm5, %v2411_v16, %v2412_v28  ;;  %v2426_v5 = vrot.slane %v5160_v13, 5  ;;  %v2433_v46 = vrot.slane %v5187_v19, 5  ;;  %v4663_v16 = vld [vmem:[%s4724_s23 + $0x58] sm:$0xf]  ;;  %v2451_v12 = vrot.slane %v5222_v2, 5  ;;  %v4638_v2 = vld [vmem:[%s6280_s1 + $0x208] sm:$0xff]  }
  0xb9   : > { %v2425_v24 = vrot.slane %v2423_v34, 4  ;;  %v2424_v13 = vsel %vm5116_vm5, %v3660_v38, %v2423_v34  ;;  %v2437_v28 = vrot.slane %v4663_v16, 5  ;;  %v2440_v34 = vrot.slane %v5205_v31, 5 }
  0xbb   : > { %v2427_v19 = vsel %vm5116_vm5, %v2425_v24, %v2426_v5  ;;  %v2439_v26 = vrot.slane %v2437_v28, 4  ;;  %v4637_v5 = vld [vmem:[%s6280_s1 + $0x148] sm:$0xff]  }
  0xbc   : > { %4279 = vmatmul.mubr.bf16.gmra.mxu1 %v5479_v25  ;;  %4327 = vmatmul.mubr.bf16.gmra.mxu0 %v5499_v3 }
  0xbd   : > { %4282 = vmatprep.mubr.bf16.mxu1 %v5499_v3  ;;  %4330 = vmatprep.mubr.bf16.mxu0 %v5501_v37 }
  0xc4   : > { %4283 = vmatmul.mubr.bf16.gmra.mxu1 %v5501_v37  ;;  %4331 = vmatmul.mubr.bf16.gmra.mxu0 %v5524_v51 }
  0xc5   : > { %4350 = vmatprep.mubr.bf16.mxu1 %v5176_v27  ;;  %4398 = vmatprep.mubr.bf16.mxu0 %v3671_v42  ;;  %v4658_v27 = vld [vmem:[%s4724_s23 + $0x30] sm:$0xf]  ;;  %v4660_v42 = vld [vmem:[%s4724_s23 + $0x4c] sm:$0xf] }
  0xc6   : > { %v3659_v9 = vrot.slane %v4658_v27, 9  ;;  %v2430_v33 = vrot.slane %v4660_v42, 5  ;;  %v4664_v27 = vld [vmem:[%s4724_s23 + $0x64] sm:$0xf]  ;;  %v4635_v42 = vld [vmem:[%s6280_s1 + $0x150] sm:$0xff]  }
  0xc8   : > { %v2432_v14 = vrot.slane %v2430_v33, 4 }
  0xcc   : > { %4351 = vmatmul.mubr.bf16.vlgmr.msra.gmra.mxu1 %v5190_v55  ;;  %4399 = vmatmul.mubr.bf16.vlgmr.msra.gmra.mxu0 %v5144_v21  ;;  %v2417_v55 = vsel %vm5116_vm5, %v3659_v9, %v2416_v43  ;;  %v3661_v43 = vrot.slane %v4662_v52, 9  ;;  %v2444_v9 = vrot.slane %v4664_v27, 5 }
  0xcd   : > { %4431 = vmatpush3.bf16.msra.mxu1 %v5431_v11  ;;  %4479 = vmatpush3.bf16.msra.mxu0 %v5436_v57  ;;  %v2420_v11 = vsel %vm5116_vm5, %v2418_v4, %v2419_v20  ;;  %v4629_v57 = vld [vmem:[%s6280_s1 + $0x168] sm:$0xff]   ;;  %v4633_v4 = vld [vmem:[%s6280_s1 + $0x158] sm:$0xff]  }
  0xce   : > { %4354 = vmatprep.mubr.bf16.mxu1 %v5236_v23  ;;  %4402 = vmatprep.mubr.bf16.mxu0 %v5549_v0  ;;  %v5581_v23 = vcombine.low %v2410_v44, %v2413_v40  ;;  %v5583_v47 = vcombine.low %v2417_v55, %v2420_v11  ;;  %v4634_v20 = vld [vmem:[%s6280_s1 + $0x218] sm:$0xff]   ;;  %v4665_v44 = vld [vmem:[%s4724_s23 + $0x54] sm:$0xf]  ;;  %v4666_v55 = vld [vmem:[%s4724_s23 + $0x60] sm:$0xf] }
  0xcf   : > { %4432 = vmatprep.subr.bf16.mxu1 %v4627_v8  ;;  %4480 = vmatprep.subr.bf16.mxu0 %v4628_v41  ;;  %v3662_v40 = vrot.slane %v4665_v44, 9  ;;  %v3663_v11 = vrot.slane %v4666_v55, 9 }
  0xd1   : > { %4433 = vmatpush3.bf16.msra.mxu1 %v4627_v8  ;;  %4481 = vmatpush3.bf16.msra.mxu0 %v4628_v41  ;;  %v5615_v8 = vcombine.low %v2424_v13, %v2427_v19  ;;  %v2438_v31 = vsel %vm5116_vm5, %v3662_v40, %v2437_v28  ;;  %v2445_v38 = vsel %vm5116_vm5, %v3663_v11, %v2444_v9  ;;  %v4669_v13 = vld [vmem:[%s4724_s23 + $0x78] sm:$0xf]  ;;  %v2461_v28 = vrot.slane %v5303_v49, 5 }
  0xd2   : > { %4434 = vmatprep.subr.bf16.mxu1 %v4629_v57  ;;  %4482 = vmatprep.subr.bf16.mxu0 %v4630_v60  ;;  %v3665_v19 = vrot.slane %v4669_v13, 9  ;;  %v2468_v40 = vrot.slane %v5324_v10, 5 }
  0xd4   : > { %4355 = vmatmul.mubr.bf16.gmra.mxu1 %v5240_v50  ;;  %4403 = vmatmul.mubr.bf16.gmra.mxu0 %v5581_v23  ;;  %v2431_v50 = vsel %vm5116_vm5, %v3661_v43, %v2430_v33  ;;  %v4636_v33 = vld [vmem:[%s6280_s1 + $0x210] sm:$0xff]  }
  0xd5   : > { %4358 = vmatprep.mubr.bf16.mxu1 %v5300_v18  ;;  %4406 = vmatprep.mubr.bf16.mxu0 %v5583_v47  ;;  %v2434_v18 = vsel %vm5116_vm5, %v2432_v14, %v2433_v46  ;;  %v4668_v14 = vld [vmem:[%s4724_s23 + $0x6c] sm:$0xf] }
  0xd6   : > { %4435 = vmatpush3.bf16.msra.mxu1 %v4629_v57  ;;  %4483 = vmatpush3.bf16.msra.mxu0 %v4630_v60  ;;  %v5617_v41 = vcombine.low %v2431_v50, %v2434_v18  ;;  %v2446_v57 = vrot.slane %v2444_v9, 4  ;;  %v2447_v60 = vrot.slane %v5243_v59, 5  ;;  %v2441_v59 = vsel %vm5116_vm5, %v2439_v26, %v2440_v34  ;;  %v4639_v50 = vld [vmem:[%s6280_s1 + $0x140] sm:$0xff]   ;;  %v4671_v34 = vld [vmem:[%s4724_s23 + $0x90] sm:$0xf] }
  0xd7   : > { %4436 = vmatprep.subr.bf16.mxu1 %v4631_v48  ;;  %4484 = vmatprep.subr.bf16.mxu0 %v4632_v29  ;;  %v5649_v52 = vcombine.low %v2438_v31, %v2441_v59  ;;  %v3664_v46 = vrot.slane %v4668_v14, 9  ;;  %v4640_v18 = vld [vmem:[%s6280_s1 + $0x200] sm:$0xff]   ;;  %v3667_v55 = vrot.slane %v4671_v34, 9 }
  0xd9   : > { %v2452_v49 = vsel %vm5116_vm5, %v3664_v46, %v2451_v12 }
  0xda   : > { %4437 = vmatpush3.bf16.msra.mxu1 %v4631_v48  ;;  %4485 = vmatpush3.bf16.msra.mxu0 %v4632_v29  ;;  %v2453_v48 = vrot.slane %v2451_v12, 4  ;;  %v2454_v29 = vrot.slane %v5254_v35, 5  ;;  %v2465_v35 = vrot.slane %v5286_v56, 5  ;;  %v6314_v12 = vld [vmem:[#allocation2_spill] sm:$0xff] }
  0xdb   : > { %4438 = vmatprep.subr.bf16.mxu1 %v4633_v4  ;;  %4486 = vmatprep.subr.bf16.mxu0 %v4634_v20 }
  0xdc   : > { %4359 = vmatmul.mubr.bf16.gmra.mxu1 %v5309_v30  ;;  %4407 = vmatmul.mubr.bf16.gmra.mxu0 %v5615_v8  ;;  %v2448_v30 = vsel %vm5116_vm5, %v2446_v57, %v2447_v60  ;;  %v2455_v27 = vsel %vm5116_vm5, %v2453_v48, %v2454_v29  ;;  %v2467_v44 = vrot.slane %v2465_v35, 4  ;;  %v6313_v57 = vld [vmem:[#allocation3_spill] sm:$0xff]  ;;  %v4672_v48 = vld [vmem:[%s4724_s23 + $0x9c] sm:$0xf] }
  0xdd   : > { %4362 = vmatprep.mubr.bf16.mxu1 %v5353_v45  ;;  %4410 = vmatprep.mubr.bf16.mxu0 %v5617_v41  ;;  %v4667_v45 = vld [vmem:[%s4724_s23 + $0x7c] sm:$0xf]  ;;  %v5651_v43 = vcombine.low %v2445_v38, %v2448_v30  ;;  %v5677_v56 = vcombine.low %v2452_v49, %v2455_v27  ;;  %v2475_v60 = vrot.slane %v6313_v57, 5  ;;  %v2479_v38 = vrot.slane %v6314_v12, 5 }
  0xde   : > { %4439 = vmatpush3.bf16.msra.mxu1 %v4633_v4  ;;  %4487 = vmatpush3.bf16.msra.mxu0 %v4634_v20  ;;  %v2458_v24 = vrot.slane %v4667_v45, 5  ;;  %v2472_v4 = vrot.slane %v5338_v39, 5  ;;  %v2099_v39 = vshrl.u32 %v5123_v63, 16  ;;  %v2469_v59 = vsel %vm5116_vm5, %v2467_v44, %v2468_v40  ;;  %v6316_v29 = vld [vmem:[#allocation5_spill] sm:$0xff] }
  0xdf   : > { %4440 = vmatprep.subr.bf16.mxu1 %v4635_v42  ;;  %4488 = vmatprep.subr.bf16.mxu0 %v4636_v33  ;;  %v2112_v30 = vshrl.u32 %v5126_v62, 16  ;;  %v2482_v13 = vrot.slane %v6316_v29, 5  ;;  %v2496_v29 = vrot.slane %v5454_v7, 5 }
  0xe0   : > { %v2460_v16 = vrot.slane %v2458_v24, 4  ;;  %v2459_v9 = vsel %vm5116_vm5, %v3665_v19, %v2458_v24  ;;  %v2474_v11 = vrot.slane %v2472_v4, 4  ;;  %v6317_v19 = vld [vmem:[#allocation4_spill] sm:$0xff]  ;;  %v2101_v49 = vrot.slane %v2099_v39, 4 }
  0xe2   : > { %4441 = vmatpush3.bf16.msra.mxu1 %v4635_v42  ;;  %4489 = vmatpush3.bf16.msra.mxu0 %v4636_v33  ;;  %v2102_v42 = vshll.u32 %v5123_v63, 16  ;;  %v6315_v63 = vld [vmem:[#allocation6_spill] sm:$0xff]  ;;  %v2476_v14 = vsel %vm5116_vm5, %v2474_v11, %v2475_v60 }
  0xe3   : > { %4442 = vmatprep.subr.bf16.mxu1 %v4637_v5  ;;  %4490 = vmatprep.subr.bf16.mxu0 %v4638_v2  ;;  %v2486_v45 = vrot.slane %v6315_v63, 5 }
  0xe4   : > { %4363 = vmatmul.mubr.bf16.gmra.mxu1 %v5367_v6  ;;  %4411 = vmatmul.mubr.bf16.gmra.mxu0 %v5649_v52  ;;  %v2462_v6 = vsel %vm5116_vm5, %v2460_v16, %v2461_v28  ;;  %v3669_v16 = vrot.slane %v6317_v19, 9  ;;  %v2104_v27 = vrot.slane %v2102_v42, 5 }
  0xe5   : > { %4366 = vmatprep.mubr.bf16.mxu1 %v5424_v32  ;;  %4414 = vmatprep.mubr.bf16.mxu0 %v5651_v43  ;;  %v4670_v32 = vld [vmem:[%s4724_s23 + $0x84] sm:$0xf]  ;;  %v5681_v26 = vcombine.low %v2459_v9, %v2462_v6  ;;  %v2488_v6 = vrot.slane %v2486_v45, 4 }
  0xe6   : > { %4443 = vmatpush3.bf16.msra.mxu1 %v4637_v5  ;;  %4491 = vmatpush3.bf16.msra.mxu0 %v4638_v2  ;;  %v3666_v20 = vrot.slane %v4670_v32, 9  ;;  %v2473_v2 = vsel %vm5116_vm5, %v3667_v55, %v2472_v4  ;;  %v2114_v32 = vrot.slane %v2112_v30, 4  ;;  %v2487_v57 = vsel %vm5116_vm5, %v3669_v16, %v2486_v45 }
  0xe7   : > { %4444 = vmatprep.subr.bf16.mxu1 %v4639_v50  ;;  %4492 = vmatprep.subr.bf16.mxu0 %v4640_v18  ;;  %v5721_v9 = vcombine.low %v2473_v2, %v2476_v14  ;;  %v2105_v60 = vor.u32 %v2104_v27, %v2101_v49  ;;  %v6320_v2 = vld [vmem:[#allocation7_spill] sm:$0xff] }
  0xe8   : > { %v2466_v10 = vsel %vm5116_vm5, %v3666_v20, %v2465_v35  ;;  %v3670_v14 = vrot.slane %v6320_v2, 9 }
  0xe9   : > { %v5711_v46 = vcombine.low %v2466_v10, %v2469_v59  ;;  %v2118_v10 = vshll.u32 %v5509_v36, 16 }
  0xea   : > { %4445 = vmatpush3.bf16.msra.mxu1 %v4639_v50  ;;  %4493 = vmatpush3.bf16.msra.mxu0 %v4640_v18  ;;  %v2481_v50 = vrot.slane %v2479_v38, 4  ;;  %v6318_v18 = vld [vmem:[#allocation9_spill] sm:$0xff] }
  0xeb   : > { %v2489_v35 = vrot.slane %v6318_v18, 5 }
  0xec   : > { %v5687_v33 = vpop.f32.mrf.mxu0  ;;  %v5689_v31 = vpop.f32.mrf.mxu1  ;;  %4367 = vmatmul.mubr.bf16.gmra.mxu1 %v5440_v54  ;;  %4415 = vmatmul.mubr.bf16.gmra.mxu0 %v5677_v56  ;;  %v2108_v54 = vshll.u32 %v5126_v62, 16  ;;  %v2483_v11 = vsel %vm5116_vm5, %v2481_v50, %v2482_v13 }
  0xed   : > { %4370 = vmatprep.mubr.bf16.mxu1 %v5477_v15  ;;  %4418 = vmatprep.mubr.bf16.mxu0 %v5681_v26  ;;  %v3668_v15 = vrot.slane %v4672_v48, 9  ;;  %v2490_v39 = vsel %vm5116_vm5, %v2488_v6, %v2489_v35 }
  0xee   : > { %v5703_v24 = vpop.f32.mrf.mxu0  ;;  %v5705_v5 = vpop.f32.mrf.mxu1  ;;  %v2110_v4 = vrot.slane %v2108_v54, 5  ;;  %v2106_v54 = vrot.slane %v2105_v60, 4 }
  0xef   : > { %v2480_v40 = vsel %vm5116_vm5, %v3668_v15, %v2479_v38  ;;  %v2120_v15 = vrot.slane %v2118_v10, 5 }
  0xf0   : > { %v5716_v28 = vpop.f32.mrf.mxu0  ;;  %v5718_v62 = vpop.f32.mrf.mxu1  ;;  %v2115_v42 = vor.u32 %v2114_v32, %v2110_v4  ;;  %v5753_v45 = vcombine.low %v2480_v40, %v2483_v11  ;;  %v2111_v18 = vsel %vm4971_vm2, %v2106_v54, %v2110_v4 }
  0xf2   : > { %v5723_v20 = vpop.f32.mrf.mxu0  ;;  %v5725_v44 = vpop.f32.mrf.mxu1  ;;  %v2116_v48 = vrot.slane %v2115_v42, 4 }
  0xf4   : > { %v5729_v34 = vpop.f32.mrf.mxu0  ;;  %v5731_v55 = vpop.f32.mrf.mxu1  ;;  %4371 = vmatmul.mubr.bf16.gmra.mxu1 %v5479_v25  ;;  %4419 = vmatmul.mubr.bf16.gmra.mxu0 %v5711_v46  ;;  %v6319_v25 = vld [vmem:[#allocation8_spill] sm:$0xff]  ;;  %v2121_v7 = vsel %vm4971_vm2, %v2116_v48, %v2120_v15 }
  0xf5   : > { %4374 = vmatprep.mubr.bf16.mxu1 %v5499_v3  ;;  %4422 = vmatprep.mubr.bf16.mxu0 %v5721_v9  ;;  %v2493_v59 = vrot.slane %v6319_v25, 5  ;;  %v5755_v3 = vcombine.low %v2487_v57, %v2490_v39 }
  0xf6   : > { %v5745_v12 = vpop.f32.mrf.mxu0  ;;  %v5747_v38 = vpop.f32.mrf.mxu1 }
  0xf7   : > { %v2495_v36 = vrot.slane %v2493_v59, 4  ;;  %v2494_v35 = vsel %vm5116_vm5, %v3670_v14, %v2493_v59 }
  0xf8   : > { %v5749_v30 = vpop.f32.mrf.mxu0  ;;  %v5751_v63 = vpop.f32.mrf.mxu1 }
  0xf9   : > { %v2497_v49 = vsel %vm5116_vm5, %v2495_v36, %v2496_v29 }
  0xfa   : > { %v5759_v13 = vpop.f32.mrf.mxu0  ;;  %v5761_v19 = vpop.f32.mrf.mxu1  ;;  %v5787_v32 = vcombine.low %v2494_v35, %v2497_v49 }
  0xfc   : > { %v5763_v16 = vpop.f32.mrf.mxu0  ;;  %v5765_v50 = vpop.f32.mrf.mxu1  ;;  %4375 = vmatmul.mubr.bf16.gmra.mxu1 %v5501_v37  ;;  %4423 = vmatmul.mubr.bf16.gmra.mxu0 %v5753_v45 }
  0xfd   : > { %4378 = vmatprep.mubr.bf16.mxu1 %v5524_v51  ;;  %4426 = vmatprep.mubr.bf16.mxu0 %v5755_v3  ;;  %v3646_v51 = vcombine.low %v2111_v18, %v2121_v7 }
  0xfe   : > { %v5779_v27 = vpop.f32.mrf.mxu0  ;;  %v5781_v37 = vpop.f32.mrf.mxu1 }
 0x100   : > { %v5783_v6 = vpop.f32.mrf.mxu0  ;;  %v5785_v4 = vpop.f32.mrf.mxu1 }
 0x102   : > { %v5789_v40 = vpop.f32.mrf.mxu0  ;;  %v5791_v61 = vpop.f32.mrf.mxu1 }
 0x104   : > { %v5793_v11 = vpop.f32.mrf.mxu0  ;;  %v5795_v57 = vpop.f32.mrf.mxu1  ;;  %4379 = vmatmul.mubr.bf16.gmra.mxu1 %v3646_v51  ;;  %4427 = vmatmul.mubr.bf16.gmra.mxu0 %v5787_v32 }
 0x105   : > { %4446 = vmatprep.mubr.bf16.mxu1 %v5144_v21  ;;  %4494 = vmatprep.mubr.bf16.mxu0 %v5549_v0 }
 0x106   : > { %v5800_v60 = vpop.f32.mrf.mxu0  ;;  %v5802_v39 = vpop.f32.mrf.mxu1 }
 0x108   : > { %v5804_v42 = vpop.f32.mrf.mxu0  ;;  %v5806_v10 = vpop.f32.mrf.mxu1 }
 0x10a   : > { %v5808_v25 = vpop.f32.mrf.mxu0  ;;  %v5810_v59 = vpop.f32.mrf.mxu1 }
 0x10c   : > { %v4160_v54 = vpop.f32.mrf.mxu1  ;;  %v4208_v2 = vpop.f32.mrf.mxu0  ;;  %4447 = vmatmul.mubr.bf16.vlgmr.msra.gmra.mxu1 %v5549_v0  ;;  %4495 = vmatmul.mubr.bf16.vlgmr.msra.gmra.mxu0 %v5581_v23 }
 0x10d   : > { %v772_v21 = vadd.f32 %v4160_v54, %v5687_v33  ;;  %4450 = vmatprep.mubr.bf16.mxu1 %v5581_v23  ;;  %4498 = vmatprep.mubr.bf16.mxu0 %v5583_v47 }
 0x10e   : > { %v763_v14 = vpop.f32.mrf.mxu1  ;;  %v978_v48 = vpop.f32.mrf.mxu0 }
 0x10f   : > { %v5817_v15 = vadd.f32 %v4208_v2, %v772_v21  ;;  %v764_v36 = vadd.f32 %v763_v14, %v5703_v24 }
 0x110   : > { %v4161_v29 = vpop.f32.mrf.mxu1  ;;  %v4209_v18 = vpop.f32.mrf.mxu0 }
 0x111   : > { %v5820_v7 = vadd.f32 %v978_v48, %v764_v36  ;;  %v775_v0 = vadd.f32 %v4161_v29, %v5716_v28 }
 0x112   : > { %v766_v35 = vpop.f32.mrf.mxu1  ;;  %v981_v49 = vpop.f32.mrf.mxu0 }
 0x113   : > { %v5823_v51 = vadd.f32 %v4209_v18, %v775_v0  ;;  %v767_v23 = vadd.f32 %v766_v35, %v5723_v20 }
 0x114   : > { %v4164_v33 = vpop.f32.mrf.mxu1  ;;  %v4212_v54 = vpop.f32.mrf.mxu0  ;;  %4451 = vmatmul.mubr.bf16.gmra.mxu1 %v5583_v47  ;;  %4499 = vmatmul.mubr.bf16.gmra.mxu0 %v5615_v8 }
 0x115   : > { %v5828_v2 = vadd.f32 %v981_v49, %v767_v23  ;;  %v788_v24 = vadd.f32 %v4164_v33, %v5729_v34  ;;  %4454 = vmatprep.mubr.bf16.mxu1 %v5615_v8  ;;  %4502 = vmatprep.mubr.bf16.mxu0 %v5617_v41 }
 0x116   : > { %v779_v28 = vpop.f32.mrf.mxu1  ;;  %v994_v21 = vpop.f32.mrf.mxu0 }
 0x117   : > { %v5833_v14 = vadd.f32 %v4212_v54, %v788_v24  ;;  %v780_v20 = vadd.f32 %v779_v28, %v5745_v12 }
 0x118   : > { %v4165_v48 = vpop.f32.mrf.mxu1  ;;  %v4213_v36 = vpop.f32.mrf.mxu0 }
 0x119   : > { %v5836_v29 = vadd.f32 %v994_v21, %v780_v20  ;;  %v791_v47 = vadd.f32 %v4165_v48, %v5749_v30 }
 0x11a   : > { %v782_v18 = vpop.f32.mrf.mxu1  ;;  %v997_v0 = vpop.f32.mrf.mxu0 }
 0x11b   : > { %v5839_v35 = vadd.f32 %v4213_v36, %v791_v47  ;;  %v783_v8 = vadd.f32 %v782_v18, %v5759_v13 }
 0x11c   : > { %v4168_v34 = vpop.f32.mrf.mxu1  ;;  %v4216_v49 = vpop.f32.mrf.mxu0  ;;  %4455 = vmatmul.mubr.bf16.gmra.mxu1 %v5617_v41  ;;  %4503 = vmatmul.mubr.bf16.gmra.mxu0 %v5649_v52 }
 0x11d   : > { %v5844_v23 = vadd.f32 %v997_v0, %v783_v8  ;;  %v804_v12 = vadd.f32 %v4168_v34, %v5763_v16  ;;  %4458 = vmatprep.mubr.bf16.mxu1 %v5649_v52  ;;  %4506 = vmatprep.mubr.bf16.mxu0 %v5651_v43 }
 0x11e   : > { %v795_v30 = vpop.f32.mrf.mxu1  ;;  %v1010_v33 = vpop.f32.mrf.mxu0 }
 0x11f   : > { %v5849_v54 = vadd.f32 %v4216_v49, %v804_v12  ;;  %v796_v13 = vadd.f32 %v795_v30, %v5779_v27 }
 0x120   : > { %v4169_v24 = vpop.f32.mrf.mxu1  ;;  %v4217_v28 = vpop.f32.mrf.mxu0 }
 0x121   : > { %v5852_v21 = vadd.f32 %v1010_v33, %v796_v13  ;;  %v807_v41 = vadd.f32 %v4169_v24, %v5783_v6 }
 0x122   : > { %v798_v20 = vpop.f32.mrf.mxu1  ;;  %v1013_v48 = vpop.f32.mrf.mxu0 }
 0x123   : > { %v5855_v36 = vadd.f32 %v4217_v28, %v807_v41  ;;  %v799_v52 = vadd.f32 %v798_v20, %v5789_v40  ;;  %v6321_v20 = vld [vmem:[#allocation11_spill] sm:$0xff] }
 0x124   : > { %v4172_v16 = vpop.f32.mrf.mxu1  ;;  %v4220_v47 = vpop.f32.mrf.mxu0  ;;  %4459 = vmatmul.mubr.bf16.gmra.mxu1 %v5651_v43  ;;  %4507 = vmatmul.mubr.bf16.gmra.mxu0 %v5677_v56 }
 0x125   : > { %v5860_v18 = vadd.f32 %v1013_v48, %v799_v52  ;;  %v820_v27 = vadd.f32 %v4172_v16, %v5793_v11  ;;  %4462 = vmatprep.mubr.bf16.mxu1 %v5677_v56  ;;  %4510 = vmatprep.mubr.bf16.mxu0 %v5681_v26  ;;  %v2806_v48 = vrot.slane %v6321_v20, 5 }
 0x126   : > { %v811_v6 = vpop.f32.mrf.mxu1  ;;  %v1026_v0 = vpop.f32.mrf.mxu0 }
 0x127   : > { %v5865_v8 = vadd.f32 %v4220_v47, %v820_v27  ;;  %v812_v40 = vadd.f32 %v811_v6, %v5800_v60 }
 0x128   : > { %v4173_v34 = vpop.f32.mrf.mxu1  ;;  %v4221_v49 = vpop.f32.mrf.mxu0 }
 0x129   : > { %v5868_v12 = vadd.f32 %v1026_v0, %v812_v40  ;;  %v823_v43 = vadd.f32 %v4173_v34, %v5804_v42  ;;  %v6322_v0 = vld [vmem:[#allocation10_spill] sm:$0xff]  ;;  %v2808_v40 = vrot.slane %v2806_v48, 4  ;;  %v2809_v34 = vrot.slane %v5482_v22, 5 }
 0x12a   : > { %v814_v30 = vpop.f32.mrf.mxu1  ;;  %v1029_v33 = vpop.f32.mrf.mxu0 }
 0x12b   : > { %v5871_v13 = vadd.f32 %v4221_v49, %v823_v43  ;;  %v815_v56 = vadd.f32 %v814_v30, %v5808_v25 }
 0x12c   : > { %v4176_v11 = vpop.f32.mrf.mxu1  ;;  %v4224_v24 = vpop.f32.mrf.mxu0  ;;  %4463 = vmatmul.mubr.bf16.gmra.mxu1 %v5681_v26  ;;  %4511 = vmatmul.mubr.bf16.gmra.mxu0 %v5711_v46 }
 0x12d   : > { %v5876_v28 = vadd.f32 %v1029_v33, %v815_v56  ;;  %v836_v60 = vadd.f32 %v4176_v11, %v5689_v31  ;;  %4466 = vmatprep.mubr.bf16.mxu1 %v5711_v46  ;;  %4514 = vmatprep.mubr.bf16.mxu0 %v5721_v9  ;;  %v3695_v46 = vrot.slane %v6322_v0, 9 }
 0x12e   : > { %v827_v42 = vpop.f32.mrf.mxu1  ;;  %v1042_v41 = vpop.f32.mrf.mxu0 }
 0x12f   : > { %v5882_v52 = vadd.f32 %v4224_v24, %v836_v60  ;;  %v828_v25 = vadd.f32 %v827_v42, %v5705_v5  ;;  %v2807_v11 = vsel %vm5116_vm5, %v3695_v46, %v2806_v48 }
 0x130   : > { %v4177_v16 = vpop.f32.mrf.mxu1  ;;  %v4225_v26 = vpop.f32.mrf.mxu0 }
 0x131   : > { %v5885_v47 = vadd.f32 %v1042_v41, %v828_v25  ;;  %v839_v27 = vadd.f32 %v4177_v16, %v5718_v62 }
 0x132   : > { %v830_v6 = vpop.f32.mrf.mxu1  ;;  %v1045_v31 = vpop.f32.mrf.mxu0 }
 0x133   : > { %v5890_v49 = vadd.f32 %v4225_v26, %v839_v27  ;;  %v831_v43 = vadd.f32 %v830_v6, %v5725_v44  ;;  %v2810_v44 = vsel %vm5116_vm5, %v2808_v40, %v2809_v34 }
 0x134   : > { %v4180_v30 = vpop.f32.mrf.mxu1  ;;  %v4228_v33 = vpop.f32.mrf.mxu0  ;;  %4467 = vmatmul.mubr.bf16.gmra.mxu1 %v5721_v9  ;;  %4515 = vmatmul.mubr.bf16.gmra.mxu0 %v5753_v45 }
 0x135   : > { %v5895_v5 = vadd.f32 %v1045_v31, %v831_v43  ;;  %v852_v62 = vadd.f32 %v4180_v30, %v5731_v55  ;;  %4470 = vmatprep.mubr.bf16.mxu1 %v5753_v45  ;;  %4518 = vmatprep.mubr.bf16.mxu0 %v5755_v3  ;;  %v3696_v45 = vcombine.low %v2807_v11, %v2810_v44 }
 0x136   : > { %v843_v56 = vpop.f32.mrf.mxu1  ;;  %v1058_v22 = vpop.f32.mrf.mxu0 }
 0x137   : > { %v5904_v24 = vadd.f32 %v4228_v33, %v852_v62  ;;  %v844_v9 = vadd.f32 %v843_v56, %v5747_v38 }
 0x138   : > { %v4181_v60 = vpop.f32.mrf.mxu1  ;;  %v4229_v42 = vpop.f32.mrf.mxu0 }
 0x139   : > { %v5907_v41 = vadd.f32 %v1058_v22, %v844_v9  ;;  %v855_v55 = vadd.f32 %v4181_v60, %v5751_v63 }
 0x13a   : > { %v846_v20 = vpop.f32.mrf.mxu1  ;;  %v1061_v25 = vpop.f32.mrf.mxu0 }
 0x13b   : > { %v5910_v16 = vadd.f32 %v4229_v42, %v855_v55  ;;  %v847_v48 = vadd.f32 %v846_v20, %v5761_v19 }
 0x13c   : > { %v4184_v26 = vpop.f32.mrf.mxu1  ;;  %v4232_v58 = vpop.f32.mrf.mxu0  ;;  %4471 = vmatmul.mubr.bf16.gmra.mxu1 %v5755_v3  ;;  %4519 = vmatmul.mubr.bf16.gmra.mxu0 %v5787_v32 }
 0x13d   : > { %v5915_v38 = vadd.f32 %v1061_v25, %v847_v48  ;;  %v868_v27 = vadd.f32 %v4184_v26, %v5765_v50  ;;  %4474 = vmatprep.mubr.bf16.mxu1 %v5787_v32  ;;  %4522 = vmatprep.mubr.bf16.mxu0 %v3696_v45 }
 0x13e   : > { %v859_v63 = vpop.f32.mrf.mxu1  ;;  %v1074_v6 = vpop.f32.mrf.mxu0 }
 0x13f   : > { %v5919_v31 = vadd.f32 %v4232_v58, %v868_v27  ;;  %v860_v0 = vadd.f32 %v859_v63, %v5781_v37 }
 0x140   : > { %v4185_v19 = vpop.f32.mrf.mxu1  ;;  %v4233_v46 = vpop.f32.mrf.mxu0 }
 0x141   : > { %v5922_v40 = vadd.f32 %v1074_v6, %v860_v0  ;;  %v871_v3 = vadd.f32 %v4185_v19, %v5785_v4 }
 0x142   : > { %v862_v34 = vpop.f32.mrf.mxu1  ;;  %v1077_v43 = vpop.f32.mrf.mxu0 }
 0x143   : > { %v5925_v30 = vadd.f32 %v4233_v46, %v871_v3  ;;  %v863_v50 = vadd.f32 %v862_v34, %v5791_v61 }
 0x144   : > { %v4188_v32 = vpop.f32.mrf.mxu1  ;;  %v4236_v33 = vpop.f32.mrf.mxu0  ;;  %4475 = vmatmul.mubr.bf16.gmra.mxu1 %v3696_v45  ;;  %4523 = vmatmul.mubr.bf16.gmra.mxu0 %v3706_v53 }
 0x145   : > { %v5931_v37 = vadd.f32 %v1077_v43, %v863_v50  ;;  %v884_v62 = vadd.f32 %v4188_v32, %v5795_v57 }
 0x146   : > { %v875_v56 = vpop.f32.mrf.mxu1  ;;  %v1090_v22 = vpop.f32.mrf.mxu0 }
 0x147   : > { %v5934_v4 = vadd.f32 %v4236_v33, %v884_v62  ;;  %v876_v11 = vadd.f32 %v875_v56, %v5802_v39 }
 0x148   : > { %v4189_v44 = vpop.f32.mrf.mxu1  ;;  %v4237_v9 = vpop.f32.mrf.mxu0 }
 0x149   : > { %v5937_v61 = vadd.f32 %v1090_v22, %v876_v11  ;;  %v887_v60 = vadd.f32 %v4189_v44, %v5806_v10 }
 0x14a   : > { %v878_v42 = vpop.f32.mrf.mxu1  ;;  %v1093_v55 = vpop.f32.mrf.mxu0 }
 0x14b   : > { %v5940_v1 = vadd.f32 %v4237_v9, %v887_v60  ;;  %v879_v17 = vadd.f32 %v878_v42, %v5810_v59 }
 0x14c   : > { %v4256_v53 = vpop.f32.mrf.mxu1  ;;  %v4304_v57 = vpop.f32.mrf.mxu0 }
 0x14d   : > { %v5943_v45 = vadd.f32 %v1093_v55, %v879_v17  ;;  %v1799_v20 = vadd.f32 %v4256_v53, %v5817_v15 }
 0x14e   : > { %v1670_v25 = vpop.f32.mrf.mxu1  ;;  %v1939_v39 = vpop.f32.mrf.mxu0 }
 0x14f   : > { %v5946_v48 = vadd.f32 %v4304_v57, %v1799_v20  ;;  %v1797_v26 = vadd.f32 %v1670_v25, %v5820_v7 }
 0x150   : > { %v4257_v58 = vpop.f32.mrf.mxu1  ;;  %v4305_v10 = vpop.f32.mrf.mxu0 }
 0x151   : > { %v5949_v27 = vadd.f32 %v1939_v39, %v1797_v26  ;;  %v1800_v63 = vadd.f32 %v4257_v58, %v5823_v51 }
 0x152   : > { %v1673_v6 = vpop.f32.mrf.mxu1  ;;  %v1942_v59 = vpop.f32.mrf.mxu0 }
 0x153   : > { %v5952_v0 = vadd.f32 %v4305_v10, %v1800_v63  ;;  %v1798_v19 = vadd.f32 %v1673_v6, %v5828_v2 }
 0x154   : > { %v4260_v46 = vpop.f32.mrf.mxu1  ;;  %v4308_v15 = vpop.f32.mrf.mxu0 }
 0x155   : > { %v5955_v3 = vadd.f32 %v1942_v59, %v1798_v19  ;;  %v1803_v34 = vadd.f32 %v4260_v46, %v5833_v14 }
 0x156   : > { %v1686_v43 = vpop.f32.mrf.mxu1  ;;  %v1955_v7 = vpop.f32.mrf.mxu0 }
 0x157   : > { %v5958_v50 = vadd.f32 %v4308_v15, %v1803_v34  ;;  %v1801_v32 = vadd.f32 %v1686_v43, %v5836_v29 }
 0x158   : > { %v4261_v33 = vpop.f32.mrf.mxu1  ;;  %v4309_v51 = vpop.f32.mrf.mxu0 }
 0x159   : > { %v5961_v62 = vadd.f32 %v1955_v7, %v1801_v32  ;;  %v1804_v56 = vadd.f32 %v4261_v33, %v5839_v35 }
 0x15a   : > { %v1689_v22 = vpop.f32.mrf.mxu1  ;;  %v1958_v2 = vpop.f32.mrf.mxu0 }
 0x15b   : > { %v5964_v11 = vadd.f32 %v4309_v51, %v1804_v56  ;;  %v1802_v44 = vadd.f32 %v1689_v22, %v5844_v23 }
 0x15c   : > { %v4264_v9 = vpop.f32.mrf.mxu1  ;;  %v4312_v14 = vpop.f32.mrf.mxu0 }
 0x15d   : > { %v5967_v60 = vadd.f32 %v1958_v2, %v1802_v44  ;;  %v1807_v42 = vadd.f32 %v4264_v9, %v5849_v54 }
 0x15e   : > { %v1702_v55 = vpop.f32.mrf.mxu1  ;;  %v1971_v29 = vpop.f32.mrf.mxu0 }
 0x15f   : > { %v5970_v17 = vadd.f32 %v4312_v14, %v1807_v42  ;;  %v1805_v53 = vadd.f32 %v1702_v55, %v5852_v21 }
 0x160   : > { %v4265_v57 = vpop.f32.mrf.mxu1  ;;  %v4313_v35 = vpop.f32.mrf.mxu0 }
 0x161   : > { %v5973_v20 = vadd.f32 %v1971_v29, %v1805_v53  ;;  %v1808_v25 = vadd.f32 %v4265_v57, %v5855_v36 }
 0x162   : > { %v1705_v39 = vpop.f32.mrf.mxu1  ;;  %v1974_v23 = vpop.f32.mrf.mxu0 }
 0x163   : > { %v5976_v26 = vadd.f32 %v4313_v35, %v1808_v25  ;;  %v1806_v58 = vadd.f32 %v1705_v39, %v5860_v18 }
 0x164   : > { %v4268_v10 = vpop.f32.mrf.mxu1  ;;  %v4316_v54 = vpop.f32.mrf.mxu0 }
 0x165   : > { %v5979_v63 = vadd.f32 %v1974_v23, %v1806_v58  ;;  %v1811_v6 = vadd.f32 %v4268_v10, %v5865_v8 }
 0x166   : > { %v1718_v59 = vpop.f32.mrf.mxu1  ;;  %v1987_v21 = vpop.f32.mrf.mxu0 }
 0x167   : > { %v5982_v19 = vadd.f32 %v4316_v54, %v1811_v6  ;;  %v1809_v46 = vadd.f32 %v1718_v59, %v5868_v12 }
 0x168   : > { %v4269_v15 = vpop.f32.mrf.mxu1  ;;  %v4317_v36 = vpop.f32.mrf.mxu0 }
 0x169   : > { %v5985_v34 = vadd.f32 %v1987_v21, %v1809_v46  ;;  %v1812_v43 = vadd.f32 %v4269_v15, %v5871_v13 }
 0x16a   : > { %v1721_v7 = vpop.f32.mrf.mxu1  ;;  %v1990_v18 = vpop.f32.mrf.mxu0 }
 0x16b   : > { %v5988_v32 = vadd.f32 %v4317_v36, %v1812_v43  ;;  %v1810_v33 = vadd.f32 %v1721_v7, %v5876_v28 }
 0x16c   : > { %v4272_v51 = vpop.f32.mrf.mxu1  ;;  %v4320_v8 = vpop.f32.mrf.mxu0 }
 0x16d   : > { %v5991_v56 = vadd.f32 %v1990_v18, %v1810_v33  ;;  %v1815_v22 = vadd.f32 %v4272_v51, %v5882_v52 }
 0x16e   : > { %v1734_v2 = vpop.f32.mrf.mxu1  ;;  %v2003_v12 = vpop.f32.mrf.mxu0 }
 0x16f   : > { %v5994_v44 = vadd.f32 %v4320_v8, %v1815_v22  ;;  %v1813_v9 = vadd.f32 %v1734_v2, %v5885_v47 }
 0x170   : > { %v4273_v14 = vpop.f32.mrf.mxu1  ;;  %v4321_v13 = vpop.f32.mrf.mxu0 }
 0x171   : > { %v5997_v42 = vadd.f32 %v2003_v12, %v1813_v9  ;;  %v1816_v55 = vadd.f32 %v4273_v14, %v5890_v49 }
 0x172   : > { %v1737_v29 = vpop.f32.mrf.mxu1  ;;  %v2006_v28 = vpop.f32.mrf.mxu0 }
 0x173   : > { %v6000_v53 = vadd.f32 %v4321_v13, %v1816_v55  ;;  %v1814_v57 = vadd.f32 %v1737_v29, %v5895_v5 }
 0x174   : > { %v4276_v35 = vpop.f32.mrf.mxu1  ;;  %v4324_v52 = vpop.f32.mrf.mxu0 }
 0x175   : > { %v6003_v25 = vadd.f32 %v2006_v28, %v1814_v57  ;;  %v1819_v39 = vadd.f32 %v4276_v35, %v5904_v24 }
 0x176   : > { %v1750_v23 = vpop.f32.mrf.mxu1  ;;  %v2019_v47 = vpop.f32.mrf.mxu0 }
 0x177   : > { %v6006_v58 = vadd.f32 %v4324_v52, %v1819_v39  ;;  %v1817_v10 = vadd.f32 %v1750_v23, %v5907_v41 }
 0x178   : > { %v4277_v54 = vpop.f32.mrf.mxu1  ;;  %v4325_v49 = vpop.f32.mrf.mxu0 }
 0x179   : > { %v6009_v6 = vadd.f32 %v2019_v47, %v1817_v10  ;;  %v1820_v59 = vadd.f32 %v4277_v54, %v5910_v16 }
 0x17a   : > { %v1753_v21 = vpop.f32.mrf.mxu1  ;;  %v2022_v5 = vpop.f32.mrf.mxu0 }
 0x17b   : > { %v6012_v46 = vadd.f32 %v4325_v49, %v1820_v59  ;;  %v1818_v15 = vadd.f32 %v1753_v21, %v5915_v38 }
 0x17c   : > { %v4280_v36 = vpop.f32.mrf.mxu1  ;;  %v4328_v24 = vpop.f32.mrf.mxu0 }
 0x17d   : > { %v6015_v43 = vadd.f32 %v2022_v5, %v1818_v15  ;;  %v1823_v7 = vadd.f32 %v4280_v36, %v5919_v31 }
 0x17e   : > { %v1766_v18 = vpop.f32.mrf.mxu1  ;;  %v2035_v41 = vpop.f32.mrf.mxu0 }
 0x17f   : > { %v6018_v33 = vadd.f32 %v4328_v24, %v1823_v7  ;;  %v1821_v51 = vadd.f32 %v1766_v18, %v5922_v40 }
 0x180   : > { %v4281_v8 = vpop.f32.mrf.mxu1  ;;  %v4329_v16 = vpop.f32.mrf.mxu0 }
 0x181   : > { %v6021_v22 = vadd.f32 %v2035_v41, %v1821_v51  ;;  %v1824_v2 = vadd.f32 %v4281_v8, %v5925_v30 }
 0x182   : > { %v1769_v12 = vpop.f32.mrf.mxu1  ;;  %v2038_v38 = vpop.f32.mrf.mxu0 }
 0x183   : > { %v6024_v9 = vadd.f32 %v4329_v16, %v1824_v2  ;;  %v1822_v14 = vadd.f32 %v1769_v12, %v5931_v37 }
 0x184   : > { %v4284_v13 = vpop.f32.mrf.mxu1  ;;  %v4332_v31 = vpop.f32.mrf.mxu0 }
 0x185   : > { %6323 = vst [vmem:[#allocation3_spill] sm:$0xff] %v6024_v9  ;;  %v6027_v55 = vadd.f32 %v2038_v38, %v1822_v14  ;;  %v1827_v29 = vadd.f32 %v4284_v13, %v5934_v4 }
 0x186   : > { %v1782_v28 = vpop.f32.mrf.mxu1  ;;  %v2051_v40 = vpop.f32.mrf.mxu0 }
 0x187   : > { %6324 = vst [vmem:[#allocation2_spill] sm:$0xff] %v6027_v55  ;;  %v6030_v57 = vadd.f32 %v4332_v31, %v1827_v29  ;;  %v1825_v35 = vadd.f32 %v1782_v28, %v5937_v61 }
 0x188   : > { %v4285_v52 = vpop.f32.mrf.mxu1  ;;  %v4333_v30 = vpop.f32.mrf.mxu0 }
 0x189   : > { %v6033_v39 = vadd.f32 %v2051_v40, %v1825_v35  ;;  %v1828_v23 = vadd.f32 %v4285_v52, %v5940_v1 }
 0x18a   : > { %v1785_v47 = vpop.f32.mrf.mxu1  ;;  %v2054_v37 = vpop.f32.mrf.mxu0 }
 0x18b   : > { %v6036_v10 = vadd.f32 %v4333_v30, %v1828_v23  ;;  %v1826_v54 = vadd.f32 %v1785_v47, %v5943_v45 }
 0x18c   : > { %v4352_v49 = vpop.f32.mrf.mxu1  ;;  %v4400_v4 = vpop.f32.mrf.mxu0 }
 0x18d   : > { %6325 = vst [vmem:[#allocation6_spill] sm:$0xff] %v6036_v10  ;;  %v6039_v59 = vadd.f32 %v2054_v37, %v1826_v54  ;;  %v2337_v21 = vadd.f32 %v4352_v49, %v5946_v48 }
 0x18e   : > { %v2208_v5 = vpop.f32.mrf.mxu1  ;;  %v2644_v61 = vpop.f32.mrf.mxu0 }
 0x18f   : > { %6326 = vst [vmem:[#allocation5_spill] sm:$0xff] %v6039_v59  ;;  %v6042_v15 = vadd.f32 %v4400_v4, %v2337_v21  ;;  %v2335_v36 = vadd.f32 %v2208_v5, %v5949_v27 }
 0x190   : > { %v6045_v24 = vpop.f32.mrf.mxu1  ;;  %v6047_v1 = vpop.f32.mrf.mxu0 }
 0x191   : > { %v6049_v7 = vadd.f32 %v2644_v61, %v2335_v36 }
 0x192   : > { %v6051_v18 = vpop.f32.mrf.mxu1  ;;  %v6053_v45 = vpop.f32.mrf.mxu0 }
 0x194   : > { %v4356_v41 = vpop.f32.mrf.mxu1  ;;  %v4404_v51 = vpop.f32.mrf.mxu0 }
 0x195   : > { %v2341_v48 = vadd.f32 %v4356_v41, %v5958_v50 }
 0x196   : > { %v2224_v8 = vpop.f32.mrf.mxu1  ;;  %v2660_v16 = vpop.f32.mrf.mxu0 }
 0x197   : > { %v6056_v2 = vadd.f32 %v4404_v51, %v2341_v48  ;;  %v2339_v27 = vadd.f32 %v2224_v8, %v5961_v62 }
 0x198   : > { %v6059_v12 = vpop.f32.mrf.mxu1  ;;  %v6061_v38 = vpop.f32.mrf.mxu0 }
 0x199   : > { %v6063_v14 = vadd.f32 %v2660_v16, %v2339_v27 }
 0x19a   : > { %v6065_v13 = vpop.f32.mrf.mxu1  ;;  %v6067_v31 = vpop.f32.mrf.mxu0 }
 0x19c   : > { %v4360_v29 = vpop.f32.mrf.mxu1  ;;  %v4408_v28 = vpop.f32.mrf.mxu0 }
 0x19d   : > { %v2345_v50 = vadd.f32 %v4360_v29, %v5970_v17 }
 0x19e   : > { %v2240_v40 = vpop.f32.mrf.mxu1  ;;  %v2676_v35 = vpop.f32.mrf.mxu0 }
 0x19f   : > { %v6070_v52 = vadd.f32 %v4408_v28, %v2345_v50  ;;  %v2343_v62 = vadd.f32 %v2240_v40, %v5973_v20 }
 0x1a0   : > { %v6073_v30 = vpop.f32.mrf.mxu1  ;;  %v6075_v23 = vpop.f32.mrf.mxu0 }
 0x1a1   : > { %v6077_v47 = vadd.f32 %v2676_v35, %v2343_v62 }
 0x1a2   : > { %v6079_v37 = vpop.f32.mrf.mxu1  ;;  %v6081_v54 = vpop.f32.mrf.mxu0 }
 0x1a4   : > { %v4364_v49 = vpop.f32.mrf.mxu1  ;;  %v4412_v4 = vpop.f32.mrf.mxu0 }
 0x1a5   : > { %v2349_v17 = vadd.f32 %v4364_v49, %v5982_v19 }
 0x1a6   : > { %v2256_v21 = vpop.f32.mrf.mxu1  ;;  %v2692_v5 = vpop.f32.mrf.mxu0 }
 0x1a7   : > { %v6084_v61 = vadd.f32 %v4412_v4, %v2349_v17  ;;  %v2347_v20 = vadd.f32 %v2256_v21, %v5985_v34 }
 0x1a8   : > { %v6087_v36 = vpop.f32.mrf.mxu1  ;;  %v6089_v41 = vpop.f32.mrf.mxu0 }
 0x1a9   : > { %v6091_v51 = vadd.f32 %v2692_v5, %v2347_v20 }
 0x1aa   : > { %v6093_v48 = vpop.f32.mrf.mxu1  ;;  %v6095_v8 = vpop.f32.mrf.mxu0 }
 0x1ac   : > { %v4368_v16 = vpop.f32.mrf.mxu1  ;;  %v4416_v27 = vpop.f32.mrf.mxu0 }
 0x1ad   : > { %v2353_v19 = vadd.f32 %v4368_v16, %v5994_v44 }
 0x1ae   : > { %v2272_v29 = vpop.f32.mrf.mxu1  ;;  %v2708_v28 = vpop.f32.mrf.mxu0 }
 0x1af   : > { %v6098_v50 = vadd.f32 %v4416_v27, %v2353_v19  ;;  %v2351_v34 = vadd.f32 %v2272_v29, %v5997_v42 }
 0x1b0   : > { %v6101_v40 = vpop.f32.mrf.mxu1  ;;  %v6103_v35 = vpop.f32.mrf.mxu0 }
 0x1b1   : > { %v6105_v62 = vadd.f32 %v2708_v28, %v2351_v34 }
 0x1b2   : > { %v6107_v49 = vpop.f32.mrf.mxu1  ;;  %v6109_v4 = vpop.f32.mrf.mxu0 }
 0x1b4   : > { %v4372_v17 = vpop.f32.mrf.mxu1  ;;  %v4420_v21 = vpop.f32.mrf.mxu0 }
 0x1b5   : > { %v2357_v44 = vadd.f32 %v4372_v17, %v6006_v58 }
 0x1b6   : > { %v2288_v5 = vpop.f32.mrf.mxu1  ;;  %v2724_v20 = vpop.f32.mrf.mxu0 }
 0x1b7   : > { %v6112_v16 = vadd.f32 %v4420_v21, %v2357_v44  ;;  %v2355_v42 = vadd.f32 %v2288_v5, %v6009_v6 }
 0x1b8   : > { %v6115_v27 = vpop.f32.mrf.mxu1  ;;  %v6117_v19 = vpop.f32.mrf.mxu0 }
 0x1b9   : > { %6327 = vst [vmem:[#allocation4_spill] sm:$0xff] %v6117_v19  ;;  %v6119_v29 = vadd.f32 %v2724_v20, %v2355_v42 }
 0x1ba   : > { %v6121_v28 = vpop.f32.mrf.mxu1  ;;  %v6123_v34 = vpop.f32.mrf.mxu0 }
 0x1bb   : > { %6328 = vst [vmem:[#allocation9_spill] sm:$0xff] %v6119_v29  ;;  %6329 = vst [vmem:[#allocation8_spill] sm:$0xff] %v6123_v34 }
 0x1bc   : > { %v4376_v59 = vpop.f32.mrf.mxu1  ;;  %v4424_v10 = vpop.f32.mrf.mxu0 }
 0x1bd   : > { %v2361_v58 = vadd.f32 %v4376_v59, %v6018_v33 }
 0x1be   : > { %v2304_v17 = vpop.f32.mrf.mxu1  ;;  %v2740_v55 = vpop.f32.mrf.mxu0 }
 0x1bf   : > { %v6126_v21 = vadd.f32 %v4424_v10, %v2361_v58  ;;  %v2359_v6 = vadd.f32 %v2304_v17, %v6021_v22 }
 0x1c0   : > { %v6129_v44 = vpop.f32.mrf.mxu1  ;;  %v6131_v5 = vpop.f32.mrf.mxu0 }
 0x1c1   : > { %v6133_v20 = vadd.f32 %v2740_v55, %v2359_v6 }
 0x1c2   : > { %v6135_v42 = vpop.f32.mrf.mxu1  ;;  %v6137_v9 = vpop.f32.mrf.mxu0 }
 0x1c3   : > { %6330 = vst [vmem:[#allocation7_spill] sm:$0xff] %v6133_v20  ;;  %6331 = vst [vmem:[#allocation11_spill] sm:$0xff] %v6137_v9  ;;  %v2338_v9 = vadd.f32 %v6045_v24, %v5952_v0  ;;  %v2342_v24 = vadd.f32 %v6059_v12, %v5964_v11 }
 0x1c4   : > { %v4380_v34 = vpop.f32.mrf.mxu1  ;;  %v4428_v29 = vpop.f32.mrf.mxu0 }
 0x1c5   : > { %v2365_v33 = vadd.f32 %v4380_v34, %v6030_v57 }
 0x1c6   : > { %v2320_v59 = vpop.f32.mrf.mxu1  ;;  %v2756_v19 = vpop.f32.mrf.mxu0 }
 0x1c7   : > { %v6140_v10 = vadd.f32 %v4428_v29, %v2365_v33  ;;  %v2363_v22 = vadd.f32 %v2320_v59, %v6033_v39  ;;  %v2336_v29 = vadd.f32 %v6051_v18, %v5955_v3  ;;  %v6166_v3 = vld [vmem:[%s6281_s2] ss:$0 sm:$0xff] }
 0x1c8   : > { %v6143_v58 = vpop.f32.mrf.mxu1  ;;  %v6145_v17 = vpop.f32.mrf.mxu0 }
 0x1c9   : > { %6332 = vst [vmem:[#allocation10_spill] sm:$0xff] %v6140_v10  ;;  %6333 = vst [vmem:[#allocation12_spill] sm:$0xff] %v6145_v17  ;;  %v6147_v55 = vadd.f32 %v2756_v19, %v2363_v22  ;;  %v2774_v19 = vadd.f32 %v6047_v1, %v2338_v9 }
 0x1ca   : > { %v6149_v6 = vpop.f32.mrf.mxu1  ;;  %v6151_v20 = vpop.f32.mrf.mxu0 }
 0x1cb   : > { %6334 = vst [vmem:[#allocation13_spill] sm:$0xff] %v6147_v55  ;;  %6335 = vst [vmem:[#allocation14_spill] sm:$0xff] %v6151_v20  ;;  %v2772_v20 = vadd.f32 %v6053_v45, %v2336_v29 }
 0x1cc   : > { %v4448_v57 = vpop.f32.mrf.mxu1  ;;  %v4496_v34 = vpop.f32.mrf.mxu0 }
 0x1cd   : > { %v3026_v39 = vadd.f32 %v4448_v57, %v6042_v15 }
 0x1ce   : > { %v2897_v33 = vpop.f32.mrf.mxu1  ;;  %v3150_v59 = vpop.f32.mrf.mxu0 }
 0x1cf   : > { %v3024_v22 = vadd.f32 %v2897_v33, %v6049_v7  ;;  %v3279_v10 = vadd.f32 %v4496_v34, %v3026_v39  ;;  %v2340_v7 = vadd.f32 %v6065_v13, %v5967_v60  ;;  %v2778_v39 = vadd.f32 %v6061_v38, %v2342_v24 }
 0x1d0   : > { %v4449_v55 = vpop.f32.mrf.mxu1  ;;  %v4497_v17 = vpop.f32.mrf.mxu0  ;;  %v2346_v24 = vadd.f32 %v6073_v30, %v5976_v26 }
 0x1d1   : > { %v3027_v0 = vadd.f32 %v4449_v55, %v2774_v19  ;;  %v3277_v57 = vadd.f32 %v3150_v59, %v3024_v22  ;;  %v3318_v55 = vadd.f32 %v6166_v3, %v3279_v10  ;;  %v2776_v38 = vadd.f32 %v6067_v31, %v2340_v7 }
 0x1d2   : > { %v2900_v15 = vpop.f32.mrf.mxu1  ;;  %v3153_v18 = vpop.f32.mrf.mxu0  ;;  %v2782_v26 = vadd.f32 %v6075_v23, %v2346_v24  ;;  %v2350_v23 = vadd.f32 %v6087_v36, %v5988_v32 }
 0x1d3   : > { %v3280_v9 = vadd.f32 %v4497_v17, %v3027_v0  ;;  %v3025_v1 = vadd.f32 %v2900_v15, %v2772_v20  ;;  %v3316_v13 = vadd.f32 %v6166_v3, %v3277_v57 }
 0x1d4   : > { %v4452_v45 = vpop.f32.mrf.mxu1  ;;  %v4500_v34 = vpop.f32.mrf.mxu0  ;;  %v2786_v32 = vadd.f32 %v6089_v41, %v2350_v23  ;;  %v2354_v41 = vadd.f32 %v6101_v40, %v6000_v53 }
 0x1d5   : > { %v3319_v11 = vadd.f32 %v6166_v3, %v3280_v9  ;;  %v3278_v12 = vadd.f32 %v3153_v18, %v3025_v1  ;;  %v3030_v29 = vadd.f32 %v4452_v45, %v6056_v2 }
 0x1d6   : > { %v2913_v20 = vpop.f32.mrf.mxu1  ;;  %v3166_v60 = vpop.f32.mrf.mxu0  ;;  %v2790_v53 = vadd.f32 %v6103_v35, %v2354_v41  ;;  %v2358_v35 = vadd.f32 %v6115_v27, %v6012_v46  ;;  %v6336_v46 = vld [vmem:[#allocation4_spill] sm:$0xff] }
 0x1d7   : > { %v3791_v17 = vpack.c.bf16 %v3319_v11, %v3318_v55  ;;  %v3317_v10 = vadd.f32 %v6166_v3, %v3278_v12  ;;  %v3028_v33 = vadd.f32 %v2913_v20, %v6063_v14  ;;  %v3283_v22 = vadd.f32 %v4500_v34, %v3030_v29 }
 0x1d8   : > { %v4453_v59 = vpop.f32.mrf.mxu1  ;;  %v4501_v2 = vpop.f32.mrf.mxu0  ;;  %v2344_v14 = vadd.f32 %v6079_v37, %v5979_v63  ;;  %v2794_v27 = vadd.f32 %v6336_v46, %v2358_v35 }
 0x1d9   : > { %3863 = vst [vmem:[%s6178_s13 + $0x8] sm:$0xff] %v3791_v17   ;;  %v3786_v19 = vpack.c.bf16 %v3317_v10, %v3316_v13  ;;  %v3031_v0 = vadd.f32 %v4453_v59, %v2778_v39  ;;  %v3281_v57 = vadd.f32 %v3166_v60, %v3028_v33  ;;  %v3322_v31 = vadd.f32 %v6166_v3, %v3283_v22 }
 0x1da   : > { %v2916_v15 = vpop.f32.mrf.mxu1  ;;  %v3169_v18 = vpop.f32.mrf.mxu0  ;;  %v2780_v13 = vadd.f32 %v6081_v54, %v2344_v14 }
 0x1db   : > { %3787 = vst [vmem:[%s6178_s13] sm:$0xff] %v3786_v19   ;;  %v3284_v9 = vadd.f32 %v4501_v2, %v3031_v0  ;;  %v3029_v1 = vadd.f32 %v2916_v15, %v2776_v38  ;;  %v3320_v29 = vadd.f32 %v6166_v3, %v3281_v57 }
 0x1dc   : > { %v4456_v45 = vpop.f32.mrf.mxu1  ;;  %v4504_v55 = vpop.f32.mrf.mxu0 }
 0x1dd   : > { %v3323_v7 = vadd.f32 %v6166_v3, %v3284_v9  ;;  %v3282_v34 = vadd.f32 %v3169_v18, %v3029_v1  ;;  %v3034_v11 = vadd.f32 %v4456_v45, %v6070_v52 }
 0x1de   : > { %v2929_v30 = vpop.f32.mrf.mxu1  ;;  %v3182_v12 = vpop.f32.mrf.mxu0 }
 0x1df   : > { %v3801_v39 = vpack.c.bf16 %v3323_v7, %v3322_v31  ;;  %v3321_v63 = vadd.f32 %v6166_v3, %v3282_v34  ;;  %v3032_v37 = vadd.f32 %v2929_v30, %v6077_v47  ;;  %v3287_v10 = vadd.f32 %v4504_v55, %v3034_v11 }
 0x1e0   : > { %v4457_v20 = vpop.f32.mrf.mxu1  ;;  %v4505_v60 = vpop.f32.mrf.mxu0  ;;  %v2348_v47 = vadd.f32 %v6093_v48, %v5991_v56 }
 0x1e1   : > { %3865 = vst [vmem:[%s6178_s13 + $0x18] sm:$0xff] %v3801_v39   ;;  %v3796_v17 = vpack.c.bf16 %v3321_v63, %v3320_v29  ;;  %v3035_v52 = vadd.f32 %v4457_v20, %v2782_v26  ;;  %v3285_v2 = vadd.f32 %v3182_v12, %v3032_v37  ;;  %v3326_v54 = vadd.f32 %v6166_v3, %v3287_v10 }
 0x1e2   : > { %v2932_v33 = vpop.f32.mrf.mxu1  ;;  %v3185_v59 = vpop.f32.mrf.mxu0  ;;  %v2784_v55 = vadd.f32 %v6095_v8, %v2348_v47 }
 0x1e3   : > { %3864 = vst [vmem:[%s6178_s13 + $0x10] sm:$0xff] %v3796_v17   ;;  %v3288_v38 = vadd.f32 %v4505_v60, %v3035_v52  ;;  %v3033_v19 = vadd.f32 %v2932_v33, %v2780_v13  ;;  %v3324_v9 = vadd.f32 %v6166_v3, %v3285_v2 }
 0x1e4   : > { %v4460_v22 = vpop.f32.mrf.mxu1  ;;  %v4508_v0 = vpop.f32.mrf.mxu0 }
 0x1e5   : > { %v3327_v24 = vadd.f32 %v6166_v3, %v3288_v38  ;;  %v3286_v15 = vadd.f32 %v3185_v59, %v3033_v19  ;;  %v3038_v18 = vadd.f32 %v4460_v22, %v6084_v61 }
 0x1e6   : > { %v2945_v36 = vpop.f32.mrf.mxu1  ;;  %v3198_v57 = vpop.f32.mrf.mxu0 }
 0x1e7   : > { %v3811_v1 = vpack.c.bf16 %v3327_v24, %v3326_v54  ;;  %v3325_v56 = vadd.f32 %v6166_v3, %v3286_v15  ;;  %v3036_v48 = vadd.f32 %v2945_v36, %v6091_v51  ;;  %v3291_v7 = vadd.f32 %v4508_v0, %v3038_v18 }
 0x1e8   : > { %v4461_v14 = vpop.f32.mrf.mxu1  ;;  %v4509_v45 = vpop.f32.mrf.mxu0  ;;  %v2352_v51 = vadd.f32 %v6107_v49, %v6003_v25 }
 0x1e9   : > { %3867 = vst [vmem:[%s6178_s13 + $0x28] sm:$0xff] %v3811_v1   ;;  %v3806_v31 = vpack.c.bf16 %v3325_v56, %v3324_v9  ;;  %v3039_v61 = vadd.f32 %v4461_v14, %v2786_v32  ;;  %v3289_v26 = vadd.f32 %v3198_v57, %v3036_v48  ;;  %v3330_v8 = vadd.f32 %v6166_v3, %v3291_v7  ;;  %v6338_v14 = vld [vmem:[#allocation8_spill] sm:$0xff]  ;;  %v6339_v7 = vld [vmem:[#allocation3_spill] sm:$0xff] }
 0x1ea   : > { %v2948_v34 = vpop.f32.mrf.mxu1  ;;  %v3201_v11 = vpop.f32.mrf.mxu0  ;;  %v2788_v23 = vadd.f32 %v6109_v4, %v2352_v51 }
 0x1eb   : > { %3866 = vst [vmem:[%s6178_s13 + $0x20] sm:$0xff] %v3806_v31   ;;  %v3292_v30 = vadd.f32 %v4509_v45, %v3039_v61  ;;  %v3037_v12 = vadd.f32 %v2948_v34, %v2784_v55  ;;  %v3328_v13 = vadd.f32 %v6166_v3, %v3289_v26  ;;  %v2362_v61 = vadd.f32 %v6129_v44, %v6339_v7 }
 0x1ec   : > { %v4464_v29 = vpop.f32.mrf.mxu1  ;;  %v4512_v39 = vpop.f32.mrf.mxu0 }
 0x1ed   : > { %v3331_v63 = vadd.f32 %v6166_v3, %v3292_v30  ;;  %v3290_v37 = vadd.f32 %v3201_v11, %v3037_v12  ;;  %v3042_v20 = vadd.f32 %v4464_v29, %v6098_v50  ;;  %v6340_v12 = vld [vmem:[#allocation2_spill] sm:$0xff]  ;;  %v2798_v44 = vadd.f32 %v6131_v5, %v2362_v61 }
 0x1ee   : > { %v2961_v40 = vpop.f32.mrf.mxu1  ;;  %v3214_v60 = vpop.f32.mrf.mxu0  ;;  %v2360_v51 = vadd.f32 %v6135_v42, %v6340_v12 }
 0x1ef   : > { %v3821_v17 = vpack.c.bf16 %v3331_v63, %v3330_v8  ;;  %v3329_v25 = vadd.f32 %v6166_v3, %v3290_v37  ;;  %v3040_v49 = vadd.f32 %v2961_v40, %v6105_v62  ;;  %v3295_v59 = vadd.f32 %v4512_v39, %v3042_v20 }
 0x1f0   : > { %v4465_v10 = vpop.f32.mrf.mxu1  ;;  %v4513_v52 = vpop.f32.mrf.mxu0  ;;  %v2356_v62 = vadd.f32 %v6121_v28, %v6015_v43  ;;  %v6337_v28 = vld [vmem:[#allocation9_spill] sm:$0xff] }
 0x1f1   : > { %3869 = vst [vmem:[%s6178_s13 + $0x38] sm:$0xff] %v3821_v17   ;;  %v3816_v33 = vpack.c.bf16 %v3329_v25, %v3328_v13  ;;  %v3043_v50 = vadd.f32 %v4465_v10, %v2790_v53  ;;  %v3293_v19 = vadd.f32 %v3214_v60, %v3040_v49  ;;  %v3334_v4 = vadd.f32 %v6166_v3, %v3295_v59  ;;  %v6341_v17 = vld [vmem:[#allocation7_spill] sm:$0xff] }
 0x1f2   : > { %v2964_v2 = vpop.f32.mrf.mxu1  ;;  %v3217_v38 = vpop.f32.mrf.mxu0  ;;  %v2792_v45 = vadd.f32 %v6338_v14, %v2356_v62 }
 0x1f3   : > { %3868 = vst [vmem:[%s6178_s13 + $0x30] sm:$0xff] %v3816_v33   ;;  %v3296_v47 = vadd.f32 %v4513_v52, %v3043_v50  ;;  %v3041_v22 = vadd.f32 %v2964_v2, %v2788_v23  ;;  %v3332_v57 = vadd.f32 %v6166_v3, %v3293_v19  ;;  %v6342_v52 = vld [vmem:[#allocation11_spill] sm:$0xff]  ;;  %v6343_v50 = vld [vmem:[#allocation6_spill] sm:$0xff] }
 0x1f4   : > { %v4468_v0 = vpop.f32.mrf.mxu1  ;;  %v4516_v54 = vpop.f32.mrf.mxu0  ;;  %v2796_v23 = vadd.f32 %v6342_v52, %v2360_v51  ;;  %v2366_v5 = vadd.f32 %v6143_v58, %v6343_v50  ;;  %v6346_v58 = vld [vmem:[#allocation12_spill] sm:$0xff] }
 0x1f5   : > { %v3335_v24 = vadd.f32 %v6166_v3, %v3296_v47  ;;  %v3294_v15 = vadd.f32 %v3217_v38, %v3041_v22  ;;  %v3046_v18 = vadd.f32 %v4468_v0, %v6112_v16  ;;  %v6344_v22 = vld [vmem:[#allocation5_spill] sm:$0xff] }
 0x1f6   : > { %v2977_v32 = vpop.f32.mrf.mxu1  ;;  %v3230_v36 = vpop.f32.mrf.mxu0  ;;  %v2364_v62 = vadd.f32 %v6149_v6, %v6344_v22 }
 0x1f7   : > { %v3831_v9 = vpack.c.bf16 %v3335_v24, %v3334_v4  ;;  %v3333_v43 = vadd.f32 %v6166_v3, %v3294_v15  ;;  %v3044_v1 = vadd.f32 %v2977_v32, %v6337_v28  ;;  %v3299_v31 = vadd.f32 %v4516_v54, %v3046_v18  ;;  %v6345_v18 = vld [vmem:[#allocation10_spill] sm:$0xff] }
 0x1f8   : > { %v4469_v56 = vpop.f32.mrf.mxu1  ;;  %v4517_v48 = vpop.f32.mrf.mxu0 }
 0x1f9   : > { %3871 = vst [vmem:[%s6178_s13 + $0x48] sm:$0xff] %v3831_v9   ;;  %v3826_v55 = vpack.c.bf16 %v3333_v43, %v3332_v57  ;;  %v3047_v16 = vadd.f32 %v4469_v56, %v2794_v27  ;;  %v3297_v11 = vadd.f32 %v3230_v36, %v3044_v1  ;;  %v3338_v8 = vadd.f32 %v6166_v3, %v3299_v31  ;;  %v6347_v43 = vld [vmem:[#allocation13_spill] sm:$0xff] }
 0x1fa   : > { %v2980_v41 = vpop.f32.mrf.mxu1  ;;  %v3233_v34 = vpop.f32.mrf.mxu0  ;;  %v2802_v27 = vadd.f32 %v6346_v58, %v2366_v5 }
 0x1fb   : > { %3870 = vst [vmem:[%s6178_s13 + $0x40] sm:$0xff] %v3826_v55   ;;  %v3300_v26 = vadd.f32 %v4517_v48, %v3047_v16  ;;  %v3045_v30 = vadd.f32 %v2980_v41, %v2792_v45  ;;  %v3336_v60 = vadd.f32 %v6166_v3, %v3297_v11  ;;  %v6348_v48 = vld [vmem:[#allocation14_spill] sm:$0xff] }
 0x1fc   : > { %v4472_v29 = vpop.f32.mrf.mxu1  ;;  %v4520_v39 = vpop.f32.mrf.mxu0  ;;  %v2800_v14 = vadd.f32 %v6348_v48, %v2364_v62 }
 0x1fd   : > { %v3339_v63 = vadd.f32 %v6166_v3, %v3300_v26  ;;  %v3298_v37 = vadd.f32 %v3233_v34, %v3045_v30  ;;  %v3050_v20 = vadd.f32 %v4472_v29, %v6126_v21 }
 0x1fe   : > { %v2993_v53 = vpop.f32.mrf.mxu1  ;;  %v3246_v40 = vpop.f32.mrf.mxu0 }
 0x1ff   : > { %v3841_v13 = vpack.c.bf16 %v3339_v63, %v3338_v8  ;;  %v3337_v42 = vadd.f32 %v6166_v3, %v3298_v37  ;;  %v3048_v25 = vadd.f32 %v2993_v53, %v6341_v17  ;;  %v3303_v59 = vadd.f32 %v4520_v39, %v3050_v20 }
 0x200   : > { %v4473_v49 = vpop.f32.mrf.mxu1  ;;  %v4521_v10 = vpop.f32.mrf.mxu0 }
 0x201   : > { %3873 = vst [vmem:[%s6178_s13 + $0x58] sm:$0xff] %v3841_v13   ;;  %v3836_v33 = vpack.c.bf16 %v3337_v42, %v3336_v60  ;;  %v3051_v21 = vadd.f32 %v4473_v49, %v2798_v44  ;;  %v3301_v38 = vadd.f32 %v3246_v40, %v3048_v25  ;;  %v3342_v4 = vadd.f32 %v6166_v3, %v3303_v59 }
 0x202   : > { %v2996_v35 = vpop.f32.mrf.mxu1  ;;  %v3249_v2 = vpop.f32.mrf.mxu0 }
 0x203   : > { %3872 = vst [vmem:[%s6178_s13 + $0x50] sm:$0xff] %v3836_v33   ;;  %v3304_v19 = vadd.f32 %v4521_v10, %v3051_v21  ;;  %v3049_v47 = vadd.f32 %v2996_v35, %v2796_v23  ;;  %v3340_v57 = vadd.f32 %v6166_v3, %v3301_v38 }
 0x204   : > { %v4476_v0 = vpop.f32.mrf.mxu1  ;;  %v4524_v54 = vpop.f32.mrf.mxu0 }
 0x205   : > { %v3343_v24 = vadd.f32 %v6166_v3, %v3304_v19  ;;  %v3302_v15 = vadd.f32 %v3249_v2, %v3049_v47  ;;  %v3054_v46 = vadd.f32 %v4476_v0, %v6345_v18 }
 0x206   : > { %v3009_v32 = vpop.f32.mrf.mxu1  ;;  %v3262_v36 = vpop.f32.mrf.mxu0 }
 0x207   : > { %v3851_v9 = vpack.c.bf16 %v3343_v24, %v3342_v4  ;;  %v3341_v6 = vadd.f32 %v6166_v3, %v3302_v15  ;;  %v3052_v28 = vadd.f32 %v3009_v32, %v6347_v43  ;;  %v3307_v55 = vadd.f32 %v4524_v54, %v3054_v46 }
 0x208   : > { %v4477_v1 = vpop.f32.mrf.mxu1  ;;  %v4525_v56 = vpop.f32.mrf.mxu0 }
 0x209   : > { %3875 = vst [vmem:[%s6178_s13 + $0x68] sm:$0xff] %v3851_v9   ;;  %v3846_v45 = vpack.c.bf16 %v3341_v6, %v3340_v57  ;;  %v3055_v31 = vadd.f32 %v4477_v1, %v2802_v27  ;;  %v3305_v7 = vadd.f32 %v3262_v36, %v3052_v28  ;;  %v3346_v11 = vadd.f32 %v6166_v3, %v3307_v55 }
 0x20a   : > { %v3012_v16 = vpop.f32.mrf.mxu1  ;;  %v3265_v34 = vpop.f32.mrf.mxu0 }
 0x20b   : > { %3874 = vst [vmem:[%s6178_s13 + $0x60] sm:$0xff] %v3846_v45   ;;  %v3308_v61 = vadd.f32 %v4525_v56, %v3055_v31  ;;  %v3053_v41 = vadd.f32 %v3012_v16, %v2800_v14  ;;  %v3344_v12 = vadd.f32 %v6166_v3, %v3305_v7 }
 0x20d   : > { %v3347_v26 = vadd.f32 %v6166_v3, %v3308_v61  ;;  %v3306_v30 = vadd.f32 %v3265_v34, %v3053_v41 }
 0x20f   : > { %v3861_v51 = vpack.c.bf16 %v3347_v26, %v3346_v11  ;;  %v3345_v29 = vadd.f32 %v6166_v3, %v3306_v30 }
 0x211   : > { %3877 = vst [vmem:[%s6178_s13 + $0x78] sm:$0xff] %v3861_v51   ;;  %v3856_v39 = vpack.c.bf16 %v3345_v29, %v3344_v12 }
 0x213   : > { %3876 = vst [vmem:[%s6178_s13 + $0x70] sm:$0xff] %v3856_v39  }
 0x214 PF: > { %s13_s12 = sadd.s32 1, %s4679_s12  }
 0x215   : > { %p10_p4 = scmp.ge.s32.totalorder %s13_s12, 4  }
 0x217   :  { %12 = sbr.rel (!%p10_p4) target bundleno = 1 (0x1), region = 62 }

// kernel: residual_coder_forward.17
= control target key start
LH: loop header
LB: loop body
LE: loop exit
PB: predicated region body
PF: predicated region fallthrough
CT: control target
= control target key end

     0   :  { %s4869_s15 = smov 0   ;;  %s6520_s0 = inlined_call_operand.vmem [shape: bf16[2,18,18,128], index: 0, kind: input, shape index: {}]   ;;  %s6521_s1 = inlined_call_operand.vmem [shape: bf16[9,128,128], index: 1, kind: input, shape index: {}]   ;;  %s6522_s2 = inlined_call_operand.vmem [shape: f32[1,128], index: 2, kind: input, shape index: {}]   ;;  %s6523_s3 = inlined_call_operand.vmem [shape: f32[1,128], index: 3, kind: input, shape index: {}]   ;;  %s6524_s4 = inlined_call_operand.vmem [shape: bf16[2,16,16,128], index: 4, kind: output, shape index: {}]  }
   0x1 LB: > { %s3725_s16 = sadd.s32 4294967295, %s4842_s15   ;;  %p3729_p0 = scmp.ge.s32.totalorder %s4842_s15, 1  ;;  %s4842_s15 = sphi %s4869_s15, %s14_s15  }
   0x2   : > { %p162_p1 = scmp.lt.s32.totalorder %s4842_s15, 3 }
   0x4   : > { %p163_p2 = pnand %p3729_p0, %p162_p1 }
   0x6   : > { %166 = sbr.rel (%p163_p2) target bundleno = 537 (0x219), region = 36 }
   0xb   : > { %v4714_v0 = vld [vmem:[%s6521_s1 + $0xf8] sm:$0xff]   ;;  %p188_p3 = scmp.lt.s32.totalorder %s3725_s16, 1  ;;  %v4715_v1 = vld [vmem:[%s6521_s1 + $0xf0] sm:$0xff]   ;;  %v4716_v2 = vld [vmem:[%s6521_s1 + $0xe8] sm:$0xff]   ;;  %vm1164_vm0 = vsmask.f32 3328 }
   0xc   : > { %4257 = vmatprep.subr.bf16.mxu0 %v4714_v0  ;;  %4689 = vmatprep.subr.bf16.mxu1 %v4714_v0  ;;  %v4717_v3 = vld [vmem:[%s6521_s1 + $0xe0] sm:$0xff]   ;;  %v4718_v10 = vld [vmem:[%s6521_s1 + $0xd8] sm:$0xff]   ;;  %v4719_v11 = vld [vmem:[%s6521_s1 + $0xd0] sm:$0xff]   ;;  %vm1165_vm1 = vsmask.f32 7440  ;;  %vm2410_vm3 = vcmask 1042432  }
   0xd   : > { %s6588_s16 = smov (!%p188_p3, %s3725_s16), 1  ;;  %4258 = vmatpush3.bf16.msra.mxu0 %v4714_v0  ;;  %4697 = vmatpush3.bf16.msra.mxu1 %v4714_v0  ;;  %v4720_v12 = vld [vmem:[%s6521_s1 + $0xc8] sm:$0xff]   ;;  %v4721_v13 = vld [vmem:[%s6521_s1 + $0xc0] sm:$0xff]   ;;  %v4726_v18 = vld [vmem:[%s6521_s1 + $0x38] sm:$0xff]   ;;  %vm2411_vm4 = vcmask 1046532  }
   0xe   : > { %4259 = vmatprep.subr.bf16.mxu0 %v4715_v1  ;;  %4690 = vmatprep.subr.bf16.mxu1 %v4715_v1  ;;  %s4705_s23 = smul.u32 216, %s6588_s16  ;;  %v4727_v19 = vld [vmem:[%s6521_s1 + $0x1b8] sm:$0xff]   ;;  %v4728_v26 = vld [vmem:[%s6521_s1 + $0x30] sm:$0xff]   ;;  %v4734_v34 = vld [vmem:[%s6521_s1 + $0x28] sm:$0xff]   ;;  %s3913_s30 = sshll.u32 %s6588_s16, 7 }
   0xf   : > { %v4729_v27 = vld [vmem:[%s6521_s1 + $0x1b0] sm:$0xff]   ;;  %v4735_v35 = vld [vmem:[%s6521_s1 + $0x1a8] sm:$0xff]   ;;  %v4736_v45 = vld [vmem:[%s6521_s1 + $0x20] sm:$0xff]   ;;  %s6382_s6 = scalar_lea.vmem %s6524_s4, %s3913_s30 }
  0x10   : > { %s4892_s26 = scalar_lea.vmem %s6520_s0, %s4705_s23  ;;  %v4737_v46 = vld [vmem:[%s6521_s1 + $0x1a0] sm:$0xff]   ;;  %v4742_v52 = vld [vmem:[%s6521_s1 + $0x18] sm:$0xff]   ;;  %v4744_v63 = vld [vmem:[%s6521_s1 + $0x10] sm:$0xff]  }
  0x11   : > { %4260 = vmatpush3.bf16.msra.mxu0 %v4715_v1  ;;  %4698 = vmatpush3.bf16.msra.mxu1 %v4715_v1  ;;  %v4898_v4 = vld [vmem:[%s4892_s26 + $0xc] sm:$0xf]  ;;  %v4901_v5 = vld [vmem:[%s4892_s26 + $0x10] sm:$0xf]  ;;  %v4932_v14 = vld [vmem:[%s4892_s26 + $0x18] sm:$0xf] }
  0x12   : > { %4261 = vmatprep.subr.bf16.mxu0 %v4716_v2  ;;  %4691 = vmatprep.subr.bf16.mxu1 %v4716_v2  ;;  %v4904_v6 = vld [vmem:[%s4892_s26 + $0x6c] sm:$0xf]  ;;  %v4908_v7 = vcombine.low %v4898_v4, %v4901_v5  ;;  %v4911_v8 = vld [vmem:[%s4892_s26 + $0x70] sm:$0xf]  ;;  %v4935_v15 = vld [vmem:[%s4892_s26 + $0x1c] sm:$0xf] }
  0x13   : > { %v4915_v9 = vcombine.low %v4904_v6, %v4911_v8  ;;  %v4938_v16 = vld [vmem:[%s4892_s26 + $0x78] sm:$0xf]  ;;  %v4941_v17 = vld [vmem:[%s4892_s26 + $0x7c] sm:$0xf]  ;;  %v4950_v20 = vld [vmem:[%s4892_s26 + $0x24] sm:$0xf]  ;;  %v4954_v21 = vcombine.low %v4932_v14, %v4935_v15 }
  0x14   : > { %4273 = vmatprep.mubr.bf16.mxu0 %v4908_v7  ;;  %v4958_v22 = vcombine.low %v4938_v16, %v4941_v17  ;;  %v4961_v23 = vld [vmem:[%s4892_s26 + $0x28] sm:$0xf]  ;;  %v4964_v24 = vld [vmem:[%s4892_s26 + $0x84] sm:$0xf]  ;;  %v4986_v30 = vld [vmem:[%s4892_s26 + $0x30] sm:$0xf] }
  0x15   : > { %4262 = vmatpush3.bf16.msra.mxu0 %v4716_v2  ;;  %4699 = vmatpush3.bf16.msra.mxu1 %v4716_v2  ;;  %v4967_v25 = vld [vmem:[%s4892_s26 + $0x88] sm:$0xf]  ;;  %v4977_v28 = vcombine.low %v4950_v20, %v4961_v23  ;;  %v4989_v31 = vld [vmem:[%s4892_s26 + $0x34] sm:$0xf]  ;;  %v4992_v32 = vld [vmem:[%s4892_s26 + $0x90] sm:$0xf] }
  0x16   : > { %4263 = vmatprep.subr.bf16.mxu0 %v4717_v3  ;;  %4692 = vmatprep.subr.bf16.mxu1 %v4717_v3  ;;  %v4981_v29 = vcombine.low %v4964_v24, %v4967_v25  ;;  %v4995_v33 = vld [vmem:[%s4892_s26 + $0x94] sm:$0xf]  ;;  %v1192_v36 = vshrl.u32 %v4898_v4, 16  ;;  %v5007_v37 = vld [vmem:[%s4892_s26 + $0x3c] sm:$0xf]  ;;  %v5011_v38 = vcombine.low %v4986_v30, %v4989_v31  ;;  %v1195_v43 = vshll.u32 %v4898_v4, 16  ;;  %vm5139_vm2 = vmor %vm1164_vm0, %vm1165_vm1 }
  0x17   : > { %4289 = vmatprep.mubr.bf16.mxu1 %v4915_v9  ;;  %v5015_v39 = vcombine.low %v4992_v32, %v4995_v33  ;;  %v5018_v40 = vld [vmem:[%s4892_s26 + $0x40] sm:$0xf]  ;;  %v5021_v41 = vld [vmem:[%s4892_s26 + $0x9c] sm:$0xf]  ;;  %v1201_v44 = vshll.u32 %v4901_v5, 16  ;;  %v1205_v50 = vshrl.u32 %v4901_v5, 16  ;;  %vm5284_vm5 = vmor %vm2410_vm3, %vm2411_vm4 }
  0x18   : > { %v5024_v42 = vld [vmem:[%s4892_s26 + $0xa0] sm:$0xf]  ;;  %v5036_v47 = vcombine.low %v5007_v37, %v5018_v40  ;;  %v5043_v49 = vld [vmem:[%s4892_s26 + $0x48] sm:$0xf]  ;;  %v5049_v51 = vld [vmem:[%s4892_s26 + $0x4c] sm:$0xf] }
  0x19   : > { %4264 = vmatpush3.bf16.msra.mxu0 %v4717_v3  ;;  %4700 = vmatpush3.bf16.msra.mxu1 %v4717_v3  ;;  %v5040_v48 = vcombine.low %v5021_v41, %v5024_v42  ;;  %v4743_v53 = vld [vmem:[%s6521_s1 + $0x198] sm:$0xff]   ;;  %v5058_v54 = vld [vmem:[%s4892_s26 + $0xa8] sm:$0xf]  ;;  %v242_v55 = vld [vmem:[%s4892_s26 + $0xac] sm:$0xf]  ;;  %v5072_v59 = vcombine.low %v5043_v49, %v5049_v51  ;;  %v1194_v62 = vrot.slane %v1192_v36, 4 }
  0x1a   : > { %4265 = vmatprep.subr.bf16.mxu0 %v4718_v10  ;;  %4693 = vmatprep.subr.bf16.mxu1 %v4718_v10  ;;  %v5062_v56 = vld [vmem:[%s4892_s26 + $0x54] sm:$0xf]  ;;  %v5065_v57 = vld [vmem:[%s4892_s26 + $0x58] sm:$0xf]  ;;  %v5075_v60 = vcombine.low %v5058_v54, %v242_v55  ;;  %v1197_v0 = vrot.slane %v1195_v43, 5  ;;  %v4752_v43 = vld [vmem:[%s6521_s1] sm:$0xff]  }
  0x1b   : > { %v244_v58 = vld [vmem:[%s4892_s26 + $0xb4] sm:$0xf]  ;;  %v245_v61 = vld [vmem:[%s4892_s26 + $0xb8] sm:$0xf]  ;;  %v5086_v2 = vcombine.low %v5062_v56, %v5065_v57  ;;  %v5118_v36 = vld [vmem:[%s4892_s26 + $0x4] sm:$0xf] }
  0x1c   : > { %v4745_v1 = vld [vmem:[%s6521_s1 + $0x190] sm:$0xff]   ;;  %v5088_v3 = vcombine.low %v244_v58, %v245_v61  ;;  %v4756_v58 = vld [vmem:[%s6521_s1 + $0x138] sm:$0xff]  }
  0x1d   : > { %4266 = vmatpush3.bf16.msra.mxu0 %v4718_v10  ;;  %4701 = vmatpush3.bf16.msra.mxu1 %v4718_v10  ;;  %v5091_v10 = vld [vmem:[%s4892_s26 + $0x60] sm:$0xf] }
  0x1e   : > { %4267 = vmatprep.subr.bf16.mxu0 %v4719_v11  ;;  %4694 = vmatprep.subr.bf16.mxu1 %v4719_v11 }
  0x21   : > { %4268 = vmatpush3.bf16.msra.mxu0 %v4719_v11  ;;  %4702 = vmatpush3.bf16.msra.mxu1 %v4719_v11  ;;  %v5094_v11 = vld [vmem:[%s4892_s26 + $0x64] sm:$0xf] }
  0x22   : > { %4269 = vmatprep.subr.bf16.mxu0 %v4720_v12  ;;  %4695 = vmatprep.subr.bf16.mxu1 %v4720_v12 }
  0x25   : > { %4270 = vmatpush3.bf16.msra.mxu0 %v4720_v12  ;;  %4703 = vmatpush3.bf16.msra.mxu1 %v4720_v12  ;;  %v247_v12 = vld [vmem:[%s4892_s26 + $0xc0] sm:$0xf] }
  0x26   : > { %4271 = vmatprep.subr.bf16.mxu0 %v4721_v13  ;;  %4696 = vmatprep.subr.bf16.mxu1 %v4721_v13 }
  0x29   : > { %4272 = vmatpush3.bf16.msra.mxu0 %v4721_v13  ;;  %4704 = vmatpush3.bf16.msra.mxu1 %v4721_v13  ;;  %v4750_v13 = vld [vmem:[%s6521_s1 + $0x8] sm:$0xff]  }
  0x2a   : > { %4305 = vmatprep.subr.bf16.mxu1 %v4726_v18  ;;  %4353 = vmatprep.subr.bf16.mxu0 %v4727_v19 }
  0x2c   : > { %4274 = vmatmul.mubr.bf16.vlgmr.msra.gmra.mxu0 %v4954_v21  ;;  %4290 = vmatmul.mubr.bf16.vlgmr.msra.gmra.mxu1 %v4958_v22 }
  0x2d   : > { %4306 = vmatpush3.bf16.msra.mxu1 %v4726_v18  ;;  %4354 = vmatpush3.bf16.msra.mxu0 %v4727_v19  ;;  %v248_v18 = vld [vmem:[%s4892_s26 + $0xc4] sm:$0xf]  ;;  %v1207_v19 = vrot.slane %v1205_v50, 4 }
  0x2e   : > { %4307 = vmatprep.subr.bf16.mxu1 %v4728_v26  ;;  %4355 = vmatprep.subr.bf16.mxu0 %v4729_v27  ;;  %v4753_v50 = vld [vmem:[%s6521_s1 + $0x180] sm:$0xff]  }
  0x2f   : > { %4277 = vmatprep.mubr.bf16.mxu0 %v4977_v28  ;;  %4293 = vmatprep.mubr.bf16.mxu1 %v4981_v29 }
  0x31   : > { %4308 = vmatpush3.bf16.msra.mxu1 %v4728_v26  ;;  %4356 = vmatpush3.bf16.msra.mxu0 %v4729_v27  ;;  %v4751_v26 = vld [vmem:[%s6521_s1 + $0x188] sm:$0xff]   ;;  %v5109_v27 = vld [vmem:[%s4892_s26] sm:$0xf] }
  0x32   : > { %4309 = vmatprep.subr.bf16.mxu1 %v4734_v34  ;;  %4357 = vmatprep.subr.bf16.mxu0 %v4735_v35 }
  0x34   : > { %4278 = vmatmul.mubr.bf16.gmra.mxu0 %v5011_v38  ;;  %4294 = vmatmul.mubr.bf16.gmra.mxu1 %v5015_v39 }
  0x35   : > { %4310 = vmatpush3.bf16.msra.mxu1 %v4734_v34  ;;  %4358 = vmatpush3.bf16.msra.mxu0 %v4735_v35  ;;  %v5113_v34 = vcombine.low %v5091_v10, %v5094_v11  ;;  %v5115_v35 = vcombine.low %v247_v12, %v248_v18  ;;  %v4757_v12 = vld [vmem:[%s6521_s1 + $0x70] sm:$0xff]  }
  0x36   : > { %4311 = vmatprep.subr.bf16.mxu1 %v4736_v45  ;;  %4359 = vmatprep.subr.bf16.mxu0 %v4737_v46 }
  0x37   : > { %4281 = vmatprep.mubr.bf16.mxu0 %v5036_v47  ;;  %4297 = vmatprep.mubr.bf16.mxu1 %v5040_v48 }
  0x39   : > { %4312 = vmatpush3.bf16.msra.mxu1 %v4736_v45  ;;  %4360 = vmatpush3.bf16.msra.mxu0 %v4737_v46  ;;  %v1198_v45 = vor.u32 %v1197_v0, %v1194_v62  ;;  %v1203_v46 = vrot.slane %v1201_v44, 5  ;;  %v4755_v44 = vld [vmem:[%s6521_s1 + $0x78] sm:$0xff]   ;;  %v5144_v62 = vld [vmem:[%s4892_s26 + $0x14] sm:$0x1] }
  0x3a   : > { %4313 = vmatprep.subr.bf16.mxu1 %v4742_v52  ;;  %4361 = vmatprep.subr.bf16.mxu0 %v4743_v53 }
  0x3b   : > { %v1208_v55 = vor.u32 %v1207_v19, %v1203_v46  ;;  %v4759_v19 = vld [vmem:[%s6521_s1 + $0x68] sm:$0xff]  }
  0x3c   : > { %4282 = vmatmul.mubr.bf16.gmra.mxu0 %v5072_v59  ;;  %4298 = vmatmul.mubr.bf16.gmra.mxu1 %v5075_v60 }
  0x3d   : > { %4314 = vmatpush3.bf16.msra.mxu1 %v4742_v52  ;;  %4362 = vmatpush3.bf16.msra.mxu0 %v4743_v53  ;;  %v3757_v52 = vcombine.low %v5109_v27, %v5118_v36  ;;  %v1199_v53 = vrot.slane %v1198_v45, 4  ;;  %v1209_v0 = vrot.slane %v1208_v55, 4  ;;  %v4761_v45 = vld [vmem:[%s6521_s1 + $0x60] sm:$0xff]   ;;  %v1216_v55 = vshrl.u32 %v4932_v14, 16 }
  0x3e   : > { %4315 = vmatprep.subr.bf16.mxu1 %v4744_v63  ;;  %4363 = vmatprep.subr.bf16.mxu0 %v4745_v1 }
  0x3f   : > { %4285 = vmatprep.mubr.bf16.mxu0 %v5086_v2  ;;  %4301 = vmatprep.mubr.bf16.mxu1 %v5088_v3 }
  0x41   : > { %4316 = vmatpush3.bf16.msra.mxu1 %v4744_v63  ;;  %4364 = vmatpush3.bf16.msra.mxu0 %v4745_v1  ;;  %v1204_v63 = vsel %vm5139_vm2, %v1199_v53, %v1203_v46  ;;  %v1211_v1 = vshll.u32 %v5144_v62, 16  ;;  %v4763_v46 = vld [vmem:[%s6521_s1 + $0x58] sm:$0xff]   ;;  %v4768_v53 = vld [vmem:[%s6521_s1 + $0x108] sm:$0xff]  }
  0x42   : > { %4317 = vmatprep.subr.bf16.mxu1 %v4750_v13  ;;  %4365 = vmatprep.subr.bf16.mxu0 %v4751_v26 }
  0x43   : > { %v1213_v18 = vrot.slane %v1211_v1, 5 }
  0x44   : > { %4286 = vmatmul.mubr.bf16.gmra.mxu0 %v5113_v34  ;;  %4302 = vmatmul.mubr.bf16.gmra.mxu1 %v5115_v35 }
  0x45   : > { %4318 = vmatpush3.bf16.msra.mxu1 %v4750_v13  ;;  %4366 = vmatpush3.bf16.msra.mxu0 %v4751_v26  ;;  %v4758_v13 = vld [vmem:[%s6521_s1 + $0x130] sm:$0xff]   ;;  %v1214_v26 = vsel %vm5139_vm2, %v1209_v0, %v1213_v18  ;;  %v5218_v0 = vld [vmem:[%s6521_s1 + $0x1f8] sm:$0xff]   ;;  %v1181_v18 = vshrl.u32 %v5118_v36, 16 }
  0x46   : > { %4319 = vmatprep.subr.bf16.mxu1 %v4752_v43  ;;  %4367 = vmatprep.subr.bf16.mxu0 %v4753_v50 }
  0x47   : > { %4321 = vmatprep.mubr.bf16.mxu1 %v3757_v52  ;;  %4369 = vmatprep.mubr.bf16.mxu0 %v4954_v21  ;;  %v4767_v52 = vld [vmem:[%s6521_s1 + $0x48] sm:$0xff]  }
  0x49   : > { %4320 = vmatpush3.bf16.msra.mxu1 %v4752_v43  ;;  %4368 = vmatpush3.bf16.msra.mxu0 %v4753_v50  ;;  %v4760_v43 = vld [vmem:[%s6521_s1 + $0x128] sm:$0xff]   ;;  %v4764_v50 = vld [vmem:[%s6521_s1 + $0x118] sm:$0xff]  }
  0x4a   : > { %4401 = vmatprep.subr.bf16.mxu1 %v4755_v44  ;;  %4449 = vmatprep.subr.bf16.mxu0 %v4756_v58 }
  0x4c   : > { %4322 = vmatmul.mubr.bf16.vlgmr.msra.gmra.mxu1 %v4908_v7  ;;  %4370 = vmatmul.mubr.bf16.vlgmr.msra.gmra.mxu0 %v4977_v28  ;;  %v5167_v7 = vcombine.low %v1204_v63, %v1214_v26  ;;  %v1229_v63 = vshrl.u32 %v4935_v15, 16  ;;  %v2422_v26 = vrot.slane %v4901_v5, 5  ;;  %v1384_v5 = vshrl.u32 %v4904_v6, 16 }
  0x4d   : > { %4402 = vmatpush3.bf16.msra.mxu1 %v4755_v44  ;;  %4450 = vmatpush3.bf16.msra.mxu0 %v4756_v58  ;;  %v1219_v44 = vshll.u32 %v4932_v14, 16  ;;  %v1225_v58 = vshll.u32 %v4935_v15, 16  ;;  %v5223_v14 = vld [vmem:[%s6521_s1 + $0xb8] sm:$0xff]  }
  0x4e   : > { %4325 = vmatprep.mubr.bf16.mxu1 %v4954_v21  ;;  %4373 = vmatprep.mubr.bf16.mxu0 %v5011_v38  ;;  %v4762_v21 = vld [vmem:[%s6521_s1 + $0x120] sm:$0xff]  }
  0x4f   : > { %4403 = vmatprep.subr.bf16.mxu1 %v4757_v12  ;;  %4451 = vmatprep.subr.bf16.mxu0 %v4758_v13  ;;  %v1221_v15 = vrot.slane %v1219_v44, 5  ;;  %v5225_v1 = vrot.slane %v1225_v58, 5 }
  0x51   : > { %4404 = vmatpush3.bf16.msra.mxu1 %v4757_v12  ;;  %4452 = vmatpush3.bf16.msra.mxu0 %v4758_v13  ;;  %v1168_v12 = vshrl.u32 %v5109_v27, 16  ;;  %v1171_v13 = vshll.u32 %v5109_v27, 16 }
  0x52   : > { %4405 = vmatprep.subr.bf16.mxu1 %v4759_v19  ;;  %4453 = vmatprep.subr.bf16.mxu0 %v4760_v43 }
  0x53   : > { %v1170_v27 = vrot.slane %v1168_v12, 4  ;;  %v1267_v12 = vshll.u32 %v4986_v30, 16 }
  0x54   : > { %4326 = vmatmul.mubr.bf16.gmra.mxu1 %v4977_v28  ;;  %4374 = vmatmul.mubr.bf16.gmra.mxu0 %v5036_v47  ;;  %v4765_v28 = vld [vmem:[%s6521_s1 + $0x50] sm:$0xff]  }
  0x55   : > { %4329 = vmatprep.mubr.bf16.mxu1 %v5011_v38  ;;  %4377 = vmatprep.mubr.bf16.mxu0 %v5072_v59  ;;  %v4766_v38 = vld [vmem:[%s6521_s1 + $0x110] sm:$0xff]  }
  0x56   : > { %4406 = vmatpush3.bf16.msra.mxu1 %v4759_v19  ;;  %4454 = vmatpush3.bf16.msra.mxu0 %v4760_v43  ;;  %v1177_v19 = vshll.u32 %v5118_v36, 16  ;;  %v1173_v36 = vrot.slane %v1171_v13, 5  ;;  %v1249_v13 = vshll.u32 %v4961_v23, 16 }
  0x57   : > { %4407 = vmatprep.subr.bf16.mxu1 %v4761_v45  ;;  %4455 = vmatprep.subr.bf16.mxu0 %v4762_v21 }
  0x58   : > { %v1174_v44 = vor.u32 %v1173_v36, %v1170_v27  ;;  %v5274_v36 = vrot.slane %v1249_v13, 5 }
  0x5a   : > { %4408 = vmatpush3.bf16.msra.mxu1 %v4761_v45  ;;  %4456 = vmatpush3.bf16.msra.mxu0 %v4762_v21  ;;  %v5239_v21 = vrot.slane %v1177_v19, 5  ;;  %v1288_v19 = vshrl.u32 %v5007_v37, 16 }
  0x5b   : > { %4409 = vmatprep.subr.bf16.mxu1 %v4763_v46  ;;  %4457 = vmatprep.subr.bf16.mxu0 %v4764_v50 }
  0x5c   : > { %4330 = vmatmul.mubr.bf16.gmra.mxu1 %v5036_v47  ;;  %4378 = vmatmul.mubr.bf16.gmra.mxu0 %v5086_v2  ;;  %v4770_v47 = vld [vmem:[%s6521_s1 + $0x40] sm:$0xff]  }
  0x5d   : > { %4333 = vmatprep.mubr.bf16.mxu1 %v5072_v59  ;;  %4381 = vmatprep.mubr.bf16.mxu0 %v5113_v34  ;;  %v4771_v59 = vld [vmem:[%s6521_s1 + $0x100] sm:$0xff]  }
  0x5e   : > { %4410 = vmatpush3.bf16.msra.mxu1 %v4763_v46  ;;  %4458 = vmatpush3.bf16.msra.mxu0 %v4764_v50  ;;  %v1183_v46 = vrot.slane %v1181_v18, 4  ;;  %v3818_v50 = vrot.slane %v4898_v4, 9  ;;  %v5254_v4 = vld [vmem:[%s4892_s26 + $0x8] sm:$0x1]  ;;  %v1277_v18 = vshrl.u32 %v4989_v31, 16 }
  0x5f   : > { %4411 = vmatprep.subr.bf16.mxu1 %v4765_v28  ;;  %4459 = vmatprep.subr.bf16.mxu0 %v4766_v38 }
  0x60   : > { %v1184_v58 = vor.u32 %v1183_v46, %v5239_v21  ;;  %v2423_v13 = vsel %vm5284_vm5, %v3818_v50, %v2422_v26  ;;  %v1269_v50 = vrot.slane %v1267_v12, 5 }
  0x62   : > { %4412 = vmatpush3.bf16.msra.mxu1 %v4765_v28  ;;  %4460 = vmatpush3.bf16.msra.mxu0 %v4766_v38  ;;  %v2424_v28 = vrot.slane %v2422_v26, 4  ;;  %v1279_v38 = vrot.slane %v1277_v18, 4 }
  0x63   : > { %4413 = vmatprep.subr.bf16.mxu1 %v4767_v52  ;;  %4461 = vmatprep.subr.bf16.mxu0 %v4768_v53 }
  0x64   : > { %4334 = vmatmul.mubr.bf16.gmra.mxu1 %v5086_v2  ;;  %4382 = vmatmul.mubr.bf16.gmra.mxu0 %v4915_v9  ;;  %v1218_v2 = vrot.slane %v1216_v55, 4  ;;  %v1240_v55 = vshrl.u32 %v4950_v20, 16 }
  0x65   : > { %4337 = vmatprep.mubr.bf16.mxu1 %v5113_v34  ;;  %4385 = vmatprep.mubr.bf16.mxu0 %v4958_v22  ;;  %v1231_v34 = vrot.slane %v1229_v63, 4  ;;  %v1243_v63 = vshll.u32 %v4950_v20, 16  ;;  %v1187_v20 = vshll.u32 %v5254_v4, 16 }
  0x66   : > { %4414 = vmatpush3.bf16.msra.mxu1 %v4767_v52  ;;  %4462 = vmatpush3.bf16.msra.mxu0 %v4768_v53  ;;  %v1222_v43 = vor.u32 %v1221_v15, %v1218_v2  ;;  %v1253_v2 = vshrl.u32 %v4961_v23, 16  ;;  %v1242_v27 = vrot.slane %v1240_v55, 4  ;;  %v1301_v15 = vshrl.u32 %v5018_v40, 16 }
  0x67   : > { %4415 = vmatprep.subr.bf16.mxu1 %v4770_v47  ;;  %4463 = vmatprep.subr.bf16.mxu0 %v4771_v59  ;;  %v1232_v45 = vor.u32 %v1231_v34, %v5225_v1  ;;  %v1264_v34 = vshrl.u32 %v4986_v30, 16  ;;  %v1175_v30 = vrot.slane %v1174_v44, 4  ;;  %v1245_v23 = vrot.slane %v1243_v63, 5  ;;  %v5281_v44 = vld [vmem:[%s4892_s26 + $0x2c] sm:$0x1] }
  0x68   : > { %v5247_v53 = vrot.slane %v1222_v43, 4  ;;  %v1291_v43 = vshll.u32 %v5007_v37, 16  ;;  %v1189_v46 = vrot.slane %v1187_v20, 5  ;;  %v1312_v37 = vshrl.u32 %v5043_v49, 16  ;;  %v5291_v63 = vld [vmem:[%s4892_s26 + $0xcc] sm:$0xf] }
  0x69   : > { %v1273_v55 = vshll.u32 %v4989_v31, 16  ;;  %v1180_v31 = vsel %vm5139_vm2, %v1175_v30, %v5239_v21  ;;  %v1297_v52 = vshll.u32 %v5018_v40, 16  ;;  %v1266_v26 = vrot.slane %v1264_v34, 4  ;;  %v5318_v40 = vld [vmem:[%s4892_s26 + $0x38] sm:$0x1] }
  0x6a   : > { %4416 = vmatpush3.bf16.msra.mxu1 %v4770_v47  ;;  %4464 = vmatpush3.bf16.msra.mxu0 %v4771_v59  ;;  %v5249_v47 = vrot.slane %v1232_v45, 4  ;;  %v1185_v45 = vrot.slane %v1184_v58, 4  ;;  %v2425_v59 = vrot.slane %v5144_v62, 5  ;;  %v5294_v62 = vld [vmem:[%s4892_s26 + $0xd0] sm:$0xf]  ;;  %v1315_v30 = vshll.u32 %v5043_v49, 16 }
  0x6b   : > { %4497 = vmatprep.subr.bf16.mxu1 %v5218_v0  ;;  %4545 = vmatprep.subr.bf16.mxu0 %v5223_v14  ;;  %v1325_v34 = vshrl.u32 %v5049_v51, 16  ;;  %v1228_v12 = vsel %vm5139_vm2, %v5247_v53, %v5225_v1  ;;  %v1321_v53 = vshll.u32 %v5049_v51, 16 }
  0x6c   : > { %4338 = vmatmul.mubr.bf16.gmra.mxu1 %v4915_v9  ;;  %4386 = vmatmul.mubr.bf16.gmra.mxu0 %v4981_v29  ;;  %v1387_v9 = vshll.u32 %v4904_v6, 16 }
  0x6d   : > { %4341 = vmatprep.mubr.bf16.mxu1 %v4958_v22  ;;  %4389 = vmatprep.mubr.bf16.mxu0 %v5015_v39 }
  0x74   : > { %4342 = vmatmul.mubr.bf16.gmra.mxu1 %v4981_v29  ;;  %4390 = vmatmul.mubr.bf16.gmra.mxu0 %v5040_v48  ;;  %v5272_v29 = vld [vmem:[%s4892_s26 + $0x20] sm:$0x1] }
  0x75   : > { %4345 = vmatprep.mubr.bf16.mxu1 %v5015_v39  ;;  %4393 = vmatprep.mubr.bf16.mxu0 %v5075_v60  ;;  %v1255_v39 = vrot.slane %v1253_v2, 4  ;;  %v1235_v22 = vshll.u32 %v5272_v29, 16  ;;  %v1246_v2 = vor.u32 %v1245_v23, %v1242_v27  ;;  %v1259_v23 = vshll.u32 %v5281_v44, 16 }
  0x77   : > { %v1256_v20 = vor.u32 %v1255_v39, %v5274_v36  ;;  %v1237_v27 = vrot.slane %v1235_v22, 5  ;;  %v1290_v22 = vrot.slane %v1288_v19, 4  ;;  %v1293_v39 = vrot.slane %v1291_v43, 5 }
  0x78   : > { %v1247_v18 = vrot.slane %v1246_v2, 4  ;;  %v1270_v43 = vor.u32 %v1269_v50, %v1266_v26  ;;  %v1349_v2 = vshrl.u32 %v5065_v57, 16  ;;  %v1314_v50 = vrot.slane %v1312_v37, 4 }
  0x79   : > { %v1257_v49 = vrot.slane %v1256_v20, 4  ;;  %v1238_v19 = vsel %vm5139_vm2, %v5249_v47, %v1237_v27  ;;  %v1294_v1 = vor.u32 %v1293_v39, %v1290_v22  ;;  %v1360_v20 = vshrl.u32 %v5091_v10, 16 }
  0x7a   : > { %v5344_v27 = vcombine.low %v1228_v12, %v1238_v19  ;;  %v1317_v22 = vrot.slane %v1315_v30, 5  ;;  %v5352_v39 = vrot.slane %v1321_v53, 5  ;;  %v5355_v19 = vld [vmem:[%s4892_s26 + $0x50] sm:$0x1]  ;;  %v1373_v37 = vshrl.u32 %v5094_v11, 16 }
  0x7c   : > { %4346 = vmatmul.mubr.bf16.gmra.mxu1 %v5040_v48  ;;  %4394 = vmatmul.mubr.bf16.gmra.mxu0 %v5088_v3  ;;  %v1190_v48 = vsel %vm5139_vm2, %v1185_v45, %v1189_v46  ;;  %v3766_v45 = vcombine.low %v5291_v63, %v5294_v62 }
  0x7d   : > { %4349 = vmatprep.mubr.bf16.mxu1 %v5075_v60  ;;  %4397 = vmatprep.mubr.bf16.mxu0 %v5115_v35  ;;  %v2426_v60 = vsel %vm5284_vm5, %v2424_v28, %v2425_v59  ;;  %v5310_v35 = vrot.slane %v1273_v55, 5  ;;  %v3775_v46 = vcombine.low %v1180_v31, %v1190_v48  ;;  %v5321_v28 = vrot.slane %v1297_v52, 5 }
  0x7e   : > { %v5312_v21 = vcombine.low %v2423_v13, %v2426_v60  ;;  %v1303_v59 = vrot.slane %v1301_v15, 4  ;;  %v1261_v55 = vrot.slane %v1259_v23, 5  ;;  %v5328_v13 = vld [vmem:[%s4892_s26 + $0x44] sm:$0x1]  ;;  %v1283_v52 = vshll.u32 %v5318_v40, 16 }
  0x7f   : > { %v1280_v31 = vor.u32 %v1279_v38, %v5310_v35  ;;  %v1336_v15 = vshrl.u32 %v5062_v56, 16  ;;  %v1339_v48 = vshll.u32 %v5062_v56, 16  ;;  %v1307_v47 = vshll.u32 %v5328_v13, 16 }
  0x80   : > { %v1304_v38 = vor.u32 %v1303_v59, %v5321_v28  ;;  %v1252_v56 = vsel %vm5139_vm2, %v1247_v18, %v5274_v36  ;;  %v1262_v51 = vsel %vm5139_vm2, %v1257_v49, %v1261_v55  ;;  %v1271_v23 = vrot.slane %v1270_v43, 4 }
  0x81   : > { %v1281_v26 = vrot.slane %v1280_v31, 4  ;;  %v1285_v60 = vrot.slane %v1283_v52, 5  ;;  %v1309_v12 = vrot.slane %v1307_v47, 5  ;;  %v1338_v36 = vrot.slane %v1336_v15, 4  ;;  %v5373_v31 = vld [vmem:[%s4892_s26 + $0x5c] sm:$0x1] }
  0x82   : > { %v1305_v59 = vrot.slane %v1304_v38, 4  ;;  %v1341_v18 = vrot.slane %v1339_v48, 5  ;;  %v1363_v49 = vshll.u32 %v5091_v10, 16  ;;  %v5358_v55 = vcombine.low %v1252_v56, %v1262_v51  ;;  %v4775_v10 = vld [vmem:[%s6521_s1 + $0xb0] sm:$0xff]  }
  0x83   : > { %v1351_v43 = vrot.slane %v1349_v2, 4  ;;  %v1276_v30 = vsel %vm5139_vm2, %v1271_v23, %v5310_v35  ;;  %v1369_v52 = vshll.u32 %v5094_v11, 16  ;;  %v1286_v35 = vsel %vm5139_vm2, %v1281_v26, %v1285_v60  ;;  %v5390_v2 = vld [vmem:[%s4892_s26 + $0x70] sm:$0xf] }
  0x84   : > { %4350 = vmatmul.mubr.bf16.gmra.mxu1 %v5088_v3  ;;  %4398 = vmatmul.mubr.bf16.gmra.mxu0 %v3766_v45  ;;  %v1345_v3 = vshll.u32 %v5065_v57, 16  ;;  %v1295_v45 = vrot.slane %v1294_v1, 4  ;;  %v1318_v15 = vor.u32 %v1317_v22, %v1314_v50  ;;  %v1331_v1 = vshll.u32 %v5355_v19, 16 }
  0x85   : > { %4417 = vmatprep.mubr.bf16.mxu1 %v3775_v46  ;;  %4465 = vmatprep.mubr.bf16.mxu0 %v5167_v7  ;;  %v1327_v46 = vrot.slane %v1325_v34, 4  ;;  %v4774_v34 = vld [vmem:[%s6521_s1 + $0x1f0] sm:$0xff]   ;;  %v1342_v53 = vor.u32 %v1341_v18, %v1338_v36  ;;  %v1393_v38 = vshll.u32 %v5390_v2, 16  ;;  %v1355_v47 = vshll.u32 %v5373_v31, 16 }
  0x86   : > { %v5360_v57 = vrot.slane %v1345_v3, 5  ;;  %v1300_v11 = vsel %vm5139_vm2, %v1295_v45, %v5321_v28  ;;  %v1362_v56 = vrot.slane %v1360_v20, 4  ;;  %v1365_v51 = vrot.slane %v1363_v49, 5 }
  0x87   : > { %v1328_v48 = vor.u32 %v1327_v46, %v5352_v39  ;;  %v1435_v3 = vshll.u32 %v4964_v24, 16  ;;  %v5404_v23 = vcombine.low %v1276_v30, %v1286_v35  ;;  %v5406_v26 = vrot.slane %v1369_v52, 5  ;;  %v5422_v35 = vld [vmem:[%s4892_s26 + $0x74] sm:$0x1] }
  0x88   : > { %v1352_v28 = vor.u32 %v1351_v43, %v5360_v57  ;;  %v1375_v60 = vrot.slane %v1373_v37, 4  ;;  %v1319_v45 = vrot.slane %v1318_v15, 4  ;;  %v1333_v46 = vrot.slane %v1331_v1, 5 }
  0x89   : > { %v1329_v22 = vrot.slane %v1328_v48, 4  ;;  %v1386_v20 = vrot.slane %v1384_v5, 4  ;;  %v5417_v36 = vrot.slane %v1393_v38, 5  ;;  %v6539_v18 = vshrl.u32 %v4911_v8, 16  ;;  %v4778_v8 = vld [vmem:[%s6521_s1 + $0x1e0] sm:$0xff]  }
  0x8a   : > { %v1343_v43 = vrot.slane %v1342_v53, 4  ;;  %v1353_v37 = vrot.slane %v1352_v28, 4  ;;  %v1357_v30 = vrot.slane %v1355_v47, 5  ;;  %v1366_v52 = vor.u32 %v1365_v51, %v1362_v56  ;;  %v5454_v56 = vld [vmem:[%s4892_s26 + $0x88] sm:$0xf] }
  0x8b   : > { %v1399_v49 = vrot.slane %v6539_v18, 4  ;;  %v1456_v5 = vshrl.u32 %v4992_v32, 16  ;;  %v1376_v6 = vor.u32 %v1375_v60, %v5406_v26  ;;  %v1459_v15 = vshll.u32 %v4992_v32, 16 }
  0x8c   : > { %4418 = vmatmul.mubr.bf16.vlgmr.msra.gmra.mxu1 %v5167_v7  ;;  %4466 = vmatmul.mubr.bf16.vlgmr.msra.gmra.mxu0 %v5344_v27  ;;  %v1310_v7 = vsel %vm5139_vm2, %v1305_v59, %v1309_v12  ;;  %v5411_v59 = vld [vmem:[%s4892_s26 + $0x68] sm:$0x1]  ;;  %v1389_v12 = vrot.slane %v1387_v9, 5  ;;  %v1469_v48 = vshrl.u32 %v4995_v33, 16  ;;  %v1417_v1 = vshll.u32 %v4941_v17, 16 }
  0x8d   : > { %4498 = vmatpush3.bf16.msra.mxu1 %v5218_v0  ;;  %4546 = vmatpush3.bf16.msra.mxu0 %v5223_v14  ;;  %v4776_v0 = vld [vmem:[%s6521_s1 + $0x1e8] sm:$0xff]   ;;  %v5408_v50 = vcombine.low %v1300_v11, %v1310_v7  ;;  %v1379_v9 = vshll.u32 %v5411_v59, 16  ;;  %v1334_v11 = vsel %vm5139_vm2, %v1329_v22, %v1333_v46  ;;  %v1400_v53 = vor.u32 %v1399_v49, %v5417_v36  ;;  %v5471_v49 = vld [vmem:[%s4892_s26 + $0x80] sm:$0x1] }
  0x8e   : > { %4421 = vmatprep.mubr.bf16.mxu1 %v5344_v27  ;;  %4469 = vmatprep.mubr.bf16.mxu0 %v5358_v55  ;;  %v4777_v14 = vld [vmem:[%s6521_s1 + $0xa8] sm:$0xff]   ;;  %v1390_v7 = vor.u32 %v1389_v12, %v1386_v20  ;;  %v1403_v38 = vshll.u32 %v5422_v35, 16  ;;  %v1358_v28 = vsel %vm5139_vm2, %v1353_v37, %v1357_v30  ;;  %v1367_v47 = vrot.slane %v1366_v52, 4  ;;  %v4781_v20 = vld [vmem:[%s6521_s1 + $0x98] sm:$0xff]  }
  0x8f   : > { %4499 = vmatprep.subr.bf16.mxu1 %v4774_v34  ;;  %4547 = vmatprep.subr.bf16.mxu0 %v4775_v10  ;;  %v1441_v51 = vshll.u32 %v5454_v56, 16  ;;  %v1377_v60 = vrot.slane %v1376_v6, 4  ;;  %v6541_v22 = vshll.u32 %v4938_v16, 16  ;;  %v1480_v12 = vshrl.u32 %v5021_v41, 16 }
  0x90   : > { %v6542_v37 = vshrl.u32 %v4941_v17, 16  ;;  %v1391_v52 = vrot.slane %v1390_v7, 4  ;;  %v1401_v6 = vrot.slane %v1400_v53, 4  ;;  %v1372_v17 = vsel %vm5139_vm2, %v1367_v47, %v5406_v26 }
  0x91   : > { %4500 = vmatpush3.bf16.msra.mxu1 %v4774_v34  ;;  %4548 = vmatpush3.bf16.msra.mxu0 %v4775_v10  ;;  %v1445_v34 = vshrl.u32 %v4967_v25, 16  ;;  %v4779_v10 = vld [vmem:[%s6521_s1 + $0xa0] sm:$0xff]   ;;  %v1324_v25 = vsel %vm5139_vm2, %v1319_v45, %v5352_v39  ;;  %v1348_v39 = vsel %vm5139_vm2, %v1343_v43, %v5360_v57  ;;  %v1381_v45 = vrot.slane %v1379_v9, 5  ;;  %v4780_v57 = vld [vmem:[%s6521_s1 + $0x1d8] sm:$0xff]  }
  0x92   : > { %4501 = vmatprep.subr.bf16.mxu1 %v4776_v0  ;;  %4549 = vmatprep.subr.bf16.mxu0 %v4777_v14  ;;  %v1413_v46 = vrot.slane %v6541_v22, 5  ;;  %v5468_v18 = vcombine.low %v1324_v25, %v1334_v11  ;;  %v5473_v43 = vrot.slane %v1417_v1, 5  ;;  %v5477_v30 = vcombine.low %v1348_v39, %v1358_v28  ;;  %v5506_v39 = vld [vmem:[%s4892_s26 + $0x94] sm:$0xf] }
  0x93   : > { %v1405_v9 = vrot.slane %v1403_v38, 5  ;;  %v1437_v25 = vrot.slane %v1435_v3, 5  ;;  %v5483_v11 = vrot.slane %v1441_v51, 5  ;;  %v1447_v1 = vrot.slane %v1445_v34, 4  ;;  %v4783_v3 = vld [vmem:[%s6521_s1 + $0x90] sm:$0xff]  }
  0x94   : > { %4422 = vmatmul.mubr.bf16.gmra.mxu1 %v5358_v55  ;;  %4470 = vmatmul.mubr.bf16.gmra.mxu0 %v5404_v23  ;;  %v1382_v7 = vsel %vm5139_vm2, %v1377_v60, %v1381_v45  ;;  %v1483_v26 = vshll.u32 %v5021_v41, 16  ;;  %v1493_v34 = vshrl.u32 %v5024_v42, 16  ;;  %v1465_v28 = vshll.u32 %v5506_v39, 16  ;;  %v5518_v51 = vld [vmem:[%s4892_s26 + $0xa0] sm:$0xf] }
  0x95   : > { %4425 = vmatprep.mubr.bf16.mxu1 %v5404_v23  ;;  %4473 = vmatprep.mubr.bf16.mxu0 %v5408_v50  ;;  %v1396_v41 = vsel %vm5139_vm2, %v1391_v52, %v5417_v36  ;;  %v1406_v42 = vsel %vm5139_vm2, %v1401_v6, %v1405_v9  ;;  %6544 = vst [vmem:[#allocation2_spill] sm:$0xff] %v5518_v51  ;;  %v1489_v60 = vshll.u32 %v5518_v51, 16  ;;  %v1458_v36 = vrot.slane %v1456_v5, 4  ;;  %v5583_v51 = vld [vmem:[%s4892_s26 + $0xb8] sm:$0xf] }
  0x96   : > { %4502 = vmatpush3.bf16.msra.mxu1 %v4776_v0  ;;  %4550 = vmatpush3.bf16.msra.mxu0 %v4777_v14  ;;  %v6540_v0 = vshrl.u32 %v4938_v16, 16  ;;  %v1423_v16 = vrot.slane %v6542_v37, 4  ;;  %v5521_v45 = vcombine.low %v1372_v17, %v1382_v7  ;;  %v1461_v52 = vrot.slane %v1459_v15, 5  ;;  %v5547_v7 = vld [vmem:[%s4892_s26 + $0xa8] sm:$0xf]  ;;  %6550 = vst [vmem:[#allocation8_spill] sm:$0xff] %v5583_v51 }
  0x97   : > { %4503 = vmatprep.subr.bf16.mxu1 %v4778_v8  ;;  %4551 = vmatprep.subr.bf16.mxu0 %v4779_v10  ;;  %v5535_v6 = vcombine.low %v1396_v41, %v1406_v42  ;;  %v5540_v5 = vrot.slane %v1465_v28, 5  ;;  %v1471_v32 = vrot.slane %v1469_v48, 4  ;;  %v1482_v15 = vrot.slane %v1480_v12, 4  ;;  %6546 = vst [vmem:[#allocation4_spill] sm:$0xff] %v5547_v7  ;;  %v5551_v28 = vld [vmem:[%s4892_s26 + $0xa4] sm:$0x1] }
  0x98   : > { %v1410_v14 = vrot.slane %v6540_v0, 4  ;;  %v6543_v0 = vshrl.u32 %v4964_v24, 16  ;;  %v4782_v24 = vld [vmem:[%s6521_s1 + $0x1d0] sm:$0xff]   ;;  %v1424_v38 = vor.u32 %v1423_v16, %v5473_v43  ;;  %v1495_v17 = vrot.slane %v1493_v34, 4  ;;  %6547 = vst [vmem:[#allocation5_spill] sm:$0xff] %v5551_v28 }
  0x99   : > { %v5554_v42 = vld [vmem:[%s4892_s26 + $0xac] sm:$0xf]  ;;  %v5558_v48 = vld [vmem:[%s4892_s26 + $0xb4] sm:$0xf] }
  0x9a   : > { %4504 = vmatpush3.bf16.msra.mxu1 %v4778_v8  ;;  %4552 = vmatpush3.bf16.msra.mxu0 %v4779_v10  ;;  %v1434_v22 = vrot.slane %v6543_v0, 4  ;;  %v1414_v53 = vor.u32 %v1413_v46, %v1410_v14  ;;  %v1427_v8 = vshll.u32 %v5471_v49, 16  ;;  %v5492_v10 = vld [vmem:[%s4892_s26 + $0x8c] sm:$0x1]  ;;  %v1448_v46 = vor.u32 %v1447_v1, %v5483_v11  ;;  %6548 = vst [vmem:[#allocation6_spill] sm:$0xff] %v5554_v42 }
  0x9b   : > { %4505 = vmatprep.subr.bf16.mxu1 %v4780_v57  ;;  %4553 = vmatprep.subr.bf16.mxu0 %v4781_v20  ;;  %v1451_v37 = vshll.u32 %v5492_v10, 16  ;;  %v1425_v9 = vrot.slane %v1424_v38, 4  ;;  %v5544_v1 = vrot.slane %v1489_v60, 5  ;;  %v1517_v33 = vshrl.u32 %v5554_v42, 16  ;;  %6549 = vst [vmem:[#allocation7_spill] sm:$0xff] %v5558_v48 }
  0x9c   : > { %4426 = vmatmul.mubr.bf16.gmra.mxu1 %v5408_v50  ;;  %4474 = vmatmul.mubr.bf16.gmra.mxu0 %v5468_v18  ;;  %v1438_v14 = vor.u32 %v1437_v25, %v1434_v22  ;;  %v1415_v16 = vrot.slane %v1414_v53, 4  ;;  %v1429_v0 = vrot.slane %v1427_v8, 5  ;;  %v5538_v22 = vld [vmem:[%s4892_s26 + $0x98] sm:$0x1]  ;;  %v1485_v25 = vrot.slane %v1483_v26, 5 }
  0x9d   : > { %4429 = vmatprep.mubr.bf16.mxu1 %v5468_v18  ;;  %4477 = vmatprep.mubr.bf16.mxu0 %v5477_v30  ;;  %6545 = vst [vmem:[#allocation3_spill] sm:$0xff] %v5538_v22  ;;  %v1507_v53 = vshll.u32 %v5547_v7, 16  ;;  %v1449_v38 = vrot.slane %v1448_v46, 4  ;;  %v1453_v41 = vrot.slane %v1451_v37, 5  ;;  %v1528_v12 = vshrl.u32 %v5558_v48, 16 }
  0x9e   : > { %4506 = vmatpush3.bf16.msra.mxu1 %v4780_v57  ;;  %4554 = vmatpush3.bf16.msra.mxu0 %v4781_v20  ;;  %v4784_v57 = vld [vmem:[%s6521_s1 + $0x1c8] sm:$0xff]   ;;  %v1439_v8 = vrot.slane %v1438_v14, 4  ;;  %v1462_v26 = vor.u32 %v1461_v52, %v1458_v36  ;;  %v1475_v34 = vshll.u32 %v5538_v22, 16  ;;  %v1420_v60 = vsel %vm5139_vm2, %v1415_v16, %v5473_v43 }
  0x9f   : > { %4507 = vmatprep.subr.bf16.mxu1 %v4782_v24  ;;  %4555 = vmatprep.subr.bf16.mxu0 %v4783_v3  ;;  %v4785_v20 = vld [vmem:[%s6521_s1 + $0x88] sm:$0xff]   ;;  %v1430_v14 = vsel %vm5139_vm2, %v1425_v9, %v1429_v0  ;;  %v1472_v46 = vor.u32 %v1471_v32, %v5540_v5  ;;  %v1513_v37 = vshll.u32 %v5554_v42, 16  ;;  %v1531_v36 = vshll.u32 %v5558_v48, 16 }
  0xa0   : > { %v1486_v52 = vor.u32 %v1485_v25, %v1482_v15  ;;  %v1496_v47 = vor.u32 %v1495_v17, %v5544_v1  ;;  %v1499_v7 = vshll.u32 %v5551_v28, 16  ;;  %v1541_v43 = vshrl.u32 %v5583_v51, 16  ;;  %v5650_v22 = vld [vmem:[%s4892_s26 + $0xc8] sm:$0x1] }
  0xa1   : > { %v1444_v16 = vsel %vm5139_vm2, %v1439_v8, %v5483_v11  ;;  %v1454_v0 = vsel %vm5139_vm2, %v1449_v38, %v1453_v41  ;;  %v1537_v9 = vshll.u32 %v5583_v51, 16  ;;  %v5592_v32 = vcombine.low %v1420_v60, %v1430_v14  ;;  %v5599_v11 = vld [vmem:[%s6521_s1 + $0x178] sm:$0xff]   ;;  %v5611_v14 = vld [vmem:[%s4892_s26 + $0xb0] sm:$0x1] }
  0xa2   : > { %4508 = vmatpush3.bf16.msra.mxu1 %v4782_v24  ;;  %4556 = vmatpush3.bf16.msra.mxu0 %v4783_v3  ;;  %v4786_v24 = vld [vmem:[%s6521_s1 + $0x1c0] sm:$0xff]   ;;  %v1463_v15 = vrot.slane %v1462_v26, 4  ;;  %v1477_v25 = vrot.slane %v1475_v34, 5  ;;  %v6551_v17 = vshrl.u32 %v5058_v54, 16  ;;  %v1509_v8 = vrot.slane %v1507_v53, 5  ;;  %6552 = vst [vmem:[#allocation9_spill] sm:$0xff] %v5611_v14 }
  0xa3   : > { %4509 = vmatprep.subr.bf16.mxu1 %v4784_v57  ;;  %4557 = vmatprep.subr.bf16.mxu0 %v4785_v20  ;;  %v4787_v3 = vld [vmem:[%s6521_s1 + $0x80] sm:$0xff]   ;;  %v5606_v38 = vrot.slane %v1513_v37, 5  ;;  %v1519_v41 = vrot.slane %v1517_v33, 4  ;;  %v5608_v54 = vcombine.low %v1444_v16, %v1454_v0  ;;  %v1487_v26 = vrot.slane %v1486_v52, 4 }
  0xa4   : > { %4430 = vmatmul.mubr.bf16.gmra.mxu1 %v5477_v30  ;;  %4478 = vmatmul.mubr.bf16.gmra.mxu0 %v5521_v45  ;;  %v1506_v48 = vrot.slane %v6551_v17, 4  ;;  %v1497_v34 = vrot.slane %v1496_v47, 4  ;;  %v1501_v60 = vrot.slane %v1499_v7, 5  ;;  %v1530_v17 = vrot.slane %v1528_v12, 4  ;;  %v5622_v7 = vld [vmem:[%s4892_s26 + $0xbc] sm:$0x1] }
  0xa5   : > { %4433 = vmatprep.mubr.bf16.mxu1 %v5521_v45  ;;  %4481 = vmatprep.mubr.bf16.mxu0 %v5535_v6  ;;  %v1533_v51 = vrot.slane %v1531_v36, 5  ;;  %v1539_v28 = vrot.slane %v1537_v9, 5  ;;  %v1543_v42 = vrot.slane %v1541_v43, 4  ;;  %v1468_v47 = vsel %vm5139_vm2, %v1463_v15, %v5540_v5  ;;  %v5633_v36 = vld [vmem:[%s4892_s26 + $0xc4] sm:$0xf] }
  0xa6   : > { %4510 = vmatpush3.bf16.msra.mxu1 %v4784_v57  ;;  %4558 = vmatpush3.bf16.msra.mxu0 %v4785_v20  ;;  %v5604_v57 = vld [vmem:[%s6521_s1 + $0x238] sm:$0xff]   ;;  %v1473_v20 = vrot.slane %v1472_v46, 4  ;;  %v5614_v46 = vld [vmem:[%s4892_s26 + $0xc0] sm:$0xf]  ;;  %v1523_v37 = vshll.u32 %v5611_v14, 16  ;;  %6554 = vst [vmem:[#allocation11_spill] sm:$0xff] %v5633_v36  ;;  %v1492_v52 = vsel %vm5139_vm2, %v1487_v26, %v5544_v1  ;;  %v1502_v43 = vsel %vm5139_vm2, %v1497_v34, %v1501_v60 }
  0xa7   : > { %4511 = vmatprep.subr.bf16.mxu1 %v4786_v24  ;;  %4559 = vmatprep.subr.bf16.mxu0 %v4787_v3  ;;  %6553 = vst [vmem:[#allocation10_spill] sm:$0xff] %v5614_v46  ;;  %v1857_v53 = vshrl.u32 %v5614_v46, 16  ;;  %v1860_v33 = vshll.u32 %v5614_v46, 16  ;;  %v1870_v5 = vshrl.u32 %v5633_v36, 16  ;;  %v1534_v16 = vor.u32 %v1533_v51, %v1530_v17 }
  0xa8   : > { %v1478_v12 = vsel %vm5139_vm2, %v1473_v20, %v1477_v25  ;;  %v1544_v0 = vor.u32 %v1543_v42, %v1539_v28  ;;  %v1547_v9 = vshll.u32 %v5622_v7, 16  ;;  %v5647_v25 = vcombine.low %v1492_v52, %v1502_v43 }
  0xa9   : > { %v5645_v15 = vcombine.low %v1468_v47, %v1478_v12  ;;  %v1859_v46 = vrot.slane %v1857_v53, 4  ;;  %v1862_v14 = vrot.slane %v1860_v33, 5  ;;  %v1872_v26 = vrot.slane %v1870_v5, 4 }
  0xaa   : > { %4512 = vmatpush3.bf16.msra.mxu1 %v4786_v24  ;;  %4560 = vmatpush3.bf16.msra.mxu0 %v4787_v3  ;;  %v1510_v24 = vor.u32 %v1509_v8, %v1506_v48  ;;  %v1520_v3 = vor.u32 %v1519_v41, %v5606_v38  ;;  %v1866_v48 = vshll.u32 %v5633_v36, 16  ;;  %v1525_v41 = vrot.slane %v1523_v37, 5 }
  0xab   : > { %4593 = vmatprep.subr.bf16.mxu1 %v5599_v11  ;;  %4641 = vmatprep.subr.bf16.mxu0 %v5604_v57  ;;  %v1535_v34 = vrot.slane %v1534_v16, 4  ;;  %v1545_v60 = vrot.slane %v1544_v0, 4  ;;  %v1549_v36 = vrot.slane %v1547_v9, 5  ;;  %v1863_v17 = vor.u32 %v1862_v14, %v1859_v46  ;;  %v4815_v14 = vld [vmem:[%s4892_s26] sm:$0xf] }
  0xac   : > { %4434 = vmatmul.mubr.bf16.gmra.mxu1 %v5535_v6  ;;  %4482 = vmatmul.mubr.bf16.gmra.mxu0 %v5592_v32  ;;  %v1511_v20 = vrot.slane %v1510_v24, 4  ;;  %v1521_v8 = vrot.slane %v1520_v3, 4  ;;  %v1868_v1 = vrot.slane %v1866_v48, 5  ;;  %v1876_v33 = vshll.u32 %v5650_v22, 16 }
  0xad   : > { %4437 = vmatprep.mubr.bf16.mxu1 %v5592_v32  ;;  %4485 = vmatprep.mubr.bf16.mxu0 %v5608_v54  ;;  %v1540_v47 = vsel %vm5139_vm2, %v1535_v34, %v1539_v28  ;;  %v1550_v12 = vsel %vm5139_vm2, %v1545_v60, %v1549_v36  ;;  %v1864_v5 = vrot.slane %v1863_v17, 4  ;;  %v3817_v46 = vrot.slane %v4815_v14, 9  ;;  %v5677_v36 = vld [vmem:[%s4892_s26 + $0xd4] sm:$0x1] }
  0xae   : > { %v1516_v51 = vsel %vm5139_vm2, %v1511_v20, %v5606_v38  ;;  %v1526_v42 = vsel %vm5139_vm2, %v1521_v8, %v1525_v41  ;;  %v1873_v53 = vor.u32 %v1872_v26, %v1868_v1  ;;  %v4814_v38 = vld [vmem:[%s4892_s26 + $0x4] sm:$0xf]  ;;  %v5669_v37 = vcombine.low %v1540_v47, %v1550_v12  ;;  %v4816_v26 = vld [vmem:[%s4892_s26 + $0x1c] sm:$0xf] }
  0xaf   : > { %v2415_v24 = vrot.slane %v4814_v38, 5  ;;  %v5667_v3 = vcombine.low %v1516_v51, %v1526_v42  ;;  %v1878_v43 = vrot.slane %v1876_v33, 5  ;;  %v2418_v16 = vrot.slane %v5254_v4, 5  ;;  %v4817_v33 = vld [vmem:[%s4892_s26 + $0x18] sm:$0xf] }
  0xb0   : > { %v1874_v52 = vrot.slane %v1873_v53, 4  ;;  %v3086_v28 = vrot.slane %v5294_v62, 5  ;;  %v3867_v0 = vrot.slane %v5291_v63, 9  ;;  %v1869_v9 = vsel %vm5139_vm2, %v1864_v5, %v1868_v1 }
  0xb1   : > { %v2417_v48 = vrot.slane %v2415_v24, 4  ;;  %v3089_v20 = vrot.slane %v5677_v36, 5  ;;  %v2416_v8 = vsel %vm5284_vm5, %v3817_v46, %v2415_v24  ;;  %v2429_v34 = vrot.slane %v4816_v26, 5  ;;  %v4818_v24 = vld [vmem:[%s4892_s26 + $0x28] sm:$0xf] }
  0xb2   : > { %v1879_v4 = vsel %vm5139_vm2, %v1874_v52, %v1878_v43  ;;  %v3088_v60 = vrot.slane %v3086_v28, 4  ;;  %v5696_v1 = vsel %vm5284_vm5, %v3867_v0, %v3086_v28  ;;  %v3819_v47 = vrot.slane %v4817_v33, 9  ;;  %v4819_v52 = vld [vmem:[%s4892_s26 + $0x34] sm:$0xf]  ;;  %v4822_v26 = vld [vmem:[%s4892_s26 + $0x40] sm:$0xf] }
  0xb3   : > { %v2419_v41 = vsel %vm5284_vm5, %v2417_v48, %v2418_v16  ;;  %v5692_v51 = vcombine.low %v1869_v9, %v1879_v4  ;;  %v2431_v12 = vrot.slane %v2429_v34, 4  ;;  %v2432_v38 = vrot.slane %v5272_v29, 5  ;;  %v4820_v48 = vld [vmem:[%s4892_s26 + $0x24] sm:$0xf] }
  0xb4   : > { %4438 = vmatmul.mubr.bf16.gmra.mxu1 %v5608_v54  ;;  %4486 = vmatmul.mubr.bf16.gmra.mxu0 %v5645_v15  ;;  %v3833_v42 = vcombine.low %v2416_v8, %v2419_v41  ;;  %v5700_v17 = vsel %vm5284_vm5, %v3088_v60, %v3089_v20  ;;  %v2436_v5 = vrot.slane %v4818_v24, 5  ;;  %v2443_v43 = vrot.slane %v4819_v52, 5  ;;  %v4790_v8 = vld [vmem:[%s6521_s1 + $0x170] sm:$0xff]   ;;  %v4793_v60 = vld [vmem:[%s6521_s1 + $0x228] sm:$0xff]  }
  0xb5   : > { %4441 = vmatprep.mubr.bf16.mxu1 %v5645_v15  ;;  %4489 = vmatprep.mubr.bf16.mxu0 %v5647_v25  ;;  %v3868_v53 = vcombine.low %v5696_v1, %v5700_v17  ;;  %v2430_v14 = vsel %vm5284_vm5, %v3819_v47, %v2429_v34  ;;  %v2433_v46 = vsel %vm5284_vm5, %v2431_v12, %v2432_v38  ;;  %v3820_v29 = vrot.slane %v4820_v48, 9  ;;  %v4791_v41 = vld [vmem:[%s6521_s1 + $0x230] sm:$0xff]   ;;  %v4824_v12 = vld [vmem:[%s4892_s26 + $0x3c] sm:$0xf]  ;;  %v4825_v52 = vld [vmem:[%s4892_s26 + $0x48] sm:$0xf] }
  0xb6   : > { %v2438_v16 = vrot.slane %v2436_v5, 4  ;;  %v2439_v28 = vrot.slane %v5281_v44, 5  ;;  %v5717_v0 = vcombine.low %v2430_v14, %v2433_v46  ;;  %v2445_v4 = vrot.slane %v2443_v43, 4  ;;  %v4794_v48 = vld [vmem:[%s6521_s1 + $0x160] sm:$0xff]  }
  0xb7   : > { %v2446_v20 = vrot.slane %v5318_v40, 5  ;;  %v2437_v44 = vsel %vm5284_vm5, %v3820_v29, %v2436_v5  ;;  %v2450_v34 = vrot.slane %v4822_v26, 5  ;;  %v3822_v38 = vrot.slane %v4824_v12, 9  ;;  %v4795_v29 = vld [vmem:[%s6521_s1 + $0x220] sm:$0xff]  }
  0xb8   : > { %v2440_v40 = vsel %vm5284_vm5, %v2438_v16, %v2439_v28  ;;  %v2453_v5 = vrot.slane %v5328_v13, 5  ;;  %v2460_v46 = vrot.slane %v5355_v19, 5  ;;  %v4826_v16 = vld [vmem:[%s4892_s26 + $0x58] sm:$0xf]  ;;  %v2478_v12 = vrot.slane %v5390_v2, 5  ;;  %v4801_v2 = vld [vmem:[%s6521_s1 + $0x208] sm:$0xff]  }
  0xb9   : > { %v2452_v24 = vrot.slane %v2450_v34, 4  ;;  %v2451_v13 = vsel %vm5284_vm5, %v3822_v38, %v2450_v34  ;;  %v2464_v28 = vrot.slane %v4826_v16, 5  ;;  %v2467_v34 = vrot.slane %v5373_v31, 5 }
  0xbb   : > { %v2454_v19 = vsel %vm5284_vm5, %v2452_v24, %v2453_v5  ;;  %v2466_v26 = vrot.slane %v2464_v28, 4  ;;  %v4800_v5 = vld [vmem:[%s6521_s1 + $0x148] sm:$0xff]  }
  0xbc   : > { %4442 = vmatmul.mubr.bf16.gmra.mxu1 %v5647_v25  ;;  %4490 = vmatmul.mubr.bf16.gmra.mxu0 %v5667_v3 }
  0xbd   : > { %4445 = vmatprep.mubr.bf16.mxu1 %v5667_v3  ;;  %4493 = vmatprep.mubr.bf16.mxu0 %v5669_v37 }
  0xc4   : > { %4446 = vmatmul.mubr.bf16.gmra.mxu1 %v5669_v37  ;;  %4494 = vmatmul.mubr.bf16.gmra.mxu0 %v5692_v51 }
  0xc5   : > { %4513 = vmatprep.mubr.bf16.mxu1 %v5344_v27  ;;  %4561 = vmatprep.mubr.bf16.mxu0 %v3833_v42  ;;  %v4821_v27 = vld [vmem:[%s4892_s26 + $0x30] sm:$0xf]  ;;  %v4823_v42 = vld [vmem:[%s4892_s26 + $0x4c] sm:$0xf] }
  0xc6   : > { %v3821_v9 = vrot.slane %v4821_v27, 9  ;;  %v2457_v33 = vrot.slane %v4823_v42, 5  ;;  %v4827_v27 = vld [vmem:[%s4892_s26 + $0x64] sm:$0xf]  ;;  %v4798_v42 = vld [vmem:[%s6521_s1 + $0x150] sm:$0xff]  }
  0xc8   : > { %v2459_v14 = vrot.slane %v2457_v33, 4 }
  0xcc   : > { %4514 = vmatmul.mubr.bf16.vlgmr.msra.gmra.mxu1 %v5358_v55  ;;  %4562 = vmatmul.mubr.bf16.vlgmr.msra.gmra.mxu0 %v5312_v21  ;;  %v2444_v55 = vsel %vm5284_vm5, %v3821_v9, %v2443_v43  ;;  %v3823_v43 = vrot.slane %v4825_v52, 9  ;;  %v2471_v9 = vrot.slane %v4827_v27, 5 }
  0xcd   : > { %4594 = vmatpush3.bf16.msra.mxu1 %v5599_v11  ;;  %4642 = vmatpush3.bf16.msra.mxu0 %v5604_v57  ;;  %v2447_v11 = vsel %vm5284_vm5, %v2445_v4, %v2446_v20  ;;  %v4792_v57 = vld [vmem:[%s6521_s1 + $0x168] sm:$0xff]   ;;  %v4796_v4 = vld [vmem:[%s6521_s1 + $0x158] sm:$0xff]  }
  0xce   : > { %4517 = vmatprep.mubr.bf16.mxu1 %v5404_v23  ;;  %4565 = vmatprep.mubr.bf16.mxu0 %v5717_v0  ;;  %v5749_v23 = vcombine.low %v2437_v44, %v2440_v40  ;;  %v5751_v47 = vcombine.low %v2444_v55, %v2447_v11  ;;  %v4797_v20 = vld [vmem:[%s6521_s1 + $0x218] sm:$0xff]   ;;  %v4828_v44 = vld [vmem:[%s4892_s26 + $0x54] sm:$0xf]  ;;  %v4829_v55 = vld [vmem:[%s4892_s26 + $0x60] sm:$0xf] }
  0xcf   : > { %4595 = vmatprep.subr.bf16.mxu1 %v4790_v8  ;;  %4643 = vmatprep.subr.bf16.mxu0 %v4791_v41  ;;  %v3824_v40 = vrot.slane %v4828_v44, 9  ;;  %v3825_v11 = vrot.slane %v4829_v55, 9 }
  0xd1   : > { %4596 = vmatpush3.bf16.msra.mxu1 %v4790_v8  ;;  %4644 = vmatpush3.bf16.msra.mxu0 %v4791_v41  ;;  %v5783_v8 = vcombine.low %v2451_v13, %v2454_v19  ;;  %v2465_v31 = vsel %vm5284_vm5, %v3824_v40, %v2464_v28  ;;  %v2472_v38 = vsel %vm5284_vm5, %v3825_v11, %v2471_v9  ;;  %v4832_v13 = vld [vmem:[%s4892_s26 + $0x78] sm:$0xf]  ;;  %v2488_v28 = vrot.slane %v5471_v49, 5 }
  0xd2   : > { %4597 = vmatprep.subr.bf16.mxu1 %v4792_v57  ;;  %4645 = vmatprep.subr.bf16.mxu0 %v4793_v60  ;;  %v3827_v19 = vrot.slane %v4832_v13, 9  ;;  %v2495_v40 = vrot.slane %v5492_v10, 5 }
  0xd4   : > { %4518 = vmatmul.mubr.bf16.gmra.mxu1 %v5408_v50  ;;  %4566 = vmatmul.mubr.bf16.gmra.mxu0 %v5749_v23  ;;  %v2458_v50 = vsel %vm5284_vm5, %v3823_v43, %v2457_v33  ;;  %v4799_v33 = vld [vmem:[%s6521_s1 + $0x210] sm:$0xff]  }
  0xd5   : > { %4521 = vmatprep.mubr.bf16.mxu1 %v5468_v18  ;;  %4569 = vmatprep.mubr.bf16.mxu0 %v5751_v47  ;;  %v2461_v18 = vsel %vm5284_vm5, %v2459_v14, %v2460_v46  ;;  %v4831_v14 = vld [vmem:[%s4892_s26 + $0x6c] sm:$0xf] }
  0xd6   : > { %4598 = vmatpush3.bf16.msra.mxu1 %v4792_v57  ;;  %4646 = vmatpush3.bf16.msra.mxu0 %v4793_v60  ;;  %v5785_v41 = vcombine.low %v2458_v50, %v2461_v18  ;;  %v2473_v57 = vrot.slane %v2471_v9, 4  ;;  %v2474_v60 = vrot.slane %v5411_v59, 5  ;;  %v2468_v59 = vsel %vm5284_vm5, %v2466_v26, %v2467_v34  ;;  %v4802_v50 = vld [vmem:[%s6521_s1 + $0x140] sm:$0xff]   ;;  %v4834_v34 = vld [vmem:[%s4892_s26 + $0x90] sm:$0xf] }
  0xd7   : > { %4599 = vmatprep.subr.bf16.mxu1 %v4794_v48  ;;  %4647 = vmatprep.subr.bf16.mxu0 %v4795_v29  ;;  %v5817_v52 = vcombine.low %v2465_v31, %v2468_v59  ;;  %v3826_v46 = vrot.slane %v4831_v14, 9  ;;  %v4803_v18 = vld [vmem:[%s6521_s1 + $0x200] sm:$0xff]   ;;  %v3829_v55 = vrot.slane %v4834_v34, 9 }
  0xd9   : > { %v2479_v49 = vsel %vm5284_vm5, %v3826_v46, %v2478_v12 }
  0xda   : > { %4600 = vmatpush3.bf16.msra.mxu1 %v4794_v48  ;;  %4648 = vmatpush3.bf16.msra.mxu0 %v4795_v29  ;;  %v2480_v48 = vrot.slane %v2478_v12, 4  ;;  %v2481_v29 = vrot.slane %v5422_v35, 5  ;;  %v2492_v35 = vrot.slane %v5454_v56, 5  ;;  %v6556_v12 = vld [vmem:[#allocation2_spill] sm:$0xff] }
  0xdb   : > { %4601 = vmatprep.subr.bf16.mxu1 %v4796_v4  ;;  %4649 = vmatprep.subr.bf16.mxu0 %v4797_v20 }
  0xdc   : > { %4522 = vmatmul.mubr.bf16.gmra.mxu1 %v5477_v30  ;;  %4570 = vmatmul.mubr.bf16.gmra.mxu0 %v5783_v8  ;;  %v2475_v30 = vsel %vm5284_vm5, %v2473_v57, %v2474_v60  ;;  %v2482_v27 = vsel %vm5284_vm5, %v2480_v48, %v2481_v29  ;;  %v2494_v44 = vrot.slane %v2492_v35, 4  ;;  %v6555_v57 = vld [vmem:[#allocation3_spill] sm:$0xff]  ;;  %v4835_v48 = vld [vmem:[%s4892_s26 + $0x9c] sm:$0xf] }
  0xdd   : > { %4525 = vmatprep.mubr.bf16.mxu1 %v5521_v45  ;;  %4573 = vmatprep.mubr.bf16.mxu0 %v5785_v41  ;;  %v4830_v45 = vld [vmem:[%s4892_s26 + $0x7c] sm:$0xf]  ;;  %v5819_v43 = vcombine.low %v2472_v38, %v2475_v30  ;;  %v5845_v56 = vcombine.low %v2479_v49, %v2482_v27  ;;  %v2502_v60 = vrot.slane %v6555_v57, 5  ;;  %v2506_v38 = vrot.slane %v6556_v12, 5 }
  0xde   : > { %4602 = vmatpush3.bf16.msra.mxu1 %v4796_v4  ;;  %4650 = vmatpush3.bf16.msra.mxu0 %v4797_v20  ;;  %v2485_v24 = vrot.slane %v4830_v45, 5  ;;  %v2499_v4 = vrot.slane %v5506_v39, 5  ;;  %v2126_v39 = vshrl.u32 %v5291_v63, 16  ;;  %v2496_v59 = vsel %vm5284_vm5, %v2494_v44, %v2495_v40  ;;  %v6558_v29 = vld [vmem:[#allocation5_spill] sm:$0xff] }
  0xdf   : > { %4603 = vmatprep.subr.bf16.mxu1 %v4798_v42  ;;  %4651 = vmatprep.subr.bf16.mxu0 %v4799_v33  ;;  %v2139_v30 = vshrl.u32 %v5294_v62, 16  ;;  %v2509_v13 = vrot.slane %v6558_v29, 5  ;;  %v2523_v29 = vrot.slane %v5622_v7, 5 }
  0xe0   : > { %v2487_v16 = vrot.slane %v2485_v24, 4  ;;  %v2486_v9 = vsel %vm5284_vm5, %v3827_v19, %v2485_v24  ;;  %v2501_v11 = vrot.slane %v2499_v4, 4  ;;  %v6559_v19 = vld [vmem:[#allocation4_spill] sm:$0xff]  ;;  %v2128_v49 = vrot.slane %v2126_v39, 4 }
  0xe2   : > { %4604 = vmatpush3.bf16.msra.mxu1 %v4798_v42  ;;  %4652 = vmatpush3.bf16.msra.mxu0 %v4799_v33  ;;  %v2129_v42 = vshll.u32 %v5291_v63, 16  ;;  %v6557_v63 = vld [vmem:[#allocation6_spill] sm:$0xff]  ;;  %v2503_v14 = vsel %vm5284_vm5, %v2501_v11, %v2502_v60 }
  0xe3   : > { %4605 = vmatprep.subr.bf16.mxu1 %v4800_v5  ;;  %4653 = vmatprep.subr.bf16.mxu0 %v4801_v2  ;;  %v2513_v45 = vrot.slane %v6557_v63, 5 }
  0xe4   : > { %4526 = vmatmul.mubr.bf16.gmra.mxu1 %v5535_v6  ;;  %4574 = vmatmul.mubr.bf16.gmra.mxu0 %v5817_v52  ;;  %v2489_v6 = vsel %vm5284_vm5, %v2487_v16, %v2488_v28  ;;  %v3831_v16 = vrot.slane %v6559_v19, 9  ;;  %v2131_v27 = vrot.slane %v2129_v42, 5 }
  0xe5   : > { %4529 = vmatprep.mubr.bf16.mxu1 %v5592_v32  ;;  %4577 = vmatprep.mubr.bf16.mxu0 %v5819_v43  ;;  %v4833_v32 = vld [vmem:[%s4892_s26 + $0x84] sm:$0xf]  ;;  %v5849_v26 = vcombine.low %v2486_v9, %v2489_v6  ;;  %v2515_v6 = vrot.slane %v2513_v45, 4 }
  0xe6   : > { %4606 = vmatpush3.bf16.msra.mxu1 %v4800_v5  ;;  %4654 = vmatpush3.bf16.msra.mxu0 %v4801_v2  ;;  %v3828_v20 = vrot.slane %v4833_v32, 9  ;;  %v2500_v2 = vsel %vm5284_vm5, %v3829_v55, %v2499_v4  ;;  %v2141_v32 = vrot.slane %v2139_v30, 4  ;;  %v2514_v57 = vsel %vm5284_vm5, %v3831_v16, %v2513_v45 }
  0xe7   : > { %4607 = vmatprep.subr.bf16.mxu1 %v4802_v50  ;;  %4655 = vmatprep.subr.bf16.mxu0 %v4803_v18  ;;  %v5889_v9 = vcombine.low %v2500_v2, %v2503_v14  ;;  %v2132_v60 = vor.u32 %v2131_v27, %v2128_v49  ;;  %v6562_v2 = vld [vmem:[#allocation7_spill] sm:$0xff] }
  0xe8   : > { %v2493_v10 = vsel %vm5284_vm5, %v3828_v20, %v2492_v35  ;;  %v3832_v14 = vrot.slane %v6562_v2, 9 }
  0xe9   : > { %v5879_v46 = vcombine.low %v2493_v10, %v2496_v59  ;;  %v2145_v10 = vshll.u32 %v5677_v36, 16 }
  0xea   : > { %4608 = vmatpush3.bf16.msra.mxu1 %v4802_v50  ;;  %4656 = vmatpush3.bf16.msra.mxu0 %v4803_v18  ;;  %v2508_v50 = vrot.slane %v2506_v38, 4  ;;  %v6560_v18 = vld [vmem:[#allocation9_spill] sm:$0xff] }
  0xeb   : > { %v2516_v35 = vrot.slane %v6560_v18, 5 }
  0xec   : > { %v5855_v33 = vpop.f32.mrf.mxu0  ;;  %v5857_v31 = vpop.f32.mrf.mxu1  ;;  %4530 = vmatmul.mubr.bf16.gmra.mxu1 %v5608_v54  ;;  %4578 = vmatmul.mubr.bf16.gmra.mxu0 %v5845_v56  ;;  %v2135_v54 = vshll.u32 %v5294_v62, 16  ;;  %v2510_v11 = vsel %vm5284_vm5, %v2508_v50, %v2509_v13 }
  0xed   : > { %4533 = vmatprep.mubr.bf16.mxu1 %v5645_v15  ;;  %4581 = vmatprep.mubr.bf16.mxu0 %v5849_v26  ;;  %v3830_v15 = vrot.slane %v4835_v48, 9  ;;  %v2517_v39 = vsel %vm5284_vm5, %v2515_v6, %v2516_v35 }
  0xee   : > { %v5871_v24 = vpop.f32.mrf.mxu0  ;;  %v5873_v5 = vpop.f32.mrf.mxu1  ;;  %v2137_v4 = vrot.slane %v2135_v54, 5  ;;  %v2133_v54 = vrot.slane %v2132_v60, 4 }
  0xef   : > { %v2507_v40 = vsel %vm5284_vm5, %v3830_v15, %v2506_v38  ;;  %v2147_v15 = vrot.slane %v2145_v10, 5 }
  0xf0   : > { %v5884_v28 = vpop.f32.mrf.mxu0  ;;  %v5886_v62 = vpop.f32.mrf.mxu1  ;;  %v2142_v42 = vor.u32 %v2141_v32, %v2137_v4  ;;  %v5921_v45 = vcombine.low %v2507_v40, %v2510_v11  ;;  %v2138_v18 = vsel %vm5139_vm2, %v2133_v54, %v2137_v4 }
  0xf2   : > { %v5891_v20 = vpop.f32.mrf.mxu0  ;;  %v5893_v44 = vpop.f32.mrf.mxu1  ;;  %v2143_v48 = vrot.slane %v2142_v42, 4 }
  0xf4   : > { %v5897_v34 = vpop.f32.mrf.mxu0  ;;  %v5899_v55 = vpop.f32.mrf.mxu1  ;;  %4534 = vmatmul.mubr.bf16.gmra.mxu1 %v5647_v25  ;;  %4582 = vmatmul.mubr.bf16.gmra.mxu0 %v5879_v46  ;;  %v6561_v25 = vld [vmem:[#allocation8_spill] sm:$0xff]  ;;  %v2148_v7 = vsel %vm5139_vm2, %v2143_v48, %v2147_v15 }
  0xf5   : > { %4537 = vmatprep.mubr.bf16.mxu1 %v5667_v3  ;;  %4585 = vmatprep.mubr.bf16.mxu0 %v5889_v9  ;;  %v2520_v59 = vrot.slane %v6561_v25, 5  ;;  %v5923_v3 = vcombine.low %v2514_v57, %v2517_v39 }
  0xf6   : > { %v5913_v12 = vpop.f32.mrf.mxu0  ;;  %v5915_v38 = vpop.f32.mrf.mxu1 }
  0xf7   : > { %v2522_v36 = vrot.slane %v2520_v59, 4  ;;  %v2521_v35 = vsel %vm5284_vm5, %v3832_v14, %v2520_v59 }
  0xf8   : > { %v5917_v30 = vpop.f32.mrf.mxu0  ;;  %v5919_v63 = vpop.f32.mrf.mxu1 }
  0xf9   : > { %v2524_v49 = vsel %vm5284_vm5, %v2522_v36, %v2523_v29 }
  0xfa   : > { %v5927_v13 = vpop.f32.mrf.mxu0  ;;  %v5929_v19 = vpop.f32.mrf.mxu1  ;;  %v5955_v32 = vcombine.low %v2521_v35, %v2524_v49 }
  0xfc   : > { %v5931_v16 = vpop.f32.mrf.mxu0  ;;  %v5933_v50 = vpop.f32.mrf.mxu1  ;;  %4538 = vmatmul.mubr.bf16.gmra.mxu1 %v5669_v37  ;;  %4586 = vmatmul.mubr.bf16.gmra.mxu0 %v5921_v45 }
  0xfd   : > { %4541 = vmatprep.mubr.bf16.mxu1 %v5692_v51  ;;  %4589 = vmatprep.mubr.bf16.mxu0 %v5923_v3  ;;  %v3808_v51 = vcombine.low %v2138_v18, %v2148_v7 }
  0xfe   : > { %v5947_v27 = vpop.f32.mrf.mxu0  ;;  %v5949_v37 = vpop.f32.mrf.mxu1 }
 0x100   : > { %v5951_v6 = vpop.f32.mrf.mxu0  ;;  %v5953_v4 = vpop.f32.mrf.mxu1 }
 0x102   : > { %v5957_v40 = vpop.f32.mrf.mxu0  ;;  %v5959_v61 = vpop.f32.mrf.mxu1 }
 0x104   : > { %v5961_v11 = vpop.f32.mrf.mxu0  ;;  %v5963_v57 = vpop.f32.mrf.mxu1  ;;  %4542 = vmatmul.mubr.bf16.gmra.mxu1 %v3808_v51  ;;  %4590 = vmatmul.mubr.bf16.gmra.mxu0 %v5955_v32 }
 0x105   : > { %4609 = vmatprep.mubr.bf16.mxu1 %v5312_v21  ;;  %4657 = vmatprep.mubr.bf16.mxu0 %v5717_v0 }
 0x106   : > { %v5968_v60 = vpop.f32.mrf.mxu0  ;;  %v5970_v39 = vpop.f32.mrf.mxu1 }
 0x108   : > { %v5972_v42 = vpop.f32.mrf.mxu0  ;;  %v5974_v10 = vpop.f32.mrf.mxu1 }
 0x10a   : > { %v5976_v25 = vpop.f32.mrf.mxu0  ;;  %v5978_v59 = vpop.f32.mrf.mxu1 }
 0x10c   : > { %v4323_v54 = vpop.f32.mrf.mxu1  ;;  %v4371_v2 = vpop.f32.mrf.mxu0  ;;  %4610 = vmatmul.mubr.bf16.vlgmr.msra.gmra.mxu1 %v5717_v0  ;;  %4658 = vmatmul.mubr.bf16.vlgmr.msra.gmra.mxu0 %v5749_v23 }
 0x10d   : > { %v799_v21 = vadd.f32 %v4323_v54, %v5855_v33  ;;  %4613 = vmatprep.mubr.bf16.mxu1 %v5749_v23  ;;  %4661 = vmatprep.mubr.bf16.mxu0 %v5751_v47 }
 0x10e   : > { %v790_v14 = vpop.f32.mrf.mxu1  ;;  %v1005_v48 = vpop.f32.mrf.mxu0 }
 0x10f   : > { %v5985_v15 = vadd.f32 %v4371_v2, %v799_v21  ;;  %v791_v36 = vadd.f32 %v790_v14, %v5871_v24 }
 0x110   : > { %v4324_v29 = vpop.f32.mrf.mxu1  ;;  %v4372_v18 = vpop.f32.mrf.mxu0 }
 0x111   : > { %v5988_v7 = vadd.f32 %v1005_v48, %v791_v36  ;;  %v802_v0 = vadd.f32 %v4324_v29, %v5884_v28 }
 0x112   : > { %v793_v35 = vpop.f32.mrf.mxu1  ;;  %v1008_v49 = vpop.f32.mrf.mxu0 }
 0x113   : > { %v5991_v51 = vadd.f32 %v4372_v18, %v802_v0  ;;  %v794_v23 = vadd.f32 %v793_v35, %v5891_v20 }
 0x114   : > { %v4327_v33 = vpop.f32.mrf.mxu1  ;;  %v4375_v54 = vpop.f32.mrf.mxu0  ;;  %4614 = vmatmul.mubr.bf16.gmra.mxu1 %v5751_v47  ;;  %4662 = vmatmul.mubr.bf16.gmra.mxu0 %v5783_v8 }
 0x115   : > { %v5996_v2 = vadd.f32 %v1008_v49, %v794_v23  ;;  %v815_v24 = vadd.f32 %v4327_v33, %v5897_v34  ;;  %4617 = vmatprep.mubr.bf16.mxu1 %v5783_v8  ;;  %4665 = vmatprep.mubr.bf16.mxu0 %v5785_v41 }
 0x116   : > { %v806_v28 = vpop.f32.mrf.mxu1  ;;  %v1021_v21 = vpop.f32.mrf.mxu0 }
 0x117   : > { %v6001_v14 = vadd.f32 %v4375_v54, %v815_v24  ;;  %v807_v20 = vadd.f32 %v806_v28, %v5913_v12 }
 0x118   : > { %v4328_v48 = vpop.f32.mrf.mxu1  ;;  %v4376_v36 = vpop.f32.mrf.mxu0 }
 0x119   : > { %v6004_v29 = vadd.f32 %v1021_v21, %v807_v20  ;;  %v818_v47 = vadd.f32 %v4328_v48, %v5917_v30 }
 0x11a   : > { %v809_v18 = vpop.f32.mrf.mxu1  ;;  %v1024_v0 = vpop.f32.mrf.mxu0 }
 0x11b   : > { %v6007_v35 = vadd.f32 %v4376_v36, %v818_v47  ;;  %v810_v8 = vadd.f32 %v809_v18, %v5927_v13 }
 0x11c   : > { %v4331_v34 = vpop.f32.mrf.mxu1  ;;  %v4379_v49 = vpop.f32.mrf.mxu0  ;;  %4618 = vmatmul.mubr.bf16.gmra.mxu1 %v5785_v41  ;;  %4666 = vmatmul.mubr.bf16.gmra.mxu0 %v5817_v52 }
 0x11d   : > { %v6012_v23 = vadd.f32 %v1024_v0, %v810_v8  ;;  %v831_v12 = vadd.f32 %v4331_v34, %v5931_v16  ;;  %4621 = vmatprep.mubr.bf16.mxu1 %v5817_v52  ;;  %4669 = vmatprep.mubr.bf16.mxu0 %v5819_v43 }
 0x11e   : > { %v822_v30 = vpop.f32.mrf.mxu1  ;;  %v1037_v33 = vpop.f32.mrf.mxu0 }
 0x11f   : > { %v6017_v54 = vadd.f32 %v4379_v49, %v831_v12  ;;  %v823_v13 = vadd.f32 %v822_v30, %v5947_v27 }
 0x120   : > { %v4332_v24 = vpop.f32.mrf.mxu1  ;;  %v4380_v28 = vpop.f32.mrf.mxu0 }
 0x121   : > { %v6020_v21 = vadd.f32 %v1037_v33, %v823_v13  ;;  %v834_v41 = vadd.f32 %v4332_v24, %v5951_v6 }
 0x122   : > { %v825_v20 = vpop.f32.mrf.mxu1  ;;  %v1040_v48 = vpop.f32.mrf.mxu0 }
 0x123   : > { %v6023_v36 = vadd.f32 %v4380_v28, %v834_v41  ;;  %v826_v52 = vadd.f32 %v825_v20, %v5957_v40  ;;  %v6563_v20 = vld [vmem:[#allocation11_spill] sm:$0xff] }
 0x124   : > { %v4335_v16 = vpop.f32.mrf.mxu1  ;;  %v4383_v47 = vpop.f32.mrf.mxu0  ;;  %4622 = vmatmul.mubr.bf16.gmra.mxu1 %v5819_v43  ;;  %4670 = vmatmul.mubr.bf16.gmra.mxu0 %v5845_v56 }
 0x125   : > { %v6028_v18 = vadd.f32 %v1040_v48, %v826_v52  ;;  %v847_v27 = vadd.f32 %v4335_v16, %v5961_v11  ;;  %4625 = vmatprep.mubr.bf16.mxu1 %v5845_v56  ;;  %4673 = vmatprep.mubr.bf16.mxu0 %v5849_v26  ;;  %v2833_v48 = vrot.slane %v6563_v20, 5 }
 0x126   : > { %v838_v6 = vpop.f32.mrf.mxu1  ;;  %v1053_v0 = vpop.f32.mrf.mxu0 }
 0x127   : > { %v6033_v8 = vadd.f32 %v4383_v47, %v847_v27  ;;  %v839_v40 = vadd.f32 %v838_v6, %v5968_v60 }
 0x128   : > { %v4336_v34 = vpop.f32.mrf.mxu1  ;;  %v4384_v49 = vpop.f32.mrf.mxu0 }
 0x129   : > { %v6036_v12 = vadd.f32 %v1053_v0, %v839_v40  ;;  %v850_v43 = vadd.f32 %v4336_v34, %v5972_v42  ;;  %v6564_v0 = vld [vmem:[#allocation10_spill] sm:$0xff]  ;;  %v2835_v40 = vrot.slane %v2833_v48, 4  ;;  %v2836_v34 = vrot.slane %v5650_v22, 5 }
 0x12a   : > { %v841_v30 = vpop.f32.mrf.mxu1  ;;  %v1056_v33 = vpop.f32.mrf.mxu0 }
 0x12b   : > { %v6039_v13 = vadd.f32 %v4384_v49, %v850_v43  ;;  %v842_v56 = vadd.f32 %v841_v30, %v5976_v25 }
 0x12c   : > { %v4339_v11 = vpop.f32.mrf.mxu1  ;;  %v4387_v24 = vpop.f32.mrf.mxu0  ;;  %4626 = vmatmul.mubr.bf16.gmra.mxu1 %v5849_v26  ;;  %4674 = vmatmul.mubr.bf16.gmra.mxu0 %v5879_v46 }
 0x12d   : > { %v6044_v28 = vadd.f32 %v1056_v33, %v842_v56  ;;  %v863_v60 = vadd.f32 %v4339_v11, %v5857_v31  ;;  %4629 = vmatprep.mubr.bf16.mxu1 %v5879_v46  ;;  %4677 = vmatprep.mubr.bf16.mxu0 %v5889_v9  ;;  %v3857_v46 = vrot.slane %v6564_v0, 9 }
 0x12e   : > { %v854_v42 = vpop.f32.mrf.mxu1  ;;  %v1069_v41 = vpop.f32.mrf.mxu0 }
 0x12f   : > { %v6050_v52 = vadd.f32 %v4387_v24, %v863_v60  ;;  %v855_v25 = vadd.f32 %v854_v42, %v5873_v5  ;;  %v2834_v11 = vsel %vm5284_vm5, %v3857_v46, %v2833_v48 }
 0x130   : > { %v4340_v16 = vpop.f32.mrf.mxu1  ;;  %v4388_v26 = vpop.f32.mrf.mxu0 }
 0x131   : > { %v6053_v47 = vadd.f32 %v1069_v41, %v855_v25  ;;  %v866_v27 = vadd.f32 %v4340_v16, %v5886_v62 }
 0x132   : > { %v857_v6 = vpop.f32.mrf.mxu1  ;;  %v1072_v31 = vpop.f32.mrf.mxu0 }
 0x133   : > { %v6058_v49 = vadd.f32 %v4388_v26, %v866_v27  ;;  %v858_v43 = vadd.f32 %v857_v6, %v5893_v44  ;;  %v2837_v44 = vsel %vm5284_vm5, %v2835_v40, %v2836_v34 }
 0x134   : > { %v4343_v30 = vpop.f32.mrf.mxu1  ;;  %v4391_v33 = vpop.f32.mrf.mxu0  ;;  %4630 = vmatmul.mubr.bf16.gmra.mxu1 %v5889_v9  ;;  %4678 = vmatmul.mubr.bf16.gmra.mxu0 %v5921_v45 }
 0x135   : > { %v6063_v5 = vadd.f32 %v1072_v31, %v858_v43  ;;  %v879_v62 = vadd.f32 %v4343_v30, %v5899_v55  ;;  %4633 = vmatprep.mubr.bf16.mxu1 %v5921_v45  ;;  %4681 = vmatprep.mubr.bf16.mxu0 %v5923_v3  ;;  %v3858_v45 = vcombine.low %v2834_v11, %v2837_v44 }
 0x136   : > { %v870_v56 = vpop.f32.mrf.mxu1  ;;  %v1085_v22 = vpop.f32.mrf.mxu0 }
 0x137   : > { %v6072_v24 = vadd.f32 %v4391_v33, %v879_v62  ;;  %v871_v9 = vadd.f32 %v870_v56, %v5915_v38 }
 0x138   : > { %v4344_v60 = vpop.f32.mrf.mxu1  ;;  %v4392_v42 = vpop.f32.mrf.mxu0 }
 0x139   : > { %v6075_v41 = vadd.f32 %v1085_v22, %v871_v9  ;;  %v882_v55 = vadd.f32 %v4344_v60, %v5919_v63 }
 0x13a   : > { %v873_v20 = vpop.f32.mrf.mxu1  ;;  %v1088_v25 = vpop.f32.mrf.mxu0 }
 0x13b   : > { %v6078_v16 = vadd.f32 %v4392_v42, %v882_v55  ;;  %v874_v48 = vadd.f32 %v873_v20, %v5929_v19 }
 0x13c   : > { %v4347_v26 = vpop.f32.mrf.mxu1  ;;  %v4395_v58 = vpop.f32.mrf.mxu0  ;;  %4634 = vmatmul.mubr.bf16.gmra.mxu1 %v5923_v3  ;;  %4682 = vmatmul.mubr.bf16.gmra.mxu0 %v5955_v32 }
 0x13d   : > { %v6083_v38 = vadd.f32 %v1088_v25, %v874_v48  ;;  %v895_v27 = vadd.f32 %v4347_v26, %v5933_v50  ;;  %4637 = vmatprep.mubr.bf16.mxu1 %v5955_v32  ;;  %4685 = vmatprep.mubr.bf16.mxu0 %v3858_v45 }
 0x13e   : > { %v886_v63 = vpop.f32.mrf.mxu1  ;;  %v1101_v6 = vpop.f32.mrf.mxu0 }
 0x13f   : > { %v6087_v31 = vadd.f32 %v4395_v58, %v895_v27  ;;  %v887_v0 = vadd.f32 %v886_v63, %v5949_v37 }
 0x140   : > { %v4348_v19 = vpop.f32.mrf.mxu1  ;;  %v4396_v46 = vpop.f32.mrf.mxu0 }
 0x141   : > { %v6090_v40 = vadd.f32 %v1101_v6, %v887_v0  ;;  %v898_v3 = vadd.f32 %v4348_v19, %v5953_v4 }
 0x142   : > { %v889_v34 = vpop.f32.mrf.mxu1  ;;  %v1104_v43 = vpop.f32.mrf.mxu0 }
 0x143   : > { %v6093_v30 = vadd.f32 %v4396_v46, %v898_v3  ;;  %v890_v50 = vadd.f32 %v889_v34, %v5959_v61 }
 0x144   : > { %v4351_v32 = vpop.f32.mrf.mxu1  ;;  %v4399_v33 = vpop.f32.mrf.mxu0  ;;  %4638 = vmatmul.mubr.bf16.gmra.mxu1 %v3858_v45  ;;  %4686 = vmatmul.mubr.bf16.gmra.mxu0 %v3868_v53 }
 0x145   : > { %v6099_v37 = vadd.f32 %v1104_v43, %v890_v50  ;;  %v911_v62 = vadd.f32 %v4351_v32, %v5963_v57 }
 0x146   : > { %v902_v56 = vpop.f32.mrf.mxu1  ;;  %v1117_v22 = vpop.f32.mrf.mxu0 }
 0x147   : > { %v6102_v4 = vadd.f32 %v4399_v33, %v911_v62  ;;  %v903_v11 = vadd.f32 %v902_v56, %v5970_v39 }
 0x148   : > { %v4352_v44 = vpop.f32.mrf.mxu1  ;;  %v4400_v9 = vpop.f32.mrf.mxu0 }
 0x149   : > { %v6105_v61 = vadd.f32 %v1117_v22, %v903_v11  ;;  %v914_v60 = vadd.f32 %v4352_v44, %v5974_v10 }
 0x14a   : > { %v905_v42 = vpop.f32.mrf.mxu1  ;;  %v1120_v55 = vpop.f32.mrf.mxu0 }
 0x14b   : > { %v6108_v1 = vadd.f32 %v4400_v9, %v914_v60  ;;  %v906_v17 = vadd.f32 %v905_v42, %v5978_v59 }
 0x14c   : > { %v4419_v53 = vpop.f32.mrf.mxu1  ;;  %v4467_v57 = vpop.f32.mrf.mxu0 }
 0x14d   : > { %v6111_v45 = vadd.f32 %v1120_v55, %v906_v17  ;;  %v1826_v20 = vadd.f32 %v4419_v53, %v5985_v15 }
 0x14e   : > { %v1697_v25 = vpop.f32.mrf.mxu1  ;;  %v1966_v39 = vpop.f32.mrf.mxu0 }
 0x14f   : > { %v6114_v48 = vadd.f32 %v4467_v57, %v1826_v20  ;;  %v1824_v26 = vadd.f32 %v1697_v25, %v5988_v7 }
 0x150   : > { %v4420_v58 = vpop.f32.mrf.mxu1  ;;  %v4468_v10 = vpop.f32.mrf.mxu0 }
 0x151   : > { %v6117_v27 = vadd.f32 %v1966_v39, %v1824_v26  ;;  %v1827_v63 = vadd.f32 %v4420_v58, %v5991_v51 }
 0x152   : > { %v1700_v6 = vpop.f32.mrf.mxu1  ;;  %v1969_v59 = vpop.f32.mrf.mxu0 }
 0x153   : > { %v6120_v0 = vadd.f32 %v4468_v10, %v1827_v63  ;;  %v1825_v19 = vadd.f32 %v1700_v6, %v5996_v2 }
 0x154   : > { %v4423_v46 = vpop.f32.mrf.mxu1  ;;  %v4471_v15 = vpop.f32.mrf.mxu0 }
 0x155   : > { %v6123_v3 = vadd.f32 %v1969_v59, %v1825_v19  ;;  %v1830_v34 = vadd.f32 %v4423_v46, %v6001_v14 }
 0x156   : > { %v1713_v43 = vpop.f32.mrf.mxu1  ;;  %v1982_v7 = vpop.f32.mrf.mxu0 }
 0x157   : > { %v6126_v50 = vadd.f32 %v4471_v15, %v1830_v34  ;;  %v1828_v32 = vadd.f32 %v1713_v43, %v6004_v29 }
 0x158   : > { %v4424_v33 = vpop.f32.mrf.mxu1  ;;  %v4472_v51 = vpop.f32.mrf.mxu0 }
 0x159   : > { %v6129_v62 = vadd.f32 %v1982_v7, %v1828_v32  ;;  %v1831_v56 = vadd.f32 %v4424_v33, %v6007_v35 }
 0x15a   : > { %v1716_v22 = vpop.f32.mrf.mxu1  ;;  %v1985_v2 = vpop.f32.mrf.mxu0 }
 0x15b   : > { %v6132_v11 = vadd.f32 %v4472_v51, %v1831_v56  ;;  %v1829_v44 = vadd.f32 %v1716_v22, %v6012_v23 }
 0x15c   : > { %v4427_v9 = vpop.f32.mrf.mxu1  ;;  %v4475_v14 = vpop.f32.mrf.mxu0 }
 0x15d   : > { %v6135_v60 = vadd.f32 %v1985_v2, %v1829_v44  ;;  %v1834_v42 = vadd.f32 %v4427_v9, %v6017_v54 }
 0x15e   : > { %v1729_v55 = vpop.f32.mrf.mxu1  ;;  %v1998_v29 = vpop.f32.mrf.mxu0 }
 0x15f   : > { %v6138_v17 = vadd.f32 %v4475_v14, %v1834_v42  ;;  %v1832_v53 = vadd.f32 %v1729_v55, %v6020_v21 }
 0x160   : > { %v4428_v57 = vpop.f32.mrf.mxu1  ;;  %v4476_v35 = vpop.f32.mrf.mxu0 }
 0x161   : > { %v6141_v20 = vadd.f32 %v1998_v29, %v1832_v53  ;;  %v1835_v25 = vadd.f32 %v4428_v57, %v6023_v36 }
 0x162   : > { %v1732_v39 = vpop.f32.mrf.mxu1  ;;  %v2001_v23 = vpop.f32.mrf.mxu0 }
 0x163   : > { %v6144_v26 = vadd.f32 %v4476_v35, %v1835_v25  ;;  %v1833_v58 = vadd.f32 %v1732_v39, %v6028_v18 }
 0x164   : > { %v4431_v10 = vpop.f32.mrf.mxu1  ;;  %v4479_v54 = vpop.f32.mrf.mxu0 }
 0x165   : > { %v6147_v63 = vadd.f32 %v2001_v23, %v1833_v58  ;;  %v1838_v6 = vadd.f32 %v4431_v10, %v6033_v8 }
 0x166   : > { %v1745_v59 = vpop.f32.mrf.mxu1  ;;  %v2014_v21 = vpop.f32.mrf.mxu0 }
 0x167   : > { %v6150_v19 = vadd.f32 %v4479_v54, %v1838_v6  ;;  %v1836_v46 = vadd.f32 %v1745_v59, %v6036_v12 }
 0x168   : > { %v4432_v15 = vpop.f32.mrf.mxu1  ;;  %v4480_v36 = vpop.f32.mrf.mxu0 }
 0x169   : > { %v6153_v34 = vadd.f32 %v2014_v21, %v1836_v46  ;;  %v1839_v43 = vadd.f32 %v4432_v15, %v6039_v13 }
 0x16a   : > { %v1748_v7 = vpop.f32.mrf.mxu1  ;;  %v2017_v18 = vpop.f32.mrf.mxu0 }
 0x16b   : > { %v6156_v32 = vadd.f32 %v4480_v36, %v1839_v43  ;;  %v1837_v33 = vadd.f32 %v1748_v7, %v6044_v28 }
 0x16c   : > { %v4435_v51 = vpop.f32.mrf.mxu1  ;;  %v4483_v8 = vpop.f32.mrf.mxu0 }
 0x16d   : > { %v6159_v56 = vadd.f32 %v2017_v18, %v1837_v33  ;;  %v1842_v22 = vadd.f32 %v4435_v51, %v6050_v52 }
 0x16e   : > { %v1761_v2 = vpop.f32.mrf.mxu1  ;;  %v2030_v12 = vpop.f32.mrf.mxu0 }
 0x16f   : > { %v6162_v44 = vadd.f32 %v4483_v8, %v1842_v22  ;;  %v1840_v9 = vadd.f32 %v1761_v2, %v6053_v47 }
 0x170   : > { %v4436_v14 = vpop.f32.mrf.mxu1  ;;  %v4484_v13 = vpop.f32.mrf.mxu0 }
 0x171   : > { %v6165_v42 = vadd.f32 %v2030_v12, %v1840_v9  ;;  %v1843_v55 = vadd.f32 %v4436_v14, %v6058_v49 }
 0x172   : > { %v1764_v29 = vpop.f32.mrf.mxu1  ;;  %v2033_v28 = vpop.f32.mrf.mxu0 }
 0x173   : > { %v6168_v53 = vadd.f32 %v4484_v13, %v1843_v55  ;;  %v1841_v57 = vadd.f32 %v1764_v29, %v6063_v5 }
 0x174   : > { %v4439_v35 = vpop.f32.mrf.mxu1  ;;  %v4487_v52 = vpop.f32.mrf.mxu0 }
 0x175   : > { %v6171_v25 = vadd.f32 %v2033_v28, %v1841_v57  ;;  %v1846_v39 = vadd.f32 %v4439_v35, %v6072_v24 }
 0x176   : > { %v1777_v23 = vpop.f32.mrf.mxu1  ;;  %v2046_v47 = vpop.f32.mrf.mxu0 }
 0x177   : > { %v6174_v58 = vadd.f32 %v4487_v52, %v1846_v39  ;;  %v1844_v10 = vadd.f32 %v1777_v23, %v6075_v41 }
 0x178   : > { %v4440_v54 = vpop.f32.mrf.mxu1  ;;  %v4488_v49 = vpop.f32.mrf.mxu0 }
 0x179   : > { %v6177_v6 = vadd.f32 %v2046_v47, %v1844_v10  ;;  %v1847_v59 = vadd.f32 %v4440_v54, %v6078_v16 }
 0x17a   : > { %v1780_v21 = vpop.f32.mrf.mxu1  ;;  %v2049_v5 = vpop.f32.mrf.mxu0 }
 0x17b   : > { %v6180_v46 = vadd.f32 %v4488_v49, %v1847_v59  ;;  %v1845_v15 = vadd.f32 %v1780_v21, %v6083_v38 }
 0x17c   : > { %v4443_v36 = vpop.f32.mrf.mxu1  ;;  %v4491_v24 = vpop.f32.mrf.mxu0 }
 0x17d   : > { %v6183_v43 = vadd.f32 %v2049_v5, %v1845_v15  ;;  %v1850_v7 = vadd.f32 %v4443_v36, %v6087_v31 }
 0x17e   : > { %v1793_v18 = vpop.f32.mrf.mxu1  ;;  %v2062_v41 = vpop.f32.mrf.mxu0 }
 0x17f   : > { %v6186_v33 = vadd.f32 %v4491_v24, %v1850_v7  ;;  %v1848_v51 = vadd.f32 %v1793_v18, %v6090_v40 }
 0x180   : > { %v4444_v8 = vpop.f32.mrf.mxu1  ;;  %v4492_v16 = vpop.f32.mrf.mxu0 }
 0x181   : > { %v6189_v22 = vadd.f32 %v2062_v41, %v1848_v51  ;;  %v1851_v2 = vadd.f32 %v4444_v8, %v6093_v30 }
 0x182   : > { %v1796_v12 = vpop.f32.mrf.mxu1  ;;  %v2065_v38 = vpop.f32.mrf.mxu0 }
 0x183   : > { %v6192_v9 = vadd.f32 %v4492_v16, %v1851_v2  ;;  %v1849_v14 = vadd.f32 %v1796_v12, %v6099_v37 }
 0x184   : > { %v4447_v13 = vpop.f32.mrf.mxu1  ;;  %v4495_v31 = vpop.f32.mrf.mxu0 }
 0x185   : > { %v6195_v55 = vadd.f32 %v2065_v38, %v1849_v14  ;;  %v1854_v29 = vadd.f32 %v4447_v13, %v6102_v4 }
 0x186   : > { %v1809_v28 = vpop.f32.mrf.mxu1  ;;  %v2078_v40 = vpop.f32.mrf.mxu0 }
 0x187   : > { %6565 = vst [vmem:[#allocation3_spill] sm:$0xff] %v6195_v55  ;;  %v6198_v57 = vadd.f32 %v4495_v31, %v1854_v29  ;;  %v1852_v35 = vadd.f32 %v1809_v28, %v6105_v61 }
 0x188   : > { %v4448_v52 = vpop.f32.mrf.mxu1  ;;  %v4496_v30 = vpop.f32.mrf.mxu0 }
 0x189   : > { %v6201_v39 = vadd.f32 %v2078_v40, %v1852_v35  ;;  %v1855_v23 = vadd.f32 %v4448_v52, %v6108_v1 }
 0x18a   : > { %v1812_v47 = vpop.f32.mrf.mxu1  ;;  %v2081_v37 = vpop.f32.mrf.mxu0 }
 0x18b   : > { %v6204_v10 = vadd.f32 %v4496_v30, %v1855_v23  ;;  %v1853_v54 = vadd.f32 %v1812_v47, %v6111_v45 }
 0x18c   : > { %v4515_v49 = vpop.f32.mrf.mxu1  ;;  %v4563_v4 = vpop.f32.mrf.mxu0 }
 0x18d   : > { %6566 = vst [vmem:[#allocation2_spill] sm:$0xff] %v6204_v10  ;;  %v6207_v59 = vadd.f32 %v2081_v37, %v1853_v54  ;;  %v2364_v21 = vadd.f32 %v4515_v49, %v6114_v48 }
 0x18e   : > { %v2235_v5 = vpop.f32.mrf.mxu1  ;;  %v2671_v61 = vpop.f32.mrf.mxu0 }
 0x18f   : > { %6567 = vst [vmem:[#allocation6_spill] sm:$0xff] %v6207_v59  ;;  %v6210_v15 = vadd.f32 %v4563_v4, %v2364_v21  ;;  %v2362_v36 = vadd.f32 %v2235_v5, %v6117_v27 }
 0x190   : > { %v6213_v24 = vpop.f32.mrf.mxu1  ;;  %v6215_v1 = vpop.f32.mrf.mxu0 }
 0x191   : > { %v6217_v7 = vadd.f32 %v2671_v61, %v2362_v36 }
 0x192   : > { %v6219_v18 = vpop.f32.mrf.mxu1  ;;  %v6221_v45 = vpop.f32.mrf.mxu0 }
 0x194   : > { %v4519_v41 = vpop.f32.mrf.mxu1  ;;  %v4567_v51 = vpop.f32.mrf.mxu0 }
 0x195   : > { %v2368_v48 = vadd.f32 %v4519_v41, %v6126_v50 }
 0x196   : > { %v2251_v8 = vpop.f32.mrf.mxu1  ;;  %v2687_v16 = vpop.f32.mrf.mxu0 }
 0x197   : > { %v6224_v2 = vadd.f32 %v4567_v51, %v2368_v48  ;;  %v2366_v27 = vadd.f32 %v2251_v8, %v6129_v62 }
 0x198   : > { %v6227_v12 = vpop.f32.mrf.mxu1  ;;  %v6229_v38 = vpop.f32.mrf.mxu0 }
 0x199   : > { %v6231_v14 = vadd.f32 %v2687_v16, %v2366_v27 }
 0x19a   : > { %v6233_v13 = vpop.f32.mrf.mxu1  ;;  %v6235_v31 = vpop.f32.mrf.mxu0 }
 0x19c   : > { %v4523_v29 = vpop.f32.mrf.mxu1  ;;  %v4571_v28 = vpop.f32.mrf.mxu0 }
 0x19d   : > { %v2372_v50 = vadd.f32 %v4523_v29, %v6138_v17 }
 0x19e   : > { %v2267_v40 = vpop.f32.mrf.mxu1  ;;  %v2703_v35 = vpop.f32.mrf.mxu0 }
 0x19f   : > { %v6238_v52 = vadd.f32 %v4571_v28, %v2372_v50  ;;  %v2370_v62 = vadd.f32 %v2267_v40, %v6141_v20 }
 0x1a0   : > { %v6241_v30 = vpop.f32.mrf.mxu1  ;;  %v6243_v23 = vpop.f32.mrf.mxu0 }
 0x1a1   : > { %v6245_v47 = vadd.f32 %v2703_v35, %v2370_v62 }
 0x1a2   : > { %v6247_v37 = vpop.f32.mrf.mxu1  ;;  %v6249_v54 = vpop.f32.mrf.mxu0 }
 0x1a4   : > { %v4527_v49 = vpop.f32.mrf.mxu1  ;;  %v4575_v4 = vpop.f32.mrf.mxu0 }
 0x1a5   : > { %v2376_v17 = vadd.f32 %v4527_v49, %v6150_v19 }
 0x1a6   : > { %v2283_v21 = vpop.f32.mrf.mxu1  ;;  %v2719_v5 = vpop.f32.mrf.mxu0 }
 0x1a7   : > { %v6252_v61 = vadd.f32 %v4575_v4, %v2376_v17  ;;  %v2374_v20 = vadd.f32 %v2283_v21, %v6153_v34 }
 0x1a8   : > { %v6255_v36 = vpop.f32.mrf.mxu1  ;;  %v6257_v41 = vpop.f32.mrf.mxu0 }
 0x1a9   : > { %v6259_v51 = vadd.f32 %v2719_v5, %v2374_v20 }
 0x1aa   : > { %v6261_v48 = vpop.f32.mrf.mxu1  ;;  %v6263_v8 = vpop.f32.mrf.mxu0 }
 0x1ac   : > { %v4531_v16 = vpop.f32.mrf.mxu1  ;;  %v4579_v27 = vpop.f32.mrf.mxu0 }
 0x1ad   : > { %v2380_v19 = vadd.f32 %v4531_v16, %v6162_v44 }
 0x1ae   : > { %v2299_v29 = vpop.f32.mrf.mxu1  ;;  %v2735_v28 = vpop.f32.mrf.mxu0 }
 0x1af   : > { %v6266_v50 = vadd.f32 %v4579_v27, %v2380_v19  ;;  %v2378_v34 = vadd.f32 %v2299_v29, %v6165_v42 }
 0x1b0   : > { %v6269_v40 = vpop.f32.mrf.mxu1  ;;  %v6271_v35 = vpop.f32.mrf.mxu0 }
 0x1b1   : > { %v6273_v62 = vadd.f32 %v2735_v28, %v2378_v34 }
 0x1b2   : > { %v6275_v49 = vpop.f32.mrf.mxu1  ;;  %v6277_v4 = vpop.f32.mrf.mxu0 }
 0x1b3   : > { %6568 = vst [vmem:[#allocation5_spill] sm:$0xff] %v6273_v62 }
 0x1b4   : > { %v4535_v17 = vpop.f32.mrf.mxu1  ;;  %v4583_v21 = vpop.f32.mrf.mxu0 }
 0x1b5   : > { %v2384_v44 = vadd.f32 %v4535_v17, %v6174_v58 }
 0x1b6   : > { %v2315_v5 = vpop.f32.mrf.mxu1  ;;  %v2751_v20 = vpop.f32.mrf.mxu0 }
 0x1b7   : > { %v6280_v16 = vadd.f32 %v4583_v21, %v2384_v44  ;;  %v2382_v42 = vadd.f32 %v2315_v5, %v6177_v6 }
 0x1b8   : > { %v6283_v27 = vpop.f32.mrf.mxu1  ;;  %v6285_v19 = vpop.f32.mrf.mxu0 }
 0x1b9   : > { %6569 = vst [vmem:[#allocation4_spill] sm:$0xff] %v6280_v16  ;;  %v6287_v29 = vadd.f32 %v2751_v20, %v2382_v42 }
 0x1ba   : > { %v6289_v28 = vpop.f32.mrf.mxu1  ;;  %v6291_v34 = vpop.f32.mrf.mxu0 }
 0x1bb   : > { %6570 = vst [vmem:[#allocation9_spill] sm:$0xff] %v6287_v29  ;;  %6571 = vst [vmem:[#allocation8_spill] sm:$0xff] %v6291_v34 }
 0x1bc   : > { %v4539_v59 = vpop.f32.mrf.mxu1  ;;  %v4587_v10 = vpop.f32.mrf.mxu0 }
 0x1bd   : > { %v2388_v58 = vadd.f32 %v4539_v59, %v6186_v33 }
 0x1be   : > { %v2331_v17 = vpop.f32.mrf.mxu1  ;;  %v2767_v55 = vpop.f32.mrf.mxu0 }
 0x1bf   : > { %v6294_v21 = vadd.f32 %v4587_v10, %v2388_v58  ;;  %v2386_v6 = vadd.f32 %v2331_v17, %v6189_v22 }
 0x1c0   : > { %v6297_v44 = vpop.f32.mrf.mxu1  ;;  %v6299_v5 = vpop.f32.mrf.mxu0 }
 0x1c1   : > { %6572 = vst [vmem:[#allocation7_spill] sm:$0xff] %v6294_v21  ;;  %v6301_v20 = vadd.f32 %v2767_v55, %v2386_v6  ;;  %v2365_v21 = vadd.f32 %v6213_v24, %v6120_v0  ;;  %v2373_v24 = vadd.f32 %v6241_v30, %v6144_v26 }
 0x1c2   : > { %v6303_v42 = vpop.f32.mrf.mxu1  ;;  %v6305_v29 = vpop.f32.mrf.mxu0 }
 0x1c3   : > { %6573 = vst [vmem:[#allocation11_spill] sm:$0xff] %v6301_v20 }
 0x1c4   : > { %v4543_v16 = vpop.f32.mrf.mxu1  ;;  %v4591_v62 = vpop.f32.mrf.mxu0 }
 0x1c5   : > { %v2392_v33 = vadd.f32 %v4543_v16, %v6198_v57  ;;  %v2363_v57 = vadd.f32 %v6219_v18, %v6123_v3  ;;  %v2369_v3 = vadd.f32 %v6227_v12, %v6132_v11  ;;  %v6343_v18 = vld [vmem:[%s6523_s3] ss:$0 sm:$0xff] }
 0x1c6   : > { %v2347_v59 = vpop.f32.mrf.mxu1  ;;  %v2783_v34 = vpop.f32.mrf.mxu0 }
 0x1c7   : > { %v6308_v10 = vadd.f32 %v4591_v62, %v2392_v33  ;;  %v2390_v22 = vadd.f32 %v2347_v59, %v6201_v39  ;;  %v6329_v33 = vld [vmem:[%s6522_s2] ss:$0 sm:$0xff]  ;;  %v2799_v0 = vadd.f32 %v6221_v45, %v2363_v57 }
 0x1c8   : > { %v6311_v58 = vpop.f32.mrf.mxu1  ;;  %v6313_v17 = vpop.f32.mrf.mxu0 }
 0x1c9   : > { %v6315_v55 = vadd.f32 %v2783_v34, %v2390_v22  ;;  %v2801_v22 = vadd.f32 %v6215_v1, %v2365_v21 }
 0x1ca   : > { %v6317_v6 = vpop.f32.mrf.mxu1  ;;  %v6319_v20 = vpop.f32.mrf.mxu0 }
 0x1cb   : > { %6574 = vst [vmem:[#allocation10_spill] sm:$0xff] %v6315_v55  ;;  %6575 = vst [vmem:[#allocation12_spill] sm:$0xff] %v6319_v20 }
 0x1cc   : > { %v4611_v62 = vpop.f32.mrf.mxu1  ;;  %v4659_v16 = vpop.f32.mrf.mxu0 }
 0x1cd   : > { %v3053_v39 = vadd.f32 %v4611_v62, %v6210_v15  ;;  %v2367_v15 = vadd.f32 %v6233_v13, %v6135_v60  ;;  %v2377_v60 = vadd.f32 %v6255_v36, %v6156_v32 }
 0x1ce   : > { %v2924_v34 = vpop.f32.mrf.mxu1  ;;  %v3177_v59 = vpop.f32.mrf.mxu0 }
 0x1cf   : > { %v3306_v20 = vadd.f32 %v4659_v16, %v3053_v39  ;;  %v3051_v55 = vadd.f32 %v2924_v34, %v6217_v7  ;;  %v2371_v7 = vadd.f32 %v6247_v37, %v6147_v63  ;;  %v2805_v39 = vadd.f32 %v6229_v38, %v2369_v3 }
 0x1d0   : > { %v4612_v1 = vpop.f32.mrf.mxu1  ;;  %v4660_v21 = vpop.f32.mrf.mxu0  ;;  %v2803_v34 = vadd.f32 %v6235_v31, %v2367_v15  ;;  %v6364_v3 = vadd.f32 %v6257_v41, %v2377_v60 }
 0x1d1   : > { %v3345_v45 = vmul.f32 %v6329_v33, %v3306_v20  ;;  %v3304_v57 = vadd.f32 %v3177_v59, %v3051_v55  ;;  %v3054_v11 = vadd.f32 %v4612_v1, %v2801_v22  ;;  %v6355_v20 = vadd.f32 %v6243_v23, %v2373_v24 }
 0x1d2   : > { %v2927_v12 = vpop.f32.mrf.mxu1  ;;  %v3180_v13 = vpop.f32.mrf.mxu0  ;;  %v6358_v32 = vadd.f32 %v6249_v54, %v2371_v7  ;;  %v2375_v23 = vadd.f32 %v6261_v48, %v6159_v56  ;;  %v2381_v54 = vadd.f32 %v6269_v40, %v6168_v53  ;;  %v2379_v24 = vadd.f32 %v6275_v49, %v6171_v25 }
 0x1d3   : > { %v3384_v26 = vadd.f32 %v6343_v18, %v3345_v45  ;;  %v3343_v30 = vmul.f32 %v6329_v33, %v3304_v57  ;;  %v3307_v62 = vadd.f32 %v4660_v21, %v3054_v11  ;;  %v3052_v16 = vadd.f32 %v2927_v12, %v2799_v0 }
 0x1d4   : > { %v4615_v63 = vpop.f32.mrf.mxu1  ;;  %v4663_v37 = vpop.f32.mrf.mxu0 }
 0x1d5   : > { %v3448_v36 = vmul.f32 0.01, %v3384_v26  ;;  %v3346_v55 = vmul.f32 %v6329_v33, %v3307_v62  ;;  %vm3416_vm6 = vcmp.ge.f32.partialorder %v3384_v26, 0.0  ;;  %v3382_v59 = vadd.f32 %v6343_v18, %v3343_v30 }
 0x1d6   : > { %v3305_v22 = vadd.f32 %v3180_v13, %v3052_v16  ;;  %v3057_v38 = vadd.f32 %v4615_v63, %v6224_v2  ;;  %v2940_v0 = vpop.f32.mrf.mxu1  ;;  %v3193_v31 = vpop.f32.mrf.mxu0 }
 0x1d7   : > { %v3385_v15 = vadd.f32 %v6343_v18, %v3346_v55  ;;  %v3055_v21 = vadd.f32 %v2940_v0, %v6231_v14  ;;  %v3480_v45 = vsel %vm3416_vm6, %v3384_v26, %v3448_v36  ;;  %v3446_v57 = vmul.f32 0.01, %v3382_v59 }
 0x1d8   : > { %v3344_v1 = vmul.f32 %v6329_v33, %v3305_v22  ;;  %v3310_v2 = vadd.f32 %v4663_v37, %v3057_v38  ;;  %v4616_v7 = vpop.f32.mrf.mxu1  ;;  %v4664_v41 = vpop.f32.mrf.mxu0  ;;  %vm3414_vm8 = vcmp.ge.f32.partialorder %v3382_v59, 0.0  ;;  %v6389_v55 = vadd.f32 %v6263_v8, %v2375_v23 }
 0x1d9   : > { %vm3417_vm7 = vcmp.ge.f32.partialorder %v3385_v15, 0.0  ;;  %v3449_v56 = vmul.f32 0.01, %v3385_v15  ;;  %v3058_v48 = vadd.f32 %v4616_v7, %v2805_v39  ;;  %v3308_v11 = vadd.f32 %v3193_v31, %v3055_v21 }
 0x1da   : > { %v3383_v53 = vadd.f32 %v6343_v18, %v3344_v1  ;;  %v3349_v40 = vmul.f32 %v6329_v33, %v3310_v2  ;;  %v2943_v25 = vpop.f32.mrf.mxu1  ;;  %v3196_v49 = vpop.f32.mrf.mxu0  ;;  %v3478_v22 = vsel %vm3414_vm8, %v3382_v59, %v3446_v57 }
 0x1db   : > { %v3481_v14 = vsel %vm3417_vm7, %v3385_v15, %v3449_v56  ;;  %v3311_v60 = vadd.f32 %v4664_v41, %v3058_v48  ;;  %v3056_v12 = vadd.f32 %v2943_v25, %v2803_v34  ;;  %v3347_v39 = vmul.f32 %v6329_v33, %v3308_v11 }
 0x1dc   : > { %v3954_v13 = vpack.c.bf16 %v3481_v14, %v3480_v45  ;;  %vm3415_vm9 = vcmp.ge.f32.partialorder %v3383_v53, 0.0  ;;  %v3447_v26 = vmul.f32 0.01, %v3383_v53  ;;  %v3388_v30 = vadd.f32 %v6343_v18, %v3349_v40  ;;  %v4619_v62 = vpop.f32.mrf.mxu1  ;;  %v4667_v16 = vpop.f32.mrf.mxu0 }
 0x1dd   : > { %v3350_v63 = vmul.f32 %v6329_v33, %v3311_v60  ;;  %v3309_v37 = vadd.f32 %v3196_v49, %v3056_v12  ;;  %v3061_v36 = vadd.f32 %v4619_v62, %v6238_v52  ;;  %v3386_v1 = vadd.f32 %v6343_v18, %v3347_v39 }
 0x1de   : > { %4026 = vst [vmem:[%s6382_s6 + $0x8] sm:$0xff] %v3954_v13   ;;  %v3479_v34 = vsel %vm3415_vm9, %v3383_v53, %v3447_v26  ;;  %v3452_v38 = vmul.f32 0.01, %v3388_v30  ;;  %v2956_v0 = vpop.f32.mrf.mxu1  ;;  %v3209_v31 = vpop.f32.mrf.mxu0  ;;  %v6397_v52 = vadd.f32 %v6271_v35, %v2381_v54  ;;  %vm3420_vm10 = vcmp.ge.f32.partialorder %v3388_v30, 0.0 }
 0x1df   : > { %v3949_v15 = vpack.c.bf16 %v3479_v34, %v3478_v22  ;;  %v3389_v2 = vadd.f32 %v6343_v18, %v3350_v63  ;;  %v3348_v21 = vmul.f32 %v6329_v33, %v3309_v37  ;;  %v3314_v8 = vadd.f32 %v4667_v16, %v3061_v36 }
 0x1e0   : > { %v3059_v59 = vadd.f32 %v2956_v0, %v6245_v47  ;;  %v4620_v23 = vpop.f32.mrf.mxu1  ;;  %v4668_v7 = vpop.f32.mrf.mxu0  ;;  %v6401_v41 = vadd.f32 %v6277_v4, %v2379_v24  ;;  %v3450_v45 = vmul.f32 0.01, %v3386_v1  ;;  %v3484_v47 = vsel %vm3420_vm10, %v3388_v30, %v3452_v38 }
 0x1e1   : > { %3950 = vst [vmem:[%s6382_s6] sm:$0xff] %v3949_v15   ;;  %vm3421_vm11 = vcmp.ge.f32.partialorder %v3389_v2, 0.0  ;;  %v3453_v56 = vmul.f32 0.01, %v3389_v2  ;;  %v3387_v48 = vadd.f32 %v6343_v18, %v3348_v21  ;;  %v3353_v57 = vmul.f32 %v6329_v33, %v3314_v8 }
 0x1e2   : > { %v3312_v53 = vadd.f32 %v3209_v31, %v3059_v59  ;;  %v3062_v35 = vadd.f32 %v4620_v23, %v6355_v20  ;;  %v2959_v54 = vpop.f32.mrf.mxu1  ;;  %v3212_v40 = vpop.f32.mrf.mxu0  ;;  %vm3418_vm12 = vcmp.ge.f32.partialorder %v3386_v1, 0.0  ;;  %v2385_v30 = vadd.f32 %v6283_v27, %v6180_v46 }
 0x1e3   : > { %v3485_v11 = vsel %vm3421_vm11, %v3389_v2, %v3453_v56  ;;  %v3060_v4 = vadd.f32 %v2959_v54, %v6358_v32  ;;  %vm3419_vm13 = vcmp.ge.f32.partialorder %v3387_v48, 0.0  ;;  %v3451_v25 = vmul.f32 0.01, %v3387_v48 }
 0x1e4   : > { %v3964_v24 = vpack.c.bf16 %v3485_v11, %v3484_v47  ;;  %v3392_v49 = vadd.f32 %v6343_v18, %v3353_v57  ;;  %v4623_v14 = vpop.f32.mrf.mxu1  ;;  %v4671_v60 = vpop.f32.mrf.mxu0  ;;  %v3351_v12 = vmul.f32 %v6329_v33, %v3312_v53  ;;  %v3315_v13 = vadd.f32 %v4668_v7, %v3062_v35 }
 0x1e5   : > { %v3313_v20 = vadd.f32 %v3212_v40, %v3060_v4  ;;  %v3065_v26 = vadd.f32 %v4623_v14, %v6252_v61  ;;  %v3482_v62 = vsel %vm3418_vm12, %v3386_v1, %v3450_v45  ;;  %v3483_v32 = vsel %vm3419_vm13, %v3387_v48, %v3451_v25 }
 0x1e6   : > { %4028 = vst [vmem:[%s6382_s6 + $0x18] sm:$0xff] %v3964_v24   ;;  %v3456_v16 = vmul.f32 0.01, %v3392_v49  ;;  %v2972_v39 = vpop.f32.mrf.mxu1  ;;  %v3225_v63 = vpop.f32.mrf.mxu0  ;;  %v3959_v37 = vpack.c.bf16 %v3483_v32, %v3482_v62  ;;  %v3390_v36 = vadd.f32 %v6343_v18, %v3351_v12  ;;  %v3354_v22 = vmul.f32 %v6329_v33, %v3315_v13  ;;  %v6576_v12 = vld [vmem:[#allocation8_spill] sm:$0xff] }
 0x1e7   : > { %v3352_v34 = vmul.f32 %v6329_v33, %v3313_v20  ;;  %v2383_v61 = vadd.f32 %v6289_v28, %v6183_v43  ;;  %vm3424_vm14 = vcmp.ge.f32.partialorder %v3392_v49, 0.0  ;;  %v3318_v38 = vadd.f32 %v4671_v60, %v3065_v26 }
 0x1e8   : > { %v3063_v46 = vadd.f32 %v2972_v39, %v6259_v51  ;;  %v4624_v27 = vpop.f32.mrf.mxu1  ;;  %v4672_v0 = vpop.f32.mrf.mxu0  ;;  %v2389_v31 = vadd.f32 %v6297_v44, %v6192_v9  ;;  %4027 = vst [vmem:[%s6382_s6 + $0x10] sm:$0xff] %v3959_v37   ;;  %v3454_v15 = vmul.f32 0.01, %v3390_v36  ;;  %v3393_v1 = vadd.f32 %v6343_v18, %v3354_v22 }
 0x1e9   : > { %v3391_v2 = vadd.f32 %v6343_v18, %v3352_v34  ;;  %vm3422_vm15 = vcmp.ge.f32.partialorder %v3390_v36, 0.0  ;;  %v3357_v21 = vmul.f32 %v6329_v33, %v3318_v38  ;;  %v3066_v43 = vadd.f32 %v4624_v27, %v6364_v3 }
 0x1ea   : > { %v3316_v8 = vadd.f32 %v3225_v63, %v3063_v46  ;;  %v2975_v28 = vpop.f32.mrf.mxu1  ;;  %v3228_v59 = vpop.f32.mrf.mxu0  ;;  %v3488_v51 = vsel %vm3424_vm14, %v3392_v49, %v3456_v16  ;;  %vm3425_vm0 = vcmp.ge.f32.partialorder %v3393_v1, 0.0  ;;  %v3457_v23 = vmul.f32 0.01, %v3393_v1 }
 0x1eb   : > { %vm3423_vm1 = vcmp.ge.f32.partialorder %v3391_v2, 0.0  ;;  %v3455_v9 = vmul.f32 0.01, %v3391_v2  ;;  %v3396_v44 = vadd.f32 %v6343_v18, %v3357_v21  ;;  %v3319_v45 = vadd.f32 %v4672_v0, %v3066_v43 }
 0x1ec   : > { %v3355_v7 = vmul.f32 %v6329_v33, %v3316_v8  ;;  %v4627_v56 = vpop.f32.mrf.mxu1  ;;  %v4675_v48 = vpop.f32.mrf.mxu0  ;;  %v3486_v57 = vsel %vm3422_vm15, %v3390_v36, %v3454_v15  ;;  %v3489_v53 = vsel %vm3425_vm0, %v3393_v1, %v3457_v23  ;;  %v3064_v3 = vadd.f32 %v2975_v28, %v6389_v55  ;;  %v6577_v55 = vld [vmem:[#allocation5_spill] sm:$0xff]  ;;  %v6579_v8 = vld [vmem:[#allocation3_spill] sm:$0xff] }
 0x1ed   : > { %v3069_v35 = vadd.f32 %v4627_v56, %v6266_v50  ;;  %v3974_v54 = vpack.c.bf16 %v3489_v53, %v3488_v51  ;;  %v3487_v40 = vsel %vm3423_vm1, %v3391_v2, %v3455_v9  ;;  %vm3428_vm2 = vcmp.ge.f32.partialorder %v3396_v44, 0.0  ;;  %v6578_v2 = vld [vmem:[#allocation4_spill] sm:$0xff] }
 0x1ee   : > { %v3460_v47 = vmul.f32 0.01, %v3396_v44  ;;  %v2988_v11 = vpop.f32.mrf.mxu1  ;;  %v3241_v4 = vpop.f32.mrf.mxu0  ;;  %v3969_v24 = vpack.c.bf16 %v3487_v40, %v3486_v57  ;;  %v3394_v25 = vadd.f32 %v6343_v18, %v3355_v7  ;;  %v3358_v49 = vmul.f32 %v6329_v33, %v3319_v45  ;;  %v6580_v40 = vld [vmem:[#allocation9_spill] sm:$0xff] }
 0x1ef   : > { %v3317_v14 = vadd.f32 %v3228_v59, %v3064_v3  ;;  %v2821_v60 = vadd.f32 %v6285_v19, %v2385_v30  ;;  %v6438_v13 = vadd.f32 %v6576_v12, %v2383_v61  ;;  %4030 = vst [vmem:[%s6382_s6 + $0x28] sm:$0xff] %v3974_v54   ;;  %v3322_v50 = vadd.f32 %v4675_v48, %v3069_v35 }
 0x1f0   : > { %v3067_v20 = vadd.f32 %v2988_v11, %v6577_v55  ;;  %v4628_v26 = vpop.f32.mrf.mxu1  ;;  %v4676_v62 = vpop.f32.mrf.mxu0  ;;  %v6443_v32 = vadd.f32 %v6299_v5, %v2389_v31  ;;  %4029 = vst [vmem:[%s6382_s6 + $0x20] sm:$0xff] %v3969_v24   ;;  %v3492_v16 = vsel %vm3428_vm2, %v3396_v44, %v3460_v47  ;;  %v3397_v39 = vadd.f32 %v6343_v18, %v3358_v49 }
 0x1f1   : > { %v3356_v63 = vmul.f32 %v6329_v33, %v3317_v14  ;;  %v3458_v19 = vmul.f32 0.01, %v3394_v25  ;;  %v3361_v30 = vmul.f32 %v6329_v33, %v3322_v50  ;;  %v3070_v36 = vadd.f32 %v4628_v26, %v6397_v52 }
 0x1f2   : > { %v3320_v37 = vadd.f32 %v3241_v4, %v3067_v20  ;;  %v2991_v22 = vpop.f32.mrf.mxu1  ;;  %v3244_v34 = vpop.f32.mrf.mxu0  ;;  %vm3426_vm3 = vcmp.ge.f32.partialorder %v3394_v25, 0.0  ;;  %vm3429_vm4 = vcmp.ge.f32.partialorder %v3397_v39, 0.0  ;;  %v3461_v61 = vmul.f32 0.01, %v3397_v39  ;;  %v6581_v4 = vld [vmem:[#allocation2_spill] sm:$0xff] }
 0x1f3   : > { %v3395_v5 = vadd.f32 %v6343_v18, %v3356_v63  ;;  %v3400_v38 = vadd.f32 %v6343_v18, %v3361_v30  ;;  %v3323_v27 = vadd.f32 %v4676_v62, %v3070_v36  ;;  %v3068_v0 = vadd.f32 %v2991_v22, %v6401_v41 }
 0x1f4   : > { %v3359_v46 = vmul.f32 %v6329_v33, %v3320_v37  ;;  %v4631_v31 = vpop.f32.mrf.mxu1  ;;  %v4679_v15 = vpop.f32.mrf.mxu0  ;;  %v3493_v1 = vsel %vm3429_vm4, %v3397_v39, %v3461_v61  ;;  %v2387_v43 = vadd.f32 %v6303_v42, %v6579_v8  ;;  %v3490_v28 = vsel %vm3426_vm3, %v3394_v25, %v3458_v19 }
 0x1f5   : > { %vm3427_vm5 = vcmp.ge.f32.partialorder %v3395_v5, 0.0  ;;  %v3459_v52 = vmul.f32 0.01, %v3395_v5  ;;  %v3073_v21 = vadd.f32 %v4631_v31, %v6578_v2  ;;  %v3984_v59 = vpack.c.bf16 %v3493_v1, %v3492_v16 }
 0x1f6   : > { %v3398_v51 = vadd.f32 %v6343_v18, %v3359_v46  ;;  %v3004_v23 = vpop.f32.mrf.mxu1  ;;  %v3257_v9 = vpop.f32.mrf.mxu0  ;;  %v3362_v41 = vmul.f32 %v6329_v33, %v3323_v27  ;;  %v3321_v7 = vadd.f32 %v3244_v34, %v3068_v0  ;;  %vm3432_vm6 = vcmp.ge.f32.partialorder %v3400_v38, 0.0 }
 0x1f7   : > { %v3491_v44 = vsel %vm3427_vm5, %v3395_v5, %v3459_v52  ;;  %v3326_v45 = vadd.f32 %v4679_v15, %v3073_v21  ;;  %4032 = vst [vmem:[%s6382_s6 + $0x38] sm:$0xff] %v3984_v59   ;;  %v3464_v48 = vmul.f32 0.01, %v3400_v38  ;;  %v3071_v47 = vadd.f32 %v3004_v23, %v6580_v40  ;;  %v6582_v5 = vld [vmem:[#allocation7_spill] sm:$0xff] }
 0x1f8   : > { %v3979_v56 = vpack.c.bf16 %v3491_v44, %v3490_v28  ;;  %v3462_v57 = vmul.f32 0.01, %v3398_v51  ;;  %v4632_v53 = vpop.f32.mrf.mxu1  ;;  %v4680_v3 = vpop.f32.mrf.mxu0  ;;  %v3401_v42 = vadd.f32 %v6343_v18, %v3362_v41  ;;  %v3360_v35 = vmul.f32 %v6329_v33, %v3321_v7  ;;  %v6584_v28 = vld [vmem:[#allocation6_spill] sm:$0xff] }
 0x1f9   : > { %v3365_v54 = vmul.f32 %v6329_v33, %v3326_v45  ;;  %v2823_v11 = vadd.f32 %v6305_v29, %v2387_v43  ;;  %v6468_v24 = vadd.f32 %v6311_v58, %v6581_v4  ;;  %vm3430_vm7 = vcmp.ge.f32.partialorder %v3398_v51, 0.0 }
 0x1fa   : > { %4031 = vst [vmem:[%s6382_s6 + $0x30] sm:$0xff] %v3979_v56   ;;  %v3074_v25 = vadd.f32 %v4632_v53, %v2821_v60  ;;  %v3007_v49 = vpop.f32.mrf.mxu1  ;;  %v3260_v14 = vpop.f32.mrf.mxu0  ;;  %vm3433_vm8 = vcmp.ge.f32.partialorder %v3401_v42, 0.0  ;;  %v3465_v12 = vmul.f32 0.01, %v3401_v42  ;;  %v3399_v50 = vadd.f32 %v6343_v18, %v3360_v35 }
 0x1fb   : > { %v3404_v55 = vadd.f32 %v6343_v18, %v3365_v54  ;;  %v3496_v20 = vsel %vm3432_vm6, %v3400_v38, %v3464_v48  ;;  %v3324_v26 = vadd.f32 %v3257_v9, %v3071_v47  ;;  %v3072_v29 = vadd.f32 %v3007_v49, %v6438_v13  ;;  %v6583_v38 = vld [vmem:[#allocation11_spill] sm:$0xff] }
 0x1fc   : > { %v3327_v62 = vadd.f32 %v4680_v3, %v3074_v25  ;;  %v4635_v16 = vpop.f32.mrf.mxu1  ;;  %v4683_v58 = vpop.f32.mrf.mxu0  ;;  %v3494_v39 = vsel %vm3430_vm7, %v3398_v51, %v3462_v57  ;;  %v3497_v63 = vsel %vm3433_vm8, %v3401_v42, %v3465_v12  ;;  %vm3431_vm9 = vcmp.ge.f32.partialorder %v3399_v50, 0.0 }
 0x1fd   : > { %v3463_v60 = vmul.f32 0.01, %v3399_v50  ;;  %v3994_v19 = vpack.c.bf16 %v3497_v63, %v3496_v20  ;;  %vm3436_vm10 = vcmp.ge.f32.partialorder %v3404_v55, 0.0  ;;  %v3363_v30 = vmul.f32 %v6329_v33, %v3324_v26  ;;  %v6586_v20 = vld [vmem:[#allocation12_spill] sm:$0xff] }
 0x1fe   : > { %v3366_v37 = vmul.f32 %v6329_v33, %v3327_v62  ;;  %v3020_v36 = vpop.f32.mrf.mxu1  ;;  %v3273_v22 = vpop.f32.mrf.mxu0  ;;  %v3325_v61 = vadd.f32 %v3260_v14, %v3072_v29  ;;  %v3077_v13 = vadd.f32 %v4635_v16, %v6582_v5  ;;  %v3468_v0 = vmul.f32 0.01, %v3404_v55 }
 0x1ff   : > { %v3495_v34 = vsel %vm3431_vm9, %v3399_v50, %v3463_v60  ;;  %v3075_v46 = vadd.f32 %v3020_v36, %v6583_v38  ;;  %4034 = vst [vmem:[%s6382_s6 + $0x48] sm:$0xff] %v3994_v19   ;;  %v3402_v31 = vadd.f32 %v6343_v18, %v3363_v30  ;;  %v2391_v59 = vadd.f32 %v6317_v6, %v6584_v28  ;;  %v6585_v50 = vld [vmem:[#allocation10_spill] sm:$0xff] }
 0x200   : > { %v3989_v27 = vpack.c.bf16 %v3495_v34, %v3494_v39  ;;  %v3405_v15 = vadd.f32 %v6343_v18, %v3366_v37  ;;  %v4636_v1 = vpop.f32.mrf.mxu1  ;;  %v4684_v52 = vpop.f32.mrf.mxu0  ;;  %v3364_v2 = vmul.f32 %v6329_v33, %v3325_v61  ;;  %v3330_v21 = vadd.f32 %v4683_v58, %v3077_v13 }
 0x201   : > { %v3328_v8 = vadd.f32 %v3273_v22, %v3075_v46  ;;  %v3078_v43 = vadd.f32 %v4636_v1, %v6443_v32  ;;  %v3466_v51 = vmul.f32 0.01, %v3402_v31  ;;  %v3500_v48 = vsel %vm3436_vm10, %v3404_v55, %v3468_v0 }
 0x202   : > { %4033 = vst [vmem:[%s6382_s6 + $0x40] sm:$0xff] %v3989_v27   ;;  %vm3437_vm11 = vcmp.ge.f32.partialorder %v3405_v15, 0.0  ;;  %v3469_v23 = vmul.f32 0.01, %v3405_v15  ;;  %v3023_v9 = vpop.f32.mrf.mxu1  ;;  %v3276_v44 = vpop.f32.mrf.mxu0  ;;  %v3403_v41 = vadd.f32 %v6343_v18, %v3364_v2  ;;  %v3369_v7 = vmul.f32 %v6329_v33, %v3330_v21 }
 0x203   : > { %v3367_v45 = vmul.f32 %v6329_v33, %v3328_v8  ;;  %v3331_v56 = vadd.f32 %v4684_v52, %v3078_v43  ;;  %vm3434_vm12 = vcmp.ge.f32.partialorder %v3402_v31, 0.0  ;;  %v3076_v57 = vadd.f32 %v3023_v9, %v2823_v11 }
 0x204   : > { %v3501_v32 = vsel %vm3437_vm11, %v3405_v15, %v3469_v23  ;;  %v4639_v6 = vpop.f32.mrf.mxu1  ;;  %v4687_v53 = vpop.f32.mrf.mxu0  ;;  %vm3435_vm13 = vcmp.ge.f32.partialorder %v3403_v41, 0.0  ;;  %v3467_v42 = vmul.f32 0.01, %v3403_v41  ;;  %v3408_v35 = vadd.f32 %v6343_v18, %v3369_v7 }
 0x205   : > { %v4004_v3 = vpack.c.bf16 %v3501_v32, %v3500_v48  ;;  %v3406_v54 = vadd.f32 %v6343_v18, %v3367_v45  ;;  %v3370_v40 = vmul.f32 %v6329_v33, %v3331_v56  ;;  %v3329_v47 = vadd.f32 %v3276_v44, %v3076_v57 }
 0x206   : > { %v3081_v4 = vadd.f32 %v4639_v6, %v6308_v10  ;;  %v3036_v25 = vpop.f32.mrf.mxu1  ;;  %v3289_v49 = vpop.f32.mrf.mxu0  ;;  %v2829_v11 = vadd.f32 %v6313_v17, %v6468_v24  ;;  %v3498_v14 = vsel %vm3434_vm12, %v3402_v31, %v3466_v51  ;;  %v3499_v12 = vsel %vm3435_vm13, %v3403_v41, %v3467_v42 }
 0x207   : > { %4036 = vst [vmem:[%s6382_s6 + $0x58] sm:$0xff] %v4004_v3   ;;  %v3079_v55 = vadd.f32 %v3036_v25, %v6585_v50  ;;  %v2827_v26 = vadd.f32 %v6586_v20, %v2391_v59  ;;  %v3999_v62 = vpack.c.bf16 %v3499_v12, %v3498_v14  ;;  %v3472_v29 = vmul.f32 0.01, %v3408_v35 }
 0x208   : > { %v3409_v16 = vadd.f32 %v6343_v18, %v3370_v40  ;;  %v4640_v58 = vpop.f32.mrf.mxu1  ;;  %vm3440_vm14 = vcmp.ge.f32.partialorder %v3408_v35, 0.0  ;;  %v3368_v10 = vmul.f32 %v6329_v33, %v3329_v47  ;;  %v3334_v39 = vadd.f32 %v4687_v53, %v3081_v4  ;;  %v4688_v60 = vpop.f32.mrf.mxu0 }
 0x209   : > { %v3332_v63 = vadd.f32 %v3289_v49, %v3079_v55  ;;  %4035 = vst [vmem:[%s6382_s6 + $0x50] sm:$0xff] %v3999_v62   ;;  %v3470_v17 = vmul.f32 0.01, %v3406_v54  ;;  %v3082_v19 = vadd.f32 %v4640_v58, %v2829_v11  ;;  %v3504_v61 = vsel %vm3440_vm14, %v3408_v35, %v3472_v29 }
 0x20a   : > { %vm3441_vm15 = vcmp.ge.f32.partialorder %v3409_v16, 0.0  ;;  %v3473_v24 = vmul.f32 0.01, %v3409_v16  ;;  %v3039_v30 = vpop.f32.mrf.mxu1  ;;  %v3407_v37 = vadd.f32 %v6343_v18, %v3368_v10  ;;  %v3373_v36 = vmul.f32 %v6329_v33, %v3334_v39  ;;  %v3292_v0 = vpop.f32.mrf.mxu0 }
 0x20b   : > { %v3371_v22 = vmul.f32 %v6329_v33, %v3332_v63  ;;  %v3080_v34 = vadd.f32 %v3039_v30, %v2827_v26  ;;  %vm3438_vm0 = vcmp.ge.f32.partialorder %v3406_v54, 0.0  ;;  %v3335_v13 = vadd.f32 %v4688_v60, %v3082_v19 }
 0x20c   : > { %v3505_v5 = vsel %vm3441_vm15, %v3409_v16, %v3473_v24  ;;  %vm3439_vm1 = vcmp.ge.f32.partialorder %v3407_v37, 0.0  ;;  %v3471_v46 = vmul.f32 0.01, %v3407_v37  ;;  %v3412_v27 = vadd.f32 %v6343_v18, %v3373_v36 }
 0x20d   : > { %v4014_v38 = vpack.c.bf16 %v3505_v5, %v3504_v61  ;;  %v3374_v31 = vmul.f32 %v6329_v33, %v3335_v13  ;;  %v3333_v15 = vadd.f32 %v3292_v0, %v3080_v34  ;;  %v3502_v1 = vsel %vm3438_vm0, %v3406_v54, %v3470_v17 }
 0x20e   : > { %v3503_v52 = vsel %vm3439_vm1, %v3407_v37, %v3471_v46  ;;  %v3410_v2 = vadd.f32 %v6343_v18, %v3371_v22  ;;  %v3476_v8 = vmul.f32 0.01, %v3412_v27  ;;  %vm3444_vm2 = vcmp.ge.f32.partialorder %v3412_v27, 0.0 }
 0x20f   : > { %4038 = vst [vmem:[%s6382_s6 + $0x68] sm:$0xff] %v4014_v38   ;;  %v4009_v21 = vpack.c.bf16 %v3503_v52, %v3502_v1  ;;  %v3413_v43 = vadd.f32 %v6343_v18, %v3374_v31  ;;  %v3372_v28 = vmul.f32 %v6329_v33, %v3333_v15 }
 0x210   : > { %v3474_v51 = vmul.f32 0.01, %v3410_v2  ;;  %v3508_v9 = vsel %vm3444_vm2, %v3412_v27, %v3476_v8  ;;  %vm3442_vm4 = vcmp.ge.f32.partialorder %v3410_v2, 0.0 }
 0x211   : > { %4037 = vst [vmem:[%s6382_s6 + $0x60] sm:$0xff] %v4009_v21   ;;  %vm3445_vm3 = vcmp.ge.f32.partialorder %v3413_v43, 0.0  ;;  %v3477_v59 = vmul.f32 0.01, %v3413_v43  ;;  %v3411_v23 = vadd.f32 %v6343_v18, %v3372_v28 }
 0x212   : > { %v3506_v45 = vsel %vm3442_vm4, %v3410_v2, %v3474_v51 }
 0x213   : > { %v3509_v44 = vsel %vm3445_vm3, %v3413_v43, %v3477_v59  ;;  %vm3443_vm5 = vcmp.ge.f32.partialorder %v3411_v23, 0.0  ;;  %v3475_v7 = vmul.f32 0.01, %v3411_v23 }
 0x214   : > { %v4024_v41 = vpack.c.bf16 %v3509_v44, %v3508_v9 }
 0x215   : > { %v3507_v56 = vsel %vm3443_vm5, %v3411_v23, %v3475_v7 }
 0x216   : > { %4040 = vst [vmem:[%s6382_s6 + $0x78] sm:$0xff] %v4024_v41   ;;  %v4019_v48 = vpack.c.bf16 %v3507_v56, %v3506_v45 }
 0x218   : > { %4039 = vst [vmem:[%s6382_s6 + $0x70] sm:$0xff] %v4019_v48  }
 0x219 PF: > { %s14_s15 = sadd.s32 1, %s4842_s15  }
 0x21a   : > { %p11_p4 = scmp.ge.s32.totalorder %s14_s15, 4  }
 0x21c   :  { %13 = sbr.rel (!%p11_p4) target bundleno = 1 (0x1), region = 66 }

// kernel: residual_coder_forward.27
= control target key start
LH: loop header
LB: loop body
LE: loop exit
PB: predicated region body
PF: predicated region fallthrough
CT: control target
= control target key end

     0   :  { %s4545_s15 = smov 0   ;;  %s6218_s0 = inlined_call_operand.vmem [shape: bf16[2,18,18,128], index: 0, kind: input, shape index: {}]   ;;  %s6219_s1 = inlined_call_operand.vmem [shape: bf16[9,128,128], index: 1, kind: input, shape index: {}]   ;;  %s6220_s2 = inlined_call_operand.vmem [shape: f32[1,128], index: 2, kind: input, shape index: {}]   ;;  %s6221_s3 = inlined_call_operand.vmem [shape: f32[2,16,16,128], index: 3, kind: input, shape index: {}]   ;;  %s6222_s4 = inlined_call_operand.vmem [shape: f32[2,16,16,128], index: 4, kind: output, shape index: {}]  }
   0x1 LB: > { %s3558_s16 = sadd.s32 4294967295, %s4518_s15   ;;  %p3562_p0 = scmp.ge.s32.totalorder %s4518_s15, 1  ;;  %s4518_s15 = sphi %s4545_s15, %s14_s15  }
   0x2   : > { %p172_p1 = scmp.lt.s32.totalorder %s4518_s15, 3 }
   0x4   : > { %p173_p2 = pnand %p3562_p0, %p172_p1 }
   0x6   : > { %176 = sbr.rel (%p173_p2) target bundleno = 532 (0x214), region = 36 }
   0xb   : > { %v4390_v0 = vld [vmem:[%s6219_s1 + $0xf8] sm:$0xff]   ;;  %p203_p3 = scmp.lt.s32.totalorder %s3558_s16, 1  ;;  %v4391_v1 = vld [vmem:[%s6219_s1 + $0xf0] sm:$0xff]   ;;  %v4392_v2 = vld [vmem:[%s6219_s1 + $0xe8] sm:$0xff]   ;;  %vm1184_vm0 = vsmask.f32 3328 }
   0xc   : > { %3933 = vmatprep.subr.bf16.mxu0 %v4390_v0  ;;  %4365 = vmatprep.subr.bf16.mxu1 %v4390_v0  ;;  %v4393_v3 = vld [vmem:[%s6219_s1 + $0xe0] sm:$0xff]   ;;  %v4394_v10 = vld [vmem:[%s6219_s1 + $0xd8] sm:$0xff]   ;;  %v4395_v11 = vld [vmem:[%s6219_s1 + $0xd0] sm:$0xff]   ;;  %vm1185_vm1 = vsmask.f32 7440  ;;  %vm2430_vm3 = vcmask 1042432  }
   0xd   : > { %s6346_s16 = smov (!%p203_p3, %s3558_s16), 1  ;;  %3934 = vmatpush3.bf16.msra.mxu0 %v4390_v0  ;;  %4373 = vmatpush3.bf16.msra.mxu1 %v4390_v0  ;;  %v4396_v12 = vld [vmem:[%s6219_s1 + $0xc8] sm:$0xff]   ;;  %v4397_v13 = vld [vmem:[%s6219_s1 + $0xc0] sm:$0xff]   ;;  %v4402_v18 = vld [vmem:[%s6219_s1 + $0x38] sm:$0xff]   ;;  %vm2431_vm4 = vcmask 1046532  }
   0xe   : > { %3935 = vmatprep.subr.bf16.mxu0 %v4391_v1  ;;  %4366 = vmatprep.subr.bf16.mxu1 %v4391_v1  ;;  %s4381_s23 = smul.u32 216, %s6346_s16  ;;  %v4403_v19 = vld [vmem:[%s6219_s1 + $0x1b8] sm:$0xff]   ;;  %v4404_v26 = vld [vmem:[%s6219_s1 + $0x30] sm:$0xff]   ;;  %v4410_v34 = vld [vmem:[%s6219_s1 + $0x28] sm:$0xff]  }
   0xf   : > { %v4405_v27 = vld [vmem:[%s6219_s1 + $0x1b0] sm:$0xff]   ;;  %v4411_v35 = vld [vmem:[%s6219_s1 + $0x1a8] sm:$0xff]   ;;  %v4412_v45 = vld [vmem:[%s6219_s1 + $0x20] sm:$0xff]  }
  0x10   : > { %s4568_s26 = scalar_lea.vmem %s6218_s0, %s4381_s23  ;;  %v4413_v46 = vld [vmem:[%s6219_s1 + $0x1a0] sm:$0xff]   ;;  %v4418_v52 = vld [vmem:[%s6219_s1 + $0x18] sm:$0xff]   ;;  %v4420_v63 = vld [vmem:[%s6219_s1 + $0x10] sm:$0xff]  }
  0x11   : > { %3936 = vmatpush3.bf16.msra.mxu0 %v4391_v1  ;;  %4374 = vmatpush3.bf16.msra.mxu1 %v4391_v1  ;;  %v4574_v4 = vld [vmem:[%s4568_s26 + $0xc] sm:$0xf]  ;;  %v4577_v5 = vld [vmem:[%s4568_s26 + $0x10] sm:$0xf]  ;;  %v4608_v14 = vld [vmem:[%s4568_s26 + $0x18] sm:$0xf] }
  0x12   : > { %3937 = vmatprep.subr.bf16.mxu0 %v4392_v2  ;;  %4367 = vmatprep.subr.bf16.mxu1 %v4392_v2  ;;  %v4580_v6 = vld [vmem:[%s4568_s26 + $0x6c] sm:$0xf]  ;;  %v4584_v7 = vcombine.low %v4574_v4, %v4577_v5  ;;  %v4587_v8 = vld [vmem:[%s4568_s26 + $0x70] sm:$0xf]  ;;  %v4611_v15 = vld [vmem:[%s4568_s26 + $0x1c] sm:$0xf] }
  0x13   : > { %v4591_v9 = vcombine.low %v4580_v6, %v4587_v8  ;;  %v4614_v16 = vld [vmem:[%s4568_s26 + $0x78] sm:$0xf]  ;;  %v4617_v17 = vld [vmem:[%s4568_s26 + $0x7c] sm:$0xf]  ;;  %v4626_v20 = vld [vmem:[%s4568_s26 + $0x24] sm:$0xf]  ;;  %v4630_v21 = vcombine.low %v4608_v14, %v4611_v15 }
  0x14   : > { %3949 = vmatprep.mubr.bf16.mxu0 %v4584_v7  ;;  %v4634_v22 = vcombine.low %v4614_v16, %v4617_v17  ;;  %v4637_v23 = vld [vmem:[%s4568_s26 + $0x28] sm:$0xf]  ;;  %v4640_v24 = vld [vmem:[%s4568_s26 + $0x84] sm:$0xf]  ;;  %v4662_v30 = vld [vmem:[%s4568_s26 + $0x30] sm:$0xf] }
  0x15   : > { %3938 = vmatpush3.bf16.msra.mxu0 %v4392_v2  ;;  %4375 = vmatpush3.bf16.msra.mxu1 %v4392_v2  ;;  %v4643_v25 = vld [vmem:[%s4568_s26 + $0x88] sm:$0xf]  ;;  %v4653_v28 = vcombine.low %v4626_v20, %v4637_v23  ;;  %v4665_v31 = vld [vmem:[%s4568_s26 + $0x34] sm:$0xf]  ;;  %v4668_v32 = vld [vmem:[%s4568_s26 + $0x90] sm:$0xf] }
  0x16   : > { %3939 = vmatprep.subr.bf16.mxu0 %v4393_v3  ;;  %4368 = vmatprep.subr.bf16.mxu1 %v4393_v3  ;;  %v4657_v29 = vcombine.low %v4640_v24, %v4643_v25  ;;  %v4671_v33 = vld [vmem:[%s4568_s26 + $0x94] sm:$0xf]  ;;  %v1212_v36 = vshrl.u32 %v4574_v4, 16  ;;  %v4683_v37 = vld [vmem:[%s4568_s26 + $0x3c] sm:$0xf]  ;;  %v4687_v38 = vcombine.low %v4662_v30, %v4665_v31  ;;  %v1215_v43 = vshll.u32 %v4574_v4, 16  ;;  %vm4815_vm2 = vmor %vm1184_vm0, %vm1185_vm1 }
  0x17   : > { %3965 = vmatprep.mubr.bf16.mxu1 %v4591_v9  ;;  %v4691_v39 = vcombine.low %v4668_v32, %v4671_v33  ;;  %v4694_v40 = vld [vmem:[%s4568_s26 + $0x40] sm:$0xf]  ;;  %v4697_v41 = vld [vmem:[%s4568_s26 + $0x9c] sm:$0xf]  ;;  %v1221_v44 = vshll.u32 %v4577_v5, 16  ;;  %v1225_v50 = vshrl.u32 %v4577_v5, 16  ;;  %vm4960_vm5 = vmor %vm2430_vm3, %vm2431_vm4 }
  0x18   : > { %v4700_v42 = vld [vmem:[%s4568_s26 + $0xa0] sm:$0xf]  ;;  %v4712_v47 = vcombine.low %v4683_v37, %v4694_v40  ;;  %v4719_v49 = vld [vmem:[%s4568_s26 + $0x48] sm:$0xf]  ;;  %v4725_v51 = vld [vmem:[%s4568_s26 + $0x4c] sm:$0xf] }
  0x19   : > { %3940 = vmatpush3.bf16.msra.mxu0 %v4393_v3  ;;  %4376 = vmatpush3.bf16.msra.mxu1 %v4393_v3  ;;  %v4716_v48 = vcombine.low %v4697_v41, %v4700_v42  ;;  %v4419_v53 = vld [vmem:[%s6219_s1 + $0x198] sm:$0xff]   ;;  %v4734_v54 = vld [vmem:[%s4568_s26 + $0xa8] sm:$0xf]  ;;  %v262_v55 = vld [vmem:[%s4568_s26 + $0xac] sm:$0xf]  ;;  %v4748_v59 = vcombine.low %v4719_v49, %v4725_v51  ;;  %v1214_v62 = vrot.slane %v1212_v36, 4 }
  0x1a   : > { %3941 = vmatprep.subr.bf16.mxu0 %v4394_v10  ;;  %4369 = vmatprep.subr.bf16.mxu1 %v4394_v10  ;;  %v4738_v56 = vld [vmem:[%s4568_s26 + $0x54] sm:$0xf]  ;;  %v4741_v57 = vld [vmem:[%s4568_s26 + $0x58] sm:$0xf]  ;;  %v4751_v60 = vcombine.low %v4734_v54, %v262_v55  ;;  %v1217_v0 = vrot.slane %v1215_v43, 5  ;;  %v4428_v43 = vld [vmem:[%s6219_s1] sm:$0xff]  }
  0x1b   : > { %v264_v58 = vld [vmem:[%s4568_s26 + $0xb4] sm:$0xf]  ;;  %v265_v61 = vld [vmem:[%s4568_s26 + $0xb8] sm:$0xf]  ;;  %v4762_v2 = vcombine.low %v4738_v56, %v4741_v57  ;;  %v4794_v36 = vld [vmem:[%s4568_s26 + $0x4] sm:$0xf] }
  0x1c   : > { %v4421_v1 = vld [vmem:[%s6219_s1 + $0x190] sm:$0xff]   ;;  %v4764_v3 = vcombine.low %v264_v58, %v265_v61  ;;  %v4432_v58 = vld [vmem:[%s6219_s1 + $0x138] sm:$0xff]  }
  0x1d   : > { %3942 = vmatpush3.bf16.msra.mxu0 %v4394_v10  ;;  %4377 = vmatpush3.bf16.msra.mxu1 %v4394_v10  ;;  %v4767_v10 = vld [vmem:[%s4568_s26 + $0x60] sm:$0xf] }
  0x1e   : > { %3943 = vmatprep.subr.bf16.mxu0 %v4395_v11  ;;  %4370 = vmatprep.subr.bf16.mxu1 %v4395_v11 }
  0x21   : > { %3944 = vmatpush3.bf16.msra.mxu0 %v4395_v11  ;;  %4378 = vmatpush3.bf16.msra.mxu1 %v4395_v11  ;;  %v4770_v11 = vld [vmem:[%s4568_s26 + $0x64] sm:$0xf] }
  0x22   : > { %3945 = vmatprep.subr.bf16.mxu0 %v4396_v12  ;;  %4371 = vmatprep.subr.bf16.mxu1 %v4396_v12 }
  0x25   : > { %3946 = vmatpush3.bf16.msra.mxu0 %v4396_v12  ;;  %4379 = vmatpush3.bf16.msra.mxu1 %v4396_v12  ;;  %v267_v12 = vld [vmem:[%s4568_s26 + $0xc0] sm:$0xf] }
  0x26   : > { %3947 = vmatprep.subr.bf16.mxu0 %v4397_v13  ;;  %4372 = vmatprep.subr.bf16.mxu1 %v4397_v13 }
  0x29   : > { %3948 = vmatpush3.bf16.msra.mxu0 %v4397_v13  ;;  %4380 = vmatpush3.bf16.msra.mxu1 %v4397_v13  ;;  %v4426_v13 = vld [vmem:[%s6219_s1 + $0x8] sm:$0xff]  }
  0x2a   : > { %3981 = vmatprep.subr.bf16.mxu1 %v4402_v18  ;;  %4029 = vmatprep.subr.bf16.mxu0 %v4403_v19 }
  0x2c   : > { %3950 = vmatmul.mubr.bf16.vlgmr.msra.gmra.mxu0 %v4630_v21  ;;  %3966 = vmatmul.mubr.bf16.vlgmr.msra.gmra.mxu1 %v4634_v22 }
  0x2d   : > { %3982 = vmatpush3.bf16.msra.mxu1 %v4402_v18  ;;  %4030 = vmatpush3.bf16.msra.mxu0 %v4403_v19  ;;  %v268_v18 = vld [vmem:[%s4568_s26 + $0xc4] sm:$0xf]  ;;  %v1227_v19 = vrot.slane %v1225_v50, 4 }
  0x2e   : > { %3983 = vmatprep.subr.bf16.mxu1 %v4404_v26  ;;  %4031 = vmatprep.subr.bf16.mxu0 %v4405_v27  ;;  %v4429_v50 = vld [vmem:[%s6219_s1 + $0x180] sm:$0xff]  }
  0x2f   : > { %3953 = vmatprep.mubr.bf16.mxu0 %v4653_v28  ;;  %3969 = vmatprep.mubr.bf16.mxu1 %v4657_v29 }
  0x31   : > { %3984 = vmatpush3.bf16.msra.mxu1 %v4404_v26  ;;  %4032 = vmatpush3.bf16.msra.mxu0 %v4405_v27  ;;  %v4427_v26 = vld [vmem:[%s6219_s1 + $0x188] sm:$0xff]   ;;  %v4785_v27 = vld [vmem:[%s4568_s26] sm:$0xf] }
  0x32   : > { %3985 = vmatprep.subr.bf16.mxu1 %v4410_v34  ;;  %4033 = vmatprep.subr.bf16.mxu0 %v4411_v35 }
  0x34   : > { %3954 = vmatmul.mubr.bf16.gmra.mxu0 %v4687_v38  ;;  %3970 = vmatmul.mubr.bf16.gmra.mxu1 %v4691_v39 }
  0x35   : > { %3986 = vmatpush3.bf16.msra.mxu1 %v4410_v34  ;;  %4034 = vmatpush3.bf16.msra.mxu0 %v4411_v35  ;;  %v4789_v34 = vcombine.low %v4767_v10, %v4770_v11  ;;  %v4791_v35 = vcombine.low %v267_v12, %v268_v18  ;;  %v4433_v12 = vld [vmem:[%s6219_s1 + $0x70] sm:$0xff]  }
  0x36   : > { %3987 = vmatprep.subr.bf16.mxu1 %v4412_v45  ;;  %4035 = vmatprep.subr.bf16.mxu0 %v4413_v46 }
  0x37   : > { %3957 = vmatprep.mubr.bf16.mxu0 %v4712_v47  ;;  %3973 = vmatprep.mubr.bf16.mxu1 %v4716_v48 }
  0x39   : > { %3988 = vmatpush3.bf16.msra.mxu1 %v4412_v45  ;;  %4036 = vmatpush3.bf16.msra.mxu0 %v4413_v46  ;;  %v1218_v45 = vor.u32 %v1217_v0, %v1214_v62  ;;  %v1223_v46 = vrot.slane %v1221_v44, 5  ;;  %v4431_v44 = vld [vmem:[%s6219_s1 + $0x78] sm:$0xff]   ;;  %v4820_v62 = vld [vmem:[%s4568_s26 + $0x14] sm:$0x1] }
  0x3a   : > { %3989 = vmatprep.subr.bf16.mxu1 %v4418_v52  ;;  %4037 = vmatprep.subr.bf16.mxu0 %v4419_v53 }
  0x3b   : > { %v1228_v55 = vor.u32 %v1227_v19, %v1223_v46  ;;  %v4435_v19 = vld [vmem:[%s6219_s1 + $0x68] sm:$0xff]  }
  0x3c   : > { %3958 = vmatmul.mubr.bf16.gmra.mxu0 %v4748_v59  ;;  %3974 = vmatmul.mubr.bf16.gmra.mxu1 %v4751_v60 }
  0x3d   : > { %3990 = vmatpush3.bf16.msra.mxu1 %v4418_v52  ;;  %4038 = vmatpush3.bf16.msra.mxu0 %v4419_v53  ;;  %v3592_v52 = vcombine.low %v4785_v27, %v4794_v36  ;;  %v1219_v53 = vrot.slane %v1218_v45, 4  ;;  %v1229_v0 = vrot.slane %v1228_v55, 4  ;;  %v4437_v45 = vld [vmem:[%s6219_s1 + $0x60] sm:$0xff]   ;;  %v1236_v55 = vshrl.u32 %v4608_v14, 16 }
  0x3e   : > { %3991 = vmatprep.subr.bf16.mxu1 %v4420_v63  ;;  %4039 = vmatprep.subr.bf16.mxu0 %v4421_v1 }
  0x3f   : > { %3961 = vmatprep.mubr.bf16.mxu0 %v4762_v2  ;;  %3977 = vmatprep.mubr.bf16.mxu1 %v4764_v3 }
  0x41   : > { %3992 = vmatpush3.bf16.msra.mxu1 %v4420_v63  ;;  %4040 = vmatpush3.bf16.msra.mxu0 %v4421_v1  ;;  %v1224_v63 = vsel %vm4815_vm2, %v1219_v53, %v1223_v46  ;;  %v1231_v1 = vshll.u32 %v4820_v62, 16  ;;  %v4439_v46 = vld [vmem:[%s6219_s1 + $0x58] sm:$0xff]   ;;  %v4444_v53 = vld [vmem:[%s6219_s1 + $0x108] sm:$0xff]  }
  0x42   : > { %3993 = vmatprep.subr.bf16.mxu1 %v4426_v13  ;;  %4041 = vmatprep.subr.bf16.mxu0 %v4427_v26 }
  0x43   : > { %v1233_v18 = vrot.slane %v1231_v1, 5 }
  0x44   : > { %3962 = vmatmul.mubr.bf16.gmra.mxu0 %v4789_v34  ;;  %3978 = vmatmul.mubr.bf16.gmra.mxu1 %v4791_v35 }
  0x45   : > { %3994 = vmatpush3.bf16.msra.mxu1 %v4426_v13  ;;  %4042 = vmatpush3.bf16.msra.mxu0 %v4427_v26  ;;  %v4434_v13 = vld [vmem:[%s6219_s1 + $0x130] sm:$0xff]   ;;  %v1234_v26 = vsel %vm4815_vm2, %v1229_v0, %v1233_v18  ;;  %v4894_v0 = vld [vmem:[%s6219_s1 + $0x1f8] sm:$0xff]   ;;  %v1201_v18 = vshrl.u32 %v4794_v36, 16 }
  0x46   : > { %3995 = vmatprep.subr.bf16.mxu1 %v4428_v43  ;;  %4043 = vmatprep.subr.bf16.mxu0 %v4429_v50 }
  0x47   : > { %3997 = vmatprep.mubr.bf16.mxu1 %v3592_v52  ;;  %4045 = vmatprep.mubr.bf16.mxu0 %v4630_v21  ;;  %v4443_v52 = vld [vmem:[%s6219_s1 + $0x48] sm:$0xff]  }
  0x49   : > { %3996 = vmatpush3.bf16.msra.mxu1 %v4428_v43  ;;  %4044 = vmatpush3.bf16.msra.mxu0 %v4429_v50  ;;  %v4436_v43 = vld [vmem:[%s6219_s1 + $0x128] sm:$0xff]   ;;  %v4440_v50 = vld [vmem:[%s6219_s1 + $0x118] sm:$0xff]  }
  0x4a   : > { %4077 = vmatprep.subr.bf16.mxu1 %v4431_v44  ;;  %4125 = vmatprep.subr.bf16.mxu0 %v4432_v58 }
  0x4c   : > { %3998 = vmatmul.mubr.bf16.vlgmr.msra.gmra.mxu1 %v4584_v7  ;;  %4046 = vmatmul.mubr.bf16.vlgmr.msra.gmra.mxu0 %v4653_v28  ;;  %v4843_v7 = vcombine.low %v1224_v63, %v1234_v26  ;;  %v1249_v63 = vshrl.u32 %v4611_v15, 16  ;;  %v2442_v26 = vrot.slane %v4577_v5, 5  ;;  %v1404_v5 = vshrl.u32 %v4580_v6, 16 }
  0x4d   : > { %4078 = vmatpush3.bf16.msra.mxu1 %v4431_v44  ;;  %4126 = vmatpush3.bf16.msra.mxu0 %v4432_v58  ;;  %v1239_v44 = vshll.u32 %v4608_v14, 16  ;;  %v1245_v58 = vshll.u32 %v4611_v15, 16  ;;  %v4899_v14 = vld [vmem:[%s6219_s1 + $0xb8] sm:$0xff]  }
  0x4e   : > { %4001 = vmatprep.mubr.bf16.mxu1 %v4630_v21  ;;  %4049 = vmatprep.mubr.bf16.mxu0 %v4687_v38  ;;  %v4438_v21 = vld [vmem:[%s6219_s1 + $0x120] sm:$0xff]  }
  0x4f   : > { %4079 = vmatprep.subr.bf16.mxu1 %v4433_v12  ;;  %4127 = vmatprep.subr.bf16.mxu0 %v4434_v13  ;;  %v1241_v15 = vrot.slane %v1239_v44, 5  ;;  %v4901_v1 = vrot.slane %v1245_v58, 5 }
  0x51   : > { %4080 = vmatpush3.bf16.msra.mxu1 %v4433_v12  ;;  %4128 = vmatpush3.bf16.msra.mxu0 %v4434_v13  ;;  %v1188_v12 = vshrl.u32 %v4785_v27, 16  ;;  %v1191_v13 = vshll.u32 %v4785_v27, 16 }
  0x52   : > { %4081 = vmatprep.subr.bf16.mxu1 %v4435_v19  ;;  %4129 = vmatprep.subr.bf16.mxu0 %v4436_v43 }
  0x53   : > { %v1190_v27 = vrot.slane %v1188_v12, 4  ;;  %v1287_v12 = vshll.u32 %v4662_v30, 16 }
  0x54   : > { %4002 = vmatmul.mubr.bf16.gmra.mxu1 %v4653_v28  ;;  %4050 = vmatmul.mubr.bf16.gmra.mxu0 %v4712_v47  ;;  %v4441_v28 = vld [vmem:[%s6219_s1 + $0x50] sm:$0xff]  }
  0x55   : > { %4005 = vmatprep.mubr.bf16.mxu1 %v4687_v38  ;;  %4053 = vmatprep.mubr.bf16.mxu0 %v4748_v59  ;;  %v4442_v38 = vld [vmem:[%s6219_s1 + $0x110] sm:$0xff]  }
  0x56   : > { %4082 = vmatpush3.bf16.msra.mxu1 %v4435_v19  ;;  %4130 = vmatpush3.bf16.msra.mxu0 %v4436_v43  ;;  %v1197_v19 = vshll.u32 %v4794_v36, 16  ;;  %v1193_v36 = vrot.slane %v1191_v13, 5  ;;  %v1269_v13 = vshll.u32 %v4637_v23, 16 }
  0x57   : > { %4083 = vmatprep.subr.bf16.mxu1 %v4437_v45  ;;  %4131 = vmatprep.subr.bf16.mxu0 %v4438_v21 }
  0x58   : > { %v1194_v44 = vor.u32 %v1193_v36, %v1190_v27  ;;  %v4950_v36 = vrot.slane %v1269_v13, 5 }
  0x5a   : > { %4084 = vmatpush3.bf16.msra.mxu1 %v4437_v45  ;;  %4132 = vmatpush3.bf16.msra.mxu0 %v4438_v21  ;;  %v4915_v21 = vrot.slane %v1197_v19, 5  ;;  %v1308_v19 = vshrl.u32 %v4683_v37, 16 }
  0x5b   : > { %4085 = vmatprep.subr.bf16.mxu1 %v4439_v46  ;;  %4133 = vmatprep.subr.bf16.mxu0 %v4440_v50 }
  0x5c   : > { %4006 = vmatmul.mubr.bf16.gmra.mxu1 %v4712_v47  ;;  %4054 = vmatmul.mubr.bf16.gmra.mxu0 %v4762_v2  ;;  %v4446_v47 = vld [vmem:[%s6219_s1 + $0x40] sm:$0xff]  }
  0x5d   : > { %4009 = vmatprep.mubr.bf16.mxu1 %v4748_v59  ;;  %4057 = vmatprep.mubr.bf16.mxu0 %v4789_v34  ;;  %v4447_v59 = vld [vmem:[%s6219_s1 + $0x100] sm:$0xff]  }
  0x5e   : > { %4086 = vmatpush3.bf16.msra.mxu1 %v4439_v46  ;;  %4134 = vmatpush3.bf16.msra.mxu0 %v4440_v50  ;;  %v1203_v46 = vrot.slane %v1201_v18, 4  ;;  %v3653_v50 = vrot.slane %v4574_v4, 9  ;;  %v4930_v4 = vld [vmem:[%s4568_s26 + $0x8] sm:$0x1]  ;;  %v1297_v18 = vshrl.u32 %v4665_v31, 16 }
  0x5f   : > { %4087 = vmatprep.subr.bf16.mxu1 %v4441_v28  ;;  %4135 = vmatprep.subr.bf16.mxu0 %v4442_v38 }
  0x60   : > { %v1204_v58 = vor.u32 %v1203_v46, %v4915_v21  ;;  %v2443_v13 = vsel %vm4960_vm5, %v3653_v50, %v2442_v26  ;;  %v1289_v50 = vrot.slane %v1287_v12, 5 }
  0x62   : > { %4088 = vmatpush3.bf16.msra.mxu1 %v4441_v28  ;;  %4136 = vmatpush3.bf16.msra.mxu0 %v4442_v38  ;;  %v2444_v28 = vrot.slane %v2442_v26, 4  ;;  %v1299_v38 = vrot.slane %v1297_v18, 4 }
  0x63   : > { %4089 = vmatprep.subr.bf16.mxu1 %v4443_v52  ;;  %4137 = vmatprep.subr.bf16.mxu0 %v4444_v53 }
  0x64   : > { %4010 = vmatmul.mubr.bf16.gmra.mxu1 %v4762_v2  ;;  %4058 = vmatmul.mubr.bf16.gmra.mxu0 %v4591_v9  ;;  %v1238_v2 = vrot.slane %v1236_v55, 4  ;;  %v1260_v55 = vshrl.u32 %v4626_v20, 16 }
  0x65   : > { %4013 = vmatprep.mubr.bf16.mxu1 %v4789_v34  ;;  %4061 = vmatprep.mubr.bf16.mxu0 %v4634_v22  ;;  %v1251_v34 = vrot.slane %v1249_v63, 4  ;;  %v1263_v63 = vshll.u32 %v4626_v20, 16  ;;  %v1207_v20 = vshll.u32 %v4930_v4, 16 }
  0x66   : > { %4090 = vmatpush3.bf16.msra.mxu1 %v4443_v52  ;;  %4138 = vmatpush3.bf16.msra.mxu0 %v4444_v53  ;;  %v1242_v43 = vor.u32 %v1241_v15, %v1238_v2  ;;  %v1273_v2 = vshrl.u32 %v4637_v23, 16  ;;  %v1262_v27 = vrot.slane %v1260_v55, 4  ;;  %v1321_v15 = vshrl.u32 %v4694_v40, 16 }
  0x67   : > { %4091 = vmatprep.subr.bf16.mxu1 %v4446_v47  ;;  %4139 = vmatprep.subr.bf16.mxu0 %v4447_v59  ;;  %v1252_v45 = vor.u32 %v1251_v34, %v4901_v1  ;;  %v1284_v34 = vshrl.u32 %v4662_v30, 16  ;;  %v1195_v30 = vrot.slane %v1194_v44, 4  ;;  %v1265_v23 = vrot.slane %v1263_v63, 5  ;;  %v4957_v44 = vld [vmem:[%s4568_s26 + $0x2c] sm:$0x1] }
  0x68   : > { %v4923_v53 = vrot.slane %v1242_v43, 4  ;;  %v1311_v43 = vshll.u32 %v4683_v37, 16  ;;  %v1209_v46 = vrot.slane %v1207_v20, 5  ;;  %v1332_v37 = vshrl.u32 %v4719_v49, 16  ;;  %v4967_v63 = vld [vmem:[%s4568_s26 + $0xcc] sm:$0xf] }
  0x69   : > { %v1293_v55 = vshll.u32 %v4665_v31, 16  ;;  %v1200_v31 = vsel %vm4815_vm2, %v1195_v30, %v4915_v21  ;;  %v1317_v52 = vshll.u32 %v4694_v40, 16  ;;  %v1286_v26 = vrot.slane %v1284_v34, 4  ;;  %v4994_v40 = vld [vmem:[%s4568_s26 + $0x38] sm:$0x1] }
  0x6a   : > { %4092 = vmatpush3.bf16.msra.mxu1 %v4446_v47  ;;  %4140 = vmatpush3.bf16.msra.mxu0 %v4447_v59  ;;  %v4925_v47 = vrot.slane %v1252_v45, 4  ;;  %v1205_v45 = vrot.slane %v1204_v58, 4  ;;  %v2445_v59 = vrot.slane %v4820_v62, 5  ;;  %v4970_v62 = vld [vmem:[%s4568_s26 + $0xd0] sm:$0xf]  ;;  %v1335_v30 = vshll.u32 %v4719_v49, 16 }
  0x6b   : > { %4173 = vmatprep.subr.bf16.mxu1 %v4894_v0  ;;  %4221 = vmatprep.subr.bf16.mxu0 %v4899_v14  ;;  %v1345_v34 = vshrl.u32 %v4725_v51, 16  ;;  %v1248_v12 = vsel %vm4815_vm2, %v4923_v53, %v4901_v1  ;;  %v1341_v53 = vshll.u32 %v4725_v51, 16 }
  0x6c   : > { %4014 = vmatmul.mubr.bf16.gmra.mxu1 %v4591_v9  ;;  %4062 = vmatmul.mubr.bf16.gmra.mxu0 %v4657_v29  ;;  %v1407_v9 = vshll.u32 %v4580_v6, 16 }
  0x6d   : > { %4017 = vmatprep.mubr.bf16.mxu1 %v4634_v22  ;;  %4065 = vmatprep.mubr.bf16.mxu0 %v4691_v39 }
  0x74   : > { %4018 = vmatmul.mubr.bf16.gmra.mxu1 %v4657_v29  ;;  %4066 = vmatmul.mubr.bf16.gmra.mxu0 %v4716_v48  ;;  %v4948_v29 = vld [vmem:[%s4568_s26 + $0x20] sm:$0x1] }
  0x75   : > { %4021 = vmatprep.mubr.bf16.mxu1 %v4691_v39  ;;  %4069 = vmatprep.mubr.bf16.mxu0 %v4751_v60  ;;  %v1275_v39 = vrot.slane %v1273_v2, 4  ;;  %v1255_v22 = vshll.u32 %v4948_v29, 16  ;;  %v1266_v2 = vor.u32 %v1265_v23, %v1262_v27  ;;  %v1279_v23 = vshll.u32 %v4957_v44, 16 }
  0x77   : > { %v1276_v20 = vor.u32 %v1275_v39, %v4950_v36  ;;  %v1257_v27 = vrot.slane %v1255_v22, 5  ;;  %v1310_v22 = vrot.slane %v1308_v19, 4  ;;  %v1313_v39 = vrot.slane %v1311_v43, 5 }
  0x78   : > { %v1267_v18 = vrot.slane %v1266_v2, 4  ;;  %v1290_v43 = vor.u32 %v1289_v50, %v1286_v26  ;;  %v1369_v2 = vshrl.u32 %v4741_v57, 16  ;;  %v1334_v50 = vrot.slane %v1332_v37, 4 }
  0x79   : > { %v1277_v49 = vrot.slane %v1276_v20, 4  ;;  %v1258_v19 = vsel %vm4815_vm2, %v4925_v47, %v1257_v27  ;;  %v1314_v1 = vor.u32 %v1313_v39, %v1310_v22  ;;  %v1380_v20 = vshrl.u32 %v4767_v10, 16 }
  0x7a   : > { %v5020_v27 = vcombine.low %v1248_v12, %v1258_v19  ;;  %v1337_v22 = vrot.slane %v1335_v30, 5  ;;  %v5028_v39 = vrot.slane %v1341_v53, 5  ;;  %v5031_v19 = vld [vmem:[%s4568_s26 + $0x50] sm:$0x1]  ;;  %v1393_v37 = vshrl.u32 %v4770_v11, 16 }
  0x7c   : > { %4022 = vmatmul.mubr.bf16.gmra.mxu1 %v4716_v48  ;;  %4070 = vmatmul.mubr.bf16.gmra.mxu0 %v4764_v3  ;;  %v1210_v48 = vsel %vm4815_vm2, %v1205_v45, %v1209_v46  ;;  %v3601_v45 = vcombine.low %v4967_v63, %v4970_v62 }
  0x7d   : > { %4025 = vmatprep.mubr.bf16.mxu1 %v4751_v60  ;;  %4073 = vmatprep.mubr.bf16.mxu0 %v4791_v35  ;;  %v2446_v60 = vsel %vm4960_vm5, %v2444_v28, %v2445_v59  ;;  %v4986_v35 = vrot.slane %v1293_v55, 5  ;;  %v3610_v46 = vcombine.low %v1200_v31, %v1210_v48  ;;  %v4997_v28 = vrot.slane %v1317_v52, 5 }
  0x7e   : > { %v4988_v21 = vcombine.low %v2443_v13, %v2446_v60  ;;  %v1323_v59 = vrot.slane %v1321_v15, 4  ;;  %v1281_v55 = vrot.slane %v1279_v23, 5  ;;  %v5004_v13 = vld [vmem:[%s4568_s26 + $0x44] sm:$0x1]  ;;  %v1303_v52 = vshll.u32 %v4994_v40, 16 }
  0x7f   : > { %v1300_v31 = vor.u32 %v1299_v38, %v4986_v35  ;;  %v1356_v15 = vshrl.u32 %v4738_v56, 16  ;;  %v1359_v48 = vshll.u32 %v4738_v56, 16  ;;  %v1327_v47 = vshll.u32 %v5004_v13, 16 }
  0x80   : > { %v1324_v38 = vor.u32 %v1323_v59, %v4997_v28  ;;  %v1272_v56 = vsel %vm4815_vm2, %v1267_v18, %v4950_v36  ;;  %v1282_v51 = vsel %vm4815_vm2, %v1277_v49, %v1281_v55  ;;  %v1291_v23 = vrot.slane %v1290_v43, 4 }
  0x81   : > { %v1301_v26 = vrot.slane %v1300_v31, 4  ;;  %v1305_v60 = vrot.slane %v1303_v52, 5  ;;  %v1329_v12 = vrot.slane %v1327_v47, 5  ;;  %v1358_v36 = vrot.slane %v1356_v15, 4  ;;  %v5049_v31 = vld [vmem:[%s4568_s26 + $0x5c] sm:$0x1] }
  0x82   : > { %v1325_v59 = vrot.slane %v1324_v38, 4  ;;  %v1361_v18 = vrot.slane %v1359_v48, 5  ;;  %v1383_v49 = vshll.u32 %v4767_v10, 16  ;;  %v5034_v55 = vcombine.low %v1272_v56, %v1282_v51  ;;  %v4451_v10 = vld [vmem:[%s6219_s1 + $0xb0] sm:$0xff]  }
  0x83   : > { %v1371_v43 = vrot.slane %v1369_v2, 4  ;;  %v1296_v30 = vsel %vm4815_vm2, %v1291_v23, %v4986_v35  ;;  %v1389_v52 = vshll.u32 %v4770_v11, 16  ;;  %v1306_v35 = vsel %vm4815_vm2, %v1301_v26, %v1305_v60  ;;  %v5066_v2 = vld [vmem:[%s4568_s26 + $0x70] sm:$0xf] }
  0x84   : > { %4026 = vmatmul.mubr.bf16.gmra.mxu1 %v4764_v3  ;;  %4074 = vmatmul.mubr.bf16.gmra.mxu0 %v3601_v45  ;;  %v1365_v3 = vshll.u32 %v4741_v57, 16  ;;  %v1315_v45 = vrot.slane %v1314_v1, 4  ;;  %v1338_v15 = vor.u32 %v1337_v22, %v1334_v50  ;;  %v1351_v1 = vshll.u32 %v5031_v19, 16 }
  0x85   : > { %4093 = vmatprep.mubr.bf16.mxu1 %v3610_v46  ;;  %4141 = vmatprep.mubr.bf16.mxu0 %v4843_v7  ;;  %v1347_v46 = vrot.slane %v1345_v34, 4  ;;  %v4450_v34 = vld [vmem:[%s6219_s1 + $0x1f0] sm:$0xff]   ;;  %v1362_v53 = vor.u32 %v1361_v18, %v1358_v36  ;;  %v1413_v38 = vshll.u32 %v5066_v2, 16  ;;  %v1375_v47 = vshll.u32 %v5049_v31, 16 }
  0x86   : > { %v5036_v57 = vrot.slane %v1365_v3, 5  ;;  %v1320_v11 = vsel %vm4815_vm2, %v1315_v45, %v4997_v28  ;;  %v1382_v56 = vrot.slane %v1380_v20, 4  ;;  %v1385_v51 = vrot.slane %v1383_v49, 5 }
  0x87   : > { %v1348_v48 = vor.u32 %v1347_v46, %v5028_v39  ;;  %v1455_v3 = vshll.u32 %v4640_v24, 16  ;;  %v5080_v23 = vcombine.low %v1296_v30, %v1306_v35  ;;  %v5082_v26 = vrot.slane %v1389_v52, 5  ;;  %v5098_v35 = vld [vmem:[%s4568_s26 + $0x74] sm:$0x1] }
  0x88   : > { %v1372_v28 = vor.u32 %v1371_v43, %v5036_v57  ;;  %v1395_v60 = vrot.slane %v1393_v37, 4  ;;  %v1339_v45 = vrot.slane %v1338_v15, 4  ;;  %v1353_v46 = vrot.slane %v1351_v1, 5 }
  0x89   : > { %v1349_v22 = vrot.slane %v1348_v48, 4  ;;  %v1406_v20 = vrot.slane %v1404_v5, 4  ;;  %v5093_v36 = vrot.slane %v1413_v38, 5  ;;  %v6237_v18 = vshrl.u32 %v4587_v8, 16  ;;  %v4454_v8 = vld [vmem:[%s6219_s1 + $0x1e0] sm:$0xff]  }
  0x8a   : > { %v1363_v43 = vrot.slane %v1362_v53, 4  ;;  %v1373_v37 = vrot.slane %v1372_v28, 4  ;;  %v1377_v30 = vrot.slane %v1375_v47, 5  ;;  %v1386_v52 = vor.u32 %v1385_v51, %v1382_v56  ;;  %v5130_v56 = vld [vmem:[%s4568_s26 + $0x88] sm:$0xf] }
  0x8b   : > { %v1419_v49 = vrot.slane %v6237_v18, 4  ;;  %v1476_v5 = vshrl.u32 %v4668_v32, 16  ;;  %v1396_v6 = vor.u32 %v1395_v60, %v5082_v26  ;;  %v1479_v15 = vshll.u32 %v4668_v32, 16 }
  0x8c   : > { %4094 = vmatmul.mubr.bf16.vlgmr.msra.gmra.mxu1 %v4843_v7  ;;  %4142 = vmatmul.mubr.bf16.vlgmr.msra.gmra.mxu0 %v5020_v27  ;;  %v1330_v7 = vsel %vm4815_vm2, %v1325_v59, %v1329_v12  ;;  %v5087_v59 = vld [vmem:[%s4568_s26 + $0x68] sm:$0x1]  ;;  %v1409_v12 = vrot.slane %v1407_v9, 5  ;;  %v1489_v48 = vshrl.u32 %v4671_v33, 16  ;;  %v1437_v1 = vshll.u32 %v4617_v17, 16 }
  0x8d   : > { %4174 = vmatpush3.bf16.msra.mxu1 %v4894_v0  ;;  %4222 = vmatpush3.bf16.msra.mxu0 %v4899_v14  ;;  %v4452_v0 = vld [vmem:[%s6219_s1 + $0x1e8] sm:$0xff]   ;;  %v5084_v50 = vcombine.low %v1320_v11, %v1330_v7  ;;  %v1399_v9 = vshll.u32 %v5087_v59, 16  ;;  %v1354_v11 = vsel %vm4815_vm2, %v1349_v22, %v1353_v46  ;;  %v1420_v53 = vor.u32 %v1419_v49, %v5093_v36  ;;  %v5147_v49 = vld [vmem:[%s4568_s26 + $0x80] sm:$0x1] }
  0x8e   : > { %4097 = vmatprep.mubr.bf16.mxu1 %v5020_v27  ;;  %4145 = vmatprep.mubr.bf16.mxu0 %v5034_v55  ;;  %v4453_v14 = vld [vmem:[%s6219_s1 + $0xa8] sm:$0xff]   ;;  %v1410_v7 = vor.u32 %v1409_v12, %v1406_v20  ;;  %v1423_v38 = vshll.u32 %v5098_v35, 16  ;;  %v1378_v28 = vsel %vm4815_vm2, %v1373_v37, %v1377_v30  ;;  %v1387_v47 = vrot.slane %v1386_v52, 4  ;;  %v4457_v20 = vld [vmem:[%s6219_s1 + $0x98] sm:$0xff]  }
  0x8f   : > { %4175 = vmatprep.subr.bf16.mxu1 %v4450_v34  ;;  %4223 = vmatprep.subr.bf16.mxu0 %v4451_v10  ;;  %v1461_v51 = vshll.u32 %v5130_v56, 16  ;;  %v1397_v60 = vrot.slane %v1396_v6, 4  ;;  %v6239_v22 = vshll.u32 %v4614_v16, 16  ;;  %v1500_v12 = vshrl.u32 %v4697_v41, 16 }
  0x90   : > { %v6240_v37 = vshrl.u32 %v4617_v17, 16  ;;  %v1411_v52 = vrot.slane %v1410_v7, 4  ;;  %v1421_v6 = vrot.slane %v1420_v53, 4  ;;  %v1392_v17 = vsel %vm4815_vm2, %v1387_v47, %v5082_v26 }
  0x91   : > { %4176 = vmatpush3.bf16.msra.mxu1 %v4450_v34  ;;  %4224 = vmatpush3.bf16.msra.mxu0 %v4451_v10  ;;  %v1465_v34 = vshrl.u32 %v4643_v25, 16  ;;  %v4455_v10 = vld [vmem:[%s6219_s1 + $0xa0] sm:$0xff]   ;;  %v1344_v25 = vsel %vm4815_vm2, %v1339_v45, %v5028_v39  ;;  %v1368_v39 = vsel %vm4815_vm2, %v1363_v43, %v5036_v57  ;;  %v1401_v45 = vrot.slane %v1399_v9, 5  ;;  %v4456_v57 = vld [vmem:[%s6219_s1 + $0x1d8] sm:$0xff]  }
  0x92   : > { %4177 = vmatprep.subr.bf16.mxu1 %v4452_v0  ;;  %4225 = vmatprep.subr.bf16.mxu0 %v4453_v14  ;;  %v1433_v46 = vrot.slane %v6239_v22, 5  ;;  %v5144_v18 = vcombine.low %v1344_v25, %v1354_v11  ;;  %v5149_v43 = vrot.slane %v1437_v1, 5  ;;  %v5153_v30 = vcombine.low %v1368_v39, %v1378_v28  ;;  %v5182_v39 = vld [vmem:[%s4568_s26 + $0x94] sm:$0xf] }
  0x93   : > { %v1425_v9 = vrot.slane %v1423_v38, 5  ;;  %v1457_v25 = vrot.slane %v1455_v3, 5  ;;  %v5159_v11 = vrot.slane %v1461_v51, 5  ;;  %v1467_v1 = vrot.slane %v1465_v34, 4  ;;  %v4459_v3 = vld [vmem:[%s6219_s1 + $0x90] sm:$0xff]  }
  0x94   : > { %4098 = vmatmul.mubr.bf16.gmra.mxu1 %v5034_v55  ;;  %4146 = vmatmul.mubr.bf16.gmra.mxu0 %v5080_v23  ;;  %v1402_v7 = vsel %vm4815_vm2, %v1397_v60, %v1401_v45  ;;  %v1503_v26 = vshll.u32 %v4697_v41, 16  ;;  %v1513_v34 = vshrl.u32 %v4700_v42, 16  ;;  %v1485_v28 = vshll.u32 %v5182_v39, 16  ;;  %v5194_v51 = vld [vmem:[%s4568_s26 + $0xa0] sm:$0xf] }
  0x95   : > { %4101 = vmatprep.mubr.bf16.mxu1 %v5080_v23  ;;  %4149 = vmatprep.mubr.bf16.mxu0 %v5084_v50  ;;  %v1416_v41 = vsel %vm4815_vm2, %v1411_v52, %v5093_v36  ;;  %v1426_v42 = vsel %vm4815_vm2, %v1421_v6, %v1425_v9  ;;  %6242 = vst [vmem:[#allocation2_spill] sm:$0xff] %v5194_v51  ;;  %v1509_v60 = vshll.u32 %v5194_v51, 16  ;;  %v1478_v36 = vrot.slane %v1476_v5, 4  ;;  %v5259_v51 = vld [vmem:[%s4568_s26 + $0xb8] sm:$0xf] }
  0x96   : > { %4178 = vmatpush3.bf16.msra.mxu1 %v4452_v0  ;;  %4226 = vmatpush3.bf16.msra.mxu0 %v4453_v14  ;;  %v6238_v0 = vshrl.u32 %v4614_v16, 16  ;;  %v1443_v16 = vrot.slane %v6240_v37, 4  ;;  %v5197_v45 = vcombine.low %v1392_v17, %v1402_v7  ;;  %v1481_v52 = vrot.slane %v1479_v15, 5  ;;  %v5223_v7 = vld [vmem:[%s4568_s26 + $0xa8] sm:$0xf]  ;;  %6248 = vst [vmem:[#allocation8_spill] sm:$0xff] %v5259_v51 }
  0x97   : > { %4179 = vmatprep.subr.bf16.mxu1 %v4454_v8  ;;  %4227 = vmatprep.subr.bf16.mxu0 %v4455_v10  ;;  %v5211_v6 = vcombine.low %v1416_v41, %v1426_v42  ;;  %v5216_v5 = vrot.slane %v1485_v28, 5  ;;  %v1491_v32 = vrot.slane %v1489_v48, 4  ;;  %v1502_v15 = vrot.slane %v1500_v12, 4  ;;  %6244 = vst [vmem:[#allocation4_spill] sm:$0xff] %v5223_v7  ;;  %v5227_v28 = vld [vmem:[%s4568_s26 + $0xa4] sm:$0x1] }
  0x98   : > { %v1430_v14 = vrot.slane %v6238_v0, 4  ;;  %v6241_v0 = vshrl.u32 %v4640_v24, 16  ;;  %v4458_v24 = vld [vmem:[%s6219_s1 + $0x1d0] sm:$0xff]   ;;  %v1444_v38 = vor.u32 %v1443_v16, %v5149_v43  ;;  %v1515_v17 = vrot.slane %v1513_v34, 4  ;;  %6245 = vst [vmem:[#allocation5_spill] sm:$0xff] %v5227_v28 }
  0x99   : > { %v5230_v42 = vld [vmem:[%s4568_s26 + $0xac] sm:$0xf]  ;;  %v5234_v48 = vld [vmem:[%s4568_s26 + $0xb4] sm:$0xf] }
  0x9a   : > { %4180 = vmatpush3.bf16.msra.mxu1 %v4454_v8  ;;  %4228 = vmatpush3.bf16.msra.mxu0 %v4455_v10  ;;  %v1454_v22 = vrot.slane %v6241_v0, 4  ;;  %v1434_v53 = vor.u32 %v1433_v46, %v1430_v14  ;;  %v1447_v8 = vshll.u32 %v5147_v49, 16  ;;  %v5168_v10 = vld [vmem:[%s4568_s26 + $0x8c] sm:$0x1]  ;;  %v1468_v46 = vor.u32 %v1467_v1, %v5159_v11  ;;  %6246 = vst [vmem:[#allocation6_spill] sm:$0xff] %v5230_v42 }
  0x9b   : > { %4181 = vmatprep.subr.bf16.mxu1 %v4456_v57  ;;  %4229 = vmatprep.subr.bf16.mxu0 %v4457_v20  ;;  %v1471_v37 = vshll.u32 %v5168_v10, 16  ;;  %v1445_v9 = vrot.slane %v1444_v38, 4  ;;  %v5220_v1 = vrot.slane %v1509_v60, 5  ;;  %v1537_v33 = vshrl.u32 %v5230_v42, 16  ;;  %6247 = vst [vmem:[#allocation7_spill] sm:$0xff] %v5234_v48 }
  0x9c   : > { %4102 = vmatmul.mubr.bf16.gmra.mxu1 %v5084_v50  ;;  %4150 = vmatmul.mubr.bf16.gmra.mxu0 %v5144_v18  ;;  %v1458_v14 = vor.u32 %v1457_v25, %v1454_v22  ;;  %v1435_v16 = vrot.slane %v1434_v53, 4  ;;  %v1449_v0 = vrot.slane %v1447_v8, 5  ;;  %v5214_v22 = vld [vmem:[%s4568_s26 + $0x98] sm:$0x1]  ;;  %v1505_v25 = vrot.slane %v1503_v26, 5 }
  0x9d   : > { %4105 = vmatprep.mubr.bf16.mxu1 %v5144_v18  ;;  %4153 = vmatprep.mubr.bf16.mxu0 %v5153_v30  ;;  %6243 = vst [vmem:[#allocation3_spill] sm:$0xff] %v5214_v22  ;;  %v1527_v53 = vshll.u32 %v5223_v7, 16  ;;  %v1469_v38 = vrot.slane %v1468_v46, 4  ;;  %v1473_v41 = vrot.slane %v1471_v37, 5  ;;  %v1548_v12 = vshrl.u32 %v5234_v48, 16 }
  0x9e   : > { %4182 = vmatpush3.bf16.msra.mxu1 %v4456_v57  ;;  %4230 = vmatpush3.bf16.msra.mxu0 %v4457_v20  ;;  %v4460_v57 = vld [vmem:[%s6219_s1 + $0x1c8] sm:$0xff]   ;;  %v1459_v8 = vrot.slane %v1458_v14, 4  ;;  %v1482_v26 = vor.u32 %v1481_v52, %v1478_v36  ;;  %v1495_v34 = vshll.u32 %v5214_v22, 16  ;;  %v1440_v60 = vsel %vm4815_vm2, %v1435_v16, %v5149_v43 }
  0x9f   : > { %4183 = vmatprep.subr.bf16.mxu1 %v4458_v24  ;;  %4231 = vmatprep.subr.bf16.mxu0 %v4459_v3  ;;  %v4461_v20 = vld [vmem:[%s6219_s1 + $0x88] sm:$0xff]   ;;  %v1450_v14 = vsel %vm4815_vm2, %v1445_v9, %v1449_v0  ;;  %v1492_v46 = vor.u32 %v1491_v32, %v5216_v5  ;;  %v1533_v37 = vshll.u32 %v5230_v42, 16  ;;  %v1551_v36 = vshll.u32 %v5234_v48, 16 }
  0xa0   : > { %v1506_v52 = vor.u32 %v1505_v25, %v1502_v15  ;;  %v1516_v47 = vor.u32 %v1515_v17, %v5220_v1  ;;  %v1519_v7 = vshll.u32 %v5227_v28, 16  ;;  %v1561_v43 = vshrl.u32 %v5259_v51, 16  ;;  %v5326_v22 = vld [vmem:[%s4568_s26 + $0xc8] sm:$0x1] }
  0xa1   : > { %v1464_v16 = vsel %vm4815_vm2, %v1459_v8, %v5159_v11  ;;  %v1474_v0 = vsel %vm4815_vm2, %v1469_v38, %v1473_v41  ;;  %v1557_v9 = vshll.u32 %v5259_v51, 16  ;;  %v5268_v32 = vcombine.low %v1440_v60, %v1450_v14  ;;  %v5275_v11 = vld [vmem:[%s6219_s1 + $0x178] sm:$0xff]   ;;  %v5287_v14 = vld [vmem:[%s4568_s26 + $0xb0] sm:$0x1] }
  0xa2   : > { %4184 = vmatpush3.bf16.msra.mxu1 %v4458_v24  ;;  %4232 = vmatpush3.bf16.msra.mxu0 %v4459_v3  ;;  %v4462_v24 = vld [vmem:[%s6219_s1 + $0x1c0] sm:$0xff]   ;;  %v1483_v15 = vrot.slane %v1482_v26, 4  ;;  %v1497_v25 = vrot.slane %v1495_v34, 5  ;;  %v6249_v17 = vshrl.u32 %v4734_v54, 16  ;;  %v1529_v8 = vrot.slane %v1527_v53, 5  ;;  %6250 = vst [vmem:[#allocation9_spill] sm:$0xff] %v5287_v14 }
  0xa3   : > { %4185 = vmatprep.subr.bf16.mxu1 %v4460_v57  ;;  %4233 = vmatprep.subr.bf16.mxu0 %v4461_v20  ;;  %v4463_v3 = vld [vmem:[%s6219_s1 + $0x80] sm:$0xff]   ;;  %v5282_v38 = vrot.slane %v1533_v37, 5  ;;  %v1539_v41 = vrot.slane %v1537_v33, 4  ;;  %v5284_v54 = vcombine.low %v1464_v16, %v1474_v0  ;;  %v1507_v26 = vrot.slane %v1506_v52, 4 }
  0xa4   : > { %4106 = vmatmul.mubr.bf16.gmra.mxu1 %v5153_v30  ;;  %4154 = vmatmul.mubr.bf16.gmra.mxu0 %v5197_v45  ;;  %v1526_v48 = vrot.slane %v6249_v17, 4  ;;  %v1517_v34 = vrot.slane %v1516_v47, 4  ;;  %v1521_v60 = vrot.slane %v1519_v7, 5  ;;  %v1550_v17 = vrot.slane %v1548_v12, 4  ;;  %v5298_v7 = vld [vmem:[%s4568_s26 + $0xbc] sm:$0x1] }
  0xa5   : > { %4109 = vmatprep.mubr.bf16.mxu1 %v5197_v45  ;;  %4157 = vmatprep.mubr.bf16.mxu0 %v5211_v6  ;;  %v1553_v51 = vrot.slane %v1551_v36, 5  ;;  %v1559_v28 = vrot.slane %v1557_v9, 5  ;;  %v1563_v42 = vrot.slane %v1561_v43, 4  ;;  %v1488_v47 = vsel %vm4815_vm2, %v1483_v15, %v5216_v5  ;;  %v5309_v36 = vld [vmem:[%s4568_s26 + $0xc4] sm:$0xf] }
  0xa6   : > { %4186 = vmatpush3.bf16.msra.mxu1 %v4460_v57  ;;  %4234 = vmatpush3.bf16.msra.mxu0 %v4461_v20  ;;  %v5280_v57 = vld [vmem:[%s6219_s1 + $0x238] sm:$0xff]   ;;  %v1493_v20 = vrot.slane %v1492_v46, 4  ;;  %v5290_v46 = vld [vmem:[%s4568_s26 + $0xc0] sm:$0xf]  ;;  %v1543_v37 = vshll.u32 %v5287_v14, 16  ;;  %6252 = vst [vmem:[#allocation11_spill] sm:$0xff] %v5309_v36  ;;  %v1512_v52 = vsel %vm4815_vm2, %v1507_v26, %v5220_v1  ;;  %v1522_v43 = vsel %vm4815_vm2, %v1517_v34, %v1521_v60 }
  0xa7   : > { %4187 = vmatprep.subr.bf16.mxu1 %v4462_v24  ;;  %4235 = vmatprep.subr.bf16.mxu0 %v4463_v3  ;;  %6251 = vst [vmem:[#allocation10_spill] sm:$0xff] %v5290_v46  ;;  %v1877_v53 = vshrl.u32 %v5290_v46, 16  ;;  %v1880_v33 = vshll.u32 %v5290_v46, 16  ;;  %v1890_v5 = vshrl.u32 %v5309_v36, 16  ;;  %v1554_v16 = vor.u32 %v1553_v51, %v1550_v17 }
  0xa8   : > { %v1498_v12 = vsel %vm4815_vm2, %v1493_v20, %v1497_v25  ;;  %v1564_v0 = vor.u32 %v1563_v42, %v1559_v28  ;;  %v1567_v9 = vshll.u32 %v5298_v7, 16  ;;  %v5323_v25 = vcombine.low %v1512_v52, %v1522_v43 }
  0xa9   : > { %v5321_v15 = vcombine.low %v1488_v47, %v1498_v12  ;;  %v1879_v46 = vrot.slane %v1877_v53, 4  ;;  %v1882_v14 = vrot.slane %v1880_v33, 5  ;;  %v1892_v26 = vrot.slane %v1890_v5, 4 }
  0xaa   : > { %4188 = vmatpush3.bf16.msra.mxu1 %v4462_v24  ;;  %4236 = vmatpush3.bf16.msra.mxu0 %v4463_v3  ;;  %v1530_v24 = vor.u32 %v1529_v8, %v1526_v48  ;;  %v1540_v3 = vor.u32 %v1539_v41, %v5282_v38  ;;  %v1886_v48 = vshll.u32 %v5309_v36, 16  ;;  %v1545_v41 = vrot.slane %v1543_v37, 5 }
  0xab   : > { %4269 = vmatprep.subr.bf16.mxu1 %v5275_v11  ;;  %4317 = vmatprep.subr.bf16.mxu0 %v5280_v57  ;;  %v1555_v34 = vrot.slane %v1554_v16, 4  ;;  %v1565_v60 = vrot.slane %v1564_v0, 4  ;;  %v1569_v36 = vrot.slane %v1567_v9, 5  ;;  %v1883_v17 = vor.u32 %v1882_v14, %v1879_v46  ;;  %v4491_v14 = vld [vmem:[%s4568_s26] sm:$0xf] }
  0xac   : > { %4110 = vmatmul.mubr.bf16.gmra.mxu1 %v5211_v6  ;;  %4158 = vmatmul.mubr.bf16.gmra.mxu0 %v5268_v32  ;;  %v1531_v20 = vrot.slane %v1530_v24, 4  ;;  %v1541_v8 = vrot.slane %v1540_v3, 4  ;;  %v1888_v1 = vrot.slane %v1886_v48, 5  ;;  %v1896_v33 = vshll.u32 %v5326_v22, 16 }
  0xad   : > { %4113 = vmatprep.mubr.bf16.mxu1 %v5268_v32  ;;  %4161 = vmatprep.mubr.bf16.mxu0 %v5284_v54  ;;  %v1560_v47 = vsel %vm4815_vm2, %v1555_v34, %v1559_v28  ;;  %v1570_v12 = vsel %vm4815_vm2, %v1565_v60, %v1569_v36  ;;  %v1884_v5 = vrot.slane %v1883_v17, 4  ;;  %v3652_v46 = vrot.slane %v4491_v14, 9  ;;  %v5353_v36 = vld [vmem:[%s4568_s26 + $0xd4] sm:$0x1] }
  0xae   : > { %v1536_v51 = vsel %vm4815_vm2, %v1531_v20, %v5282_v38  ;;  %v1546_v42 = vsel %vm4815_vm2, %v1541_v8, %v1545_v41  ;;  %v1893_v53 = vor.u32 %v1892_v26, %v1888_v1  ;;  %v4490_v38 = vld [vmem:[%s4568_s26 + $0x4] sm:$0xf]  ;;  %v5345_v37 = vcombine.low %v1560_v47, %v1570_v12  ;;  %v4492_v26 = vld [vmem:[%s4568_s26 + $0x1c] sm:$0xf] }
  0xaf   : > { %v2435_v24 = vrot.slane %v4490_v38, 5  ;;  %v5343_v3 = vcombine.low %v1536_v51, %v1546_v42  ;;  %v1898_v43 = vrot.slane %v1896_v33, 5  ;;  %v2438_v16 = vrot.slane %v4930_v4, 5  ;;  %v4493_v33 = vld [vmem:[%s4568_s26 + $0x18] sm:$0xf] }
  0xb0   : > { %v1894_v52 = vrot.slane %v1893_v53, 4  ;;  %v3106_v28 = vrot.slane %v4970_v62, 5  ;;  %v3702_v0 = vrot.slane %v4967_v63, 9  ;;  %v1889_v9 = vsel %vm4815_vm2, %v1884_v5, %v1888_v1 }
  0xb1   : > { %v2437_v48 = vrot.slane %v2435_v24, 4  ;;  %v3109_v20 = vrot.slane %v5353_v36, 5  ;;  %v2436_v8 = vsel %vm4960_vm5, %v3652_v46, %v2435_v24  ;;  %v2449_v34 = vrot.slane %v4492_v26, 5  ;;  %v4494_v24 = vld [vmem:[%s4568_s26 + $0x28] sm:$0xf] }
  0xb2   : > { %v1899_v4 = vsel %vm4815_vm2, %v1894_v52, %v1898_v43  ;;  %v3108_v60 = vrot.slane %v3106_v28, 4  ;;  %v5372_v1 = vsel %vm4960_vm5, %v3702_v0, %v3106_v28  ;;  %v3654_v47 = vrot.slane %v4493_v33, 9  ;;  %v4495_v52 = vld [vmem:[%s4568_s26 + $0x34] sm:$0xf]  ;;  %v4498_v26 = vld [vmem:[%s4568_s26 + $0x40] sm:$0xf] }
  0xb3   : > { %v2439_v41 = vsel %vm4960_vm5, %v2437_v48, %v2438_v16  ;;  %v5368_v51 = vcombine.low %v1889_v9, %v1899_v4  ;;  %v2451_v12 = vrot.slane %v2449_v34, 4  ;;  %v2452_v38 = vrot.slane %v4948_v29, 5  ;;  %v4496_v48 = vld [vmem:[%s4568_s26 + $0x24] sm:$0xf] }
  0xb4   : > { %4114 = vmatmul.mubr.bf16.gmra.mxu1 %v5284_v54  ;;  %4162 = vmatmul.mubr.bf16.gmra.mxu0 %v5321_v15  ;;  %v3668_v42 = vcombine.low %v2436_v8, %v2439_v41  ;;  %v5376_v17 = vsel %vm4960_vm5, %v3108_v60, %v3109_v20  ;;  %v2456_v5 = vrot.slane %v4494_v24, 5  ;;  %v2463_v43 = vrot.slane %v4495_v52, 5  ;;  %v4466_v8 = vld [vmem:[%s6219_s1 + $0x170] sm:$0xff]   ;;  %v4469_v60 = vld [vmem:[%s6219_s1 + $0x228] sm:$0xff]  }
  0xb5   : > { %4117 = vmatprep.mubr.bf16.mxu1 %v5321_v15  ;;  %4165 = vmatprep.mubr.bf16.mxu0 %v5323_v25  ;;  %v3703_v53 = vcombine.low %v5372_v1, %v5376_v17  ;;  %v2450_v14 = vsel %vm4960_vm5, %v3654_v47, %v2449_v34  ;;  %v2453_v46 = vsel %vm4960_vm5, %v2451_v12, %v2452_v38  ;;  %v3655_v29 = vrot.slane %v4496_v48, 9  ;;  %v4467_v41 = vld [vmem:[%s6219_s1 + $0x230] sm:$0xff]   ;;  %v4500_v12 = vld [vmem:[%s4568_s26 + $0x3c] sm:$0xf]  ;;  %v4501_v52 = vld [vmem:[%s4568_s26 + $0x48] sm:$0xf] }
  0xb6   : > { %v2458_v16 = vrot.slane %v2456_v5, 4  ;;  %v2459_v28 = vrot.slane %v4957_v44, 5  ;;  %v5393_v0 = vcombine.low %v2450_v14, %v2453_v46  ;;  %v2465_v4 = vrot.slane %v2463_v43, 4  ;;  %v4470_v48 = vld [vmem:[%s6219_s1 + $0x160] sm:$0xff]  }
  0xb7   : > { %v2466_v20 = vrot.slane %v4994_v40, 5  ;;  %v2457_v44 = vsel %vm4960_vm5, %v3655_v29, %v2456_v5  ;;  %v2470_v34 = vrot.slane %v4498_v26, 5  ;;  %v3657_v38 = vrot.slane %v4500_v12, 9  ;;  %v4471_v29 = vld [vmem:[%s6219_s1 + $0x220] sm:$0xff]  }
  0xb8   : > { %v2460_v40 = vsel %vm4960_vm5, %v2458_v16, %v2459_v28  ;;  %v2473_v5 = vrot.slane %v5004_v13, 5  ;;  %v2480_v46 = vrot.slane %v5031_v19, 5  ;;  %v4502_v16 = vld [vmem:[%s4568_s26 + $0x58] sm:$0xf]  ;;  %v2498_v12 = vrot.slane %v5066_v2, 5  ;;  %v4477_v2 = vld [vmem:[%s6219_s1 + $0x208] sm:$0xff]  }
  0xb9   : > { %v2472_v24 = vrot.slane %v2470_v34, 4  ;;  %v2471_v13 = vsel %vm4960_vm5, %v3657_v38, %v2470_v34  ;;  %v2484_v28 = vrot.slane %v4502_v16, 5  ;;  %v2487_v34 = vrot.slane %v5049_v31, 5 }
  0xbb   : > { %v2474_v19 = vsel %vm4960_vm5, %v2472_v24, %v2473_v5  ;;  %v2486_v26 = vrot.slane %v2484_v28, 4  ;;  %v4476_v5 = vld [vmem:[%s6219_s1 + $0x148] sm:$0xff]  }
  0xbc   : > { %4118 = vmatmul.mubr.bf16.gmra.mxu1 %v5323_v25  ;;  %4166 = vmatmul.mubr.bf16.gmra.mxu0 %v5343_v3 }
  0xbd   : > { %4121 = vmatprep.mubr.bf16.mxu1 %v5343_v3  ;;  %4169 = vmatprep.mubr.bf16.mxu0 %v5345_v37 }
  0xc4   : > { %4122 = vmatmul.mubr.bf16.gmra.mxu1 %v5345_v37  ;;  %4170 = vmatmul.mubr.bf16.gmra.mxu0 %v5368_v51 }
  0xc5   : > { %4189 = vmatprep.mubr.bf16.mxu1 %v5020_v27  ;;  %4237 = vmatprep.mubr.bf16.mxu0 %v3668_v42  ;;  %v4497_v27 = vld [vmem:[%s4568_s26 + $0x30] sm:$0xf]  ;;  %v4499_v42 = vld [vmem:[%s4568_s26 + $0x4c] sm:$0xf] }
  0xc6   : > { %v3656_v9 = vrot.slane %v4497_v27, 9  ;;  %v2477_v33 = vrot.slane %v4499_v42, 5  ;;  %v4503_v27 = vld [vmem:[%s4568_s26 + $0x64] sm:$0xf]  ;;  %v4474_v42 = vld [vmem:[%s6219_s1 + $0x150] sm:$0xff]  }
  0xc8   : > { %v2479_v14 = vrot.slane %v2477_v33, 4 }
  0xcc   : > { %4190 = vmatmul.mubr.bf16.vlgmr.msra.gmra.mxu1 %v5034_v55  ;;  %4238 = vmatmul.mubr.bf16.vlgmr.msra.gmra.mxu0 %v4988_v21  ;;  %v2464_v55 = vsel %vm4960_vm5, %v3656_v9, %v2463_v43  ;;  %v3658_v43 = vrot.slane %v4501_v52, 9  ;;  %v2491_v9 = vrot.slane %v4503_v27, 5 }
  0xcd   : > { %4270 = vmatpush3.bf16.msra.mxu1 %v5275_v11  ;;  %4318 = vmatpush3.bf16.msra.mxu0 %v5280_v57  ;;  %v2467_v11 = vsel %vm4960_vm5, %v2465_v4, %v2466_v20  ;;  %v4468_v57 = vld [vmem:[%s6219_s1 + $0x168] sm:$0xff]   ;;  %v4472_v4 = vld [vmem:[%s6219_s1 + $0x158] sm:$0xff]  }
  0xce   : > { %4193 = vmatprep.mubr.bf16.mxu1 %v5080_v23  ;;  %4241 = vmatprep.mubr.bf16.mxu0 %v5393_v0  ;;  %v5425_v23 = vcombine.low %v2457_v44, %v2460_v40  ;;  %v5427_v47 = vcombine.low %v2464_v55, %v2467_v11  ;;  %v4473_v20 = vld [vmem:[%s6219_s1 + $0x218] sm:$0xff]   ;;  %v4504_v44 = vld [vmem:[%s4568_s26 + $0x54] sm:$0xf]  ;;  %v4505_v55 = vld [vmem:[%s4568_s26 + $0x60] sm:$0xf] }
  0xcf   : > { %4271 = vmatprep.subr.bf16.mxu1 %v4466_v8  ;;  %4319 = vmatprep.subr.bf16.mxu0 %v4467_v41  ;;  %v3659_v40 = vrot.slane %v4504_v44, 9  ;;  %v3660_v11 = vrot.slane %v4505_v55, 9 }
  0xd1   : > { %4272 = vmatpush3.bf16.msra.mxu1 %v4466_v8  ;;  %4320 = vmatpush3.bf16.msra.mxu0 %v4467_v41  ;;  %v5459_v8 = vcombine.low %v2471_v13, %v2474_v19  ;;  %v2485_v31 = vsel %vm4960_vm5, %v3659_v40, %v2484_v28  ;;  %v2492_v38 = vsel %vm4960_vm5, %v3660_v11, %v2491_v9  ;;  %v4508_v13 = vld [vmem:[%s4568_s26 + $0x78] sm:$0xf]  ;;  %v2508_v28 = vrot.slane %v5147_v49, 5 }
  0xd2   : > { %4273 = vmatprep.subr.bf16.mxu1 %v4468_v57  ;;  %4321 = vmatprep.subr.bf16.mxu0 %v4469_v60  ;;  %v3662_v19 = vrot.slane %v4508_v13, 9  ;;  %v2515_v40 = vrot.slane %v5168_v10, 5 }
  0xd4   : > { %4194 = vmatmul.mubr.bf16.gmra.mxu1 %v5084_v50  ;;  %4242 = vmatmul.mubr.bf16.gmra.mxu0 %v5425_v23  ;;  %v2478_v50 = vsel %vm4960_vm5, %v3658_v43, %v2477_v33  ;;  %v4475_v33 = vld [vmem:[%s6219_s1 + $0x210] sm:$0xff]  }
  0xd5   : > { %4197 = vmatprep.mubr.bf16.mxu1 %v5144_v18  ;;  %4245 = vmatprep.mubr.bf16.mxu0 %v5427_v47  ;;  %v2481_v18 = vsel %vm4960_vm5, %v2479_v14, %v2480_v46  ;;  %v4507_v14 = vld [vmem:[%s4568_s26 + $0x6c] sm:$0xf] }
  0xd6   : > { %4274 = vmatpush3.bf16.msra.mxu1 %v4468_v57  ;;  %4322 = vmatpush3.bf16.msra.mxu0 %v4469_v60  ;;  %v5461_v41 = vcombine.low %v2478_v50, %v2481_v18  ;;  %v2493_v57 = vrot.slane %v2491_v9, 4  ;;  %v2494_v60 = vrot.slane %v5087_v59, 5  ;;  %v2488_v59 = vsel %vm4960_vm5, %v2486_v26, %v2487_v34  ;;  %v4478_v50 = vld [vmem:[%s6219_s1 + $0x140] sm:$0xff]   ;;  %v4510_v34 = vld [vmem:[%s4568_s26 + $0x90] sm:$0xf] }
  0xd7   : > { %4275 = vmatprep.subr.bf16.mxu1 %v4470_v48  ;;  %4323 = vmatprep.subr.bf16.mxu0 %v4471_v29  ;;  %v5493_v52 = vcombine.low %v2485_v31, %v2488_v59  ;;  %v3661_v46 = vrot.slane %v4507_v14, 9  ;;  %v4479_v18 = vld [vmem:[%s6219_s1 + $0x200] sm:$0xff]   ;;  %v3664_v55 = vrot.slane %v4510_v34, 9 }
  0xd9   : > { %v2499_v49 = vsel %vm4960_vm5, %v3661_v46, %v2498_v12 }
  0xda   : > { %4276 = vmatpush3.bf16.msra.mxu1 %v4470_v48  ;;  %4324 = vmatpush3.bf16.msra.mxu0 %v4471_v29  ;;  %v2500_v48 = vrot.slane %v2498_v12, 4  ;;  %v2501_v29 = vrot.slane %v5098_v35, 5  ;;  %v2512_v35 = vrot.slane %v5130_v56, 5  ;;  %v6254_v12 = vld [vmem:[#allocation2_spill] sm:$0xff] }
  0xdb   : > { %4277 = vmatprep.subr.bf16.mxu1 %v4472_v4  ;;  %4325 = vmatprep.subr.bf16.mxu0 %v4473_v20 }
  0xdc   : > { %4198 = vmatmul.mubr.bf16.gmra.mxu1 %v5153_v30  ;;  %4246 = vmatmul.mubr.bf16.gmra.mxu0 %v5459_v8  ;;  %v2495_v30 = vsel %vm4960_vm5, %v2493_v57, %v2494_v60  ;;  %v2502_v27 = vsel %vm4960_vm5, %v2500_v48, %v2501_v29  ;;  %v2514_v44 = vrot.slane %v2512_v35, 4  ;;  %v6253_v57 = vld [vmem:[#allocation3_spill] sm:$0xff]  ;;  %v4511_v48 = vld [vmem:[%s4568_s26 + $0x9c] sm:$0xf] }
  0xdd   : > { %4201 = vmatprep.mubr.bf16.mxu1 %v5197_v45  ;;  %4249 = vmatprep.mubr.bf16.mxu0 %v5461_v41  ;;  %v4506_v45 = vld [vmem:[%s4568_s26 + $0x7c] sm:$0xf]  ;;  %v5495_v43 = vcombine.low %v2492_v38, %v2495_v30  ;;  %v5521_v56 = vcombine.low %v2499_v49, %v2502_v27  ;;  %v2522_v60 = vrot.slane %v6253_v57, 5  ;;  %v2526_v38 = vrot.slane %v6254_v12, 5 }
  0xde   : > { %4278 = vmatpush3.bf16.msra.mxu1 %v4472_v4  ;;  %4326 = vmatpush3.bf16.msra.mxu0 %v4473_v20  ;;  %v2505_v24 = vrot.slane %v4506_v45, 5  ;;  %v2519_v4 = vrot.slane %v5182_v39, 5  ;;  %v2146_v39 = vshrl.u32 %v4967_v63, 16  ;;  %v2516_v59 = vsel %vm4960_vm5, %v2514_v44, %v2515_v40  ;;  %v6256_v29 = vld [vmem:[#allocation5_spill] sm:$0xff] }
  0xdf   : > { %4279 = vmatprep.subr.bf16.mxu1 %v4474_v42  ;;  %4327 = vmatprep.subr.bf16.mxu0 %v4475_v33  ;;  %v2159_v30 = vshrl.u32 %v4970_v62, 16  ;;  %v2529_v13 = vrot.slane %v6256_v29, 5  ;;  %v2543_v29 = vrot.slane %v5298_v7, 5 }
  0xe0   : > { %v2507_v16 = vrot.slane %v2505_v24, 4  ;;  %v2506_v9 = vsel %vm4960_vm5, %v3662_v19, %v2505_v24  ;;  %v2521_v11 = vrot.slane %v2519_v4, 4  ;;  %v6257_v19 = vld [vmem:[#allocation4_spill] sm:$0xff]  ;;  %v2148_v49 = vrot.slane %v2146_v39, 4 }
  0xe2   : > { %4280 = vmatpush3.bf16.msra.mxu1 %v4474_v42  ;;  %4328 = vmatpush3.bf16.msra.mxu0 %v4475_v33  ;;  %v2149_v42 = vshll.u32 %v4967_v63, 16  ;;  %v6255_v63 = vld [vmem:[#allocation6_spill] sm:$0xff]  ;;  %v2523_v14 = vsel %vm4960_vm5, %v2521_v11, %v2522_v60 }
  0xe3   : > { %4281 = vmatprep.subr.bf16.mxu1 %v4476_v5  ;;  %4329 = vmatprep.subr.bf16.mxu0 %v4477_v2  ;;  %v2533_v45 = vrot.slane %v6255_v63, 5 }
  0xe4   : > { %4202 = vmatmul.mubr.bf16.gmra.mxu1 %v5211_v6  ;;  %4250 = vmatmul.mubr.bf16.gmra.mxu0 %v5493_v52  ;;  %v2509_v6 = vsel %vm4960_vm5, %v2507_v16, %v2508_v28  ;;  %v3666_v16 = vrot.slane %v6257_v19, 9  ;;  %v2151_v27 = vrot.slane %v2149_v42, 5 }
  0xe5   : > { %4205 = vmatprep.mubr.bf16.mxu1 %v5268_v32  ;;  %4253 = vmatprep.mubr.bf16.mxu0 %v5495_v43  ;;  %v4509_v32 = vld [vmem:[%s4568_s26 + $0x84] sm:$0xf]  ;;  %v5525_v26 = vcombine.low %v2506_v9, %v2509_v6  ;;  %v2535_v6 = vrot.slane %v2533_v45, 4  ;;  %s3715_s26 = sshll.u32 %s6346_s16, 8 }
  0xe6   : > { %4282 = vmatpush3.bf16.msra.mxu1 %v4476_v5  ;;  %4330 = vmatpush3.bf16.msra.mxu0 %v4477_v2  ;;  %v3663_v20 = vrot.slane %v4509_v32, 9  ;;  %v2520_v2 = vsel %vm4960_vm5, %v3664_v55, %v2519_v4  ;;  %v2161_v32 = vrot.slane %v2159_v30, 4  ;;  %v2534_v57 = vsel %vm4960_vm5, %v3666_v16, %v2533_v45  ;;  %s6021_s29 = scalar_lea.vmem %s6221_s3, %s3715_s26  ;;  %s6042_s7 = scalar_lea.vmem %s6222_s4, %s3715_s26 }
  0xe7   : > { %4283 = vmatprep.subr.bf16.mxu1 %v4478_v50  ;;  %4331 = vmatprep.subr.bf16.mxu0 %v4479_v18  ;;  %v5565_v9 = vcombine.low %v2520_v2, %v2523_v14  ;;  %v2152_v60 = vor.u32 %v2151_v27, %v2148_v49  ;;  %v6260_v2 = vld [vmem:[#allocation7_spill] sm:$0xff] }
  0xe8   : > { %v2513_v10 = vsel %vm4960_vm5, %v3663_v20, %v2512_v35  ;;  %v3667_v14 = vrot.slane %v6260_v2, 9 }
  0xe9   : > { %v5555_v46 = vcombine.low %v2513_v10, %v2516_v59  ;;  %v2165_v10 = vshll.u32 %v5353_v36, 16 }
  0xea   : > { %4284 = vmatpush3.bf16.msra.mxu1 %v4478_v50  ;;  %4332 = vmatpush3.bf16.msra.mxu0 %v4479_v18  ;;  %v2528_v50 = vrot.slane %v2526_v38, 4  ;;  %v6258_v18 = vld [vmem:[#allocation9_spill] sm:$0xff] }
  0xeb   : > { %v2536_v35 = vrot.slane %v6258_v18, 5 }
  0xec   : > { %v5531_v33 = vpop.f32.mrf.mxu0  ;;  %v5533_v31 = vpop.f32.mrf.mxu1  ;;  %4206 = vmatmul.mubr.bf16.gmra.mxu1 %v5284_v54  ;;  %4254 = vmatmul.mubr.bf16.gmra.mxu0 %v5521_v56  ;;  %v2155_v54 = vshll.u32 %v4970_v62, 16  ;;  %v2530_v11 = vsel %vm4960_vm5, %v2528_v50, %v2529_v13 }
  0xed   : > { %4209 = vmatprep.mubr.bf16.mxu1 %v5321_v15  ;;  %4257 = vmatprep.mubr.bf16.mxu0 %v5525_v26  ;;  %v3665_v15 = vrot.slane %v4511_v48, 9  ;;  %v2537_v39 = vsel %vm4960_vm5, %v2535_v6, %v2536_v35 }
  0xee   : > { %v5547_v24 = vpop.f32.mrf.mxu0  ;;  %v5549_v5 = vpop.f32.mrf.mxu1  ;;  %v2157_v4 = vrot.slane %v2155_v54, 5  ;;  %v2153_v54 = vrot.slane %v2152_v60, 4 }
  0xef   : > { %v2527_v40 = vsel %vm4960_vm5, %v3665_v15, %v2526_v38  ;;  %v2167_v15 = vrot.slane %v2165_v10, 5 }
  0xf0   : > { %v5560_v28 = vpop.f32.mrf.mxu0  ;;  %v5562_v62 = vpop.f32.mrf.mxu1  ;;  %v2162_v42 = vor.u32 %v2161_v32, %v2157_v4  ;;  %v5597_v45 = vcombine.low %v2527_v40, %v2530_v11  ;;  %v2158_v18 = vsel %vm4815_vm2, %v2153_v54, %v2157_v4 }
  0xf2   : > { %v5567_v20 = vpop.f32.mrf.mxu0  ;;  %v5569_v44 = vpop.f32.mrf.mxu1  ;;  %v2163_v48 = vrot.slane %v2162_v42, 4 }
  0xf4   : > { %v5573_v34 = vpop.f32.mrf.mxu0  ;;  %v5575_v55 = vpop.f32.mrf.mxu1  ;;  %4210 = vmatmul.mubr.bf16.gmra.mxu1 %v5323_v25  ;;  %4258 = vmatmul.mubr.bf16.gmra.mxu0 %v5555_v46  ;;  %v6259_v25 = vld [vmem:[#allocation8_spill] sm:$0xff]  ;;  %v2168_v7 = vsel %vm4815_vm2, %v2163_v48, %v2167_v15 }
  0xf5   : > { %4213 = vmatprep.mubr.bf16.mxu1 %v5343_v3  ;;  %4261 = vmatprep.mubr.bf16.mxu0 %v5565_v9  ;;  %v2540_v59 = vrot.slane %v6259_v25, 5  ;;  %v5599_v3 = vcombine.low %v2534_v57, %v2537_v39 }
  0xf6   : > { %v5589_v12 = vpop.f32.mrf.mxu0  ;;  %v5591_v38 = vpop.f32.mrf.mxu1 }
  0xf7   : > { %v2542_v36 = vrot.slane %v2540_v59, 4  ;;  %v2541_v35 = vsel %vm4960_vm5, %v3667_v14, %v2540_v59 }
  0xf8   : > { %v5593_v30 = vpop.f32.mrf.mxu0  ;;  %v5595_v63 = vpop.f32.mrf.mxu1 }
  0xf9   : > { %v2544_v49 = vsel %vm4960_vm5, %v2542_v36, %v2543_v29 }
  0xfa   : > { %v5603_v13 = vpop.f32.mrf.mxu0  ;;  %v5605_v19 = vpop.f32.mrf.mxu1  ;;  %v5631_v32 = vcombine.low %v2541_v35, %v2544_v49 }
  0xfc   : > { %v5607_v16 = vpop.f32.mrf.mxu0  ;;  %v5609_v50 = vpop.f32.mrf.mxu1  ;;  %4214 = vmatmul.mubr.bf16.gmra.mxu1 %v5345_v37  ;;  %4262 = vmatmul.mubr.bf16.gmra.mxu0 %v5597_v45 }
  0xfd   : > { %4217 = vmatprep.mubr.bf16.mxu1 %v5368_v51  ;;  %4265 = vmatprep.mubr.bf16.mxu0 %v5599_v3  ;;  %v3643_v51 = vcombine.low %v2158_v18, %v2168_v7 }
  0xfe   : > { %v5623_v27 = vpop.f32.mrf.mxu0  ;;  %v5625_v37 = vpop.f32.mrf.mxu1 }
 0x100   : > { %v5627_v6 = vpop.f32.mrf.mxu0  ;;  %v5629_v4 = vpop.f32.mrf.mxu1 }
 0x102   : > { %v5633_v40 = vpop.f32.mrf.mxu0  ;;  %v5635_v61 = vpop.f32.mrf.mxu1 }
 0x104   : > { %v5637_v11 = vpop.f32.mrf.mxu0  ;;  %v5639_v57 = vpop.f32.mrf.mxu1  ;;  %4218 = vmatmul.mubr.bf16.gmra.mxu1 %v3643_v51  ;;  %4266 = vmatmul.mubr.bf16.gmra.mxu0 %v5631_v32 }
 0x105   : > { %4285 = vmatprep.mubr.bf16.mxu1 %v4988_v21  ;;  %4333 = vmatprep.mubr.bf16.mxu0 %v5393_v0 }
 0x106   : > { %v5644_v60 = vpop.f32.mrf.mxu0  ;;  %v5646_v39 = vpop.f32.mrf.mxu1 }
 0x108   : > { %v5648_v42 = vpop.f32.mrf.mxu0  ;;  %v5650_v10 = vpop.f32.mrf.mxu1 }
 0x10a   : > { %v5652_v25 = vpop.f32.mrf.mxu0  ;;  %v5654_v59 = vpop.f32.mrf.mxu1 }
 0x10c   : > { %v3999_v54 = vpop.f32.mrf.mxu1  ;;  %v4047_v2 = vpop.f32.mrf.mxu0  ;;  %4286 = vmatmul.mubr.bf16.vlgmr.msra.gmra.mxu1 %v5393_v0  ;;  %4334 = vmatmul.mubr.bf16.vlgmr.msra.gmra.mxu0 %v5425_v23 }
 0x10d   : > { %v819_v21 = vadd.f32 %v3999_v54, %v5531_v33  ;;  %4289 = vmatprep.mubr.bf16.mxu1 %v5425_v23  ;;  %4337 = vmatprep.mubr.bf16.mxu0 %v5427_v47 }
 0x10e   : > { %v810_v14 = vpop.f32.mrf.mxu1  ;;  %v1025_v48 = vpop.f32.mrf.mxu0 }
 0x10f   : > { %v5661_v15 = vadd.f32 %v4047_v2, %v819_v21  ;;  %v811_v36 = vadd.f32 %v810_v14, %v5547_v24 }
 0x110   : > { %v4000_v29 = vpop.f32.mrf.mxu1  ;;  %v4048_v18 = vpop.f32.mrf.mxu0 }
 0x111   : > { %v5664_v7 = vadd.f32 %v1025_v48, %v811_v36  ;;  %v822_v0 = vadd.f32 %v4000_v29, %v5560_v28 }
 0x112   : > { %v813_v35 = vpop.f32.mrf.mxu1  ;;  %v1028_v49 = vpop.f32.mrf.mxu0 }
 0x113   : > { %v5667_v51 = vadd.f32 %v4048_v18, %v822_v0  ;;  %v814_v23 = vadd.f32 %v813_v35, %v5567_v20 }
 0x114   : > { %v4003_v33 = vpop.f32.mrf.mxu1  ;;  %v4051_v54 = vpop.f32.mrf.mxu0  ;;  %4290 = vmatmul.mubr.bf16.gmra.mxu1 %v5427_v47  ;;  %4338 = vmatmul.mubr.bf16.gmra.mxu0 %v5459_v8 }
 0x115   : > { %v5672_v2 = vadd.f32 %v1028_v49, %v814_v23  ;;  %v835_v24 = vadd.f32 %v4003_v33, %v5573_v34  ;;  %4293 = vmatprep.mubr.bf16.mxu1 %v5459_v8  ;;  %4341 = vmatprep.mubr.bf16.mxu0 %v5461_v41 }
 0x116   : > { %v826_v28 = vpop.f32.mrf.mxu1  ;;  %v1041_v21 = vpop.f32.mrf.mxu0 }
 0x117   : > { %v5677_v14 = vadd.f32 %v4051_v54, %v835_v24  ;;  %v827_v20 = vadd.f32 %v826_v28, %v5589_v12 }
 0x118   : > { %v4004_v48 = vpop.f32.mrf.mxu1  ;;  %v4052_v36 = vpop.f32.mrf.mxu0 }
 0x119   : > { %v5680_v29 = vadd.f32 %v1041_v21, %v827_v20  ;;  %v838_v47 = vadd.f32 %v4004_v48, %v5593_v30 }
 0x11a   : > { %v829_v18 = vpop.f32.mrf.mxu1  ;;  %v1044_v0 = vpop.f32.mrf.mxu0 }
 0x11b   : > { %v5683_v35 = vadd.f32 %v4052_v36, %v838_v47  ;;  %v830_v8 = vadd.f32 %v829_v18, %v5603_v13 }
 0x11c   : > { %v4007_v34 = vpop.f32.mrf.mxu1  ;;  %v4055_v49 = vpop.f32.mrf.mxu0  ;;  %4294 = vmatmul.mubr.bf16.gmra.mxu1 %v5461_v41  ;;  %4342 = vmatmul.mubr.bf16.gmra.mxu0 %v5493_v52 }
 0x11d   : > { %v5688_v23 = vadd.f32 %v1044_v0, %v830_v8  ;;  %v851_v12 = vadd.f32 %v4007_v34, %v5607_v16  ;;  %4297 = vmatprep.mubr.bf16.mxu1 %v5493_v52  ;;  %4345 = vmatprep.mubr.bf16.mxu0 %v5495_v43 }
 0x11e   : > { %v842_v30 = vpop.f32.mrf.mxu1  ;;  %v1057_v33 = vpop.f32.mrf.mxu0 }
 0x11f   : > { %v5693_v54 = vadd.f32 %v4055_v49, %v851_v12  ;;  %v843_v13 = vadd.f32 %v842_v30, %v5623_v27 }
 0x120   : > { %v4008_v24 = vpop.f32.mrf.mxu1  ;;  %v4056_v28 = vpop.f32.mrf.mxu0 }
 0x121   : > { %v5696_v21 = vadd.f32 %v1057_v33, %v843_v13  ;;  %v854_v41 = vadd.f32 %v4008_v24, %v5627_v6 }
 0x122   : > { %v845_v20 = vpop.f32.mrf.mxu1  ;;  %v1060_v48 = vpop.f32.mrf.mxu0 }
 0x123   : > { %v5699_v36 = vadd.f32 %v4056_v28, %v854_v41  ;;  %v846_v52 = vadd.f32 %v845_v20, %v5633_v40  ;;  %v6261_v20 = vld [vmem:[#allocation11_spill] sm:$0xff] }
 0x124   : > { %v4011_v16 = vpop.f32.mrf.mxu1  ;;  %v4059_v47 = vpop.f32.mrf.mxu0  ;;  %4298 = vmatmul.mubr.bf16.gmra.mxu1 %v5495_v43  ;;  %4346 = vmatmul.mubr.bf16.gmra.mxu0 %v5521_v56 }
 0x125   : > { %v5704_v18 = vadd.f32 %v1060_v48, %v846_v52  ;;  %v867_v27 = vadd.f32 %v4011_v16, %v5637_v11  ;;  %4301 = vmatprep.mubr.bf16.mxu1 %v5521_v56  ;;  %4349 = vmatprep.mubr.bf16.mxu0 %v5525_v26  ;;  %v2853_v48 = vrot.slane %v6261_v20, 5 }
 0x126   : > { %v858_v6 = vpop.f32.mrf.mxu1  ;;  %v1073_v0 = vpop.f32.mrf.mxu0 }
 0x127   : > { %v5709_v8 = vadd.f32 %v4059_v47, %v867_v27  ;;  %v859_v40 = vadd.f32 %v858_v6, %v5644_v60 }
 0x128   : > { %v4012_v34 = vpop.f32.mrf.mxu1  ;;  %v4060_v49 = vpop.f32.mrf.mxu0 }
 0x129   : > { %v5712_v12 = vadd.f32 %v1073_v0, %v859_v40  ;;  %v870_v43 = vadd.f32 %v4012_v34, %v5648_v42  ;;  %v6262_v0 = vld [vmem:[#allocation10_spill] sm:$0xff]  ;;  %v2855_v40 = vrot.slane %v2853_v48, 4  ;;  %v2856_v34 = vrot.slane %v5326_v22, 5 }
 0x12a   : > { %v861_v30 = vpop.f32.mrf.mxu1  ;;  %v1076_v33 = vpop.f32.mrf.mxu0 }
 0x12b   : > { %v5715_v13 = vadd.f32 %v4060_v49, %v870_v43  ;;  %v862_v56 = vadd.f32 %v861_v30, %v5652_v25 }
 0x12c   : > { %v4015_v11 = vpop.f32.mrf.mxu1  ;;  %v4063_v24 = vpop.f32.mrf.mxu0  ;;  %4302 = vmatmul.mubr.bf16.gmra.mxu1 %v5525_v26  ;;  %4350 = vmatmul.mubr.bf16.gmra.mxu0 %v5555_v46 }
 0x12d   : > { %v5720_v28 = vadd.f32 %v1076_v33, %v862_v56  ;;  %v883_v60 = vadd.f32 %v4015_v11, %v5533_v31  ;;  %4305 = vmatprep.mubr.bf16.mxu1 %v5555_v46  ;;  %4353 = vmatprep.mubr.bf16.mxu0 %v5565_v9  ;;  %v3692_v46 = vrot.slane %v6262_v0, 9 }
 0x12e   : > { %v874_v42 = vpop.f32.mrf.mxu1  ;;  %v1089_v41 = vpop.f32.mrf.mxu0 }
 0x12f   : > { %v5726_v52 = vadd.f32 %v4063_v24, %v883_v60  ;;  %v875_v25 = vadd.f32 %v874_v42, %v5549_v5  ;;  %v2854_v11 = vsel %vm4960_vm5, %v3692_v46, %v2853_v48 }
 0x130   : > { %v4016_v16 = vpop.f32.mrf.mxu1  ;;  %v4064_v26 = vpop.f32.mrf.mxu0 }
 0x131   : > { %v5729_v47 = vadd.f32 %v1089_v41, %v875_v25  ;;  %v886_v27 = vadd.f32 %v4016_v16, %v5562_v62 }
 0x132   : > { %v877_v6 = vpop.f32.mrf.mxu1  ;;  %v1092_v31 = vpop.f32.mrf.mxu0 }
 0x133   : > { %v5734_v49 = vadd.f32 %v4064_v26, %v886_v27  ;;  %v878_v43 = vadd.f32 %v877_v6, %v5569_v44  ;;  %v2857_v44 = vsel %vm4960_vm5, %v2855_v40, %v2856_v34 }
 0x134   : > { %v4019_v30 = vpop.f32.mrf.mxu1  ;;  %v4067_v33 = vpop.f32.mrf.mxu0  ;;  %4306 = vmatmul.mubr.bf16.gmra.mxu1 %v5565_v9  ;;  %4354 = vmatmul.mubr.bf16.gmra.mxu0 %v5597_v45 }
 0x135   : > { %v5739_v5 = vadd.f32 %v1092_v31, %v878_v43  ;;  %v899_v62 = vadd.f32 %v4019_v30, %v5575_v55  ;;  %4309 = vmatprep.mubr.bf16.mxu1 %v5597_v45  ;;  %4357 = vmatprep.mubr.bf16.mxu0 %v5599_v3  ;;  %v3693_v45 = vcombine.low %v2854_v11, %v2857_v44 }
 0x136   : > { %v890_v56 = vpop.f32.mrf.mxu1  ;;  %v1105_v22 = vpop.f32.mrf.mxu0 }
 0x137   : > { %v5748_v24 = vadd.f32 %v4067_v33, %v899_v62  ;;  %v891_v9 = vadd.f32 %v890_v56, %v5591_v38 }
 0x138   : > { %v4020_v60 = vpop.f32.mrf.mxu1  ;;  %v4068_v42 = vpop.f32.mrf.mxu0 }
 0x139   : > { %v5751_v41 = vadd.f32 %v1105_v22, %v891_v9  ;;  %v902_v55 = vadd.f32 %v4020_v60, %v5595_v63 }
 0x13a   : > { %v893_v20 = vpop.f32.mrf.mxu1  ;;  %v1108_v25 = vpop.f32.mrf.mxu0 }
 0x13b   : > { %v5754_v16 = vadd.f32 %v4068_v42, %v902_v55  ;;  %v894_v48 = vadd.f32 %v893_v20, %v5605_v19 }
 0x13c   : > { %v4023_v26 = vpop.f32.mrf.mxu1  ;;  %v4071_v58 = vpop.f32.mrf.mxu0  ;;  %4310 = vmatmul.mubr.bf16.gmra.mxu1 %v5599_v3  ;;  %4358 = vmatmul.mubr.bf16.gmra.mxu0 %v5631_v32 }
 0x13d   : > { %v5759_v38 = vadd.f32 %v1108_v25, %v894_v48  ;;  %v915_v27 = vadd.f32 %v4023_v26, %v5609_v50  ;;  %4313 = vmatprep.mubr.bf16.mxu1 %v5631_v32  ;;  %4361 = vmatprep.mubr.bf16.mxu0 %v3693_v45 }
 0x13e   : > { %v906_v63 = vpop.f32.mrf.mxu1  ;;  %v1121_v6 = vpop.f32.mrf.mxu0 }
 0x13f   : > { %v5763_v31 = vadd.f32 %v4071_v58, %v915_v27  ;;  %v907_v0 = vadd.f32 %v906_v63, %v5625_v37 }
 0x140   : > { %v4024_v19 = vpop.f32.mrf.mxu1  ;;  %v4072_v46 = vpop.f32.mrf.mxu0 }
 0x141   : > { %v5766_v40 = vadd.f32 %v1121_v6, %v907_v0  ;;  %v918_v3 = vadd.f32 %v4024_v19, %v5629_v4 }
 0x142   : > { %v909_v34 = vpop.f32.mrf.mxu1  ;;  %v1124_v43 = vpop.f32.mrf.mxu0 }
 0x143   : > { %v5769_v30 = vadd.f32 %v4072_v46, %v918_v3  ;;  %v910_v50 = vadd.f32 %v909_v34, %v5635_v61 }
 0x144   : > { %v4027_v32 = vpop.f32.mrf.mxu1  ;;  %v4075_v33 = vpop.f32.mrf.mxu0  ;;  %4314 = vmatmul.mubr.bf16.gmra.mxu1 %v3693_v45  ;;  %4362 = vmatmul.mubr.bf16.gmra.mxu0 %v3703_v53 }
 0x145   : > { %v5775_v37 = vadd.f32 %v1124_v43, %v910_v50  ;;  %v931_v62 = vadd.f32 %v4027_v32, %v5639_v57 }
 0x146   : > { %v922_v56 = vpop.f32.mrf.mxu1  ;;  %v1137_v22 = vpop.f32.mrf.mxu0 }
 0x147   : > { %v5778_v4 = vadd.f32 %v4075_v33, %v931_v62  ;;  %v923_v11 = vadd.f32 %v922_v56, %v5646_v39 }
 0x148   : > { %v4028_v44 = vpop.f32.mrf.mxu1  ;;  %v4076_v9 = vpop.f32.mrf.mxu0 }
 0x149   : > { %v5781_v61 = vadd.f32 %v1137_v22, %v923_v11  ;;  %v934_v60 = vadd.f32 %v4028_v44, %v5650_v10 }
 0x14a   : > { %v925_v42 = vpop.f32.mrf.mxu1  ;;  %v1140_v55 = vpop.f32.mrf.mxu0 }
 0x14b   : > { %v5784_v1 = vadd.f32 %v4076_v9, %v934_v60  ;;  %v926_v17 = vadd.f32 %v925_v42, %v5654_v59 }
 0x14c   : > { %v4095_v53 = vpop.f32.mrf.mxu1  ;;  %v4143_v57 = vpop.f32.mrf.mxu0 }
 0x14d   : > { %v5787_v45 = vadd.f32 %v1140_v55, %v926_v17  ;;  %v1846_v20 = vadd.f32 %v4095_v53, %v5661_v15 }
 0x14e   : > { %v1717_v25 = vpop.f32.mrf.mxu1  ;;  %v1986_v39 = vpop.f32.mrf.mxu0 }
 0x14f   : > { %v5790_v48 = vadd.f32 %v4143_v57, %v1846_v20  ;;  %v1844_v26 = vadd.f32 %v1717_v25, %v5664_v7 }
 0x150   : > { %v4096_v58 = vpop.f32.mrf.mxu1  ;;  %v4144_v10 = vpop.f32.mrf.mxu0 }
 0x151   : > { %v5793_v27 = vadd.f32 %v1986_v39, %v1844_v26  ;;  %v1847_v63 = vadd.f32 %v4096_v58, %v5667_v51 }
 0x152   : > { %v1720_v6 = vpop.f32.mrf.mxu1  ;;  %v1989_v59 = vpop.f32.mrf.mxu0 }
 0x153   : > { %v5796_v0 = vadd.f32 %v4144_v10, %v1847_v63  ;;  %v1845_v19 = vadd.f32 %v1720_v6, %v5672_v2 }
 0x154   : > { %v4099_v46 = vpop.f32.mrf.mxu1  ;;  %v4147_v15 = vpop.f32.mrf.mxu0 }
 0x155   : > { %v5799_v3 = vadd.f32 %v1989_v59, %v1845_v19  ;;  %v1850_v34 = vadd.f32 %v4099_v46, %v5677_v14 }
 0x156   : > { %v1733_v43 = vpop.f32.mrf.mxu1  ;;  %v2002_v7 = vpop.f32.mrf.mxu0 }
 0x157   : > { %v5802_v50 = vadd.f32 %v4147_v15, %v1850_v34  ;;  %v1848_v32 = vadd.f32 %v1733_v43, %v5680_v29 }
 0x158   : > { %v4100_v33 = vpop.f32.mrf.mxu1  ;;  %v4148_v51 = vpop.f32.mrf.mxu0 }
 0x159   : > { %v5805_v62 = vadd.f32 %v2002_v7, %v1848_v32  ;;  %v1851_v56 = vadd.f32 %v4100_v33, %v5683_v35 }
 0x15a   : > { %v1736_v22 = vpop.f32.mrf.mxu1  ;;  %v2005_v2 = vpop.f32.mrf.mxu0 }
 0x15b   : > { %v5808_v11 = vadd.f32 %v4148_v51, %v1851_v56  ;;  %v1849_v44 = vadd.f32 %v1736_v22, %v5688_v23 }
 0x15c   : > { %v4103_v9 = vpop.f32.mrf.mxu1  ;;  %v4151_v14 = vpop.f32.mrf.mxu0 }
 0x15d   : > { %v5811_v60 = vadd.f32 %v2005_v2, %v1849_v44  ;;  %v1854_v42 = vadd.f32 %v4103_v9, %v5693_v54 }
 0x15e   : > { %v1749_v55 = vpop.f32.mrf.mxu1  ;;  %v2018_v29 = vpop.f32.mrf.mxu0 }
 0x15f   : > { %v5814_v17 = vadd.f32 %v4151_v14, %v1854_v42  ;;  %v1852_v53 = vadd.f32 %v1749_v55, %v5696_v21 }
 0x160   : > { %v4104_v57 = vpop.f32.mrf.mxu1  ;;  %v4152_v35 = vpop.f32.mrf.mxu0 }
 0x161   : > { %v5817_v20 = vadd.f32 %v2018_v29, %v1852_v53  ;;  %v1855_v25 = vadd.f32 %v4104_v57, %v5699_v36 }
 0x162   : > { %v1752_v39 = vpop.f32.mrf.mxu1  ;;  %v2021_v23 = vpop.f32.mrf.mxu0 }
 0x163   : > { %v5820_v26 = vadd.f32 %v4152_v35, %v1855_v25  ;;  %v1853_v58 = vadd.f32 %v1752_v39, %v5704_v18 }
 0x164   : > { %v4107_v10 = vpop.f32.mrf.mxu1  ;;  %v4155_v54 = vpop.f32.mrf.mxu0 }
 0x165   : > { %v5823_v63 = vadd.f32 %v2021_v23, %v1853_v58  ;;  %v1858_v6 = vadd.f32 %v4107_v10, %v5709_v8 }
 0x166   : > { %v1765_v59 = vpop.f32.mrf.mxu1  ;;  %v2034_v21 = vpop.f32.mrf.mxu0 }
 0x167   : > { %v5826_v19 = vadd.f32 %v4155_v54, %v1858_v6  ;;  %v1856_v46 = vadd.f32 %v1765_v59, %v5712_v12 }
 0x168   : > { %v4108_v15 = vpop.f32.mrf.mxu1  ;;  %v4156_v36 = vpop.f32.mrf.mxu0 }
 0x169   : > { %v5829_v34 = vadd.f32 %v2034_v21, %v1856_v46  ;;  %v1859_v43 = vadd.f32 %v4108_v15, %v5715_v13 }
 0x16a   : > { %v1768_v7 = vpop.f32.mrf.mxu1  ;;  %v2037_v18 = vpop.f32.mrf.mxu0 }
 0x16b   : > { %v5832_v32 = vadd.f32 %v4156_v36, %v1859_v43  ;;  %v1857_v33 = vadd.f32 %v1768_v7, %v5720_v28 }
 0x16c   : > { %v4111_v51 = vpop.f32.mrf.mxu1  ;;  %v4159_v8 = vpop.f32.mrf.mxu0 }
 0x16d   : > { %v5835_v56 = vadd.f32 %v2037_v18, %v1857_v33  ;;  %v1862_v22 = vadd.f32 %v4111_v51, %v5726_v52 }
 0x16e   : > { %v1781_v2 = vpop.f32.mrf.mxu1  ;;  %v2050_v12 = vpop.f32.mrf.mxu0 }
 0x16f   : > { %v5838_v44 = vadd.f32 %v4159_v8, %v1862_v22  ;;  %v1860_v9 = vadd.f32 %v1781_v2, %v5729_v47 }
 0x170   : > { %v4112_v14 = vpop.f32.mrf.mxu1  ;;  %v4160_v13 = vpop.f32.mrf.mxu0 }
 0x171   : > { %v5841_v42 = vadd.f32 %v2050_v12, %v1860_v9  ;;  %v1863_v55 = vadd.f32 %v4112_v14, %v5734_v49 }
 0x172   : > { %v1784_v29 = vpop.f32.mrf.mxu1  ;;  %v2053_v28 = vpop.f32.mrf.mxu0 }
 0x173   : > { %v5844_v53 = vadd.f32 %v4160_v13, %v1863_v55  ;;  %v1861_v57 = vadd.f32 %v1784_v29, %v5739_v5 }
 0x174   : > { %v4115_v35 = vpop.f32.mrf.mxu1  ;;  %v4163_v52 = vpop.f32.mrf.mxu0 }
 0x175   : > { %6263 = vst [vmem:[#allocation3_spill] sm:$0xff] %v5844_v53  ;;  %v5847_v25 = vadd.f32 %v2053_v28, %v1861_v57  ;;  %v1866_v39 = vadd.f32 %v4115_v35, %v5748_v24 }
 0x176   : > { %v1797_v23 = vpop.f32.mrf.mxu1  ;;  %v2066_v47 = vpop.f32.mrf.mxu0 }
 0x177   : > { %6264 = vst [vmem:[#allocation2_spill] sm:$0xff] %v5847_v25  ;;  %v5850_v58 = vadd.f32 %v4163_v52, %v1866_v39  ;;  %v1864_v10 = vadd.f32 %v1797_v23, %v5751_v41 }
 0x178   : > { %v4116_v54 = vpop.f32.mrf.mxu1  ;;  %v4164_v49 = vpop.f32.mrf.mxu0 }
 0x179   : > { %6265 = vst [vmem:[#allocation6_spill] sm:$0xff] %v5850_v58  ;;  %v5853_v6 = vadd.f32 %v2066_v47, %v1864_v10  ;;  %v1867_v59 = vadd.f32 %v4116_v54, %v5754_v16 }
 0x17a   : > { %v1800_v21 = vpop.f32.mrf.mxu1  ;;  %v2069_v5 = vpop.f32.mrf.mxu0 }
 0x17b   : > { %6266 = vst [vmem:[#allocation5_spill] sm:$0xff] %v5853_v6  ;;  %v5856_v46 = vadd.f32 %v4164_v49, %v1867_v59  ;;  %v1865_v15 = vadd.f32 %v1800_v21, %v5759_v38 }
 0x17c   : > { %v4119_v36 = vpop.f32.mrf.mxu1  ;;  %v4167_v24 = vpop.f32.mrf.mxu0 }
 0x17d   : > { %6267 = vst [vmem:[#allocation4_spill] sm:$0xff] %v5856_v46  ;;  %v5859_v43 = vadd.f32 %v2069_v5, %v1865_v15  ;;  %v1870_v7 = vadd.f32 %v4119_v36, %v5763_v31 }
 0x17e   : > { %v1813_v18 = vpop.f32.mrf.mxu1  ;;  %v2082_v41 = vpop.f32.mrf.mxu0 }
 0x17f   : > { %6268 = vst [vmem:[#allocation9_spill] sm:$0xff] %v5859_v43  ;;  %v5862_v33 = vadd.f32 %v4167_v24, %v1870_v7  ;;  %v1868_v51 = vadd.f32 %v1813_v18, %v5766_v40 }
 0x180   : > { %v4120_v8 = vpop.f32.mrf.mxu1  ;;  %v4168_v16 = vpop.f32.mrf.mxu0 }
 0x181   : > { %6269 = vst [vmem:[#allocation8_spill] sm:$0xff] %v5862_v33  ;;  %v5865_v22 = vadd.f32 %v2082_v41, %v1868_v51  ;;  %v1871_v2 = vadd.f32 %v4120_v8, %v5769_v30 }
 0x182   : > { %v1816_v12 = vpop.f32.mrf.mxu1  ;;  %v2085_v38 = vpop.f32.mrf.mxu0 }
 0x183   : > { %6270 = vst [vmem:[#allocation7_spill] sm:$0xff] %v5865_v22  ;;  %v5868_v9 = vadd.f32 %v4168_v16, %v1871_v2  ;;  %v1869_v14 = vadd.f32 %v1816_v12, %v5775_v37 }
 0x184   : > { %v4123_v13 = vpop.f32.mrf.mxu1  ;;  %v4171_v31 = vpop.f32.mrf.mxu0 }
 0x185   : > { %6271 = vst [vmem:[#allocation11_spill] sm:$0xff] %v5868_v9  ;;  %v5871_v55 = vadd.f32 %v2085_v38, %v1869_v14  ;;  %v1874_v29 = vadd.f32 %v4123_v13, %v5778_v4 }
 0x186   : > { %v1829_v28 = vpop.f32.mrf.mxu1  ;;  %v2098_v40 = vpop.f32.mrf.mxu0 }
 0x187   : > { %6272 = vst [vmem:[#allocation10_spill] sm:$0xff] %v5871_v55  ;;  %v5874_v57 = vadd.f32 %v4171_v31, %v1874_v29  ;;  %v1872_v35 = vadd.f32 %v1829_v28, %v5781_v61 }
 0x188   : > { %v4124_v52 = vpop.f32.mrf.mxu1  ;;  %v4172_v30 = vpop.f32.mrf.mxu0 }
 0x189   : > { %6273 = vst [vmem:[#allocation12_spill] sm:$0xff] %v5874_v57  ;;  %v5877_v39 = vadd.f32 %v2098_v40, %v1872_v35  ;;  %v1875_v23 = vadd.f32 %v4124_v52, %v5784_v1 }
 0x18a   : > { %v1832_v47 = vpop.f32.mrf.mxu1  ;;  %v2101_v37 = vpop.f32.mrf.mxu0 }
 0x18b   : > { %6274 = vst [vmem:[#allocation13_spill] sm:$0xff] %v5877_v39  ;;  %v5880_v10 = vadd.f32 %v4172_v30, %v1875_v23  ;;  %v1873_v54 = vadd.f32 %v1832_v47, %v5787_v45 }
 0x18c   : > { %v4191_v49 = vpop.f32.mrf.mxu1  ;;  %v5883_v4 = vpop.f32.mrf.mxu0 }
 0x18d   : > { %6275 = vst [vmem:[#allocation14_spill] sm:$0xff] %v5880_v10  ;;  %v5885_v59 = vadd.f32 %v2101_v37, %v1873_v54 }
 0x18e   : > { %v2255_v21 = vpop.f32.mrf.mxu1  ;;  %v5887_v5 = vpop.f32.mrf.mxu0 }
 0x18f   : > { %6276 = vst [vmem:[#allocation15_spill] sm:$0xff] %v5885_v59 }
 0x190   : > { %v5889_v61 = vpop.f32.mrf.mxu1  ;;  %v5891_v15 = vpop.f32.mrf.mxu0 }
 0x192   : > { %v5893_v36 = vpop.f32.mrf.mxu1  ;;  %v5895_v1 = vpop.f32.mrf.mxu0 }
 0x194   : > { %v5897_v24 = vpop.f32.mrf.mxu1  ;;  %v5899_v7 = vpop.f32.mrf.mxu0 }
 0x196   : > { %v5901_v45 = vpop.f32.mrf.mxu1  ;;  %v5903_v18 = vpop.f32.mrf.mxu0 }
 0x198   : > { %v5905_v41 = vpop.f32.mrf.mxu1  ;;  %v5907_v51 = vpop.f32.mrf.mxu0 }
 0x19a   : > { %v5909_v8 = vpop.f32.mrf.mxu1  ;;  %v5911_v16 = vpop.f32.mrf.mxu0 }
 0x19c   : > { %v5913_v2 = vpop.f32.mrf.mxu1  ;;  %v5915_v12 = vpop.f32.mrf.mxu0 }
 0x19e   : > { %v5917_v38 = vpop.f32.mrf.mxu1  ;;  %v5919_v14 = vpop.f32.mrf.mxu0 }
 0x1a0   : > { %v5921_v13 = vpop.f32.mrf.mxu1  ;;  %v5923_v31 = vpop.f32.mrf.mxu0 }
 0x1a2   : > { %v5925_v29 = vpop.f32.mrf.mxu1  ;;  %v5927_v28 = vpop.f32.mrf.mxu0 }
 0x1a4   : > { %v5929_v40 = vpop.f32.mrf.mxu1  ;;  %v5931_v35 = vpop.f32.mrf.mxu0 }
 0x1a6   : > { %v5933_v52 = vpop.f32.mrf.mxu1  ;;  %v5935_v30 = vpop.f32.mrf.mxu0 }
 0x1a8   : > { %v5937_v23 = vpop.f32.mrf.mxu1  ;;  %v5939_v47 = vpop.f32.mrf.mxu0 }
 0x1aa   : > { %v5941_v37 = vpop.f32.mrf.mxu1  ;;  %v5943_v54 = vpop.f32.mrf.mxu0 }
 0x1ac   : > { %v5945_v59 = vpop.f32.mrf.mxu1  ;;  %v5947_v10 = vpop.f32.mrf.mxu0 }
 0x1ae   : > { %v5949_v39 = vpop.f32.mrf.mxu1  ;;  %v5951_v57 = vpop.f32.mrf.mxu0 }
 0x1af   : > { %6277 = vst [vmem:[#allocation16_spill] sm:$0xff] %v5951_v57 }
 0x1b0   : > { %v5953_v55 = vpop.f32.mrf.mxu1  ;;  %v5955_v9 = vpop.f32.mrf.mxu0 }
 0x1b1   : > { %6278 = vst [vmem:[#allocation17_spill] sm:$0xff] %v5953_v55  ;;  %6279 = vst [vmem:[#allocation18_spill] sm:$0xff] %v5955_v9 }
 0x1b2   : > { %v5957_v22 = vpop.f32.mrf.mxu1  ;;  %v5959_v33 = vpop.f32.mrf.mxu0 }
 0x1b3   : > { %6280 = vst [vmem:[#allocation19_spill] sm:$0xff] %v5957_v22  ;;  %6281 = vst [vmem:[#allocation20_spill] sm:$0xff] %v5959_v33 }
 0x1b4   : > { %v5961_v43 = vpop.f32.mrf.mxu1  ;;  %v5963_v46 = vpop.f32.mrf.mxu0 }
 0x1b5   : > { %6282 = vst [vmem:[#allocation21_spill] sm:$0xff] %v5961_v43  ;;  %6283 = vst [vmem:[#allocation22_spill] sm:$0xff] %v5963_v46 }
 0x1b6   : > { %v5965_v6 = vpop.f32.mrf.mxu1  ;;  %v5967_v58 = vpop.f32.mrf.mxu0 }
 0x1b7   : > { %6284 = vst [vmem:[#allocation23_spill] sm:$0xff] %v5965_v6  ;;  %6285 = vst [vmem:[#allocation24_spill] sm:$0xff] %v5967_v58 }
 0x1b8   : > { %v5969_v25 = vpop.f32.mrf.mxu1  ;;  %v5971_v53 = vpop.f32.mrf.mxu0 }
 0x1b9   : > { %6286 = vst [vmem:[#allocation25_spill] sm:$0xff] %v5969_v25  ;;  %6287 = vst [vmem:[#allocation26_spill] sm:$0xff] %v5971_v53 }
 0x1ba   : > { %v5973_v57 = vpop.f32.mrf.mxu1  ;;  %v5975_v55 = vpop.f32.mrf.mxu0 }
 0x1bb   : > { %6288 = vst [vmem:[#allocation27_spill] sm:$0xff] %v5973_v57  ;;  %6289 = vst [vmem:[#allocation28_spill] sm:$0xff] %v5975_v55 }
 0x1bc   : > { %v5977_v9 = vpop.f32.mrf.mxu1  ;;  %v5979_v22 = vpop.f32.mrf.mxu0 }
 0x1bd   : > { %6290 = vst [vmem:[#allocation29_spill] sm:$0xff] %v5977_v9  ;;  %6291 = vst [vmem:[#allocation30_spill] sm:$0xff] %v5979_v22 }
 0x1be   : > { %v5981_v33 = vpop.f32.mrf.mxu1  ;;  %v5983_v46 = vpop.f32.mrf.mxu0 }
 0x1bf   : > { %6292 = vst [vmem:[#allocation31_spill] sm:$0xff] %v5981_v33  ;;  %6293 = vst [vmem:[#allocation32_spill] sm:$0xff] %v5983_v46  ;;  %v2384_v33 = vadd.f32 %v4191_v49, %v5790_v48  ;;  %v2383_v49 = vadd.f32 %v5893_v36, %v5799_v3 }
 0x1c0   : > { %v5985_v6 = vpop.f32.mrf.mxu1  ;;  %v5987_v58 = vpop.f32.mrf.mxu0 }
 0x1c1   : > { %6294 = vst [vmem:[#allocation33_spill] sm:$0xff] %v5985_v6  ;;  %6295 = vst [vmem:[#allocation34_spill] sm:$0xff] %v5987_v58  ;;  %v2382_v58 = vadd.f32 %v2255_v21, %v5793_v27  ;;  %v2388_v27 = vadd.f32 %v5897_v24, %v5802_v50  ;;  %v3397_v21 = vld [vmem:[%s6021_s29 + $0x10] sm:$0xff]  ;;  %v2819_v50 = vadd.f32 %v5895_v1, %v2383_v49 }
 0x1c2   : > { %v5989_v25 = vpop.f32.mrf.mxu1  ;;  %v5991_v53 = vpop.f32.mrf.mxu0 }
 0x1c3   : > { %6296 = vst [vmem:[#allocation35_spill] sm:$0xff] %v5989_v25  ;;  %6297 = vst [vmem:[#allocation36_spill] sm:$0xff] %v5991_v53  ;;  %v2820_v53 = vadd.f32 %v5883_v4, %v2384_v33  ;;  %v2818_v48 = vadd.f32 %v5887_v5, %v2382_v58  ;;  %v2386_v4 = vadd.f32 %v5901_v45, %v5805_v62  ;;  %v3395_v62 = vld [vmem:[%s6021_s29] sm:$0xff] }
 0x1c4   : > { %v5993_v57 = vpop.f32.mrf.mxu1  ;;  %v5995_v55 = vpop.f32.mrf.mxu0 }
 0x1c5   : > { %6298 = vst [vmem:[#allocation37_spill] sm:$0xff] %v5995_v55  ;;  %v2385_v55 = vadd.f32 %v5889_v61, %v5796_v0  ;;  %v6028_v0 = vld [vmem:[%s6220_s2] ss:$0 sm:$0xff] }
 0x1c6   : > { %v5997_v9 = vpop.f32.mrf.mxu1  ;;  %v5999_v22 = vpop.f32.mrf.mxu0 }
 0x1c7   : > { %6299 = vst [vmem:[#allocation38_spill] sm:$0xff] %v5997_v9  ;;  %6300 = vst [vmem:[#allocation39_spill] sm:$0xff] %v5999_v22  ;;  %v2821_v3 = vadd.f32 %v5891_v15, %v2385_v55  ;;  %v2389_v55 = vadd.f32 %v5905_v41, %v5808_v11  ;;  %v2387_v11 = vadd.f32 %v5909_v8, %v5811_v60  ;;  %v3398_v41 = vld [vmem:[%s6021_s29 + $0x18] sm:$0xff] }
 0x1c8   : > { %v6002_v43 = vpop.f32.mrf.mxu1  ;;  %v6004_v46 = vpop.f32.mrf.mxu0 }
 0x1c9   : > { %6301 = vst [vmem:[#allocation40_spill] sm:$0xff] %v6004_v46 }
 0x1ca   : > { %v6007_v6 = vpop.f32.mrf.mxu1  ;;  %v6009_v25 = vpop.f32.mrf.mxu0 }
 0x1cb   : > { %6302 = vst [vmem:[#allocation41_spill] sm:$0xff] %v6007_v6  ;;  %6303 = vst [vmem:[#allocation42_spill] sm:$0xff] %v6009_v25  ;;  %v2824_v6 = vadd.f32 %v5899_v7, %v2388_v27  ;;  %v2822_v7 = vadd.f32 %v5903_v18, %v2386_v4  ;;  %v3396_v18 = vld [vmem:[%s6021_s29 + $0x8] sm:$0xff] }
 0x1cc   : > { %v4287_v9 = vpop.f32.mrf.mxu1  ;;  %v4335_v22 = vpop.f32.mrf.mxu0 }
 0x1cd   : > { %v3073_v46 = vadd.f32 %v4287_v9, %v2820_v53 }
 0x1ce   : > { %v2944_v33 = vpop.f32.mrf.mxu1  ;;  %v3197_v58 = vpop.f32.mrf.mxu0 }
 0x1cf   : > { %v3326_v53 = vadd.f32 %v4335_v22, %v3073_v46  ;;  %v3071_v9 = vadd.f32 %v2944_v33, %v2818_v48 }
 0x1d0   : > { %v4288_v5 = vpop.f32.mrf.mxu1  ;;  %v4336_v61 = vpop.f32.mrf.mxu0 }
 0x1d1   : > { %v3365_v36 = vadd.f32 %v6028_v0, %v3326_v53  ;;  %v3324_v24 = vadd.f32 %v3197_v58, %v3071_v9  ;;  %v3074_v25 = vadd.f32 %v4288_v5, %v2821_v3  ;;  %v2392_v9 = vadd.f32 %v5913_v2, %v5814_v17 }
 0x1d2   : > { %v2947_v46 = vpop.f32.mrf.mxu1  ;;  %v3200_v22 = vpop.f32.mrf.mxu0 }
 0x1d3   : > { %v3429_v15 = vadd.f32 %v3397_v21, %v3365_v36  ;;  %v3363_v1 = vadd.f32 %v6028_v0, %v3324_v24  ;;  %v3327_v45 = vadd.f32 %v4336_v61, %v3074_v25  ;;  %v3072_v48 = vadd.f32 %v2947_v46, %v2819_v50 }
 0x1d4   : > { %v4291_v49 = vpop.f32.mrf.mxu1  ;;  %v4339_v27 = vpop.f32.mrf.mxu0  ;;  %v2825_v25 = vadd.f32 %v5907_v51, %v2389_v55  ;;  %v2823_v50 = vadd.f32 %v5911_v16, %v2387_v11  ;;  %v3401_v51 = vld [vmem:[%s6021_s29 + $0x30] sm:$0xff]  ;;  %v2828_v46 = vadd.f32 %v5915_v12, %v2392_v9  ;;  %v3399_v16 = vld [vmem:[%s6021_s29 + $0x20] sm:$0xff]  ;;  %v2391_v11 = vadd.f32 %v5925_v29, %v5823_v63  ;;  %v3402_v12 = vld [vmem:[%s6021_s29 + $0x38] sm:$0xff] }
 0x1d5   : > { %3461 = vst [vmem:[%s6042_s7 + $0x10] sm:$0xff] %v3429_v15  ;;  %v3427_v33 = vadd.f32 %v3395_v62, %v3363_v1  ;;  %v3366_v58 = vadd.f32 %v6028_v0, %v3327_v45  ;;  %v3325_v3 = vadd.f32 %v3200_v22, %v3072_v48  ;;  %v3077_v53 = vadd.f32 %v4291_v49, %v2824_v6 }
 0x1d6   : > { %v2960_v4 = vpop.f32.mrf.mxu1  ;;  %v3213_v21 = vpop.f32.mrf.mxu0  ;;  %v2390_v6 = vadd.f32 %v5917_v38, %v5817_v20  ;;  %v2393_v22 = vadd.f32 %v5921_v13, %v5820_v26 }
 0x1d7   : > { %3459 = vst [vmem:[%s6042_s7] sm:$0xff] %v3427_v33  ;;  %v3430_v60 = vadd.f32 %v3398_v41, %v3366_v58  ;;  %v3364_v8 = vadd.f32 %v6028_v0, %v3325_v3  ;;  %v3330_v5 = vadd.f32 %v4339_v27, %v3077_v53  ;;  %v3075_v61 = vadd.f32 %v2960_v4, %v2822_v7 }
 0x1d8   : > { %v4292_v36 = vpop.f32.mrf.mxu1  ;;  %v4340_v24 = vpop.f32.mrf.mxu0  ;;  %v2826_v7 = vadd.f32 %v5919_v14, %v2390_v6  ;;  %v2829_v58 = vadd.f32 %v5923_v31, %v2393_v22  ;;  %v2396_v3 = vadd.f32 %v5929_v40, %v5826_v19  ;;  %v3400_v14 = vld [vmem:[%s6021_s29 + $0x28] sm:$0xff]  ;;  %v2827_v4 = vadd.f32 %v5927_v28, %v2391_v11  ;;  %v3405_v31 = vld [vmem:[%s6021_s29 + $0x50] sm:$0xff]  ;;  %v3403_v28 = vld [vmem:[%s6021_s29 + $0x40] sm:$0xff] }
 0x1d9   : > { %3462 = vst [vmem:[%s6042_s7 + $0x18] sm:$0xff] %v3430_v60  ;;  %v3428_v17 = vadd.f32 %v3396_v18, %v3364_v8  ;;  %v3369_v2 = vadd.f32 %v6028_v0, %v3330_v5  ;;  %v3328_v55 = vadd.f32 %v3213_v21, %v3075_v61  ;;  %v3078_v62 = vadd.f32 %v4292_v36, %v2825_v25 }
 0x1da   : > { %v2963_v15 = vpop.f32.mrf.mxu1  ;;  %v3216_v1 = vpop.f32.mrf.mxu0  ;;  %v2394_v21 = vadd.f32 %v5933_v52, %v5829_v34  ;;  %v2397_v6 = vadd.f32 %v5937_v23, %v5832_v32  ;;  %v2398_v11 = vadd.f32 %v5949_v39, %v5841_v42 }
 0x1db   : > { %3460 = vst [vmem:[%s6042_s7 + $0x8] sm:$0xff] %v3428_v17  ;;  %v3433_v20 = vadd.f32 %v3401_v51, %v3369_v2  ;;  %v3367_v38 = vadd.f32 %v6028_v0, %v3328_v55  ;;  %v3331_v45 = vadd.f32 %v4340_v24, %v3078_v62  ;;  %v3076_v48 = vadd.f32 %v2963_v15, %v2823_v50 }
 0x1dc   : > { %v4295_v41 = vpop.f32.mrf.mxu1  ;;  %v4343_v49 = vpop.f32.mrf.mxu0  ;;  %v2832_v50 = vadd.f32 %v5931_v35, %v2396_v3  ;;  %v2830_v2 = vadd.f32 %v5935_v30, %v2394_v21  ;;  %v2395_v55 = vadd.f32 %v5941_v37, %v5835_v56  ;;  %v3406_v35 = vld [vmem:[%s6021_s29 + $0x58] sm:$0xff]  ;;  %v2833_v15 = vadd.f32 %v5939_v47, %v2397_v6  ;;  %v3404_v30 = vld [vmem:[%s6021_s29 + $0x48] sm:$0xff]  ;;  %v3409_v47 = vld [vmem:[%s6021_s29 + $0x70] sm:$0xff] }
 0x1dd   : > { %3465 = vst [vmem:[%s6042_s7 + $0x30] sm:$0xff] %v3433_v20  ;;  %v3431_v26 = vadd.f32 %v3399_v16, %v3367_v38  ;;  %v3370_v13 = vadd.f32 %v6028_v0, %v3331_v45  ;;  %v3329_v27 = vadd.f32 %v3216_v1, %v3076_v48  ;;  %v3081_v33 = vadd.f32 %v4295_v41, %v2828_v46  ;;  %v6311_v6 = vld [vmem:[#allocation21_spill] sm:$0xff] }
 0x1de   : > { %v2976_v53 = vpop.f32.mrf.mxu1  ;;  %v3229_v25 = vpop.f32.mrf.mxu0  ;;  %v2400_v1 = vadd.f32 %v5945_v59, %v5838_v44 }
 0x1df   : > { %3463 = vst [vmem:[%s6042_s7 + $0x20] sm:$0xff] %v3431_v26  ;;  %v3434_v63 = vadd.f32 %v3402_v12, %v3370_v13  ;;  %v3368_v29 = vadd.f32 %v6028_v0, %v3329_v27  ;;  %v3334_v9 = vadd.f32 %v4343_v49, %v3081_v33  ;;  %v3079_v18 = vadd.f32 %v2976_v53, %v2826_v7  ;;  %v6304_v27 = vld [vmem:[#allocation3_spill] sm:$0xff]  ;;  %v6305_v33 = vld [vmem:[#allocation17_spill] sm:$0xff] }
 0x1e0   : > { %v4296_v60 = vpop.f32.mrf.mxu1  ;;  %v4344_v8 = vpop.f32.mrf.mxu0  ;;  %v2831_v7 = vadd.f32 %v5943_v54, %v2395_v55  ;;  %v2836_v13 = vadd.f32 %v5947_v10, %v2400_v1  ;;  %v3407_v54 = vld [vmem:[%s6021_s29 + $0x60] sm:$0xff]  ;;  %v3410_v10 = vld [vmem:[%s6021_s29 + $0x78] sm:$0xff]  ;;  %v6312_v55 = vld [vmem:[#allocation20_spill] sm:$0xff] }
 0x1e1   : > { %3466 = vst [vmem:[%s6042_s7 + $0x38] sm:$0xff] %v3434_v63  ;;  %v3432_v19 = vadd.f32 %v3400_v14, %v3368_v29  ;;  %v3373_v40 = vadd.f32 %v6028_v0, %v3334_v9  ;;  %v3332_v5 = vadd.f32 %v3229_v25, %v3079_v18  ;;  %v3082_v61 = vadd.f32 %v4296_v60, %v2829_v58  ;;  %v6306_v63 = vld [vmem:[#allocation16_spill] sm:$0xff]  ;;  %v6307_v9 = vld [vmem:[#allocation2_spill] sm:$0xff]  ;;  %v6308_v18 = vld [vmem:[#allocation19_spill] sm:$0xff] }
 0x1e2   : > { %v2979_v51 = vpop.f32.mrf.mxu1  ;;  %v3232_v36 = vpop.f32.mrf.mxu0  ;;  %v2401_v58 = vadd.f32 %v6305_v33, %v6304_v27  ;;  %v2834_v29 = vadd.f32 %v6306_v63, %v2398_v11  ;;  %v6320_v27 = vld [vmem:[#allocation27_spill] sm:$0xff] }
 0x1e3   : > { %3464 = vst [vmem:[%s6042_s7 + $0x28] sm:$0xff] %v3432_v19  ;;  %v3437_v34 = vadd.f32 %v3405_v31, %v3373_v40  ;;  %v3371_v52 = vadd.f32 %v6028_v0, %v3332_v5  ;;  %v3335_v24 = vadd.f32 %v4344_v8, %v3082_v61  ;;  %v3080_v17 = vadd.f32 %v2979_v51, %v2827_v4  ;;  %v6309_v5 = vld [vmem:[#allocation18_spill] sm:$0xff]  ;;  %v3408_v51 = vld [vmem:[%s6021_s29 + $0x68] sm:$0xff] }
 0x1e4   : > { %v4299_v62 = vpop.f32.mrf.mxu1  ;;  %v4347_v46 = vpop.f32.mrf.mxu0  ;;  %v2399_v4 = vadd.f32 %v6308_v18, %v6307_v9  ;;  %v2837_v61 = vadd.f32 %v6309_v5, %v2401_v58  ;;  %v3414_v58 = vld [vmem:[%s6021_s29 + $0x98] sm:$0xff] }
 0x1e5   : > { %3469 = vst [vmem:[%s6042_s7 + $0x50] sm:$0xff] %v3437_v34  ;;  %v3435_v32 = vadd.f32 %v3403_v28, %v3371_v52  ;;  %v3374_v23 = vadd.f32 %v6028_v0, %v3335_v24  ;;  %v3333_v22 = vadd.f32 %v3232_v36, %v3080_v17  ;;  %v3085_v16 = vadd.f32 %v4299_v62, %v2832_v50  ;;  %v6310_v50 = vld [vmem:[#allocation6_spill] sm:$0xff]  ;;  %v6313_v62 = vld [vmem:[#allocation5_spill] sm:$0xff] }
 0x1e6   : > { %v2992_v20 = vpop.f32.mrf.mxu1  ;;  %v3245_v38 = vpop.f32.mrf.mxu0  ;;  %v2404_v28 = vadd.f32 %v6311_v6, %v6310_v50  ;;  %v6323_v9 = vld [vmem:[#allocation29_spill] sm:$0xff]  ;;  %v6326_v50 = vld [vmem:[#allocation31_spill] sm:$0xff] }
 0x1e7   : > { %3467 = vst [vmem:[%s6042_s7 + $0x40] sm:$0xff] %v3435_v32  ;;  %v3438_v56 = vadd.f32 %v3406_v35, %v3374_v23  ;;  %v3372_v37 = vadd.f32 %v6028_v0, %v3333_v22  ;;  %v3338_v45 = vadd.f32 %v4347_v46, %v3085_v16  ;;  %v3083_v48 = vadd.f32 %v2992_v20, %v2830_v2  ;;  %v6314_v46 = vld [vmem:[#allocation23_spill] sm:$0xff]  ;;  %v3413_v23 = vld [vmem:[%s6021_s29 + $0x90] sm:$0xff] }
 0x1e8   : > { %v4300_v12 = vpop.f32.mrf.mxu1  ;;  %v4348_v41 = vpop.f32.mrf.mxu0  ;;  %v2835_v35 = vadd.f32 %v6312_v55, %v2399_v4  ;;  %v2402_v32 = vadd.f32 %v6314_v46, %v6313_v62  ;;  %v3412_v4 = vld [vmem:[%s6021_s29 + $0x88] sm:$0xff]  ;;  %v6329_v62 = vld [vmem:[#allocation33_spill] sm:$0xff] }
 0x1e9   : > { %3470 = vst [vmem:[%s6042_s7 + $0x58] sm:$0xff] %v3438_v56  ;;  %v3436_v44 = vadd.f32 %v3404_v30, %v3372_v37  ;;  %v3377_v59 = vadd.f32 %v6028_v0, %v3338_v45  ;;  %v3336_v49 = vadd.f32 %v3245_v38, %v3083_v48  ;;  %v3086_v26 = vadd.f32 %v4300_v12, %v2833_v15  ;;  %v6315_v38 = vld [vmem:[#allocation22_spill] sm:$0xff]  ;;  %v6316_v37 = vld [vmem:[#allocation4_spill] sm:$0xff]  ;;  %v6317_v45 = vld [vmem:[#allocation25_spill] sm:$0xff] }
 0x1ea   : > { %v2995_v3 = vpop.f32.mrf.mxu1  ;;  %v3248_v14 = vpop.f32.mrf.mxu0  ;;  %v2840_v56 = vadd.f32 %v6315_v38, %v2404_v28  ;;  %v2405_v48 = vadd.f32 %v6317_v45, %v6316_v37  ;;  %v3417_v28 = vld [vmem:[%s6021_s29 + $0xb0] sm:$0xff]  ;;  %v6332_v37 = vld [vmem:[#allocation35_spill] sm:$0xff] }
 0x1eb   : > { %3468 = vst [vmem:[%s6042_s7 + $0x48] sm:$0xff] %v3436_v44  ;;  %v3441_v42 = vadd.f32 %v3409_v47, %v3377_v59  ;;  %v3375_v39 = vadd.f32 %v6028_v0, %v3336_v49  ;;  %v3339_v53 = vadd.f32 %v4348_v41, %v3086_v26  ;;  %v3084_v25 = vadd.f32 %v2995_v3, %v2831_v7  ;;  %v3411_v7 = vld [vmem:[%s6021_s29 + $0x80] sm:$0xff]  ;;  %v6318_v49 = vld [vmem:[#allocation24_spill] sm:$0xff] }
 0x1ec   : > { %v4303_v21 = vpop.f32.mrf.mxu1  ;;  %v4351_v31 = vpop.f32.mrf.mxu0  ;;  %v2838_v26 = vadd.f32 %v6318_v49, %v2402_v32  ;;  %v3415_v32 = vld [vmem:[%s6021_s29 + $0xa0] sm:$0xff] }
 0x1ed   : > { %3473 = vst [vmem:[%s6042_s7 + $0x70] sm:$0xff] %v3441_v42  ;;  %v3439_v60 = vadd.f32 %v3407_v54, %v3375_v39  ;;  %v3378_v8 = vadd.f32 %v6028_v0, %v3339_v53  ;;  %v3337_v19 = vadd.f32 %v3248_v14, %v3084_v25  ;;  %v3089_v40 = vadd.f32 %v4303_v21, %v2836_v13  ;;  %v6319_v13 = vld [vmem:[#allocation9_spill] sm:$0xff]  ;;  %v6321_v25 = vld [vmem:[#allocation26_spill] sm:$0xff] }
 0x1ee   : > { %v3008_v36 = vpop.f32.mrf.mxu1  ;;  %v3261_v34 = vpop.f32.mrf.mxu0  ;;  %v2403_v33 = vadd.f32 %v6320_v27, %v6319_v13  ;;  %v2841_v63 = vadd.f32 %v6321_v25, %v2405_v48  ;;  %v3418_v48 = vld [vmem:[%s6021_s29 + $0xb8] sm:$0xff]  ;;  %v3416_v27 = vld [vmem:[%s6021_s29 + $0xa8] sm:$0xff] }
 0x1ef   : > { %3471 = vst [vmem:[%s6042_s7 + $0x60] sm:$0xff] %v3439_v60  ;;  %v3442_v52 = vadd.f32 %v3410_v10, %v3378_v8  ;;  %v3376_v24 = vadd.f32 %v6028_v0, %v3337_v19  ;;  %v3342_v17 = vadd.f32 %v4351_v31, %v3089_v40  ;;  %v3087_v2 = vadd.f32 %v3008_v36, %v2834_v29  ;;  %v6322_v29 = vld [vmem:[#allocation8_spill] sm:$0xff]  ;;  %v6336_v25 = vld [vmem:[#allocation13_spill] sm:$0xff] }
 0x1f0   : > { %v4304_v22 = vpop.f32.mrf.mxu1  ;;  %v4352_v16 = vpop.f32.mrf.mxu0  ;;  %v2408_v18 = vadd.f32 %v6323_v9, %v6322_v29  ;;  %v6324_v40 = vld [vmem:[#allocation28_spill] sm:$0xff] }
 0x1f1   : > { %3474 = vst [vmem:[%s6042_s7 + $0x78] sm:$0xff] %v3442_v52  ;;  %v3440_v15 = vadd.f32 %v3408_v51, %v3376_v24  ;;  %v3381_v1 = vadd.f32 %v6028_v0, %v3342_v17  ;;  %v3340_v30 = vadd.f32 %v3261_v34, %v3087_v2  ;;  %v3090_v20 = vadd.f32 %v4304_v22, %v2837_v61  ;;  %v6325_v61 = vld [vmem:[#allocation7_spill] sm:$0xff]  ;;  %v6327_v2 = vld [vmem:[#allocation30_spill] sm:$0xff]  ;;  %v3421_v9 = vld [vmem:[%s6021_s29 + $0xd0] sm:$0xff] }
 0x1f2   : > { %v3011_v11 = vpop.f32.mrf.mxu1  ;;  %v3264_v47 = vpop.f32.mrf.mxu0  ;;  %v2839_v5 = vadd.f32 %v6324_v40, %v2403_v33  ;;  %v2406_v6 = vadd.f32 %v6326_v50, %v6325_v61  ;;  %v2844_v55 = vadd.f32 %v6327_v2, %v2408_v18 }
 0x1f3   : > { %3472 = vst [vmem:[%s6042_s7 + $0x68] sm:$0xff] %v3440_v15  ;;  %v3445_v12 = vadd.f32 %v3413_v23, %v3381_v1  ;;  %v3379_v41 = vadd.f32 %v6028_v0, %v3340_v30  ;;  %v3343_v44 = vadd.f32 %v4352_v16, %v3090_v20  ;;  %v3088_v59 = vadd.f32 %v3011_v11, %v2835_v35  ;;  %v6328_v35 = vld [vmem:[#allocation11_spill] sm:$0xff]  ;;  %v6330_v20 = vld [vmem:[#allocation32_spill] sm:$0xff] }
 0x1f4   : > { %v4307_v54 = vpop.f32.mrf.mxu1  ;;  %v4355_v3 = vpop.f32.mrf.mxu0  ;;  %v2409_v46 = vadd.f32 %v6329_v62, %v6328_v35  ;;  %v2842_v38 = vadd.f32 %v6330_v20, %v2406_v6 }
 0x1f5   : > { %3477 = vst [vmem:[%s6042_s7 + $0x90] sm:$0xff] %v3445_v12  ;;  %v3443_v14 = vadd.f32 %v3411_v7, %v3379_v41  ;;  %v3382_v42 = vadd.f32 %v6028_v0, %v3343_v44  ;;  %v3341_v39 = vadd.f32 %v3264_v47, %v3088_v59  ;;  %v3093_v53 = vadd.f32 %v4307_v54, %v2840_v56  ;;  %v6331_v56 = vld [vmem:[#allocation10_spill] sm:$0xff] }
 0x1f6   : > { %v3024_v10 = vpop.f32.mrf.mxu1  ;;  %v3277_v21 = vpop.f32.mrf.mxu0  ;;  %v2407_v45 = vadd.f32 %v6332_v37, %v6331_v56  ;;  %v6333_v59 = vld [vmem:[#allocation34_spill] sm:$0xff] }
 0x1f7   : > { %3475 = vst [vmem:[%s6042_s7 + $0x80] sm:$0xff] %v3443_v14  ;;  %v3446_v31 = vadd.f32 %v3414_v58, %v3382_v42  ;;  %v3380_v60 = vadd.f32 %v6028_v0, %v3341_v39  ;;  %v3346_v8 = vadd.f32 %v4355_v3, %v3093_v53  ;;  %v3091_v19 = vadd.f32 %v3024_v10, %v2838_v26  ;;  %v6334_v26 = vld [vmem:[#allocation12_spill] sm:$0xff] }
 0x1f8   : > { %v4308_v51 = vpop.f32.mrf.mxu1  ;;  %v4356_v36 = vpop.f32.mrf.mxu0  ;;  %v2845_v49 = vadd.f32 %v6333_v59, %v2409_v46  ;;  %v2412_v13 = vadd.f32 %v5993_v57, %v6334_v26  ;;  %v6335_v39 = vld [vmem:[#allocation36_spill] sm:$0xff] }
 0x1f9   : > { %3478 = vst [vmem:[%s6042_s7 + $0x98] sm:$0xff] %v3446_v31  ;;  %v3444_v34 = vadd.f32 %v3412_v4, %v3380_v60  ;;  %v3385_v52 = vadd.f32 %v6028_v0, %v3346_v8  ;;  %v3344_v24 = vadd.f32 %v3277_v21, %v3091_v19  ;;  %v3094_v17 = vadd.f32 %v4308_v51, %v2841_v63  ;;  %v6337_v63 = vld [vmem:[#allocation38_spill] sm:$0xff]  ;;  %v6338_v60 = vld [vmem:[#allocation37_spill] sm:$0xff] }
 0x1fa   : > { %v3027_v23 = vpop.f32.mrf.mxu1  ;;  %v3280_v22 = vpop.f32.mrf.mxu0  ;;  %v2843_v53 = vadd.f32 %v6335_v39, %v2407_v45  ;;  %v2410_v29 = vadd.f32 %v6337_v63, %v6336_v25  ;;  %v2848_v8 = vadd.f32 %v6338_v60, %v2412_v13  ;;  %v6339_v19 = vld [vmem:[#allocation14_spill] sm:$0xff] }
 0x1fb   : > { %3476 = vst [vmem:[%s6042_s7 + $0x88] sm:$0xff] %v3444_v34  ;;  %v3449_v16 = vadd.f32 %v3417_v28, %v3385_v52  ;;  %v3383_v15 = vadd.f32 %v6028_v0, %v3344_v24  ;;  %v3347_v1 = vadd.f32 %v4356_v36, %v3094_v17  ;;  %v3092_v30 = vadd.f32 %v3027_v23, %v2839_v5  ;;  %v3419_v5 = vld [vmem:[%s6021_s29 + $0xc0] sm:$0xff]  ;;  %v6340_v34 = vld [vmem:[#allocation39_spill] sm:$0xff]  ;;  %v6342_v17 = vld [vmem:[#allocation41_spill] sm:$0xff] }
 0x1fc   : > { %v4311_v7 = vpop.f32.mrf.mxu1  ;;  %v4359_v11 = vpop.f32.mrf.mxu0  ;;  %v2413_v40 = vadd.f32 %v6002_v43, %v6339_v19  ;;  %v2846_v52 = vadd.f32 %v6340_v34, %v2410_v29  ;;  %v6341_v24 = vld [vmem:[#allocation15_spill] sm:$0xff]  ;;  %v6344_v45 = vld [vmem:[#allocation42_spill] sm:$0xff] }
 0x1fd   : > { %3481 = vst [vmem:[%s6042_s7 + $0xb0] sm:$0xff] %v3449_v16  ;;  %v3447_v47 = vadd.f32 %v3415_v32, %v3383_v15  ;;  %v3386_v12 = vadd.f32 %v6028_v0, %v3347_v1  ;;  %v3345_v41 = vadd.f32 %v3280_v22, %v3092_v30  ;;  %v3097_v44 = vadd.f32 %v4311_v7, %v2844_v55  ;;  %v3422_v55 = vld [vmem:[%s6021_s29 + $0xd8] sm:$0xff]  ;;  %v6343_v22 = vld [vmem:[#allocation40_spill] sm:$0xff]  ;;  %v3420_v15 = vld [vmem:[%s6021_s29 + $0xc8] sm:$0xff] }
 0x1fe   : > { %v3040_v33 = vpop.f32.mrf.mxu1  ;;  %v3293_v58 = vpop.f32.mrf.mxu0  ;;  %v2411_v2 = vadd.f32 %v6342_v17, %v6341_v24  ;;  %v2849_v16 = vadd.f32 %v6343_v22, %v2413_v40  ;;  %v3425_v7 = vld [vmem:[%s6021_s29 + $0xf0] sm:$0xff] }
 0x1ff   : > { %3479 = vst [vmem:[%s6042_s7 + $0xa0] sm:$0xff] %v3447_v47  ;;  %v3450_v54 = vadd.f32 %v3418_v48, %v3386_v12  ;;  %v3384_v3 = vadd.f32 %v6028_v0, %v3345_v41  ;;  %v3350_v14 = vadd.f32 %v4359_v11, %v3097_v44  ;;  %v3095_v42 = vadd.f32 %v3040_v33, %v2842_v38 }
 0x200   : > { %v4312_v18 = vpop.f32.mrf.mxu1  ;;  %v4360_v4 = vpop.f32.mrf.mxu0  ;;  %v2847_v48 = vadd.f32 %v6344_v45, %v2411_v2 }
 0x201   : > { %3482 = vst [vmem:[%s6042_s7 + $0xb8] sm:$0xff] %v3450_v54  ;;  %v3448_v57 = vadd.f32 %v3416_v27, %v3384_v3  ;;  %v3389_v10 = vadd.f32 %v6028_v0, %v3350_v14  ;;  %v3348_v21 = vadd.f32 %v3293_v58, %v3095_v42  ;;  %v3098_v31 = vadd.f32 %v4312_v18, %v2845_v49  ;;  %v3423_v49 = vld [vmem:[%s6021_s29 + $0xe0] sm:$0xff]  ;;  %v3426_v54 = vld [vmem:[%s6021_s29 + $0xf8] sm:$0xff] }
 0x202   : > { %v3043_v61 = vpop.f32.mrf.mxu1  ;;  %v3296_v50 = vpop.f32.mrf.mxu0 }
 0x203   : > { %3480 = vst [vmem:[%s6042_s7 + $0xa8] sm:$0xff] %v3448_v57  ;;  %v3453_v6 = vadd.f32 %v3421_v9, %v3389_v10  ;;  %v3387_v28 = vadd.f32 %v6028_v0, %v3348_v21  ;;  %v3351_v51 = vadd.f32 %v4360_v4, %v3098_v31  ;;  %v3096_v36 = vadd.f32 %v3043_v61, %v2843_v53  ;;  %v3424_v53 = vld [vmem:[%s6021_s29 + $0xe8] sm:$0xff] }
 0x204   : > { %v4315_v35 = vpop.f32.mrf.mxu1  ;;  %v4363_v62 = vpop.f32.mrf.mxu0 }
 0x205   : > { %3485 = vst [vmem:[%s6042_s7 + $0xd0] sm:$0xff] %v3453_v6  ;;  %v3451_v43 = vadd.f32 %v3419_v5, %v3387_v28  ;;  %v3390_v46 = vadd.f32 %v6028_v0, %v3351_v51  ;;  %v3349_v32 = vadd.f32 %v3296_v50, %v3096_v36  ;;  %v3101_v23 = vadd.f32 %v4315_v35, %v2848_v8 }
 0x206   : > { %v3056_v1 = vpop.f32.mrf.mxu1  ;;  %v3309_v30 = vpop.f32.mrf.mxu0 }
 0x207   : > { %3483 = vst [vmem:[%s6042_s7 + $0xc0] sm:$0xff] %v3451_v43  ;;  %v3454_v20 = vadd.f32 %v3422_v55, %v3390_v46  ;;  %v3388_v38 = vadd.f32 %v6028_v0, %v3349_v32  ;;  %v3354_v56 = vadd.f32 %v4363_v62, %v3101_v23  ;;  %v3099_v37 = vadd.f32 %v3056_v1, %v2846_v52 }
 0x208   : > { %v4316_v11 = vpop.f32.mrf.mxu1  ;;  %v4364_v47 = vpop.f32.mrf.mxu0 }
 0x209   : > { %3486 = vst [vmem:[%s6042_s7 + $0xd8] sm:$0xff] %v3454_v20  ;;  %v3452_v12 = vadd.f32 %v3420_v15, %v3388_v38  ;;  %v3393_v41 = vadd.f32 %v6028_v0, %v3354_v56  ;;  %v3352_v44 = vadd.f32 %v3309_v30, %v3099_v37  ;;  %v3102_v59 = vadd.f32 %v4316_v11, %v2849_v16 }
 0x20a   : > { %v3059_v26 = vpop.f32.mrf.mxu1  ;;  %v3312_v3 = vpop.f32.mrf.mxu0 }
 0x20b   : > { %3484 = vst [vmem:[%s6042_s7 + $0xc8] sm:$0xff] %v3452_v12  ;;  %v3457_v13 = vadd.f32 %v3425_v7, %v3393_v41  ;;  %v3391_v27 = vadd.f32 %v6028_v0, %v3352_v44  ;;  %v3355_v33 = vadd.f32 %v4364_v47, %v3102_v59  ;;  %v3100_v58 = vadd.f32 %v3059_v26, %v2847_v48 }
 0x20d   : > { %3489 = vst [vmem:[%s6042_s7 + $0xf0] sm:$0xff] %v3457_v13  ;;  %v3455_v14 = vadd.f32 %v3423_v49, %v3391_v27  ;;  %v3394_v42 = vadd.f32 %v6028_v0, %v3355_v33  ;;  %v3353_v39 = vadd.f32 %v3312_v3, %v3100_v58 }
 0x20f   : > { %3487 = vst [vmem:[%s6042_s7 + $0xe0] sm:$0xff] %v3455_v14  ;;  %v3458_v25 = vadd.f32 %v3426_v54, %v3394_v42  ;;  %v3392_v63 = vadd.f32 %v6028_v0, %v3353_v39 }
 0x211   : > { %3490 = vst [vmem:[%s6042_s7 + $0xf8] sm:$0xff] %v3458_v25  ;;  %v3456_v29 = vadd.f32 %v3424_v53, %v3392_v63 }
 0x213   : > { %3488 = vst [vmem:[%s6042_s7 + $0xe8] sm:$0xff] %v3456_v29 }
 0x214 PF: > { %s14_s15 = sadd.s32 1, %s4518_s15  }
 0x215   : > { %p11_p4 = scmp.ge.s32.totalorder %s14_s15, 4  }
 0x217   :  { %13 = sbr.rel (!%p11_p4) target bundleno = 1 (0x1), region = 69 }

</bundles_post_ra>
